<compile_context>
chip_gen: v5e
topology: v5e:2x2
jax: 0.10.0
libtpu: 0.0.40
codegen_flags: <defaults>
</compile_context>

<pallas_src>
import functools

import jax
import jax.numpy as jnp
from jax.experimental import pallas as pl
from jax.experimental.pallas import tpu as pltpu


# ----------------------------------------------------------------------------
# Fused conv3x3 (+bias, ReLU) -> maxpool 2x2 -> dropout(0.5), one image per grid step.
# ----------------------------------------------------------------------------
def _conv_pool_drop_kernel(h, w, xcol_ref, w_ref, b_ref, u_ref, o_ref):
    # xcol_ref: (1, H*W, 9*Cin) bf16   im2col rows, ordered r = y*W + (x%2)*(W//2) + x//2
    # w_ref   : (9*Cin, Cout)   bf16   HWIO weights reshaped to the im2col K layout
    # b_ref   : (1, Cout)       f32
    # u_ref   : (1, (H//2)*(W//2), Cout) f32   uniform(0,1) numbers for the dropout mask
    # o_ref   : (1, (H//2)*(W//2), Cout) f32   pooled+dropped output, row = y2*(W//2) + x2
    c_out = o_ref.shape[-1]

    # Single MXU push per stage: M = H*W rows, K = 9*Cin (vs 9 tiny-K dots).
    acc = jnp.dot(xcol_ref[0], w_ref[...], preferred_element_type=jnp.float32)
    acc = jnp.maximum(acc + b_ref[...], 0.0)                        # bias + ReLU

    # 2x2 max-pool. Thanks to the row ordering, the 4 pool partners differ only in
    # leading axes after a sublane-aligned reshape: (h2, dy, dx, w2, C).
    y = acc.reshape(h // 2, 2, 2, w // 2, c_out)
    pooled = jnp.maximum(jnp.maximum(y[:, 0, 0], y[:, 0, 1]),
                         jnp.maximum(y[:, 1, 0], y[:, 1, 1]))       # (H//2, W//2, C)
    pooled = pooled.reshape((h // 2) * (w // 2), c_out)

    # Inverted dropout, p = 0.5 (nn.Dropout(0.5) built inside forward() is always
    # training-mode).
    # TODO(synk): torch's bernoulli RNG stream cannot be replicated bit-exactly; the
    # mask comes from jax.random uniforms generated in the wrapper instead.
    keep = u_ref[0] >= 0.5
    o_ref[0] = jnp.where(keep, pooled * 2.0, 0.0).astype(o_ref.dtype)


def _im2col_3x3(x_nhwc):
    """(B, H, W, C) -> (B, H*W, 9C) patches for a stride-1, pad-1 3x3 conv.

    Row ordering is r = y*W + (x % 2)*(W//2) + (x // 2) so the Pallas kernel can do the
    2x2 max-pool with leading-axis maxes only. K ordering matches w.reshape(9*Cin, Cout).
    """
    b, h, w, c = x_nhwc.shape
    xp = jnp.pad(x_nhwc, ((0, 0), (1, 1), (1, 1), (0, 0)))
    cols = [xp[:, dh:dh + h, dw:dw + w, :] for dh in range(3) for dw in range(3)]
    xcol = jnp.concatenate(cols, axis=-1)                           # (B, H, W, 9C)
    xcol = xcol.reshape(b, h, w // 2, 2, 9 * c).transpose(0, 1, 3, 2, 4)
    return xcol.reshape(b, h * w, 9 * c)


def conv_relu_pool_drop(x_nhwc, w_hwio, bias, drop_key):
    """One CNN stage: conv3x3(pad=1) + ReLU + maxpool(2) + dropout(0.5), fused in Pallas."""
    b, h, w, c_in = x_nhwc.shape
    c_out = w_hwio.shape[-1]
    assert h % 2 == 0 and w % 2 == 0 and (w // 2) % 8 == 0
    h2, w2 = h // 2, w // 2

    xcol = _im2col_3x3(x_nhwc).astype(jnp.bfloat16)                 # (B, H*W, 9*Cin)
    wcol = w_hwio.reshape(9 * c_in, c_out).astype(jnp.bfloat16)     # (9*Cin, Cout)
    unif = jax.random.uniform(drop_key, (b, h2 * w2, c_out), jnp.float32)

    out = pl.pallas_call(
        functools.partial(_conv_pool_drop_kernel, h, w),
        out_shape=jax.ShapeDtypeStruct((b, h2 * w2, c_out), jnp.float32),
        grid=(b,),
        in_specs=[
            pl.BlockSpec((1, h * w, 9 * c_in), lambda bi: (bi, 0, 0)),
            pl.BlockSpec((9 * c_in, c_out), lambda bi: (0, 0)),
            pl.BlockSpec((1, c_out), lambda bi: (0, 0)),
            pl.BlockSpec((1, h2 * w2, c_out), lambda bi: (bi, 0, 0)),
        ],
        out_specs=pl.BlockSpec((1, h2 * w2, c_out), lambda bi: (bi, 0, 0)),
        compiler_params=pltpu.CompilerParams(
            dimension_semantics=("parallel",),
        ),
    )(xcol, wcol, bias.reshape(1, c_out), unif)
    return out.reshape(b, h2, w2, c_out)


# ----------------------------------------------------------------------------
# Parameters and forward pass.
# ----------------------------------------------------------------------------
def init_params(key):
    def uniform(k, shape, fan_in):
        bound = 1.0 / jnp.sqrt(jnp.float32(fan_in))
        return jax.random.uniform(k, shape, jnp.float32, -bound, bound)

    ks = jax.random.split(key, 8)
    return {
        # HWIO conv weights (torch stores OIHW; shapes/distributions are equivalent).
        "w1": uniform(ks[0], (3, 3, 3, 16), 3 * 3 * 3),
        "b1": uniform(ks[1], (16,), 3 * 3 * 3),
        "w2": uniform(ks[2], (3, 3, 16, 32), 16 * 3 * 3),
        "b2": uniform(ks[3], (32,), 16 * 3 * 3),
        "w3": uniform(ks[4], (3, 3, 32, 64), 32 * 3 * 3),
        "b3": uniform(ks[5], (64,), 32 * 3 * 3),
        # Linear: torch weight is (2, 4096); stored here as (4096, 2) = W.T.
        "wl": uniform(ks[6], (4096, 2), 4096),
        "bl": uniform(ks[7], (2,), 4096),
    }


@jax.jit
def cnn_forward(x_nchw, params, drop_key):
    # NCHW (torch convention) -> NHWC for the TPU kernels.
    x = jnp.transpose(x_nchw, (0, 2, 3, 1)).astype(jnp.float32)
    k1, k2, k3 = jax.random.split(drop_key, 3)

    x = conv_relu_pool_drop(x, params["w1"], params["b1"], k1)      # (B, 32, 32, 16)
    x = conv_relu_pool_drop(x, params["w2"], params["b2"], k2)      # (B, 16, 16, 32)
    x = conv_relu_pool_drop(x, params["w3"], params["b3"], k3)      # (B, 8, 8, 64)

    # Flatten in NCHW order to match torch's x.view(B, -1); the tiny (B,4096)@(4096,2)
    # GEMV stays in XLA (a Pallas dispatch costs more than it saves here).
    flat = jnp.transpose(x, (0, 3, 1, 2)).reshape(x.shape[0], -1)
    return flat @ params["wl"] + params["bl"]


if __name__ == "__main__":
    root = jax.random.PRNGKey(0)
    k_param, k_input, k_drop = jax.random.split(root, 3)

    params = init_params(k_param)
    # Linear(4096, 2) with 64 channels after 3x maxpool(2) implies 64x64 spatial input:
    # (B=2, C=3, H=64, W=64) in NCHW, like the torch model.
    x = jax.random.normal(k_input, (2, 3, 64, 64), jnp.float32)

    out = cnn_forward(x, params, k_drop)
    out = jax.block_until_ready(out)
    assert out.shape == (2, 2) and out.dtype == jnp.float32
    print("KERNEL_OK")
</pallas_src>

<mosaic_0001>
module attributes {stable_mosaic.version = 11 : i64} {
  func.func @_conv_pool_drop_kernel(%arg0: i32, %arg1: memref<1x4096x27xbf16, #tpu.memory_space<vmem>>, %arg2: memref<27x16xbf16, #tpu.memory_space<vmem>>, %arg3: memref<1x16xf32, #tpu.memory_space<vmem>>, %arg4: memref<1x1024x16xf32, #tpu.memory_space<vmem>>, %arg5: memref<1x1024x16xf32, #tpu.memory_space<vmem>>) attributes {dimension_semantics = [#tpu.dimension_semantics<parallel>], iteration_bounds = array<i64: 2>, scalar_prefetch = 0 : i64, scratch_operands = 0 : i64, tpu.core_type = #tpu.core_type<tc>, window_params = [{transform_indices = @transform_0, window_bounds = array<i64: 1, 4096, 27>}, {pipeline_mode = #tpu.pipeline_mode<synchronous>, transform_indices = @transform_1, window_bounds = array<i64: 27, 16>}, {pipeline_mode = #tpu.pipeline_mode<synchronous>, transform_indices = @transform_2, window_bounds = array<i64: 1, 16>}, {transform_indices = @transform_3, window_bounds = array<i64: 1, 1024, 16>}, {transform_indices = @transform_4, window_bounds = array<i64: 1, 1024, 16>}]} {
    %c0 = arith.constant 0 : index
    %c0_0 = arith.constant 0 : index
    %c0_1 = arith.constant 0 : index
    %0 = vector.load %arg1[%c0, %c0_0, %c0_1] : memref<1x4096x27xbf16, #tpu.memory_space<vmem>>, vector<1x4096x27xbf16>
    %1 = vector.shape_cast %0 : vector<1x4096x27xbf16> to vector<4096x27xbf16>
    %c0_2 = arith.constant 0 : index
    %c0_3 = arith.constant 0 : index
    %2 = vector.load %arg2[%c0_2, %c0_3] : memref<27x16xbf16, #tpu.memory_space<vmem>>, vector<27x16xbf16>
    %cst = arith.constant dense<0.000000e+00> : vector<4096x16xf32>
    %3 = tpu.matmul %1, %2, %cst {dimension_numbers = #tpu.dot_dimension_numbers<[1], [0], [0], [1], [0, 0, 1, 1], [], []>} : vector<4096x27xbf16>, vector<27x16xbf16>, vector<4096x16xf32> -> vector<4096x16xf32>
    %c0_4 = arith.constant 0 : index
    %c0_5 = arith.constant 0 : index
    %4 = vector.load %arg3[%c0_4, %c0_5] : memref<1x16xf32, #tpu.memory_space<vmem>>, vector<1x16xf32>
    %5 = vector.broadcast %4 : vector<1x16xf32> to vector<4096x16xf32>
    %6 = arith.addf %3, %5 : vector<4096x16xf32>
    %cst_6 = arith.constant 0.000000e+00 : f32
    %7 = vector.broadcast %cst_6 : f32 to vector<4096x16xf32>
    %8 = arith.maximumf %6, %7 : vector<4096x16xf32>
    %9 = vector.shape_cast %8 : vector<4096x16xf32> to vector<32x2x2x32x16xf32>
    %10 = vector.extract_strided_slice %9 {offsets = [0, 0, 0, 0, 0], sizes = [32, 1, 1, 32, 16], strides = [1, 1, 1, 1, 1]} : vector<32x2x2x32x16xf32> to vector<32x1x1x32x16xf32>
    %11 = vector.shape_cast %10 : vector<32x1x1x32x16xf32> to vector<32x32x16xf32>
    %12 = vector.extract_strided_slice %9 {offsets = [0, 0, 1, 0, 0], sizes = [32, 1, 1, 32, 16], strides = [1, 1, 1, 1, 1]} : vector<32x2x2x32x16xf32> to vector<32x1x1x32x16xf32>
    %13 = vector.shape_cast %12 : vector<32x1x1x32x16xf32> to vector<32x32x16xf32>
    %14 = arith.maximumf %11, %13 : vector<32x32x16xf32>
    %15 = vector.extract_strided_slice %9 {offsets = [0, 1, 0, 0, 0], sizes = [32, 1, 1, 32, 16], strides = [1, 1, 1, 1, 1]} : vector<32x2x2x32x16xf32> to vector<32x1x1x32x16xf32>
    %16 = vector.shape_cast %15 : vector<32x1x1x32x16xf32> to vector<32x32x16xf32>
    %17 = vector.extract_strided_slice %9 {offsets = [0, 1, 1, 0, 0], sizes = [32, 1, 1, 32, 16], strides = [1, 1, 1, 1, 1]} : vector<32x2x2x32x16xf32> to vector<32x1x1x32x16xf32>
    %18 = vector.shape_cast %17 : vector<32x1x1x32x16xf32> to vector<32x32x16xf32>
    %19 = arith.maximumf %16, %18 : vector<32x32x16xf32>
    %20 = arith.maximumf %14, %19 : vector<32x32x16xf32>
    %21 = vector.shape_cast %20 : vector<32x32x16xf32> to vector<1024x16xf32>
    %c0_7 = arith.constant 0 : index
    %c0_8 = arith.constant 0 : index
    %c0_9 = arith.constant 0 : index
    %22 = vector.load %arg4[%c0_7, %c0_8, %c0_9] : memref<1x1024x16xf32, #tpu.memory_space<vmem>>, vector<1x1024x16xf32>
    %23 = vector.shape_cast %22 : vector<1x1024x16xf32> to vector<1024x16xf32>
    %cst_10 = arith.constant 5.000000e-01 : f32
    %24 = vector.broadcast %cst_10 : f32 to vector<1024x16xf32>
    %25 = arith.cmpf oge, %23, %24 : vector<1024x16xf32>
    %cst_11 = arith.constant 2.000000e+00 : f32
    %26 = vector.broadcast %cst_11 : f32 to vector<1024x16xf32>
    %27 = arith.mulf %21, %26 : vector<1024x16xf32>
    %cst_12 = arith.constant 0.000000e+00 : f32
    %28 = vector.broadcast %cst_12 : f32 to vector<1024x16xf32>
    %29 = arith.select %25, %27, %28 : vector<1024x16xi1>, vector<1024x16xf32>
    %c0_13 = arith.constant 0 : index
    %c0_14 = arith.constant 0 : index
    %c0_15 = arith.constant 0 : index
    %30 = vector.load %arg5[%c0_13, %c0_14, %c0_15] : memref<1x1024x16xf32, #tpu.memory_space<vmem>>, vector<1x1024x16xf32>
    %31 = vector.shape_cast %30 : vector<1x1024x16xf32> to vector<1024x16xf32>
    %32 = vector.shape_cast %29 : vector<1024x16xf32> to vector<1x1024x16xf32>
    tpu.vector_store %arg5[%c0_13, %c0_14, %c0_15], %32 {strides = array<i32>} : memref<1x1024x16xf32, #tpu.memory_space<vmem>>, vector<1x1024x16xf32>,
    return
  }
  func.func @transform_0(%arg0: i32) -> (i32, i32, i32) {
    %c0_i32 = arith.constant 0 : i32
    %c0_i32_0 = arith.constant 0 : i32
    %c0_i32_1 = arith.constant 0 : i32
    return %arg0, %c0_i32, %c0_i32_0 : i32, i32, i32
  }
  func.func @transform_1(%arg0: i32) -> (i32, i32) {
    %c0_i32 = arith.constant 0 : i32
    %c0_i32_0 = arith.constant 0 : i32
    %c0_i32_1 = arith.constant 0 : i32
    return %c0_i32, %c0_i32_0 : i32, i32
  }
  func.func @transform_2(%arg0: i32) -> (i32, i32) {
    %c0_i32 = arith.constant 0 : i32
    %c0_i32_0 = arith.constant 0 : i32
    %c0_i32_1 = arith.constant 0 : i32
    return %c0_i32, %c0_i32_0 : i32, i32
  }
  func.func @transform_3(%arg0: i32) -> (i32, i32, i32) {
    %c0_i32 = arith.constant 0 : i32
    %c0_i32_0 = arith.constant 0 : i32
    %c0_i32_1 = arith.constant 0 : i32
    return %arg0, %c0_i32, %c0_i32_0 : i32, i32, i32
  }
  func.func @transform_4(%arg0: i32) -> (i32, i32, i32) {
    %c0_i32 = arith.constant 0 : i32
    %c0_i32_0 = arith.constant 0 : i32
    %c0_i32_1 = arith.constant 0 : i32
    return %arg0, %c0_i32, %c0_i32_0 : i32, i32, i32
  }
}

module attributes {stable_mosaic.version = 11 : i64} {
  func.func @_conv_pool_drop_kernel(%arg0: i32, %arg1: memref<1x1024x144xbf16, #tpu.memory_space<vmem>>, %arg2: memref<144x32xbf16, #tpu.memory_space<vmem>>, %arg3: memref<1x32xf32, #tpu.memory_space<vmem>>, %arg4: memref<1x256x32xf32, #tpu.memory_space<vmem>>, %arg5: memref<1x256x32xf32, #tpu.memory_space<vmem>>) attributes {dimension_semantics = [#tpu.dimension_semantics<parallel>], iteration_bounds = array<i64: 2>, scalar_prefetch = 0 : i64, scratch_operands = 0 : i64, tpu.core_type = #tpu.core_type<tc>, window_params = [{transform_indices = @transform_0, window_bounds = array<i64: 1, 1024, 144>}, {pipeline_mode = #tpu.pipeline_mode<synchronous>, transform_indices = @transform_1, window_bounds = array<i64: 144, 32>}, {pipeline_mode = #tpu.pipeline_mode<synchronous>, transform_indices = @transform_2, window_bounds = array<i64: 1, 32>}, {transform_indices = @transform_3, window_bounds = array<i64: 1, 256, 32>}, {transform_indices = @transform_4, window_bounds = array<i64: 1, 256, 32>}]} {
    %c0 = arith.constant 0 : index
    %c0_0 = arith.constant 0 : index
    %c0_1 = arith.constant 0 : index
    %0 = vector.load %arg1[%c0, %c0_0, %c0_1] : memref<1x1024x144xbf16, #tpu.memory_space<vmem>>, vector<1x1024x144xbf16>
    %1 = vector.shape_cast %0 : vector<1x1024x144xbf16> to vector<1024x144xbf16>
    %c0_2 = arith.constant 0 : index
    %c0_3 = arith.constant 0 : index
    %2 = vector.load %arg2[%c0_2, %c0_3] : memref<144x32xbf16, #tpu.memory_space<vmem>>, vector<144x32xbf16>
    %cst = arith.constant dense<0.000000e+00> : vector<1024x32xf32>
    %3 = tpu.matmul %1, %2, %cst {dimension_numbers = #tpu.dot_dimension_numbers<[1], [0], [0], [1], [0, 0, 1, 1], [], []>} : vector<1024x144xbf16>, vector<144x32xbf16>, vector<1024x32xf32> -> vector<1024x32xf32>
    %c0_4 = arith.constant 0 : index
    %c0_5 = arith.constant 0 : index
    %4 = vector.load %arg3[%c0_4, %c0_5] : memref<1x32xf32, #tpu.memory_space<vmem>>, vector<1x32xf32>
    %5 = vector.broadcast %4 : vector<1x32xf32> to vector<1024x32xf32>
    %6 = arith.addf %3, %5 : vector<1024x32xf32>
    %cst_6 = arith.constant 0.000000e+00 : f32
    %7 = vector.broadcast %cst_6 : f32 to vector<1024x32xf32>
    %8 = arith.maximumf %6, %7 : vector<1024x32xf32>
    %9 = vector.shape_cast %8 : vector<1024x32xf32> to vector<16x2x2x16x32xf32>
    %10 = vector.extract_strided_slice %9 {offsets = [0, 0, 0, 0, 0], sizes = [16, 1, 1, 16, 32], strides = [1, 1, 1, 1, 1]} : vector<16x2x2x16x32xf32> to vector<16x1x1x16x32xf32>
    %11 = vector.shape_cast %10 : vector<16x1x1x16x32xf32> to vector<16x16x32xf32>
    %12 = vector.extract_strided_slice %9 {offsets = [0, 0, 1, 0, 0], sizes = [16, 1, 1, 16, 32], strides = [1, 1, 1, 1, 1]} : vector<16x2x2x16x32xf32> to vector<16x1x1x16x32xf32>
    %13 = vector.shape_cast %12 : vector<16x1x1x16x32xf32> to vector<16x16x32xf32>
    %14 = arith.maximumf %11, %13 : vector<16x16x32xf32>
    %15 = vector.extract_strided_slice %9 {offsets = [0, 1, 0, 0, 0], sizes = [16, 1, 1, 16, 32], strides = [1, 1, 1, 1, 1]} : vector<16x2x2x16x32xf32> to vector<16x1x1x16x32xf32>
    %16 = vector.shape_cast %15 : vector<16x1x1x16x32xf32> to vector<16x16x32xf32>
    %17 = vector.extract_strided_slice %9 {offsets = [0, 1, 1, 0, 0], sizes = [16, 1, 1, 16, 32], strides = [1, 1, 1, 1, 1]} : vector<16x2x2x16x32xf32> to vector<16x1x1x16x32xf32>
    %18 = vector.shape_cast %17 : vector<16x1x1x16x32xf32> to vector<16x16x32xf32>
    %19 = arith.maximumf %16, %18 : vector<16x16x32xf32>
    %20 = arith.maximumf %14, %19 : vector<16x16x32xf32>
    %21 = vector.shape_cast %20 : vector<16x16x32xf32> to vector<256x32xf32>
    %c0_7 = arith.constant 0 : index
    %c0_8 = arith.constant 0 : index
    %c0_9 = arith.constant 0 : index
    %22 = vector.load %arg4[%c0_7, %c0_8, %c0_9] : memref<1x256x32xf32, #tpu.memory_space<vmem>>, vector<1x256x32xf32>
    %23 = vector.shape_cast %22 : vector<1x256x32xf32> to vector<256x32xf32>
    %cst_10 = arith.constant 5.000000e-01 : f32
    %24 = vector.broadcast %cst_10 : f32 to vector<256x32xf32>
    %25 = arith.cmpf oge, %23, %24 : vector<256x32xf32>
    %cst_11 = arith.constant 2.000000e+00 : f32
    %26 = vector.broadcast %cst_11 : f32 to vector<256x32xf32>
    %27 = arith.mulf %21, %26 : vector<256x32xf32>
    %cst_12 = arith.constant 0.000000e+00 : f32
    %28 = vector.broadcast %cst_12 : f32 to vector<256x32xf32>
    %29 = arith.select %25, %27, %28 : vector<256x32xi1>, vector<256x32xf32>
    %c0_13 = arith.constant 0 : index
    %c0_14 = arith.constant 0 : index
    %c0_15 = arith.constant 0 : index
    %30 = vector.load %arg5[%c0_13, %c0_14, %c0_15] : memref<1x256x32xf32, #tpu.memory_space<vmem>>, vector<1x256x32xf32>
    %31 = vector.shape_cast %30 : vector<1x256x32xf32> to vector<256x32xf32>
    %32 = vector.shape_cast %29 : vector<256x32xf32> to vector<1x256x32xf32>
    tpu.vector_store %arg5[%c0_13, %c0_14, %c0_15], %32 {strides = array<i32>} : memref<1x256x32xf32, #tpu.memory_space<vmem>>, vector<1x256x32xf32>,
    return
  }
  func.func @transform_0(%arg0: i32) -> (i32, i32, i32) {
    %c0_i32 = arith.constant 0 : i32
    %c0_i32_0 = arith.constant 0 : i32
    %c0_i32_1 = arith.constant 0 : i32
    return %arg0, %c0_i32, %c0_i32_0 : i32, i32, i32
  }
  func.func @transform_1(%arg0: i32) -> (i32, i32) {
    %c0_i32 = arith.constant 0 : i32
    %c0_i32_0 = arith.constant 0 : i32
    %c0_i32_1 = arith.constant 0 : i32
    return %c0_i32, %c0_i32_0 : i32, i32
  }
  func.func @transform_2(%arg0: i32) -> (i32, i32) {
    %c0_i32 = arith.constant 0 : i32
    %c0_i32_0 = arith.constant 0 : i32
    %c0_i32_1 = arith.constant 0 : i32
    return %c0_i32, %c0_i32_0 : i32, i32
  }
  func.func @transform_3(%arg0: i32) -> (i32, i32, i32) {
    %c0_i32 = arith.constant 0 : i32
    %c0_i32_0 = arith.constant 0 : i32
    %c0_i32_1 = arith.constant 0 : i32
    return %arg0, %c0_i32, %c0_i32_0 : i32, i32, i32
  }
  func.func @transform_4(%arg0: i32) -> (i32, i32, i32) {
    %c0_i32 = arith.constant 0 : i32
    %c0_i32_0 = arith.constant 0 : i32
    %c0_i32_1 = arith.constant 0 : i32
    return %arg0, %c0_i32, %c0_i32_0 : i32, i32, i32
  }
}

module attributes {stable_mosaic.version = 11 : i64} {
  func.func @_conv_pool_drop_kernel(%arg0: i32, %arg1: memref<1x256x288xbf16, #tpu.memory_space<vmem>>, %arg2: memref<288x64xbf16, #tpu.memory_space<vmem>>, %arg3: memref<1x64xf32, #tpu.memory_space<vmem>>, %arg4: memref<1x64x64xf32, #tpu.memory_space<vmem>>, %arg5: memref<1x64x64xf32, #tpu.memory_space<vmem>>) attributes {dimension_semantics = [#tpu.dimension_semantics<parallel>], iteration_bounds = array<i64: 2>, scalar_prefetch = 0 : i64, scratch_operands = 0 : i64, tpu.core_type = #tpu.core_type<tc>, window_params = [{transform_indices = @transform_0, window_bounds = array<i64: 1, 256, 288>}, {pipeline_mode = #tpu.pipeline_mode<synchronous>, transform_indices = @transform_1, window_bounds = array<i64: 288, 64>}, {pipeline_mode = #tpu.pipeline_mode<synchronous>, transform_indices = @transform_2, window_bounds = array<i64: 1, 64>}, {transform_indices = @transform_3, window_bounds = array<i64: 1, 64, 64>}, {transform_indices = @transform_4, window_bounds = array<i64: 1, 64, 64>}]} {
    %c0 = arith.constant 0 : index
    %c0_0 = arith.constant 0 : index
    %c0_1 = arith.constant 0 : index
    %0 = vector.load %arg1[%c0, %c0_0, %c0_1] : memref<1x256x288xbf16, #tpu.memory_space<vmem>>, vector<1x256x288xbf16>
    %1 = vector.shape_cast %0 : vector<1x256x288xbf16> to vector<256x288xbf16>
    %c0_2 = arith.constant 0 : index
    %c0_3 = arith.constant 0 : index
    %2 = vector.load %arg2[%c0_2, %c0_3] : memref<288x64xbf16, #tpu.memory_space<vmem>>, vector<288x64xbf16>
    %cst = arith.constant dense<0.000000e+00> : vector<256x64xf32>
    %3 = tpu.matmul %1, %2, %cst {dimension_numbers = #tpu.dot_dimension_numbers<[1], [0], [0], [1], [0, 0, 1, 1], [], []>} : vector<256x288xbf16>, vector<288x64xbf16>, vector<256x64xf32> -> vector<256x64xf32>
    %c0_4 = arith.constant 0 : index
    %c0_5 = arith.constant 0 : index
    %4 = vector.load %arg3[%c0_4, %c0_5] : memref<1x64xf32, #tpu.memory_space<vmem>>, vector<1x64xf32>
    %5 = vector.broadcast %4 : vector<1x64xf32> to vector<256x64xf32>
    %6 = arith.addf %3, %5 : vector<256x64xf32>
    %cst_6 = arith.constant 0.000000e+00 : f32
    %7 = vector.broadcast %cst_6 : f32 to vector<256x64xf32>
    %8 = arith.maximumf %6, %7 : vector<256x64xf32>
    %9 = vector.shape_cast %8 : vector<256x64xf32> to vector<8x2x2x8x64xf32>
    %10 = vector.extract_strided_slice %9 {offsets = [0, 0, 0, 0, 0], sizes = [8, 1, 1, 8, 64], strides = [1, 1, 1, 1, 1]} : vector<8x2x2x8x64xf32> to vector<8x1x1x8x64xf32>
    %11 = vector.shape_cast %10 : vector<8x1x1x8x64xf32> to vector<8x8x64xf32>
    %12 = vector.extract_strided_slice %9 {offsets = [0, 0, 1, 0, 0], sizes = [8, 1, 1, 8, 64], strides = [1, 1, 1, 1, 1]} : vector<8x2x2x8x64xf32> to vector<8x1x1x8x64xf32>
    %13 = vector.shape_cast %12 : vector<8x1x1x8x64xf32> to vector<8x8x64xf32>
    %14 = arith.maximumf %11, %13 : vector<8x8x64xf32>
    %15 = vector.extract_strided_slice %9 {offsets = [0, 1, 0, 0, 0], sizes = [8, 1, 1, 8, 64], strides = [1, 1, 1, 1, 1]} : vector<8x2x2x8x64xf32> to vector<8x1x1x8x64xf32>
    %16 = vector.shape_cast %15 : vector<8x1x1x8x64xf32> to vector<8x8x64xf32>
    %17 = vector.extract_strided_slice %9 {offsets = [0, 1, 1, 0, 0], sizes = [8, 1, 1, 8, 64], strides = [1, 1, 1, 1, 1]} : vector<8x2x2x8x64xf32> to vector<8x1x1x8x64xf32>
    %18 = vector.shape_cast %17 : vector<8x1x1x8x64xf32> to vector<8x8x64xf32>
    %19 = arith.maximumf %16, %18 : vector<8x8x64xf32>
    %20 = arith.maximumf %14, %19 : vector<8x8x64xf32>
    %21 = vector.shape_cast %20 : vector<8x8x64xf32> to vector<64x64xf32>
    %c0_7 = arith.constant 0 : index
    %c0_8 = arith.constant 0 : index
    %c0_9 = arith.constant 0 : index
    %22 = vector.load %arg4[%c0_7, %c0_8, %c0_9] : memref<1x64x64xf32, #tpu.memory_space<vmem>>, vector<1x64x64xf32>
    %23 = vector.shape_cast %22 : vector<1x64x64xf32> to vector<64x64xf32>
    %cst_10 = arith.constant 5.000000e-01 : f32
    %24 = vector.broadcast %cst_10 : f32 to vector<64x64xf32>
    %25 = arith.cmpf oge, %23, %24 : vector<64x64xf32>
    %cst_11 = arith.constant 2.000000e+00 : f32
    %26 = vector.broadcast %cst_11 : f32 to vector<64x64xf32>
    %27 = arith.mulf %21, %26 : vector<64x64xf32>
    %cst_12 = arith.constant 0.000000e+00 : f32
    %28 = vector.broadcast %cst_12 : f32 to vector<64x64xf32>
    %29 = arith.select %25, %27, %28 : vector<64x64xi1>, vector<64x64xf32>
    %c0_13 = arith.constant 0 : index
    %c0_14 = arith.constant 0 : index
    %c0_15 = arith.constant 0 : index
    %30 = vector.load %arg5[%c0_13, %c0_14, %c0_15] : memref<1x64x64xf32, #tpu.memory_space<vmem>>, vector<1x64x64xf32>
    %31 = vector.shape_cast %30 : vector<1x64x64xf32> to vector<64x64xf32>
    %32 = vector.shape_cast %29 : vector<64x64xf32> to vector<1x64x64xf32>
    tpu.vector_store %arg5[%c0_13, %c0_14, %c0_15], %32 {strides = array<i32>} : memref<1x64x64xf32, #tpu.memory_space<vmem>>, vector<1x64x64xf32>,
    return
  }
  func.func @transform_0(%arg0: i32) -> (i32, i32, i32) {
    %c0_i32 = arith.constant 0 : i32
    %c0_i32_0 = arith.constant 0 : i32
    %c0_i32_1 = arith.constant 0 : i32
    return %arg0, %c0_i32, %c0_i32_0 : i32, i32, i32
  }
  func.func @transform_1(%arg0: i32) -> (i32, i32) {
    %c0_i32 = arith.constant 0 : i32
    %c0_i32_0 = arith.constant 0 : i32
    %c0_i32_1 = arith.constant 0 : i32
    return %c0_i32, %c0_i32_0 : i32, i32
  }
  func.func @transform_2(%arg0: i32) -> (i32, i32) {
    %c0_i32 = arith.constant 0 : i32
    %c0_i32_0 = arith.constant 0 : i32
    %c0_i32_1 = arith.constant 0 : i32
    return %c0_i32, %c0_i32_0 : i32, i32
  }
  func.func @transform_3(%arg0: i32) -> (i32, i32, i32) {
    %c0_i32 = arith.constant 0 : i32
    %c0_i32_0 = arith.constant 0 : i32
    %c0_i32_1 = arith.constant 0 : i32
    return %arg0, %c0_i32, %c0_i32_0 : i32, i32, i32
  }
  func.func @transform_4(%arg0: i32) -> (i32, i32, i32) {
    %c0_i32 = arith.constant 0 : i32
    %c0_i32_0 = arith.constant 0 : i32
    %c0_i32_1 = arith.constant 0 : i32
    return %arg0, %c0_i32, %c0_i32_0 : i32, i32, i32
  }
}

</mosaic_0001>

<bundles_post_ra>
// kernel: cnn_forward.5
= control target key start
LH: loop header
LB: loop body
LE: loop exit
PB: predicated region body
PF: predicated region fallthrough
CT: control target
= control target key end

     0   :  { %s7316_s15 = smov 0   ;;  %s9841_s0 = inlined_call_operand.vmem [shape: bf16[2,4096,27], index: 0, kind: input, shape index: {}]   ;;  %s9842_s1 = inlined_call_operand.vmem [shape: bf16[27,16], index: 1, kind: input, shape index: {}]   ;;  %s9843_s2 = inlined_call_operand.vmem [shape: f32[1,16], index: 2, kind: input, shape index: {}]   ;;  %s9844_s3 = inlined_call_operand.vmem [shape: f32[2,1024,16], index: 3, kind: input, shape index: {}]   ;;  %s9845_s4 = inlined_call_operand.vmem [shape: f32[2,1024,16], index: 4, kind: output, shape index: {}]  }
   0x1 LB: > { %s5699_s16 = sadd.s32 4294967295, %s7288_s15   ;;  %p5703_p0 = scmp.ge.s32.totalorder %s7288_s15, 1  ;;  %s7288_s15 = sphi %s7316_s15, %s14_s15  }
   0x2   : > { %p172_p1 = scmp.lt.s32.totalorder %s7288_s15, 3 }
   0x4   : > { %p173_p2 = pnand %p5703_p0, %p172_p1 }
   0x5   : > { %p203_p3 = scmp.lt.s32.totalorder (!%p173_p2), %s5699_s16, 1 }
   0x6   : > { %176 = sbr.rel (%p173_p2) target bundleno = 1186 (0x4a2), region = 36 }
   0xb   : > { %v6740_v0 = vld [vmem:[%s9842_s1 + $0x8] sm:$0xf]  ;;  %v7260_v1 = vld [vmem:[%s9842_s1 + $0x8] sm:$0x30]  ;;  %vm2799_vm0 = vcmask 1044480   ;;  %vm2800_vm1 = vcmask 1045504  }
   0xc   : > { %v6741_v2 = vor.u32 %v7260_v1, %v6740_v0  ;;  %v7290_v3 = vmov 65535   ;;  %s9847_s16 = smov (!%p203_p3, %s5699_s16), 1  ;;  %v7259_v7 = vld [vmem:[%s9842_s1] sm:$0xff]  ;;  %vm2030_vm2 = vcmask 220160   ;;  %vm5503_vm4 = vcmask 130048  }
   0xd   : > { %v2801_v4 = vsel %vm2799_vm0, 4294967295, %v7290_v3  ;;  %s7000_s21 = sshll.u32 %s9847_s16, 11  ;;  %v7436_v62 = vld [vmem:[%s9843_s2] ss:$0 sm:$0xff]  ;;  %s7001_s29 = sshll.u32 %s9847_s16, 10 }
   0xe   : > { %v2802_v5 = vsel %vm2800_vm1, %v2801_v4, 0  ;;  %s7339_s26 = scalar_lea.vmem %s9841_s0, %s7000_s21  ;;  %s7560_s6 = scalar_lea.vmem %s9844_s3, %s7001_s29 }
   0xf   : > { %v2804_v6 = vand.u32 %v6741_v2, %v2802_v5  ;;  %v7003_v8 = vld [vmem:[%s7339_s26] sm:$0xff]  ;;  %v7004_v12 = vld [vmem:[%s7339_s26 + $0x8] sm:$0xff]  ;;  %v7005_v16 = vld [vmem:[%s7339_s26 + $0x10] sm:$0xff]  ;;  %s7619_s9 = scalar_lea.vmem %s9845_s4, %s7001_s29 }
  0x10   : > { %v7067_v9 = vld [vmem:[%s7339_s26 + $0x200] sm:$0xff]  ;;  %v7068_v13 = vld [vmem:[%s7339_s26 + $0x208] sm:$0xff]  ;;  %v7069_v17 = vld [vmem:[%s7339_s26 + $0x210] sm:$0xff] }
  0x11   : > { %2812 = vmatpush.bf16.msra.mxu0 %v2804_v6  ;;  %7261 = vmatpush.bf16.msra.mxu1 %v2804_v6  ;;  %v7131_v10 = vld [vmem:[%s7339_s26 + $0x400] sm:$0xff]  ;;  %v7132_v14 = vld [vmem:[%s7339_s26 + $0x408] sm:$0xff]  ;;  %v7133_v18 = vld [vmem:[%s7339_s26 + $0x410] sm:$0xff] }
  0x12   : > { %7262 = vmatpush.bf16.msra.mxu2 %v2804_v6  ;;  %7263 = vmatpush.bf16.msra.mxu3 %v2804_v6  ;;  %v7195_v11 = vld [vmem:[%s7339_s26 + $0x600] sm:$0xff]  ;;  %v7196_v15 = vld [vmem:[%s7339_s26 + $0x608] sm:$0xff]  ;;  %v7197_v19 = vld [vmem:[%s7339_s26 + $0x610] sm:$0xff] }
  0x13   : > { %v7006_v20 = vld [vmem:[%s7339_s26 + $0x18] sm:$0xff]  ;;  %v7007_v24 = vld [vmem:[%s7339_s26 + $0x20] sm:$0xff]  ;;  %v7008_v28 = vld [vmem:[%s7339_s26 + $0x28] sm:$0xff] }
  0x14   : > { %v7070_v21 = vld [vmem:[%s7339_s26 + $0x218] sm:$0xff]  ;;  %v7071_v25 = vld [vmem:[%s7339_s26 + $0x220] sm:$0xff]  ;;  %v7072_v29 = vld [vmem:[%s7339_s26 + $0x228] sm:$0xff] }
  0x15   : > { %2813 = vmatpush.bf16.msra.mxu0 %v7259_v7  ;;  %7264 = vmatpush.bf16.msra.mxu1 %v7259_v7  ;;  %v7134_v22 = vld [vmem:[%s7339_s26 + $0x418] sm:$0xff]  ;;  %v7135_v26 = vld [vmem:[%s7339_s26 + $0x420] sm:$0xff]  ;;  %v7136_v30 = vld [vmem:[%s7339_s26 + $0x428] sm:$0xff] }
  0x16   : > { %7265 = vmatpush.bf16.msra.mxu2 %v7259_v7  ;;  %7266 = vmatpush.bf16.msra.mxu3 %v7259_v7  ;;  %v7198_v23 = vld [vmem:[%s7339_s26 + $0x618] sm:$0xff]  ;;  %v7199_v27 = vld [vmem:[%s7339_s26 + $0x620] sm:$0xff]  ;;  %v7200_v31 = vld [vmem:[%s7339_s26 + $0x628] sm:$0xff] }
  0x17   : > { %v7009_v32 = vld [vmem:[%s7339_s26 + $0x30] sm:$0xff]  ;;  %v7010_v36 = vld [vmem:[%s7339_s26 + $0x38] sm:$0xff]  ;;  %v7011_v40 = vld [vmem:[%s7339_s26 + $0x40] sm:$0xff] }
  0x18   : > { %6742 = vmatmul.msk.bf16.vlgmr.msra.gmra.mxu0 %vm2030_vm2, %v7003_v8  ;;  %6806 = vmatmul.msk.bf16.vlgmr.msra.gmra.mxu1 %vm2030_vm2, %v7067_v9  ;;  %v7073_v33 = vld [vmem:[%s7339_s26 + $0x230] sm:$0xff]  ;;  %v7074_v37 = vld [vmem:[%s7339_s26 + $0x238] sm:$0xff]  ;;  %v7075_v41 = vld [vmem:[%s7339_s26 + $0x240] sm:$0xff] }
  0x19   : > { %6870 = vmatmul.msk.bf16.vlgmr.msra.gmra.mxu2 %vm2030_vm2, %v7131_v10  ;;  %6934 = vmatmul.msk.bf16.vlgmr.msra.gmra.mxu3 %vm2030_vm2, %v7195_v11  ;;  %v7137_v34 = vld [vmem:[%s7339_s26 + $0x430] sm:$0xff]  ;;  %v7138_v38 = vld [vmem:[%s7339_s26 + $0x438] sm:$0xff]  ;;  %v7139_v44 = vld [vmem:[%s7339_s26 + $0x440] sm:$0xff] }
  0x1a   : > { %v7201_v35 = vld [vmem:[%s7339_s26 + $0x630] sm:$0xff]  ;;  %v7202_v39 = vld [vmem:[%s7339_s26 + $0x638] sm:$0xff]  ;;  %v7203_v45 = vld [vmem:[%s7339_s26 + $0x640] sm:$0xff] }
  0x1b   : > { %v7012_v52 = vld [vmem:[%s7339_s26 + $0x48] sm:$0xff]  ;;  %v7013_v3 = vld [vmem:[%s7339_s26 + $0x50] sm:$0xff] }
  0x1c   : > { %v7076_v53 = vld [vmem:[%s7339_s26 + $0x248] sm:$0xff]  ;;  %v7077_v4 = vld [vmem:[%s7339_s26 + $0x250] sm:$0xff] }
  0x1d   : > { %v7140_v56 = vld [vmem:[%s7339_s26 + $0x448] sm:$0xff]  ;;  %v7141_v7 = vld [vmem:[%s7339_s26 + $0x450] sm:$0xff] }
  0x1e   : > { %v7204_v57 = vld [vmem:[%s7339_s26 + $0x648] sm:$0xff]  ;;  %v7205_v8 = vld [vmem:[%s7339_s26 + $0x650] sm:$0xff] }
  0x28   : > { %6743 = vmatmul.msk.bf16.gmra.mxu0 %vm2030_vm2, %v7004_v12  ;;  %6807 = vmatmul.msk.bf16.gmra.mxu1 %vm2030_vm2, %v7068_v13 }
  0x29   : > { %6871 = vmatmul.msk.bf16.gmra.mxu2 %vm2030_vm2, %v7132_v14  ;;  %6935 = vmatmul.msk.bf16.gmra.mxu3 %vm2030_vm2, %v7196_v15 }
  0x38   : > { %6744 = vmatmul.msk.bf16.gmra.mxu0 %vm2030_vm2, %v7005_v16  ;;  %6808 = vmatmul.msk.bf16.gmra.mxu1 %vm2030_vm2, %v7069_v17 }
  0x39   : > { %6872 = vmatmul.msk.bf16.gmra.mxu2 %vm2030_vm2, %v7133_v18  ;;  %6936 = vmatmul.msk.bf16.gmra.mxu3 %vm2030_vm2, %v7197_v19 }
  0x48   : > { %6745 = vmatmul.msk.bf16.gmra.mxu0 %vm2030_vm2, %v7006_v20  ;;  %6809 = vmatmul.msk.bf16.gmra.mxu1 %vm2030_vm2, %v7070_v21 }
  0x49   : > { %6873 = vmatmul.msk.bf16.gmra.mxu2 %vm2030_vm2, %v7134_v22  ;;  %6937 = vmatmul.msk.bf16.gmra.mxu3 %vm2030_vm2, %v7198_v23 }
  0x58   : > { %6746 = vmatmul.msk.bf16.gmra.mxu0 %vm2030_vm2, %v7007_v24  ;;  %6810 = vmatmul.msk.bf16.gmra.mxu1 %vm2030_vm2, %v7071_v25 }
  0x59   : > { %6874 = vmatmul.msk.bf16.gmra.mxu2 %vm2030_vm2, %v7135_v26  ;;  %6938 = vmatmul.msk.bf16.gmra.mxu3 %vm2030_vm2, %v7199_v27 }
  0x68   : > { %6747 = vmatmul.msk.bf16.gmra.mxu0 %vm2030_vm2, %v7008_v28  ;;  %6811 = vmatmul.msk.bf16.gmra.mxu1 %vm2030_vm2, %v7072_v29 }
  0x69   : > { %6875 = vmatmul.msk.bf16.gmra.mxu2 %vm2030_vm2, %v7136_v30  ;;  %6939 = vmatmul.msk.bf16.gmra.mxu3 %vm2030_vm2, %v7200_v31 }
  0x78   : > { %6748 = vmatmul.msk.bf16.gmra.mxu0 %vm2030_vm2, %v7009_v32  ;;  %6812 = vmatmul.msk.bf16.gmra.mxu1 %vm2030_vm2, %v7073_v33 }
  0x79   : > { %6876 = vmatmul.msk.bf16.gmra.mxu2 %vm2030_vm2, %v7137_v34  ;;  %6940 = vmatmul.msk.bf16.gmra.mxu3 %vm2030_vm2, %v7201_v35 }
  0x88   : > { %6749 = vmatmul.msk.bf16.gmra.mxu0 %vm2030_vm2, %v7010_v36  ;;  %6813 = vmatmul.msk.bf16.gmra.mxu1 %vm2030_vm2, %v7074_v37 }
  0x89   : > { %6877 = vmatmul.msk.bf16.gmra.mxu2 %vm2030_vm2, %v7138_v38  ;;  %6941 = vmatmul.msk.bf16.gmra.mxu3 %vm2030_vm2, %v7202_v39 }
  0x95   : > { %v2815_v42 = vpop.f32.mrf.mxu0  ;;  %v3135_v43 = vpop.f32.mrf.mxu1 }
  0x96   : > { %v2816_v63 = vadd.f32 %v7436_v62, %v2815_v42  ;;  %v3136_v0 = vadd.f32 %v7436_v62, %v3135_v43 }
  0x98   : > { %6750 = vmatmul.msk.bf16.gmra.mxu0 %vm2030_vm2, %v7011_v40  ;;  %6814 = vmatmul.msk.bf16.gmra.mxu1 %vm2030_vm2, %v7075_v41  ;;  %v4095_v11 = vmax.f32 %v2816_v63, 0.0  ;;  %v4223_v12 = vmax.f32 %v3136_v0, 0.0  ;;  %v7206_v63 = vld [vmem:[%s7339_s26 + $0x658] sm:$0xff] }
  0x99   : > { %6878 = vmatmul.msk.bf16.gmra.mxu2 %vm2030_vm2, %v7139_v44  ;;  %6942 = vmatmul.msk.bf16.gmra.mxu3 %vm2030_vm2, %v7203_v45 }
  0x9c   : > { %v3455_v46 = vpop.f32.mrf.mxu2  ;;  %v3775_v47 = vpop.f32.mrf.mxu3 }
  0x9d   : > { %v2817_v48 = vpop.f32.mrf.mxu0  ;;  %v3137_v49 = vpop.f32.mrf.mxu1  ;;  %v3456_v17 = vadd.f32 %v7436_v62, %v3455_v46  ;;  %v3776_v18 = vadd.f32 %v7436_v62, %v3775_v47  ;;  %v7014_v47 = vld [vmem:[%s7339_s26 + $0x58] sm:$0xff] }
  0x9e   : > { %v2818_v19 = vadd.f32 %v7436_v62, %v2817_v48  ;;  %v3138_v20 = vadd.f32 %v7436_v62, %v3137_v49  ;;  %v7078_v48 = vld [vmem:[%s7339_s26 + $0x258] sm:$0xff] }
  0x9f   : > { %v4351_v29 = vmax.f32 %v3456_v17, 0.0  ;;  %v4479_v30 = vmax.f32 %v3776_v18, 0.0 }
  0xa0   : > { %v4096_v33 = vmax.f32 %v2818_v19, 0.0  ;;  %v4224_v34 = vmax.f32 %v3138_v20, 0.0 }
  0xa4   : > { %v7413_v50 = vpop.f32.mrf.mxu2  ;;  %v7415_v51 = vpop.f32.mrf.mxu3 }
  0xa5   : > { %v2820_v54 = vpop.f32.mrf.mxu0  ;;  %v3140_v55 = vpop.f32.mrf.mxu1  ;;  %v3458_v41 = vadd.f32 %v7436_v62, %v7413_v50  ;;  %v3778_v42 = vadd.f32 %v7436_v62, %v7415_v51 }
  0xa6   : > { %v2821_v43 = vadd.f32 %v7436_v62, %v2820_v54  ;;  %v3141_v44 = vadd.f32 %v7436_v62, %v3140_v55 }
  0xa7   : > { %v4352_v0 = vmax.f32 %v3458_v41, 0.0  ;;  %v4480_v54 = vmax.f32 %v3778_v42, 0.0  ;;  %v7015_v42 = vld [vmem:[%s7339_s26 + $0x60] sm:$0xff] }
  0xa8   : > { %6751 = vmatmul.msk.bf16.gmra.mxu0 %vm2030_vm2, %v7012_v52  ;;  %6815 = vmatmul.msk.bf16.gmra.mxu1 %vm2030_vm2, %v7076_v53 }
  0xa9   : > { %6879 = vmatmul.msk.bf16.gmra.mxu2 %vm2030_vm2, %v7140_v56  ;;  %6943 = vmatmul.msk.bf16.gmra.mxu3 %vm2030_vm2, %v7204_v57  ;;  %v7142_v57 = vld [vmem:[%s7339_s26 + $0x458] sm:$0xff] }
  0xac   : > { %v7425_v58 = vpop.f32.mrf.mxu2  ;;  %v7427_v59 = vpop.f32.mrf.mxu3 }
  0xad   : > { %v7429_v60 = vpop.f32.mrf.mxu0  ;;  %v7431_v61 = vpop.f32.mrf.mxu1 }
  0xae   : > { %v3143_v17 = vadd.f32 %v7436_v62, %v7431_v61 }
  0xb0   : > { %v4226_v61 = vmax.f32 %v3143_v17, 0.0 }
  0xb4   : > { %v7440_v1 = vpop.f32.mrf.mxu2  ;;  %v7442_v2 = vpop.f32.mrf.mxu3 }
  0xb5   : > { %v2825_v5 = vpop.f32.mrf.mxu0  ;;  %v3145_v6 = vpop.f32.mrf.mxu1 }
  0xb6   : > { %v2826_v9 = vadd.f32 %v7436_v62, %v2825_v5  ;;  %v3146_v10 = vadd.f32 %v7436_v62, %v3145_v6  ;;  %v4225_v5 = vmax.f32 %v3141_v44, 0.0 }
  0xb8   : > { %v4099_v13 = vmax.f32 %v2826_v9, 0.0  ;;  %v4227_v14 = vmax.f32 %v3146_v10, 0.0  ;;  %6752 = vmatmul.msk.bf16.gmra.mxu0 %vm2030_vm2, %v7013_v3  ;;  %6816 = vmatmul.msk.bf16.gmra.mxu1 %vm2030_vm2, %v7077_v4  ;;  %v4097_v4 = vmax.f32 %v2821_v43, 0.0  ;;  %v7079_v43 = vld [vmem:[%s7339_s26 + $0x260] sm:$0xff] }
  0xb9   : > { %6880 = vmatmul.msk.bf16.gmra.mxu2 %vm2030_vm2, %v7141_v7  ;;  %6944 = vmatmul.msk.bf16.gmra.mxu3 %vm2030_vm2, %v7205_v8 }
  0xba   : > { %v7454_v15 = vmax.f32 %v4095_v11, %v4099_v13  ;;  %v7456_v16 = vmax.f32 %v4223_v12, %v4227_v14  ;;  %v3461_v12 = vadd.f32 %v7436_v62, %v7425_v58  ;;  %v3781_v13 = vadd.f32 %v7436_v62, %v7427_v59 }
  0xbb   : > { %v2823_v14 = vadd.f32 %v7436_v62, %v7429_v60 }
  0xbc   : > { %v3465_v21 = vpop.f32.mrf.mxu2  ;;  %v3785_v22 = vpop.f32.mrf.mxu3  ;;  %v4481_v59 = vmax.f32 %v3781_v13, 0.0 }
  0xbd   : > { %v3466_v23 = vadd.f32 %v7436_v62, %v3465_v21  ;;  %v3786_v24 = vadd.f32 %v7436_v62, %v3785_v22  ;;  %v2827_v25 = vpop.f32.mrf.mxu0  ;;  %v3147_v26 = vpop.f32.mrf.mxu1 }
  0xbe   : > { %v2828_v27 = vadd.f32 %v7436_v62, %v2827_v25  ;;  %v3148_v28 = vadd.f32 %v7436_v62, %v3147_v26  ;;  %v4353_v25 = vmax.f32 %v3461_v12, 0.0  ;;  %v7208_v12 = vld [vmem:[%s7339_s26 + $0x668] sm:$0xff] }
  0xbf   : > { %v4355_v31 = vmax.f32 %v3466_v23, 0.0  ;;  %v4483_v32 = vmax.f32 %v3786_v24, 0.0 }
  0xc0   : > { %v4100_v35 = vmax.f32 %v2828_v27, 0.0  ;;  %v4228_v36 = vmax.f32 %v3148_v28, 0.0  ;;  %v4098_v27 = vmax.f32 %v2823_v14, 0.0 }
  0xc1   : > { %v7466_v37 = vmax.f32 %v4351_v29, %v4355_v31  ;;  %v7468_v38 = vmax.f32 %v4479_v30, %v4483_v32 }
  0xc2   : > { %v7470_v39 = vmax.f32 %v4096_v33, %v4100_v35  ;;  %v7472_v40 = vmax.f32 %v4224_v34, %v4228_v36  ;;  %v3463_v34 = vadd.f32 %v7436_v62, %v7440_v1  ;;  %v3783_v35 = vadd.f32 %v7436_v62, %v7442_v2 }
  0xc4   : > { %v3467_v45 = vpop.f32.mrf.mxu2  ;;  %v3787_v46 = vpop.f32.mrf.mxu3 }
  0xc5   : > { %v3468_v49 = vadd.f32 %v7436_v62, %v3467_v45  ;;  %v3788_v52 = vadd.f32 %v7436_v62, %v3787_v46  ;;  %v2830_v53 = vpop.f32.mrf.mxu0  ;;  %v3150_v56 = vpop.f32.mrf.mxu1 }
  0xc6   : > { %v2831_v50 = vadd.f32 %v7436_v62, %v2830_v53  ;;  %v3151_v51 = vadd.f32 %v7436_v62, %v3150_v56  ;;  %v4482_v53 = vmax.f32 %v3783_v35, 0.0 }
  0xc7   : > { %v4356_v3 = vmax.f32 %v3468_v49, 0.0  ;;  %v4484_v55 = vmax.f32 %v3788_v52, 0.0  ;;  %v7207_v49 = vld [vmem:[%s7339_s26 + $0x660] sm:$0xff]  ;;  %v4354_v52 = vmax.f32 %v3463_v34, 0.0 }
  0xc8   : > { %v4101_v6 = vmax.f32 %v2831_v50, 0.0  ;;  %v4229_v7 = vmax.f32 %v3151_v51, 0.0  ;;  %6753 = vmatmul.msk.bf16.gmra.mxu0 %vm2030_vm2, %v7014_v47  ;;  %6817 = vmatmul.msk.bf16.gmra.mxu1 %vm2030_vm2, %v7078_v48  ;;  %v7143_v48 = vld [vmem:[%s7339_s26 + $0x460] sm:$0xff] }
  0xc9   : > { %v7490_v8 = vmax.f32 %v4352_v0, %v4356_v3  ;;  %v7492_v9 = vmax.f32 %v4480_v54, %v4484_v55  ;;  %6881 = vmatmul.msk.bf16.gmra.mxu2 %vm2030_vm2, %v7142_v57  ;;  %6945 = vmatmul.msk.bf16.gmra.mxu3 %vm2030_vm2, %v7206_v63  ;;  %v7016_v55 = vld [vmem:[%s7339_s26 + $0x68] sm:$0xff]  ;;  %v4991_v34 = vld [vmem:[%s7560_s6] sm:$0xff] }
  0xca   : > { %v7496_v10 = vmax.f32 %v4097_v4, %v4101_v6  ;;  %v7498_v11 = vmax.f32 %v4225_v5, %v4229_v7  ;;  %v7080_v4 = vld [vmem:[%s7339_s26 + $0x268] sm:$0xff]  ;;  %vm5119_vm3 = vcmp.ge.f32.partialorder %v4991_v34, 0.5 }
  0xcb   : > { %v7144_v7 = vld [vmem:[%s7339_s26 + $0x468] sm:$0xff] }
  0xcc   : > { %v3470_v18 = vpop.f32.mrf.mxu2  ;;  %v3790_v19 = vpop.f32.mrf.mxu3 }
  0xcd   : > { %v3471_v20 = vadd.f32 %v7436_v62, %v3470_v18  ;;  %v3791_v21 = vadd.f32 %v7436_v62, %v3790_v19  ;;  %v2832_v22 = vpop.f32.mrf.mxu0  ;;  %v3152_v23 = vpop.f32.mrf.mxu1 }
  0xce   : > { %v2833_v24 = vadd.f32 %v7436_v62, %v2832_v22  ;;  %v3153_v58 = vadd.f32 %v7436_v62, %v3152_v23  ;;  %v7017_v23 = vld [vmem:[%s7339_s26 + $0x70] sm:$0xff] }
  0xcf   : > { %v4357_v60 = vmax.f32 %v3471_v20, 0.0  ;;  %v4485_v26 = vmax.f32 %v3791_v21, 0.0 }
  0xd0   : > { %v4102_v28 = vmax.f32 %v2833_v24, 0.0  ;;  %v4230_v29 = vmax.f32 %v3153_v58, 0.0  ;;  %v7081_v24 = vld [vmem:[%s7339_s26 + $0x270] sm:$0xff] }
  0xd1   : > { %v7512_v30 = vmax.f32 %v4353_v25, %v4357_v60  ;;  %v7514_v31 = vmax.f32 %v4481_v59, %v4485_v26  ;;  %v7145_v26 = vld [vmem:[%s7339_s26 + $0x470] sm:$0xff] }
  0xd2   : > { %v7516_v32 = vmax.f32 %v4098_v27, %v4102_v28  ;;  %v7518_v33 = vmax.f32 %v4226_v61, %v4230_v29  ;;  %v7209_v27 = vld [vmem:[%s7339_s26 + $0x670] sm:$0xff] }
  0xd4   : > { %v3472_v36 = vpop.f32.mrf.mxu2  ;;  %v3792_v41 = vpop.f32.mrf.mxu3 }
  0xd5   : > { %v3473_v44 = vadd.f32 %v7436_v62, %v3472_v36  ;;  %v3793_v45 = vadd.f32 %v7436_v62, %v3792_v41  ;;  %v2835_v46 = vpop.f32.mrf.mxu0  ;;  %v3155_v47 = vpop.f32.mrf.mxu1 }
  0xd6   : > { %v2836_v19 = vadd.f32 %v7436_v62, %v2835_v46  ;;  %v3156_v20 = vadd.f32 %v7436_v62, %v3155_v47  ;;  %v7591_v47 = vld [vmem:[%s7560_s6 + $0x200] sm:$0xff] }
  0xd7   : > { %v4358_v1 = vmax.f32 %v3473_v44, 0.0  ;;  %v4486_v56 = vmax.f32 %v3793_v45, 0.0  ;;  %v5023_v44 = vld [vmem:[%s7560_s6 + $0x100] sm:$0xff]  ;;  %vm5183_vm6 = vcmp.ge.f32.partialorder %v7591_v47, 0.5 }
  0xd8   : > { %6754 = vmatmul.msk.bf16.gmra.mxu0 %vm2030_vm2, %v7015_v42  ;;  %6818 = vmatmul.msk.bf16.gmra.mxu1 %vm2030_vm2, %v7079_v43  ;;  %v4103_v36 = vmax.f32 %v2836_v19, 0.0  ;;  %v4231_v41 = vmax.f32 %v3156_v20, 0.0  ;;  %vm5151_vm5 = vcmp.ge.f32.partialorder %v5023_v44, 0.5 }
  0xd9   : > { %v7532_v2 = vmax.f32 %v4354_v52, %v4358_v1  ;;  %v7534_v57 = vmax.f32 %v4482_v53, %v4486_v56  ;;  %6882 = vmatmul.msk.bf16.gmra.mxu2 %vm2030_vm2, %v7143_v48  ;;  %6946 = vmatmul.msk.bf16.gmra.mxu3 %vm2030_vm2, %v7207_v49  ;;  %v7594_v1 = vld [vmem:[%s7560_s6 + $0x300] sm:$0xff] }
  0xda   : > { %vm5215_vm7 = vcmp.ge.f32.partialorder %v7594_v1, 0.5 }
  0xdc   : > { %v3475_v63 = vpop.f32.mrf.mxu2  ;;  %v3795_v50 = vpop.f32.mrf.mxu3 }
  0xdd   : > { %v2837_v51 = vpop.f32.mrf.mxu0  ;;  %v3157_v0 = vpop.f32.mrf.mxu1  ;;  %v7571_v58 = vadd.f32 %v7436_v62, %v3475_v63  ;;  %v7574_v25 = vadd.f32 %v7436_v62, %v3795_v50 }
  0xde   : > { %v2838_v61 = vadd.f32 %v7436_v62, %v2837_v51  ;;  %v3158_v28 = vadd.f32 %v7436_v62, %v3157_v0 }
  0xdf   : > { %v4359_v45 = vmax.f32 %v7571_v58, 0.0  ;;  %v4487_v46 = vmax.f32 %v7574_v25, 0.0  ;;  %v4992_v25 = vld [vmem:[%s7560_s6 + $0x8] sm:$0xff] }
  0xe0   : > { %v4104_v48 = vmax.f32 %v2838_v61, 0.0  ;;  %v4232_v49 = vmax.f32 %v3158_v28, 0.0  ;;  %vm5120_vm8 = vcmp.ge.f32.partialorder %v4992_v25, 0.5  ;;  %v5025_v25 = vld [vmem:[%s7560_s6 + $0x110] sm:$0xff] }
  0xe1   : > { %vm5153_vm13 = vcmp.ge.f32.partialorder %v5025_v25, 0.5 }
  0xe4   : > { %v3477_v54 = vpop.f32.mrf.mxu2  ;;  %v3797_v3 = vpop.f32.mrf.mxu3 }
  0xe5   : > { %v2840_v5 = vpop.f32.mrf.mxu0  ;;  %v3160_v6 = vpop.f32.mrf.mxu1  ;;  %v7597_v56 = vadd.f32 %v7436_v62, %v3477_v54  ;;  %v7600_v63 = vadd.f32 %v7436_v62, %v3797_v3 }
  0xe6   : > { %v7603_v50 = vadd.f32 %v7436_v62, %v2840_v5  ;;  %v7609_v54 = vadd.f32 %v7436_v62, %v3160_v6 }
  0xe7   : > { %v4360_v20 = vmax.f32 %v7597_v56, 0.0 }
  0xe8   : > { %6755 = vmatmul.msk.bf16.gmra.mxu0 %vm2030_vm2, %v7016_v55  ;;  %6819 = vmatmul.msk.bf16.gmra.mxu1 %vm2030_vm2, %v7080_v4  ;;  %v4105_v28 = vmax.f32 %v7603_v50, 0.0 }
  0xe9   : > { %6883 = vmatmul.msk.bf16.gmra.mxu2 %vm2030_vm2, %v7144_v7  ;;  %6947 = vmatmul.msk.bf16.gmra.mxu3 %vm2030_vm2, %v7208_v12 }
  0xec   : > { %v7546_v13 = vpop.f32.mrf.mxu2  ;;  %v7548_v14 = vpop.f32.mrf.mxu3 }
  0xed   : > { %v7550_v17 = vpop.f32.mrf.mxu0  ;;  %v7552_v18 = vpop.f32.mrf.mxu1 }
  0xf4   : > { %v7564_v21 = vpop.f32.mrf.mxu2  ;;  %v7566_v22 = vpop.f32.mrf.mxu3 }
  0xf5   : > { %v2845_v59 = vpop.f32.mrf.mxu0  ;;  %v3165_v60 = vpop.f32.mrf.mxu1 }
  0xf6   : > { %v2846_v29 = vadd.f32 %v7436_v62, %v2845_v59  ;;  %v3166_v35 = vadd.f32 %v7436_v62, %v3165_v60  ;;  %v5024_v59 = vld [vmem:[%s7560_s6 + $0x108] sm:$0xff] }
  0xf7   : > { %vm5152_vm9 = vcmp.ge.f32.partialorder %v5024_v59, 0.5 }
  0xf8   : > { %v4107_v42 = vmax.f32 %v2846_v29, 0.0  ;;  %v4235_v43 = vmax.f32 %v3166_v35, 0.0  ;;  %6756 = vmatmul.msk.bf16.gmra.mxu0 %vm2030_vm2, %v7017_v23  ;;  %6820 = vmatmul.msk.bf16.gmra.mxu1 %vm2030_vm2, %v7081_v24  ;;  %v4488_v23 = vmax.f32 %v7600_v63, 0.0  ;;  %v4233_v29 = vmax.f32 %v7609_v54, 0.0 }
  0xf9   : > { %6884 = vmatmul.msk.bf16.gmra.mxu2 %vm2030_vm2, %v7145_v26  ;;  %6948 = vmatmul.msk.bf16.gmra.mxu3 %vm2030_vm2, %v7209_v27 }
  0xfa   : > { %v4735_v52 = vmax.f32 %v4103_v36, %v4107_v42  ;;  %v4767_v53 = vmax.f32 %v4231_v41, %v4235_v43  ;;  %v7637_v42 = vadd.f32 %v7436_v62, %v7546_v13  ;;  %v7641_v43 = vadd.f32 %v7436_v62, %v7548_v14 }
  0xfc   : > { %v4863_v51 = vmax.f32 %v7454_v15, %v4735_v52  ;;  %v4895_v0 = vmax.f32 %v7456_v16, %v4767_v53  ;;  %v3485_v55 = vpop.f32.mrf.mxu2  ;;  %v3805_v4 = vpop.f32.mrf.mxu3  ;;  %v7082_v53 = vld [vmem:[%s7339_s26 + $0x278] sm:$0xff]  ;;  %v4361_v47 = vmax.f32 %v7637_v42, 0.0  ;;  %v4489_v59 = vmax.f32 %v7641_v43, 0.0 }
  0xfd   : > { %v3486_v3 = vadd.f32 %v7436_v62, %v3485_v55  ;;  %v3806_v7 = vadd.f32 %v7436_v62, %v3805_v4  ;;  %v2847_v5 = vpop.f32.mrf.mxu0  ;;  %v3167_v12 = vpop.f32.mrf.mxu1  ;;  %v5056_v4 = vld [vmem:[%s7560_s6 + $0x208] sm:$0xff] }
  0xfe   : > { %v5247_v15 = vmul.f32 2.0, %v4863_v51  ;;  %v5279_v16 = vmul.f32 2.0, %v4895_v0  ;;  %v2848_v6 = vadd.f32 %v7436_v62, %v2847_v5  ;;  %v3168_v19 = vadd.f32 %v7436_v62, %v3167_v12  ;;  %v7146_v51 = vld [vmem:[%s7339_s26 + $0x478] sm:$0xff] }
  0xff   : > { %v4363_v24 = vmax.f32 %v3486_v3, 0.0  ;;  %v4491_v58 = vmax.f32 %v3806_v7, 0.0  ;;  %v7210_v0 = vld [vmem:[%s7339_s26 + $0x678] sm:$0xff]  ;;  %vm5184_vm10 = vcmp.ge.f32.partialorder %v5056_v4, 0.5 }
 0x100   : > { %v5375_v60 = vsel %vm5119_vm3, %v5247_v15, 0.0  ;;  %v5407_v26 = vsel %vm5151_vm5, %v5279_v16, 0.0  ;;  %v4108_v27 = vmax.f32 %v2848_v6, 0.0  ;;  %v4236_v61 = vmax.f32 %v3168_v19, 0.0  ;;  %v5088_v15 = vld [vmem:[%s7560_s6 + $0x308] sm:$0xff] }
 0x101   : > { %5504 = vst.msk [vmem:[%s7619_s9] sm:$0xff] %vm5503_vm4, %v5375_v60  ;;  %v4799_v35 = vmax.f32 %v4359_v45, %v4363_v24  ;;  %v4831_v36 = vmax.f32 %v4487_v46, %v4491_v58  ;;  %v7647_v46 = vadd.f32 %v7436_v62, %v7550_v17  ;;  %v4993_v60 = vld [vmem:[%s7560_s6 + $0x10] sm:$0xff]  ;;  %vm5216_vm11 = vcmp.ge.f32.partialorder %v5088_v15, 0.5 }
 0x102   : > { %5536 = vst.msk [vmem:[%s7619_s9 + $0x100] sm:$0xff] %vm5503_vm4, %v5407_v26  ;;  %v4736_v41 = vmax.f32 %v4104_v48, %v4108_v27  ;;  %v4768_v34 = vmax.f32 %v4232_v49, %v4236_v61  ;;  %v7651_v48 = vadd.f32 %v7436_v62, %v7552_v18  ;;  %vm5121_vm12 = vcmp.ge.f32.partialorder %v4993_v60, 0.5 }
 0x103   : > { %v4927_v44 = vmax.f32 %v7466_v37, %v4799_v35  ;;  %v4959_v45 = vmax.f32 %v7468_v38, %v4831_v36  ;;  %v7018_v37 = vld [vmem:[%s7339_s26 + $0x78] sm:$0xff]  ;;  %v4106_v61 = vmax.f32 %v7647_v46, 0.0 }
 0x104   : > { %v4864_v13 = vmax.f32 %v7470_v39, %v4736_v41  ;;  %v4896_v14 = vmax.f32 %v7472_v40, %v4768_v34  ;;  %v3487_v49 = vpop.f32.mrf.mxu2  ;;  %v3807_v52 = vpop.f32.mrf.mxu3  ;;  %v4234_v35 = vmax.f32 %v7651_v48, 0.0 }
 0x105   : > { %v5311_v56 = vmul.f32 2.0, %v4927_v44  ;;  %v5343_v38 = vmul.f32 2.0, %v4959_v45  ;;  %v3488_v63 = vadd.f32 %v7436_v62, %v3487_v49  ;;  %v3808_v17 = vadd.f32 %v7436_v62, %v3807_v52  ;;  %v2850_v50 = vpop.f32.mrf.mxu0  ;;  %v3170_v18 = vpop.f32.mrf.mxu1  ;;  %v5057_v49 = vld [vmem:[%s7560_s6 + $0x210] sm:$0xff] }
 0x106   : > { %v5248_v39 = vmul.f32 2.0, %v4864_v13  ;;  %v5280_v55 = vmul.f32 2.0, %v4896_v14  ;;  %v2851_v40 = vadd.f32 %v7436_v62, %v2850_v50  ;;  %v3171_v54 = vadd.f32 %v7436_v62, %v3170_v18  ;;  %v4994_v18 = vld [vmem:[%s7560_s6 + $0x18] sm:$0xff] }
 0x107   : > { %v5439_v3 = vsel %vm5183_vm6, %v5311_v56, 0.0  ;;  %v5471_v7 = vsel %vm5215_vm7, %v5343_v38, 0.0  ;;  %v4364_v5 = vmax.f32 %v3488_v63, 0.0  ;;  %v4492_v12 = vmax.f32 %v3808_v17, 0.0  ;;  %v5089_v56 = vld [vmem:[%s7560_s6 + $0x310] sm:$0xff] }
 0x108   : > { %5568 = vst.msk [vmem:[%s7619_s9 + $0x200] sm:$0xff] %vm5503_vm4, %v5439_v3  ;;  %v5376_v16 = vsel %vm5120_vm8, %v5248_v39, 0.0  ;;  %v5408_v6 = vsel %vm5152_vm9, %v5280_v55, 0.0  ;;  %v4109_v19 = vmax.f32 %v2851_v40, 0.0  ;;  %v4237_v24 = vmax.f32 %v3171_v54, 0.0  ;;  %6757 = vmatmul.msk.bf16.gmra.mxu0 %vm2030_vm2, %v7018_v37  ;;  %6821 = vmatmul.msk.bf16.gmra.mxu1 %vm2030_vm2, %v7082_v53 }
 0x109   : > { %5600 = vst.msk [vmem:[%s7619_s9 + $0x300] sm:$0xff] %vm5503_vm4, %v5471_v7  ;;  %v4800_v1 = vmax.f32 %v4360_v20, %v4364_v5  ;;  %v4832_v58 = vmax.f32 %v4488_v23, %v4492_v12  ;;  %6885 = vmatmul.msk.bf16.gmra.mxu2 %vm2030_vm2, %v7146_v51  ;;  %6949 = vmatmul.msk.bf16.gmra.mxu3 %vm2030_vm2, %v7210_v0  ;;  %v5026_v51 = vld [vmem:[%s7560_s6 + $0x118] sm:$0xff]  ;;  %vm5185_vm14 = vcmp.ge.f32.partialorder %v5057_v49, 0.5  ;;  %vm5217_vm15 = vcmp.ge.f32.partialorder %v5089_v56, 0.5  ;;  %v7019_v5 = vld [vmem:[%s7339_s26 + $0x80] sm:$0xff] }
 0x10a   : > { %5505 = vst.msk [vmem:[%s7619_s9 + $0x8] sm:$0xff] %vm5503_vm4, %v5376_v16  ;;  %v4737_v26 = vmax.f32 %v4105_v28, %v4109_v19  ;;  %v4769_v27 = vmax.f32 %v4233_v29, %v4237_v24  ;;  %v3483_v0 = vadd.f32 %v7436_v62, %v7564_v21  ;;  %v3803_v39 = vadd.f32 %v7436_v62, %v7566_v22  ;;  %v7083_v12 = vld [vmem:[%s7339_s26 + $0x280] sm:$0xff] }
 0x10b   : > { %5537 = vst.msk [vmem:[%s7619_s9 + $0x108] sm:$0xff] %vm5503_vm4, %v5408_v6  ;;  %v4928_v20 = vmax.f32 %v7490_v8, %v4800_v1  ;;  %v4960_v23 = vmax.f32 %v7492_v9, %v4832_v58  ;;  %vm5122_vm0 = vcmp.ge.f32.partialorder %v4994_v18, 0.5  ;;  %vm5154_vm1 = vcmp.ge.f32.partialorder %v5026_v51, 0.5  ;;  %v7147_v24 = vld [vmem:[%s7339_s26 + $0x480] sm:$0xff]  ;;  %v7085_v18 = vld [vmem:[%s7339_s26 + $0x290] sm:$0xff] }
 0x10c   : > { %v4865_v36 = vmax.f32 %v7496_v10, %v4737_v26  ;;  %v4897_v41 = vmax.f32 %v7498_v11, %v4769_v27  ;;  %v3490_v34 = vpop.f32.mrf.mxu2  ;;  %v3810_v28 = vpop.f32.mrf.mxu3 }
 0x10d   : > { %v5312_v29 = vmul.f32 2.0, %v4928_v20  ;;  %v5344_v42 = vmul.f32 2.0, %v4960_v23  ;;  %v3491_v43 = vadd.f32 %v7436_v62, %v3490_v34  ;;  %v3811_v44 = vadd.f32 %v7436_v62, %v3810_v28  ;;  %v2852_v8 = vpop.f32.mrf.mxu0  ;;  %v3172_v45 = vpop.f32.mrf.mxu1  ;;  %v5058_v20 = vld [vmem:[%s7560_s6 + $0x218] sm:$0xff] }
 0x10e   : > { %v5249_v9 = vmul.f32 2.0, %v4865_v36  ;;  %v5281_v10 = vmul.f32 2.0, %v4897_v41  ;;  %v2853_v46 = vadd.f32 %v7436_v62, %v2852_v8  ;;  %v3173_v11 = vadd.f32 %v7436_v62, %v3172_v45  ;;  %v5090_v36 = vld [vmem:[%s7560_s6 + $0x318] sm:$0xff] }
 0x10f   : > { %v5440_v48 = vsel %vm5184_vm10, %v5312_v29, 0.0  ;;  %v5472_v13 = vsel %vm5216_vm11, %v5344_v42, 0.0  ;;  %v4365_v14 = vmax.f32 %v3491_v43, 0.0  ;;  %v4493_v52 = vmax.f32 %v3811_v44, 0.0 }
 0x110   : > { %5569 = vst.msk [vmem:[%s7619_s9 + $0x208] sm:$0xff] %vm5503_vm4, %v5440_v48  ;;  %v5377_v37 = vsel %vm5121_vm12, %v5249_v9, 0.0  ;;  %v5409_v53 = vsel %vm5153_vm13, %v5281_v10, 0.0  ;;  %v4110_v38 = vmax.f32 %v2853_v46, 0.0  ;;  %v4238_v63 = vmax.f32 %v3173_v11, 0.0  ;;  %v7084_v46 = vld [vmem:[%s7339_s26 + $0x288] sm:$0xff] }
 0x111   : > { %5601 = vst.msk [vmem:[%s7619_s9 + $0x308] sm:$0xff] %vm5503_vm4, %v5472_v13  ;;  %v4801_v17 = vmax.f32 %v4361_v47, %v4365_v14  ;;  %v4833_v50 = vmax.f32 %v4489_v59, %v4493_v52  ;;  %v4362_v47 = vmax.f32 %v3483_v0, 0.0  ;;  %vm5186_vm3 = vcmp.ge.f32.partialorder %v5058_v20, 0.5  ;;  %v7148_v13 = vld [vmem:[%s7339_s26 + $0x488] sm:$0xff] }
 0x112   : > { %5506 = vst.msk [vmem:[%s7619_s9 + $0x10] sm:$0xff] %vm5503_vm4, %v5377_v37  ;;  %v4738_v55 = vmax.f32 %v4106_v61, %v4110_v38  ;;  %v4770_v4 = vmax.f32 %v4234_v35, %v4238_v63  ;;  %vm5218_vm5 = vcmp.ge.f32.partialorder %v5090_v36, 0.5  ;;  %v7212_v14 = vld [vmem:[%s7339_s26 + $0x688] sm:$0xff] }
 0x113   : > { %5538 = vst.msk [vmem:[%s7619_s9 + $0x110] sm:$0xff] %vm5503_vm4, %v5409_v53  ;;  %v4929_v40 = vmax.f32 %v7512_v30, %v4801_v17  ;;  %v4961_v54 = vmax.f32 %v7514_v31, %v4833_v50  ;;  %v7021_v50 = vld [vmem:[%s7339_s26 + $0x90] sm:$0xff] }
 0x114   : > { %v4866_v21 = vmax.f32 %v7516_v32, %v4738_v55  ;;  %v4898_v22 = vmax.f32 %v7518_v33, %v4770_v4  ;;  %v3492_v3 = vpop.f32.mrf.mxu2  ;;  %v3812_v7 = vpop.f32.mrf.mxu3  ;;  %v7211_v32 = vld [vmem:[%s7339_s26 + $0x680] sm:$0xff]  ;;  %v4490_v33 = vmax.f32 %v3803_v39, 0.0  ;;  %v7149_v39 = vld [vmem:[%s7339_s26 + $0x490] sm:$0xff] }
 0x115   : > { %v5313_v15 = vmul.f32 2.0, %v4929_v40  ;;  %v5345_v16 = vmul.f32 2.0, %v4961_v54  ;;  %v3493_v30 = vadd.f32 %v7436_v62, %v3492_v3  ;;  %v3813_v31 = vadd.f32 %v7436_v62, %v3812_v7  ;;  %v2855_v6 = vpop.f32.mrf.mxu0  ;;  %v3175_v19 = vpop.f32.mrf.mxu1  ;;  %v7213_v55 = vld [vmem:[%s7339_s26 + $0x690] sm:$0xff] }
 0x116   : > { %v5250_v1 = vmul.f32 2.0, %v4866_v21  ;;  %v5282_v58 = vmul.f32 2.0, %v4898_v22  ;;  %v2856_v56 = vadd.f32 %v7436_v62, %v2855_v6  ;;  %v3176_v38 = vadd.f32 %v7436_v62, %v3175_v19 }
 0x117   : > { %v5441_v60 = vsel %vm5185_vm14, %v5313_v15, 0.0  ;;  %v5473_v25 = vsel %vm5217_vm15, %v5345_v16, 0.0  ;;  %v4366_v59 = vmax.f32 %v3493_v30, 0.0  ;;  %v4494_v26 = vmax.f32 %v3813_v31, 0.0 }
 0x118   : > { %5570 = vst.msk [vmem:[%s7619_s9 + $0x210] sm:$0xff] %vm5503_vm4, %v5441_v60  ;;  %v5378_v27 = vsel %vm5122_vm0, %v5250_v1, 0.0  ;;  %v5410_v61 = vsel %vm5154_vm1, %v5282_v58, 0.0  ;;  %6758 = vmatmul.msk.bf16.gmra.mxu0 %vm2030_vm2, %v7019_v5  ;;  %6822 = vmatmul.msk.bf16.gmra.mxu1 %vm2030_vm2, %v7083_v12  ;;  %v4111_v54 = vmax.f32 %v2856_v56, 0.0  ;;  %v4239_v21 = vmax.f32 %v3176_v38, 0.0  ;;  %v7214_v56 = vld [vmem:[%s7339_s26 + $0x698] sm:$0xff] }
 0x119   : > { %5602 = vst.msk [vmem:[%s7619_s9 + $0x310] sm:$0xff] %vm5503_vm4, %v5473_v25  ;;  %v4802_v35 = vmax.f32 %v4362_v47, %v4366_v59  ;;  %v4834_v23 = vmax.f32 %v4490_v33, %v4494_v26  ;;  %6886 = vmatmul.msk.bf16.gmra.mxu2 %vm2030_vm2, %v7147_v24  ;;  %6950 = vmatmul.msk.bf16.gmra.mxu3 %vm2030_vm2, %v7211_v32 }
 0x11a   : > { %5507 = vst.msk [vmem:[%s7619_s9 + $0x18] sm:$0xff] %vm5503_vm4, %v5378_v27 }
 0x11b   : > { %5539 = vst.msk [vmem:[%s7619_s9 + $0x118] sm:$0xff] %vm5503_vm4, %v5410_v61  ;;  %v4930_v41 = vmax.f32 %v7532_v2, %v4802_v35  ;;  %v4962_v34 = vmax.f32 %v7534_v57, %v4834_v23  ;;  %v7020_v57 = vld [vmem:[%s7339_s26 + $0x88] sm:$0xff] }
 0x11c   : > { %v3495_v28 = vpop.f32.mrf.mxu2  ;;  %v3815_v29 = vpop.f32.mrf.mxu3 }
 0x11d   : > { %v5314_v42 = vmul.f32 2.0, %v4930_v41  ;;  %v5346_v43 = vmul.f32 2.0, %v4962_v34  ;;  %v2857_v44 = vpop.f32.mrf.mxu0  ;;  %v3177_v8 = vpop.f32.mrf.mxu1  ;;  %v3496_v12 = vadd.f32 %v7436_v62, %v3495_v28  ;;  %v3816_v15 = vadd.f32 %v7436_v62, %v3815_v29 }
 0x11e   : > { %v2858_v16 = vadd.f32 %v7436_v62, %v2857_v44  ;;  %v3178_v30 = vadd.f32 %v7436_v62, %v3177_v8  ;;  %v7022_v8 = vld [vmem:[%s7339_s26 + $0x98] sm:$0xff] }
 0x11f   : > { %v5442_v45 = vsel %vm5186_vm3, %v5314_v42, 0.0  ;;  %v5474_v9 = vsel %vm5218_vm5, %v5346_v43, 0.0  ;;  %v4367_v58 = vmax.f32 %v3496_v12, 0.0  ;;  %v4495_v60 = vmax.f32 %v3816_v15, 0.0 }
 0x120   : > { %5571 = vst.msk [vmem:[%s7619_s9 + $0x218] sm:$0xff] %vm5503_vm4, %v5442_v45  ;;  %v4112_v26 = vmax.f32 %v2858_v16, 0.0  ;;  %v4240_v27 = vmax.f32 %v3178_v30, 0.0  ;;  %v7086_v45 = vld [vmem:[%s7339_s26 + $0x298] sm:$0xff] }
 0x121   : > { %5603 = vst.msk [vmem:[%s7619_s9 + $0x318] sm:$0xff] %vm5503_vm4, %v5474_v9 }
 0x124   : > { %v3497_v2 = vpop.f32.mrf.mxu2  ;;  %v3817_v10 = vpop.f32.mrf.mxu3 }
 0x125   : > { %v2860_v11 = vpop.f32.mrf.mxu0  ;;  %v3180_v48 = vpop.f32.mrf.mxu1  ;;  %v3498_v34 = vadd.f32 %v7436_v62, %v3497_v2  ;;  %v3818_v28 = vadd.f32 %v7436_v62, %v3817_v10 }
 0x126   : > { %v2861_v29 = vadd.f32 %v7436_v62, %v2860_v11  ;;  %v3181_v42 = vadd.f32 %v7436_v62, %v3180_v48 }
 0x127   : > { %v4368_v38 = vmax.f32 %v3498_v34, 0.0  ;;  %v4496_v11 = vmax.f32 %v3818_v28, 0.0  ;;  %v7023_v28 = vld [vmem:[%s7339_s26 + $0xa0] sm:$0xff] }
 0x128   : > { %6759 = vmatmul.msk.bf16.gmra.mxu0 %vm2030_vm2, %v7020_v57  ;;  %6823 = vmatmul.msk.bf16.gmra.mxu1 %vm2030_vm2, %v7084_v46 }
 0x129   : > { %6887 = vmatmul.msk.bf16.gmra.mxu2 %vm2030_vm2, %v7148_v13  ;;  %6951 = vmatmul.msk.bf16.gmra.mxu3 %vm2030_vm2, %v7212_v14  ;;  %v7150_v14 = vld [vmem:[%s7339_s26 + $0x498] sm:$0xff] }
 0x12c   : > { %v7759_v49 = vpop.f32.mrf.mxu2  ;;  %v7761_v52 = vpop.f32.mrf.mxu3 }
 0x12d   : > { %v7763_v37 = vpop.f32.mrf.mxu0  ;;  %v7765_v53 = vpop.f32.mrf.mxu1 }
 0x12e   : > { %v3183_v12 = vadd.f32 %v7436_v62, %v7765_v53 }
 0x130   : > { %v4242_v53 = vmax.f32 %v3183_v12, 0.0 }
 0x134   : > { %v7769_v63 = vpop.f32.mrf.mxu2  ;;  %v7771_v17 = vpop.f32.mrf.mxu3 }
 0x135   : > { %v2865_v51 = vpop.f32.mrf.mxu0  ;;  %v3185_v0 = vpop.f32.mrf.mxu1 }
 0x136   : > { %v2866_v4 = vadd.f32 %v7436_v62, %v2865_v51  ;;  %v3186_v40 = vadd.f32 %v7436_v62, %v3185_v0  ;;  %v4241_v51 = vmax.f32 %v3181_v42, 0.0 }
 0x138   : > { %v4115_v22 = vmax.f32 %v2866_v4, 0.0  ;;  %v4243_v3 = vmax.f32 %v3186_v40, 0.0  ;;  %6760 = vmatmul.msk.bf16.gmra.mxu0 %vm2030_vm2, %v7021_v50  ;;  %6824 = vmatmul.msk.bf16.gmra.mxu1 %vm2030_vm2, %v7085_v18  ;;  %v4113_v18 = vmax.f32 %v2861_v29, 0.0  ;;  %v7087_v29 = vld [vmem:[%s7339_s26 + $0x2a0] sm:$0xff] }
 0x139   : > { %6888 = vmatmul.msk.bf16.gmra.mxu2 %vm2030_vm2, %v7149_v39  ;;  %6952 = vmatmul.msk.bf16.gmra.mxu3 %vm2030_vm2, %v7213_v55 }
 0x13a   : > { %v7783_v7 = vmax.f32 %v4111_v54, %v4115_v22  ;;  %v7785_v5 = vmax.f32 %v4239_v21, %v4243_v3  ;;  %v3501_v21 = vadd.f32 %v7436_v62, %v7759_v49  ;;  %v3821_v22 = vadd.f32 %v7436_v62, %v7761_v52 }
 0x13b   : > { %v2863_v3 = vadd.f32 %v7436_v62, %v7763_v37 }
 0x13c   : > { %v3505_v31 = vpop.f32.mrf.mxu2  ;;  %v3825_v6 = vpop.f32.mrf.mxu3  ;;  %v4497_v52 = vmax.f32 %v3821_v22, 0.0 }
 0x13d   : > { %v3506_v19 = vadd.f32 %v7436_v62, %v3505_v31  ;;  %v3826_v24 = vadd.f32 %v7436_v62, %v3825_v6  ;;  %v2867_v32 = vpop.f32.mrf.mxu0  ;;  %v3187_v47 = vpop.f32.mrf.mxu1 }
 0x13e   : > { %v2868_v33 = vadd.f32 %v7436_v62, %v2867_v32  ;;  %v3188_v1 = vadd.f32 %v7436_v62, %v3187_v47  ;;  %v4369_v32 = vmax.f32 %v3501_v21, 0.0 }
 0x13f   : > { %v4371_v25 = vmax.f32 %v3506_v19, 0.0  ;;  %v4499_v59 = vmax.f32 %v3826_v24, 0.0 }
 0x140   : > { %v4116_v61 = vmax.f32 %v2868_v33, 0.0  ;;  %v4244_v35 = vmax.f32 %v3188_v1, 0.0  ;;  %v4114_v33 = vmax.f32 %v2863_v3, 0.0 }
 0x141   : > { %v7795_v20 = vmax.f32 %v4367_v58, %v4371_v25  ;;  %v7797_v23 = vmax.f32 %v4495_v60, %v4499_v59 }
 0x142   : > { %v7799_v36 = vmax.f32 %v4112_v26, %v4116_v61  ;;  %v7801_v41 = vmax.f32 %v4240_v27, %v4244_v35  ;;  %v3503_v27 = vadd.f32 %v7436_v62, %v7769_v63  ;;  %v3823_v61 = vadd.f32 %v7436_v62, %v7771_v17 }
 0x144   : > { %v3507_v43 = vpop.f32.mrf.mxu2  ;;  %v3827_v44 = vpop.f32.mrf.mxu3 }
 0x145   : > { %v3508_v9 = vadd.f32 %v7436_v62, %v3507_v43  ;;  %v3828_v57 = vadd.f32 %v7436_v62, %v3827_v44  ;;  %v2870_v46 = vpop.f32.mrf.mxu0  ;;  %v3190_v13 = vpop.f32.mrf.mxu1 }
 0x146   : > { %v2871_v2 = vadd.f32 %v7436_v62, %v2870_v46  ;;  %v3191_v10 = vadd.f32 %v7436_v62, %v3190_v13  ;;  %v4498_v46 = vmax.f32 %v3823_v61, 0.0 }
 0x147   : > { %v4372_v50 = vmax.f32 %v3508_v9, 0.0  ;;  %v4500_v48 = vmax.f32 %v3828_v57, 0.0  ;;  %v7215_v9 = vld [vmem:[%s7339_s26 + $0x6a0] sm:$0xff]  ;;  %v4370_v57 = vmax.f32 %v3503_v27, 0.0 }
 0x148   : > { %v4117_v0 = vmax.f32 %v2871_v2, 0.0  ;;  %v4245_v39 = vmax.f32 %v3191_v10, 0.0  ;;  %6761 = vmatmul.msk.bf16.gmra.mxu0 %vm2030_vm2, %v7022_v8  ;;  %6825 = vmatmul.msk.bf16.gmra.mxu1 %vm2030_vm2, %v7086_v45  ;;  %v7151_v45 = vld [vmem:[%s7339_s26 + $0x4a0] sm:$0xff] }
 0x149   : > { %v7817_v55 = vmax.f32 %v4368_v38, %v4372_v50  ;;  %v7819_v4 = vmax.f32 %v4496_v11, %v4500_v48  ;;  %6889 = vmatmul.msk.bf16.gmra.mxu2 %vm2030_vm2, %v7150_v14  ;;  %6953 = vmatmul.msk.bf16.gmra.mxu3 %vm2030_vm2, %v7214_v56  ;;  %v7024_v50 = vld [vmem:[%s7339_s26 + $0xa8] sm:$0xff] }
 0x14a   : > { %v7823_v40 = vmax.f32 %v4113_v18, %v4117_v0  ;;  %v7825_v54 = vmax.f32 %v4241_v51, %v4245_v39  ;;  %v7088_v48 = vld [vmem:[%s7339_s26 + $0x2a8] sm:$0xff] }
 0x14b   : > { %v7152_v0 = vld [vmem:[%s7339_s26 + $0x4a8] sm:$0xff] }
 0x14c   : > { %v3510_v15 = vpop.f32.mrf.mxu2  ;;  %v3830_v16 = vpop.f32.mrf.mxu3  ;;  %v7216_v39 = vld [vmem:[%s7339_s26 + $0x6a8] sm:$0xff] }
 0x14d   : > { %v3511_v30 = vadd.f32 %v7436_v62, %v3510_v15  ;;  %v3831_v31 = vadd.f32 %v7436_v62, %v3830_v16  ;;  %v2872_v6 = vpop.f32.mrf.mxu0  ;;  %v3192_v19 = vpop.f32.mrf.mxu1  ;;  %v7884_v15 = vld [vmem:[%s9843_s2] ss:$0 sm:$0xff] }
 0x14e   : > { %v2873_v24 = vadd.f32 %v7436_v62, %v2872_v6  ;;  %v3193_v49 = vadd.f32 %v7436_v62, %v3192_v19  ;;  %v7025_v19 = vld [vmem:[%s7339_s26 + $0xb0] sm:$0xff] }
 0x14f   : > { %v4373_v37 = vmax.f32 %v3511_v30, 0.0  ;;  %v4501_v47 = vmax.f32 %v3831_v31, 0.0 }
 0x150   : > { %v4118_v1 = vmax.f32 %v2873_v24, 0.0  ;;  %v4246_v58 = vmax.f32 %v3193_v49, 0.0  ;;  %v7089_v24 = vld [vmem:[%s7339_s26 + $0x2b0] sm:$0xff] }
 0x151   : > { %v7839_v60 = vmax.f32 %v4369_v32, %v4373_v37  ;;  %v7841_v25 = vmax.f32 %v4497_v52, %v4501_v47  ;;  %v7153_v52 = vld [vmem:[%s7339_s26 + $0x4b0] sm:$0xff] }
 0x152   : > { %v7843_v59 = vmax.f32 %v4114_v33, %v4118_v1  ;;  %v7845_v26 = vmax.f32 %v4242_v53, %v4246_v58  ;;  %v7217_v37 = vld [vmem:[%s7339_s26 + $0x6b0] sm:$0xff]  ;;  %v4995_v1 = vld [vmem:[%s7560_s6 + $0x20] sm:$0xff] }
 0x153   : > { %vm5123_vm6 = vcmp.ge.f32.partialorder %v4995_v1, 0.5 }
 0x154   : > { %v3512_v35 = vpop.f32.mrf.mxu2  ;;  %v3832_v34 = vpop.f32.mrf.mxu3 }
 0x155   : > { %v3513_v42 = vadd.f32 %v7436_v62, %v3512_v35  ;;  %v3833_v43 = vadd.f32 %v7436_v62, %v3832_v34  ;;  %v2875_v44 = vpop.f32.mrf.mxu0  ;;  %v3195_v8 = vpop.f32.mrf.mxu1 }
 0x156   : > { %v2876_v16 = vadd.f32 %v7884_v15, %v2875_v44  ;;  %v3196_v30 = vadd.f32 %v7884_v15, %v3195_v8  ;;  %v7912_v44 = vld [vmem:[%s7560_s6 + $0x220] sm:$0xff] }
 0x157   : > { %v4374_v63 = vmax.f32 %v3513_v42, 0.0  ;;  %v4502_v13 = vmax.f32 %v3833_v43, 0.0  ;;  %v5027_v42 = vld [vmem:[%s7560_s6 + $0x120] sm:$0xff]  ;;  %vm5187_vm8 = vcmp.ge.f32.partialorder %v7912_v44, 0.5 }
 0x158   : > { %6762 = vmatmul.msk.bf16.gmra.mxu0 %vm2030_vm2, %v7023_v28  ;;  %6826 = vmatmul.msk.bf16.gmra.mxu1 %vm2030_vm2, %v7087_v29  ;;  %v4119_v35 = vmax.f32 %v2876_v16, 0.0  ;;  %v4247_v34 = vmax.f32 %v3196_v30, 0.0  ;;  %vm5155_vm7 = vcmp.ge.f32.partialorder %v5027_v42, 0.5 }
 0x159   : > { %v7859_v17 = vmax.f32 %v4370_v57, %v4374_v63  ;;  %v7861_v14 = vmax.f32 %v4498_v46, %v4502_v13  ;;  %6890 = vmatmul.msk.bf16.gmra.mxu2 %vm2030_vm2, %v7151_v45  ;;  %6954 = vmatmul.msk.bf16.gmra.mxu3 %vm2030_vm2, %v7215_v9 }
 0x15c   : > { %v3515_v62 = vpop.f32.mrf.mxu2  ;;  %v3835_v56 = vpop.f32.mrf.mxu3 }
 0x15d   : > { %v2877_v2 = vpop.f32.mrf.mxu0  ;;  %v3197_v10 = vpop.f32.mrf.mxu1  ;;  %v3516_v47 = vadd.f32 %v7884_v15, %v3515_v62  ;;  %v3836_v33 = vadd.f32 %v7884_v15, %v3835_v56 }
 0x15e   : > { %v2878_v27 = vadd.f32 %v7884_v15, %v2877_v2  ;;  %v3198_v61 = vadd.f32 %v7884_v15, %v3197_v10 }
 0x15f   : > { %v4375_v8 = vmax.f32 %v3516_v47, 0.0  ;;  %v4503_v45 = vmax.f32 %v3836_v33, 0.0 }
 0x160   : > { %v4120_v46 = vmax.f32 %v2878_v27, 0.0  ;;  %v4248_v63 = vmax.f32 %v3198_v61, 0.0 }
 0x164   : > { %v3517_v38 = vpop.f32.mrf.mxu2  ;;  %v3837_v11 = vpop.f32.mrf.mxu3 }
 0x165   : > { %v2880_v18 = vpop.f32.mrf.mxu0  ;;  %v3200_v51 = vpop.f32.mrf.mxu1  ;;  %v7907_v43 = vadd.f32 %v7884_v15, %v3517_v38  ;;  %v7915_v13 = vadd.f32 %v7884_v15, %v3837_v11 }
 0x166   : > { %v7918_v62 = vadd.f32 %v7884_v15, %v2880_v18  ;;  %v7926_v11 = vadd.f32 %v7884_v15, %v3200_v51  ;;  %v4996_v51 = vld [vmem:[%s7560_s6 + $0x28] sm:$0xff] }
 0x167   : > { %vm5124_vm10 = vcmp.ge.f32.partialorder %v4996_v51, 0.5 }
 0x168   : > { %6763 = vmatmul.msk.bf16.gmra.mxu0 %vm2030_vm2, %v7024_v50  ;;  %6827 = vmatmul.msk.bf16.gmra.mxu1 %vm2030_vm2, %v7088_v48  ;;  %v5091_v50 = vld [vmem:[%s7560_s6 + $0x320] sm:$0xff]  ;;  %v4376_v48 = vmax.f32 %v7907_v43, 0.0  ;;  %v4249_v27 = vmax.f32 %v7926_v11, 0.0  ;;  %v5060_v11 = vld [vmem:[%s7560_s6 + $0x228] sm:$0xff] }
 0x169   : > { %6891 = vmatmul.msk.bf16.gmra.mxu2 %vm2030_vm2, %v7152_v0  ;;  %6955 = vmatmul.msk.bf16.gmra.mxu3 %vm2030_vm2, %v7216_v39  ;;  %vm5219_vm9 = vcmp.ge.f32.partialorder %v5091_v50, 0.5  ;;  %vm5188_vm12 = vcmp.ge.f32.partialorder %v5060_v11, 0.5 }
 0x16c   : > { %v7873_v21 = vpop.f32.mrf.mxu2  ;;  %v7875_v22 = vpop.f32.mrf.mxu3 }
 0x16d   : > { %v7877_v3 = vpop.f32.mrf.mxu0  ;;  %v7879_v12 = vpop.f32.mrf.mxu1 }
 0x174   : > { %v7888_v31 = vpop.f32.mrf.mxu2  ;;  %v7890_v6 = vpop.f32.mrf.mxu3 }
 0x175   : > { %v2885_v49 = vpop.f32.mrf.mxu0  ;;  %v3205_v32 = vpop.f32.mrf.mxu1 }
 0x176   : > { %v2886_v53 = vadd.f32 %v7884_v15, %v2885_v49  ;;  %v3206_v58 = vadd.f32 %v7884_v15, %v3205_v32 }
 0x178   : > { %v4123_v28 = vmax.f32 %v2886_v53, 0.0  ;;  %v4251_v29 = vmax.f32 %v3206_v58, 0.0  ;;  %6764 = vmatmul.msk.bf16.gmra.mxu0 %vm2030_vm2, %v7025_v19  ;;  %6828 = vmatmul.msk.bf16.gmra.mxu1 %vm2030_vm2, %v7089_v24  ;;  %v4504_v24 = vmax.f32 %v7915_v13, 0.0  ;;  %v4121_v58 = vmax.f32 %v7918_v62, 0.0 }
 0x179   : > { %6892 = vmatmul.msk.bf16.gmra.mxu2 %vm2030_vm2, %v7153_v52  ;;  %6956 = vmatmul.msk.bf16.gmra.mxu3 %vm2030_vm2, %v7217_v37  ;;  %v5028_v52 = vld [vmem:[%s7560_s6 + $0x128] sm:$0xff] }
 0x17a   : > { %v4739_v9 = vmax.f32 %v4119_v35, %v4123_v28  ;;  %v4771_v57 = vmax.f32 %v4247_v34, %v4251_v29  ;;  %vm5156_vm11 = vcmp.ge.f32.partialorder %v5028_v52, 0.5  ;;  %v7945_v28 = vadd.f32 %v7884_v15, %v7873_v21  ;;  %v5029_v52 = vld [vmem:[%s7560_s6 + $0x130] sm:$0xff] }
 0x17b   : > { %v7949_v29 = vadd.f32 %v7884_v15, %v7875_v22  ;;  %vm5157_vm15 = vcmp.ge.f32.partialorder %v5029_v52, 0.5 }
 0x17c   : > { %v4867_v56 = vmax.f32 %v7783_v7, %v4739_v9  ;;  %v4899_v2 = vmax.f32 %v7785_v5, %v4771_v57  ;;  %v3525_v10 = vpop.f32.mrf.mxu2  ;;  %v3845_v38 = vpop.f32.mrf.mxu3  ;;  %v7959_v9 = vadd.f32 %v7884_v15, %v7879_v12  ;;  %v4377_v44 = vmax.f32 %v7945_v28, 0.0 }
 0x17d   : > { %v3526_v0 = vadd.f32 %v7884_v15, %v3525_v10  ;;  %v3846_v18 = vadd.f32 %v7884_v15, %v3845_v38  ;;  %v2887_v39 = vpop.f32.mrf.mxu0  ;;  %v3207_v7 = vpop.f32.mrf.mxu1  ;;  %v7218_v10 = vld [vmem:[%s7339_s26 + $0x6b8] sm:$0xff] }
 0x17e   : > { %v5251_v16 = vmul.f32 2.0, %v4867_v56  ;;  %v5283_v5 = vmul.f32 2.0, %v4899_v2  ;;  %v2888_v30 = vadd.f32 %v7884_v15, %v2887_v39  ;;  %v3208_v19 = vadd.f32 %v7884_v15, %v3207_v7  ;;  %v7154_v2 = vld [vmem:[%s7339_s26 + $0x4b8] sm:$0xff] }
 0x17f   : > { %v4379_v49 = vmax.f32 %v3526_v0, 0.0  ;;  %v4507_v32 = vmax.f32 %v3846_v18, 0.0  ;;  %v4250_v43 = vmax.f32 %v7959_v9, 0.0 }
 0x180   : > { %v5379_v37 = vsel %vm5123_vm6, %v5251_v16, 0.0  ;;  %v5411_v47 = vsel %vm5155_vm7, %v5283_v5, 0.0  ;;  %v4124_v33 = vmax.f32 %v2888_v30, 0.0  ;;  %v4252_v53 = vmax.f32 %v3208_v19, 0.0  ;;  %v5092_v5 = vld [vmem:[%s7560_s6 + $0x328] sm:$0xff] }
 0x181   : > { %5508 = vst.msk [vmem:[%s7619_s9 + $0x20] sm:$0xff] %vm5503_vm4, %v5379_v37  ;;  %v4803_v61 = vmax.f32 %v4375_v8, %v4379_v49  ;;  %v4835_v35 = vmax.f32 %v4503_v45, %v4507_v32  ;;  %v7955_v45 = vadd.f32 %v7884_v15, %v7877_v3  ;;  %v4997_v37 = vld [vmem:[%s7560_s6 + $0x30] sm:$0xff]  ;;  %vm5220_vm13 = vcmp.ge.f32.partialorder %v5092_v5, 0.5 }
 0x182   : > { %5540 = vst.msk [vmem:[%s7619_s9 + $0x120] sm:$0xff] %vm5503_vm4, %v5411_v47  ;;  %v4740_v34 = vmax.f32 %v4120_v46, %v4124_v33  ;;  %v4772_v1 = vmax.f32 %v4248_v63, %v4252_v53  ;;  %v7090_v63 = vld [vmem:[%s7339_s26 + $0x2b8] sm:$0xff]  ;;  %v4505_v47 = vmax.f32 %v7949_v29, 0.0  ;;  %vm5125_vm14 = vcmp.ge.f32.partialorder %v4997_v37, 0.5 }
 0x183   : > { %v4931_v42 = vmax.f32 %v7795_v20, %v4803_v61  ;;  %v4963_v8 = vmax.f32 %v7797_v23, %v4835_v35  ;;  %v7026_v20 = vld [vmem:[%s7339_s26 + $0xb8] sm:$0xff]  ;;  %v4122_v61 = vmax.f32 %v7955_v45, 0.0 }
 0x184   : > { %v4868_v21 = vmax.f32 %v7799_v36, %v4740_v34  ;;  %v4900_v22 = vmax.f32 %v7801_v41, %v4772_v1  ;;  %v3527_v57 = vpop.f32.mrf.mxu2  ;;  %v3847_v46 = vpop.f32.mrf.mxu3 }
 0x185   : > { %v5315_v13 = vmul.f32 2.0, %v4931_v42  ;;  %v5347_v23 = vmul.f32 2.0, %v4963_v8  ;;  %v3528_v62 = vadd.f32 %v7884_v15, %v3527_v57  ;;  %v3848_v3 = vadd.f32 %v7884_v15, %v3847_v46  ;;  %v2890_v56 = vpop.f32.mrf.mxu0  ;;  %v3210_v12 = vpop.f32.mrf.mxu1  ;;  %v5061_v57 = vld [vmem:[%s7560_s6 + $0x230] sm:$0xff] }
 0x186   : > { %v5252_v36 = vmul.f32 2.0, %v4868_v21  ;;  %v5284_v38 = vmul.f32 2.0, %v4900_v22  ;;  %v2891_v41 = vadd.f32 %v7884_v15, %v2890_v56  ;;  %v3211_v0 = vadd.f32 %v7884_v15, %v3210_v12  ;;  %v4998_v12 = vld [vmem:[%s7560_s6 + $0x38] sm:$0xff] }
 0x187   : > { %v5443_v18 = vsel %vm5187_vm8, %v5315_v13, 0.0  ;;  %v5475_v39 = vsel %vm5219_vm9, %v5347_v23, 0.0  ;;  %v4380_v7 = vmax.f32 %v3528_v62, 0.0  ;;  %v4508_v16 = vmax.f32 %v3848_v3, 0.0  ;;  %v5093_v13 = vld [vmem:[%s7560_s6 + $0x330] sm:$0xff] }
 0x188   : > { %5572 = vst.msk [vmem:[%s7619_s9 + $0x220] sm:$0xff] %vm5503_vm4, %v5443_v18  ;;  %v5380_v30 = vsel %vm5124_vm10, %v5252_v36, 0.0  ;;  %v5412_v19 = vsel %vm5156_vm11, %v5284_v38, 0.0  ;;  %v4125_v49 = vmax.f32 %v2891_v41, 0.0  ;;  %v4253_v32 = vmax.f32 %v3211_v0, 0.0  ;;  %6765 = vmatmul.msk.bf16.gmra.mxu0 %vm2030_vm2, %v7026_v20  ;;  %6829 = vmatmul.msk.bf16.gmra.mxu1 %vm2030_vm2, %v7090_v63 }
 0x189   : > { %5604 = vst.msk [vmem:[%s7619_s9 + $0x320] sm:$0xff] %vm5503_vm4, %v5475_v39  ;;  %v4804_v50 = vmax.f32 %v4376_v48, %v4380_v7  ;;  %v4836_v51 = vmax.f32 %v4504_v24, %v4508_v16  ;;  %6893 = vmatmul.msk.bf16.gmra.mxu2 %vm2030_vm2, %v7154_v2  ;;  %6957 = vmatmul.msk.bf16.gmra.mxu3 %vm2030_vm2, %v7218_v10  ;;  %v5030_v2 = vld [vmem:[%s7560_s6 + $0x138] sm:$0xff]  ;;  %vm5189_vm0 = vcmp.ge.f32.partialorder %v5061_v57, 0.5  ;;  %vm5221_vm1 = vcmp.ge.f32.partialorder %v5093_v13, 0.5  ;;  %v7027_v7 = vld [vmem:[%s7339_s26 + $0xc0] sm:$0xff] }
 0x18a   : > { %5509 = vst.msk [vmem:[%s7619_s9 + $0x28] sm:$0xff] %vm5503_vm4, %v5380_v30  ;;  %v4741_v33 = vmax.f32 %v4121_v58, %v4125_v49  ;;  %v4773_v53 = vmax.f32 %v4249_v27, %v4253_v32  ;;  %v3523_v10 = vadd.f32 %v7884_v15, %v7888_v31  ;;  %v3843_v36 = vadd.f32 %v7884_v15, %v7890_v6  ;;  %v7091_v16 = vld [vmem:[%s7339_s26 + $0x2c0] sm:$0xff] }
 0x18b   : > { %5541 = vst.msk [vmem:[%s7619_s9 + $0x128] sm:$0xff] %vm5503_vm4, %v5412_v19  ;;  %v4932_v48 = vmax.f32 %v7817_v55, %v4804_v50  ;;  %v4964_v24 = vmax.f32 %v7819_v4, %v4836_v51  ;;  %vm5126_vm3 = vcmp.ge.f32.partialorder %v4998_v12, 0.5  ;;  %vm5158_vm5 = vcmp.ge.f32.partialorder %v5030_v2, 0.5  ;;  %v7155_v32 = vld [vmem:[%s7339_s26 + $0x4c0] sm:$0xff]  ;;  %v7093_v12 = vld [vmem:[%s7339_s26 + $0x2d0] sm:$0xff] }
 0x18c   : > { %v4869_v35 = vmax.f32 %v7823_v40, %v4741_v33  ;;  %v4901_v34 = vmax.f32 %v7825_v54, %v4773_v53  ;;  %v3530_v1 = vpop.f32.mrf.mxu2  ;;  %v3850_v58 = vpop.f32.mrf.mxu3 }
 0x18d   : > { %v5316_v27 = vmul.f32 2.0, %v4932_v48  ;;  %v5348_v28 = vmul.f32 2.0, %v4964_v24  ;;  %v3531_v29 = vadd.f32 %v7884_v15, %v3530_v1  ;;  %v3851_v42 = vadd.f32 %v7884_v15, %v3850_v58  ;;  %v2892_v55 = vpop.f32.mrf.mxu0  ;;  %v3212_v8 = vpop.f32.mrf.mxu1  ;;  %v5062_v48 = vld [vmem:[%s7560_s6 + $0x238] sm:$0xff] }
 0x18e   : > { %v5253_v4 = vmul.f32 2.0, %v4869_v35  ;;  %v5285_v40 = vmul.f32 2.0, %v4901_v34  ;;  %v2893_v45 = vadd.f32 %v7884_v15, %v2892_v55  ;;  %v3213_v54 = vadd.f32 %v7884_v15, %v3212_v8  ;;  %v5094_v35 = vld [vmem:[%s7560_s6 + $0x338] sm:$0xff] }
 0x18f   : > { %v5444_v9 = vsel %vm5188_vm12, %v5316_v27, 0.0  ;;  %v5476_v21 = vsel %vm5220_vm13, %v5348_v28, 0.0  ;;  %v4381_v22 = vmax.f32 %v3531_v29, 0.0  ;;  %v4509_v46 = vmax.f32 %v3851_v42, 0.0 }
 0x190   : > { %5573 = vst.msk [vmem:[%s7619_s9 + $0x228] sm:$0xff] %vm5503_vm4, %v5444_v9  ;;  %v5381_v20 = vsel %vm5125_vm14, %v5253_v4, 0.0  ;;  %v5413_v63 = vsel %vm5157_vm15, %v5285_v40, 0.0  ;;  %v4126_v23 = vmax.f32 %v2893_v45, 0.0  ;;  %v4254_v62 = vmax.f32 %v3213_v54, 0.0  ;;  %v7092_v45 = vld [vmem:[%s7339_s26 + $0x2c8] sm:$0xff] }
 0x191   : > { %5605 = vst.msk [vmem:[%s7619_s9 + $0x328] sm:$0xff] %vm5503_vm4, %v5476_v21  ;;  %v4805_v3 = vmax.f32 %v4377_v44, %v4381_v22  ;;  %v4837_v56 = vmax.f32 %v4505_v47, %v4509_v46  ;;  %v4378_v44 = vmax.f32 %v3523_v10, 0.0  ;;  %vm5190_vm6 = vcmp.ge.f32.partialorder %v5062_v48, 0.5  ;;  %v7156_v21 = vld [vmem:[%s7339_s26 + $0x4c8] sm:$0xff] }
 0x192   : > { %5510 = vst.msk [vmem:[%s7619_s9 + $0x30] sm:$0xff] %vm5503_vm4, %v5381_v20  ;;  %v4742_v38 = vmax.f32 %v4122_v61, %v4126_v23  ;;  %v4774_v11 = vmax.f32 %v4250_v43, %v4254_v62  ;;  %vm5222_vm7 = vcmp.ge.f32.partialorder %v5094_v35, 0.5  ;;  %v7220_v22 = vld [vmem:[%s7339_s26 + $0x6c8] sm:$0xff] }
 0x193   : > { %5542 = vst.msk [vmem:[%s7619_s9 + $0x130] sm:$0xff] %vm5503_vm4, %v5413_v63  ;;  %v4933_v41 = vmax.f32 %v7839_v60, %v4805_v3  ;;  %v4965_v0 = vmax.f32 %v7841_v25, %v4837_v56  ;;  %v7029_v56 = vld [vmem:[%s7339_s26 + $0xd0] sm:$0xff] }
 0x194   : > { %v4870_v31 = vmax.f32 %v7843_v59, %v4742_v38  ;;  %v4902_v6 = vmax.f32 %v7845_v26, %v4774_v11  ;;  %v3532_v18 = vpop.f32.mrf.mxu2  ;;  %v3852_v39 = vpop.f32.mrf.mxu3  ;;  %v7219_v59 = vld [vmem:[%s7339_s26 + $0x6c0] sm:$0xff]  ;;  %v4506_v26 = vmax.f32 %v3843_v36, 0.0  ;;  %v7157_v36 = vld [vmem:[%s7339_s26 + $0x4d0] sm:$0xff] }
 0x195   : > { %v5317_v5 = vmul.f32 2.0, %v4933_v41  ;;  %v5349_v30 = vmul.f32 2.0, %v4965_v0  ;;  %v3533_v60 = vadd.f32 %v7884_v15, %v3532_v18  ;;  %v3853_v25 = vadd.f32 %v7884_v15, %v3852_v39  ;;  %v2895_v19 = vpop.f32.mrf.mxu0  ;;  %v3215_v49 = vpop.f32.mrf.mxu1  ;;  %v7221_v38 = vld [vmem:[%s7339_s26 + $0x6d0] sm:$0xff] }
 0x196   : > { %v5254_v50 = vmul.f32 2.0, %v4870_v31  ;;  %v5286_v51 = vmul.f32 2.0, %v4902_v6  ;;  %v2896_v13 = vadd.f32 %v7884_v15, %v2895_v19  ;;  %v3216_v23 = vadd.f32 %v7884_v15, %v3215_v49 }
 0x197   : > { %v5445_v37 = vsel %vm5189_vm0, %v5317_v5, 0.0  ;;  %v5477_v52 = vsel %vm5221_vm1, %v5349_v30, 0.0  ;;  %v4382_v47 = vmax.f32 %v3533_v60, 0.0  ;;  %v4510_v33 = vmax.f32 %v3853_v25, 0.0 }
 0x198   : > { %5574 = vst.msk [vmem:[%s7619_s9 + $0x230] sm:$0xff] %vm5503_vm4, %v5445_v37  ;;  %v5382_v53 = vsel %vm5126_vm3, %v5254_v50, 0.0  ;;  %v5414_v61 = vsel %vm5158_vm5, %v5286_v51, 0.0  ;;  %6766 = vmatmul.msk.bf16.gmra.mxu0 %vm2030_vm2, %v7027_v7  ;;  %6830 = vmatmul.msk.bf16.gmra.mxu1 %vm2030_vm2, %v7091_v16  ;;  %v4127_v0 = vmax.f32 %v2896_v13, 0.0  ;;  %v4255_v31 = vmax.f32 %v3216_v23, 0.0  ;;  %v7222_v13 = vld [vmem:[%s7339_s26 + $0x6d8] sm:$0xff] }
 0x199   : > { %5606 = vst.msk [vmem:[%s7619_s9 + $0x330] sm:$0xff] %vm5503_vm4, %v5477_v52  ;;  %v4806_v43 = vmax.f32 %v4378_v44, %v4382_v47  ;;  %v4838_v24 = vmax.f32 %v4506_v26, %v4510_v33  ;;  %6894 = vmatmul.msk.bf16.gmra.mxu2 %vm2030_vm2, %v7155_v32  ;;  %6958 = vmatmul.msk.bf16.gmra.mxu3 %vm2030_vm2, %v7219_v59 }
 0x19a   : > { %5511 = vst.msk [vmem:[%s7619_s9 + $0x38] sm:$0xff] %vm5503_vm4, %v5382_v53 }
 0x19b   : > { %5543 = vst.msk [vmem:[%s7619_s9 + $0x138] sm:$0xff] %vm5503_vm4, %v5414_v61  ;;  %v4934_v34 = vmax.f32 %v7859_v17, %v4806_v43  ;;  %v4966_v1 = vmax.f32 %v7861_v14, %v4838_v24  ;;  %v7028_v14 = vld [vmem:[%s7339_s26 + $0xc8] sm:$0xff] }
 0x19c   : > { %v3535_v58 = vpop.f32.mrf.mxu2  ;;  %v3855_v27 = vpop.f32.mrf.mxu3 }
 0x19d   : > { %v5318_v28 = vmul.f32 2.0, %v4934_v34  ;;  %v5350_v29 = vmul.f32 2.0, %v4966_v1  ;;  %v2897_v42 = vpop.f32.mrf.mxu0  ;;  %v3217_v55 = vpop.f32.mrf.mxu1  ;;  %v3536_v16 = vadd.f32 %v7884_v15, %v3535_v58  ;;  %v3856_v5 = vadd.f32 %v7884_v15, %v3855_v27 }
 0x19e   : > { %v2898_v30 = vadd.f32 %v7884_v15, %v2897_v42  ;;  %v3218_v60 = vadd.f32 %v7884_v15, %v3217_v55  ;;  %v7030_v55 = vld [vmem:[%s7339_s26 + $0xd8] sm:$0xff] }
 0x19f   : > { %v5446_v8 = vsel %vm5190_vm6, %v5318_v28, 0.0  ;;  %v5478_v4 = vsel %vm5222_vm7, %v5350_v29, 0.0  ;;  %v4383_v51 = vmax.f32 %v3536_v16, 0.0  ;;  %v4511_v37 = vmax.f32 %v3856_v5, 0.0 }
 0x1a0   : > { %5575 = vst.msk [vmem:[%s7619_s9 + $0x238] sm:$0xff] %vm5503_vm4, %v5446_v8  ;;  %v4128_v33 = vmax.f32 %v2898_v30, 0.0  ;;  %v4256_v53 = vmax.f32 %v3218_v60, 0.0  ;;  %v7094_v8 = vld [vmem:[%s7339_s26 + $0x2d8] sm:$0xff] }
 0x1a1   : > { %5607 = vst.msk [vmem:[%s7619_s9 + $0x338] sm:$0xff] %vm5503_vm4, %v5478_v4 }
 0x1a4   : > { %v3537_v17 = vpop.f32.mrf.mxu2  ;;  %v3857_v40 = vpop.f32.mrf.mxu3 }
 0x1a5   : > { %v2900_v54 = vpop.f32.mrf.mxu0  ;;  %v3220_v9 = vpop.f32.mrf.mxu1  ;;  %v3538_v1 = vadd.f32 %v7884_v15, %v3537_v17  ;;  %v3858_v58 = vadd.f32 %v7884_v15, %v3857_v40 }
 0x1a6   : > { %v2901_v27 = vadd.f32 %v7884_v15, %v2900_v54  ;;  %v3221_v28 = vadd.f32 %v7884_v15, %v3220_v9 }
 0x1a7   : > { %v4384_v23 = vmax.f32 %v3538_v1, 0.0  ;;  %v4512_v54 = vmax.f32 %v3858_v58, 0.0  ;;  %v7031_v58 = vld [vmem:[%s7339_s26 + $0xe0] sm:$0xff] }
 0x1a8   : > { %6767 = vmatmul.msk.bf16.gmra.mxu0 %vm2030_vm2, %v7028_v14  ;;  %6831 = vmatmul.msk.bf16.gmra.mxu1 %vm2030_vm2, %v7092_v45 }
 0x1a9   : > { %6895 = vmatmul.msk.bf16.gmra.mxu2 %vm2030_vm2, %v7156_v21  ;;  %6959 = vmatmul.msk.bf16.gmra.mxu3 %vm2030_vm2, %v7220_v22  ;;  %v7158_v22 = vld [vmem:[%s7339_s26 + $0x4d8] sm:$0xff] }
 0x1ac   : > { %v8068_v57 = vpop.f32.mrf.mxu2  ;;  %v8070_v46 = vpop.f32.mrf.mxu3 }
 0x1ad   : > { %v8072_v20 = vpop.f32.mrf.mxu0  ;;  %v8074_v63 = vpop.f32.mrf.mxu1 }
 0x1ae   : > { %v3223_v16 = vadd.f32 %v7884_v15, %v8074_v63 }
 0x1b0   : > { %v4258_v63 = vmax.f32 %v3223_v16, 0.0 }
 0x1b4   : > { %v8078_v62 = vpop.f32.mrf.mxu2  ;;  %v8080_v3 = vpop.f32.mrf.mxu3 }
 0x1b5   : > { %v2905_v2 = vpop.f32.mrf.mxu0  ;;  %v3225_v10 = vpop.f32.mrf.mxu1 }
 0x1b6   : > { %v2906_v11 = vadd.f32 %v7884_v15, %v2905_v2  ;;  %v3226_v41 = vadd.f32 %v7884_v15, %v3225_v10  ;;  %v4257_v2 = vmax.f32 %v3221_v28, 0.0 }
 0x1b8   : > { %v4131_v6 = vmax.f32 %v2906_v11, 0.0  ;;  %v4259_v18 = vmax.f32 %v3226_v41, 0.0  ;;  %6768 = vmatmul.msk.bf16.gmra.mxu0 %vm2030_vm2, %v7029_v56  ;;  %6832 = vmatmul.msk.bf16.gmra.mxu1 %vm2030_vm2, %v7093_v12  ;;  %v4129_v12 = vmax.f32 %v2901_v27, 0.0  ;;  %v7095_v27 = vld [vmem:[%s7339_s26 + $0x2e0] sm:$0xff] }
 0x1b9   : > { %6896 = vmatmul.msk.bf16.gmra.mxu2 %vm2030_vm2, %v7157_v36  ;;  %6960 = vmatmul.msk.bf16.gmra.mxu3 %vm2030_vm2, %v7221_v38 }
 0x1ba   : > { %v8092_v39 = vmax.f32 %v4127_v0, %v4131_v6  ;;  %v8094_v7 = vmax.f32 %v4255_v31, %v4259_v18  ;;  %v3541_v31 = vadd.f32 %v7884_v15, %v8068_v57  ;;  %v3861_v6 = vadd.f32 %v7884_v15, %v8070_v46 }
 0x1bb   : > { %v2903_v18 = vadd.f32 %v7884_v15, %v8072_v20 }
 0x1bc   : > { %v3545_v25 = vpop.f32.mrf.mxu2  ;;  %v3865_v19 = vpop.f32.mrf.mxu3  ;;  %v4513_v46 = vmax.f32 %v3861_v6, 0.0 }
 0x1bd   : > { %v3546_v49 = vadd.f32 %v7884_v15, %v3545_v25  ;;  %v3866_v32 = vadd.f32 %v7884_v15, %v3865_v19  ;;  %v2907_v59 = vpop.f32.mrf.mxu0  ;;  %v3227_v44 = vpop.f32.mrf.mxu1 }
 0x1be   : > { %v2908_v26 = vadd.f32 %v7884_v15, %v2907_v59  ;;  %v3228_v50 = vadd.f32 %v7884_v15, %v3227_v44  ;;  %v4385_v59 = vmax.f32 %v3541_v31, 0.0  ;;  %v7224_v31 = vld [vmem:[%s7339_s26 + $0x6e8] sm:$0xff] }
 0x1bf   : > { %v4387_v52 = vmax.f32 %v3546_v49, 0.0  ;;  %v4515_v47 = vmax.f32 %v3866_v32, 0.0 }
 0x1c0   : > { %v4132_v61 = vmax.f32 %v2908_v26, 0.0  ;;  %v4260_v43 = vmax.f32 %v3228_v50, 0.0  ;;  %v4130_v26 = vmax.f32 %v2903_v18, 0.0 }
 0x1c1   : > { %v8104_v48 = vmax.f32 %v4383_v51, %v4387_v52  ;;  %v8106_v24 = vmax.f32 %v4511_v37, %v4515_v47 }
 0x1c2   : > { %v8108_v35 = vmax.f32 %v4128_v33, %v4132_v61  ;;  %v8110_v34 = vmax.f32 %v4256_v53, %v4260_v43  ;;  %v3543_v53 = vadd.f32 %v7884_v15, %v8078_v62  ;;  %v3863_v61 = vadd.f32 %v7884_v15, %v8080_v3 }
 0x1c4   : > { %v3547_v29 = vpop.f32.mrf.mxu2  ;;  %v3867_v42 = vpop.f32.mrf.mxu3 }
 0x1c5   : > { %v3548_v4 = vadd.f32 %v7884_v15, %v3547_v29  ;;  %v3868_v14 = vadd.f32 %v7884_v15, %v3867_v42  ;;  %v2910_v45 = vpop.f32.mrf.mxu0  ;;  %v3230_v21 = vpop.f32.mrf.mxu1 }
 0x1c6   : > { %v2911_v17 = vadd.f32 %v7884_v15, %v2910_v45  ;;  %v3231_v40 = vadd.f32 %v7884_v15, %v3230_v21  ;;  %v4514_v45 = vmax.f32 %v3863_v61, 0.0 }
 0x1c7   : > { %v4388_v56 = vmax.f32 %v3548_v4, 0.0  ;;  %v4516_v9 = vmax.f32 %v3868_v14, 0.0  ;;  %v7223_v4 = vld [vmem:[%s7339_s26 + $0x6e0] sm:$0xff]  ;;  %v4386_v14 = vmax.f32 %v3543_v53, 0.0 }
 0x1c8   : > { %v4133_v10 = vmax.f32 %v2911_v17, 0.0  ;;  %v4261_v36 = vmax.f32 %v3231_v40, 0.0  ;;  %6769 = vmatmul.msk.bf16.gmra.mxu0 %vm2030_vm2, %v7030_v55  ;;  %6833 = vmatmul.msk.bf16.gmra.mxu1 %vm2030_vm2, %v7094_v8  ;;  %v7159_v8 = vld [vmem:[%s7339_s26 + $0x4e0] sm:$0xff] }
 0x1c9   : > { %v8126_v38 = vmax.f32 %v4384_v23, %v4388_v56  ;;  %v8128_v11 = vmax.f32 %v4512_v54, %v4516_v9  ;;  %6897 = vmatmul.msk.bf16.gmra.mxu2 %vm2030_vm2, %v7158_v22  ;;  %6961 = vmatmul.msk.bf16.gmra.mxu3 %vm2030_vm2, %v7222_v13  ;;  %v7032_v9 = vld [vmem:[%s7339_s26 + $0xe8] sm:$0xff] }
 0x1ca   : > { %v8132_v41 = vmax.f32 %v4129_v12, %v4133_v10  ;;  %v8134_v0 = vmax.f32 %v4257_v2, %v4261_v36  ;;  %v7096_v12 = vld [vmem:[%s7339_s26 + $0x2e8] sm:$0xff] }
 0x1cb   : > { %v7160_v36 = vld [vmem:[%s7339_s26 + $0x4e8] sm:$0xff] }
 0x1cc   : > { %v3550_v5 = vpop.f32.mrf.mxu2  ;;  %v3870_v30 = vpop.f32.mrf.mxu3 }
 0x1cd   : > { %v3551_v60 = vadd.f32 %v7884_v15, %v3550_v5  ;;  %v3871_v25 = vadd.f32 %v7884_v15, %v3870_v30  ;;  %v2912_v19 = vpop.f32.mrf.mxu0  ;;  %v3232_v49 = vpop.f32.mrf.mxu1 }
 0x1ce   : > { %v2913_v32 = vadd.f32 %v7884_v15, %v2912_v19  ;;  %v3233_v57 = vadd.f32 %v7884_v15, %v3232_v49  ;;  %v7033_v49 = vld [vmem:[%s7339_s26 + $0xf0] sm:$0xff] }
 0x1cf   : > { %v4389_v20 = vmax.f32 %v3551_v60, 0.0  ;;  %v4517_v44 = vmax.f32 %v3871_v25, 0.0 }
 0x1d0   : > { %v4134_v50 = vmax.f32 %v2913_v32, 0.0  ;;  %v4262_v51 = vmax.f32 %v3233_v57, 0.0  ;;  %v7097_v32 = vld [vmem:[%s7339_s26 + $0x2f0] sm:$0xff] }
 0x1d1   : > { %v8148_v37 = vmax.f32 %v4385_v59, %v4389_v20  ;;  %v8150_v52 = vmax.f32 %v4513_v46, %v4517_v44  ;;  %v7161_v46 = vld [vmem:[%s7339_s26 + $0x4f0] sm:$0xff] }
 0x1d2   : > { %v8152_v47 = vmax.f32 %v4130_v26, %v4134_v50  ;;  %v8154_v33 = vmax.f32 %v4258_v63, %v4262_v51  ;;  %v7225_v20 = vld [vmem:[%s7339_s26 + $0x6f0] sm:$0xff]  ;;  %v4999_v50 = vld [vmem:[%s7560_s6 + $0x40] sm:$0xff] }
 0x1d3   : > { %vm5127_vm8 = vcmp.ge.f32.partialorder %v4999_v50, 0.5 }
 0x1d4   : > { %v3552_v43 = vpop.f32.mrf.mxu2  ;;  %v3872_v1 = vpop.f32.mrf.mxu3 }
 0x1d5   : > { %v3553_v28 = vadd.f32 %v7884_v15, %v3552_v43  ;;  %v3873_v29 = vadd.f32 %v7884_v15, %v3872_v1  ;;  %v2915_v42 = vpop.f32.mrf.mxu0  ;;  %v3235_v55 = vpop.f32.mrf.mxu1 }
 0x1d6   : > { %v2916_v30 = vadd.f32 %v7884_v15, %v2915_v42  ;;  %v3236_v60 = vadd.f32 %v7884_v15, %v3235_v55  ;;  %v8216_v42 = vld [vmem:[%s7560_s6 + $0x240] sm:$0xff] }
 0x1d7   : > { %v4390_v62 = vmax.f32 %v3553_v28, 0.0  ;;  %v4518_v21 = vmax.f32 %v3873_v29, 0.0  ;;  %v5031_v28 = vld [vmem:[%s7560_s6 + $0x140] sm:$0xff]  ;;  %vm5191_vm10 = vcmp.ge.f32.partialorder %v8216_v42, 0.5 }
 0x1d8   : > { %6770 = vmatmul.msk.bf16.gmra.mxu0 %vm2030_vm2, %v7031_v58  ;;  %6834 = vmatmul.msk.bf16.gmra.mxu1 %vm2030_vm2, %v7095_v27  ;;  %v4135_v43 = vmax.f32 %v2916_v30, 0.0  ;;  %v4263_v1 = vmax.f32 %v3236_v60, 0.0  ;;  %vm5159_vm9 = vcmp.ge.f32.partialorder %v5031_v28, 0.5 }
 0x1d9   : > { %v8168_v3 = vmax.f32 %v4386_v14, %v4390_v62  ;;  %v8170_v22 = vmax.f32 %v4514_v45, %v4518_v21  ;;  %6898 = vmatmul.msk.bf16.gmra.mxu2 %vm2030_vm2, %v7159_v8  ;;  %6962 = vmatmul.msk.bf16.gmra.mxu3 %vm2030_vm2, %v7223_v4 }
 0x1dc   : > { %v3555_v13 = vpop.f32.mrf.mxu2  ;;  %v3875_v17 = vpop.f32.mrf.mxu3 }
 0x1dd   : > { %v2917_v40 = vpop.f32.mrf.mxu0  ;;  %v3237_v23 = vpop.f32.mrf.mxu1  ;;  %v3556_v44 = vadd.f32 %v7884_v15, %v3555_v13  ;;  %v3876_v26 = vadd.f32 %v7884_v15, %v3875_v17 }
 0x1de   : > { %v2918_v53 = vadd.f32 %v7884_v15, %v2917_v40  ;;  %v3238_v61 = vadd.f32 %v7884_v15, %v3237_v23 }
 0x1df   : > { %v4391_v55 = vmax.f32 %v3556_v44, 0.0  ;;  %v4519_v8 = vmax.f32 %v3876_v26, 0.0 }
 0x1e0   : > { %v4136_v45 = vmax.f32 %v2918_v53, 0.0  ;;  %v4264_v62 = vmax.f32 %v3238_v61, 0.0 }
 0x1e4   : > { %v3557_v54 = vpop.f32.mrf.mxu2  ;;  %v3877_v56 = vpop.f32.mrf.mxu3 }
 0x1e5   : > { %v2920_v2 = vpop.f32.mrf.mxu0  ;;  %v3240_v10 = vpop.f32.mrf.mxu1  ;;  %v8211_v29 = vadd.f32 %v7884_v15, %v3557_v54  ;;  %v8219_v21 = vadd.f32 %v7884_v15, %v3877_v56 }
 0x1e6   : > { %v8222_v13 = vadd.f32 %v7884_v15, %v2920_v2  ;;  %v8230_v56 = vadd.f32 %v7884_v15, %v3240_v10  ;;  %v5000_v10 = vld [vmem:[%s7560_s6 + $0x48] sm:$0xff] }
 0x1e7   : > { %vm5128_vm12 = vcmp.ge.f32.partialorder %v5000_v10, 0.5  ;;  %v5001_v10 = vld [vmem:[%s7560_s6 + $0x50] sm:$0xff] }
 0x1e8   : > { %6771 = vmatmul.msk.bf16.gmra.mxu0 %vm2030_vm2, %v7032_v9  ;;  %6835 = vmatmul.msk.bf16.gmra.mxu1 %vm2030_vm2, %v7096_v12  ;;  %v5095_v9 = vld [vmem:[%s7560_s6 + $0x340] sm:$0xff]  ;;  %v4392_v12 = vmax.f32 %v8211_v29, 0.0  ;;  %v4265_v53 = vmax.f32 %v8230_v56, 0.0  ;;  %v5064_v56 = vld [vmem:[%s7560_s6 + $0x248] sm:$0xff]  ;;  %vm5129_vm0 = vcmp.ge.f32.partialorder %v5001_v10, 0.5 }
 0x1e9   : > { %6899 = vmatmul.msk.bf16.gmra.mxu2 %vm2030_vm2, %v7160_v36  ;;  %6963 = vmatmul.msk.bf16.gmra.mxu3 %vm2030_vm2, %v7224_v31  ;;  %vm5223_vm11 = vcmp.ge.f32.partialorder %v5095_v9, 0.5  ;;  %vm5192_vm14 = vcmp.ge.f32.partialorder %v5064_v56, 0.5 }
 0x1ec   : > { %v8182_v6 = vpop.f32.mrf.mxu2  ;;  %v8184_v18 = vpop.f32.mrf.mxu3 }
 0x1ed   : > { %v8186_v16 = vpop.f32.mrf.mxu0  ;;  %v8188_v5 = vpop.f32.mrf.mxu1 }
 0x1f4   : > { %v8192_v25 = vpop.f32.mrf.mxu2  ;;  %v8194_v19 = vpop.f32.mrf.mxu3 }
 0x1f5   : > { %v2925_v57 = vpop.f32.mrf.mxu0  ;;  %v3245_v59 = vpop.f32.mrf.mxu1 }
 0x1f6   : > { %v2926_v63 = vadd.f32 %v7884_v15, %v2925_v57  ;;  %v3246_v51 = vadd.f32 %v7884_v15, %v3245_v59 }
 0x1f8   : > { %v4139_v58 = vmax.f32 %v2926_v63, 0.0  ;;  %v4267_v27 = vmax.f32 %v3246_v51, 0.0  ;;  %6772 = vmatmul.msk.bf16.gmra.mxu0 %vm2030_vm2, %v7033_v49  ;;  %6836 = vmatmul.msk.bf16.gmra.mxu1 %vm2030_vm2, %v7097_v32  ;;  %v4520_v32 = vmax.f32 %v8219_v21, 0.0  ;;  %v4137_v51 = vmax.f32 %v8222_v13, 0.0 }
 0x1f9   : > { %6900 = vmatmul.msk.bf16.gmra.mxu2 %vm2030_vm2, %v7161_v46  ;;  %6964 = vmatmul.msk.bf16.gmra.mxu3 %vm2030_vm2, %v7225_v20  ;;  %v5032_v46 = vld [vmem:[%s7560_s6 + $0x148] sm:$0xff] }
 0x1fa   : > { %v4743_v4 = vmax.f32 %v4135_v43, %v4139_v58  ;;  %v4775_v14 = vmax.f32 %v4263_v1, %v4267_v27  ;;  %vm5160_vm13 = vcmp.ge.f32.partialorder %v5032_v46, 0.5  ;;  %v8249_v58 = vadd.f32 %v7884_v15, %v8182_v6  ;;  %v5033_v46 = vld [vmem:[%s7560_s6 + $0x150] sm:$0xff] }
 0x1fb   : > { %v8253_v27 = vadd.f32 %v7884_v15, %v8184_v18  ;;  %vm5161_vm1 = vcmp.ge.f32.partialorder %v5033_v46, 0.5 }
 0x1fc   : > { %v4871_v17 = vmax.f32 %v8092_v39, %v4743_v4  ;;  %v4903_v40 = vmax.f32 %v8094_v7, %v4775_v14  ;;  %v3565_v23 = vpop.f32.mrf.mxu2  ;;  %v3885_v54 = vpop.f32.mrf.mxu3  ;;  %v8263_v4 = vadd.f32 %v7884_v15, %v8188_v5 }
 0x1fd   : > { %v3566_v36 = vadd.f32 %v7884_v15, %v3565_v23  ;;  %v3886_v2 = vadd.f32 %v7884_v15, %v3885_v54  ;;  %v2927_v31 = vpop.f32.mrf.mxu0  ;;  %v3247_v39 = vpop.f32.mrf.mxu1  ;;  %v7226_v23 = vld [vmem:[%s7339_s26 + $0x6f8] sm:$0xff] }
 0x1fe   : > { %v5255_v30 = vmul.f32 2.0, %v4871_v17  ;;  %v5287_v7 = vmul.f32 2.0, %v4903_v40  ;;  %v2928_v60 = vadd.f32 %v7884_v15, %v2927_v31  ;;  %v3248_v49 = vadd.f32 %v7884_v15, %v3247_v39  ;;  %v7162_v40 = vld [vmem:[%s7339_s26 + $0x4f8] sm:$0xff] }
 0x1ff   : > { %v4395_v57 = vmax.f32 %v3566_v36, 0.0  ;;  %v4523_v59 = vmax.f32 %v3886_v2, 0.0  ;;  %v4266_v29 = vmax.f32 %v8263_v4, 0.0 }
 0x200   : > { %v5383_v20 = vsel %vm5127_vm8, %v5255_v30, 0.0  ;;  %v5415_v44 = vsel %vm5159_vm9, %v5287_v7, 0.0  ;;  %v4140_v26 = vmax.f32 %v2928_v60, 0.0  ;;  %v4268_v63 = vmax.f32 %v3248_v49, 0.0  ;;  %v5096_v7 = vld [vmem:[%s7560_s6 + $0x348] sm:$0xff] }
 0x201   : > { %5512 = vst.msk [vmem:[%s7619_s9 + $0x40] sm:$0xff] %vm5503_vm4, %v5383_v20  ;;  %v4807_v61 = vmax.f32 %v4391_v55, %v4395_v57  ;;  %v4839_v43 = vmax.f32 %v4519_v8, %v4523_v59  ;;  %v8259_v8 = vadd.f32 %v7884_v15, %v8186_v16  ;;  %v4521_v20 = vmax.f32 %v8253_v27, 0.0 }
 0x202   : > { %5544 = vst.msk [vmem:[%s7619_s9 + $0x140] sm:$0xff] %vm5503_vm4, %v5415_v44  ;;  %v4744_v1 = vmax.f32 %v4136_v45, %v4140_v26  ;;  %v4776_v50 = vmax.f32 %v4264_v62, %v4268_v63  ;;  %v7098_v62 = vld [vmem:[%s7339_s26 + $0x2f8] sm:$0xff]  ;;  %vm5224_vm15 = vcmp.ge.f32.partialorder %v5096_v7, 0.5 }
 0x203   : > { %v4935_v28 = vmax.f32 %v8104_v48, %v4807_v61  ;;  %v4967_v55 = vmax.f32 %v8106_v24, %v4839_v43  ;;  %v7034_v48 = vld [vmem:[%s7339_s26 + $0xf8] sm:$0xff]  ;;  %v4138_v63 = vmax.f32 %v8259_v8, 0.0 }
 0x204   : > { %v4872_v6 = vmax.f32 %v8108_v35, %v4744_v1  ;;  %v4904_v18 = vmax.f32 %v8110_v34, %v4776_v50  ;;  %v3567_v14 = vpop.f32.mrf.mxu2  ;;  %v3887_v45 = vpop.f32.mrf.mxu3 }
 0x205   : > { %v5319_v21 = vmul.f32 2.0, %v4935_v28  ;;  %v5351_v24 = vmul.f32 2.0, %v4967_v55  ;;  %v3568_v13 = vadd.f32 %v7884_v15, %v3567_v14  ;;  %v3888_v16 = vadd.f32 %v7884_v15, %v3887_v45  ;;  %v2930_v17 = vpop.f32.mrf.mxu0  ;;  %v3250_v5 = vpop.f32.mrf.mxu1  ;;  %v5065_v14 = vld [vmem:[%s7560_s6 + $0x250] sm:$0xff] }
 0x206   : > { %v5256_v35 = vmul.f32 2.0, %v4872_v6  ;;  %v5288_v54 = vmul.f32 2.0, %v4904_v18  ;;  %v2931_v34 = vadd.f32 %v7884_v15, %v2930_v17  ;;  %v3251_v36 = vadd.f32 %v7884_v15, %v3250_v5  ;;  %v5002_v5 = vld [vmem:[%s7560_s6 + $0x58] sm:$0xff] }
 0x207   : > { %v5447_v2 = vsel %vm5191_vm10, %v5319_v21, 0.0  ;;  %v5479_v31 = vsel %vm5223_vm11, %v5351_v24, 0.0  ;;  %v4396_v39 = vmax.f32 %v3568_v13, 0.0  ;;  %v4524_v30 = vmax.f32 %v3888_v16, 0.0  ;;  %v5097_v21 = vld [vmem:[%s7560_s6 + $0x350] sm:$0xff] }
 0x208   : > { %5576 = vst.msk [vmem:[%s7619_s9 + $0x240] sm:$0xff] %vm5503_vm4, %v5447_v2  ;;  %v5384_v60 = vsel %vm5128_vm12, %v5256_v35, 0.0  ;;  %v5416_v49 = vsel %vm5160_vm13, %v5288_v54, 0.0  ;;  %v4141_v57 = vmax.f32 %v2931_v34, 0.0  ;;  %v4269_v59 = vmax.f32 %v3251_v36, 0.0  ;;  %6773 = vmatmul.msk.bf16.gmra.mxu0 %vm2030_vm2, %v7034_v48  ;;  %6837 = vmatmul.msk.bf16.gmra.mxu1 %vm2030_vm2, %v7098_v62 }
 0x209   : > { %v4393_v15 = vmax.f32 %v8249_v58, 0.0  ;;  %5608 = vst.msk [vmem:[%s7619_s9 + $0x340] sm:$0xff] %vm5503_vm4, %v5479_v31  ;;  %v4808_v42 = vmax.f32 %v4392_v12, %v4396_v39  ;;  %v4840_v9 = vmax.f32 %v4520_v32, %v4524_v30  ;;  %6901 = vmatmul.msk.bf16.gmra.mxu2 %vm2030_vm2, %v7162_v40  ;;  %6965 = vmatmul.msk.bf16.gmra.mxu3 %vm2030_vm2, %v7226_v23  ;;  %v8309_v58 = vld [vmem:[%s9843_s2] ss:$0 sm:$0xff]  ;;  %v5034_v40 = vld [vmem:[%s7560_s6 + $0x158] sm:$0xff]  ;;  %vm5193_vm3 = vcmp.ge.f32.partialorder %v5065_v14, 0.5 }
 0x20a   : > { %5513 = vst.msk [vmem:[%s7619_s9 + $0x48] sm:$0xff] %vm5503_vm4, %v5384_v60  ;;  %v4745_v44 = vmax.f32 %v4137_v51, %v4141_v57  ;;  %v4777_v26 = vmax.f32 %v4265_v53, %v4269_v59  ;;  %v3563_v23 = vadd.f32 %v8309_v58, %v8192_v25  ;;  %v3883_v35 = vadd.f32 %v8309_v58, %v8194_v19  ;;  %v7035_v39 = vld [vmem:[%s7339_s26 + $0x100] sm:$0xff] }
 0x20b   : > { %5545 = vst.msk [vmem:[%s7619_s9 + $0x148] sm:$0xff] %vm5503_vm4, %v5416_v49  ;;  %v4936_v12 = vmax.f32 %v8126_v38, %v4808_v42  ;;  %v4968_v32 = vmax.f32 %v8128_v11, %v4840_v9  ;;  %vm5225_vm5 = vcmp.ge.f32.partialorder %v5097_v21, 0.5  ;;  %vm5130_vm6 = vcmp.ge.f32.partialorder %v5002_v5, 0.5  ;;  %v7099_v30 = vld [vmem:[%s7339_s26 + $0x300] sm:$0xff]  ;;  %v7101_v5 = vld [vmem:[%s7339_s26 + $0x310] sm:$0xff] }
 0x20c   : > { %v4873_v61 = vmax.f32 %v8132_v41, %v4745_v44  ;;  %v4905_v43 = vmax.f32 %v8134_v0, %v4777_v26  ;;  %v3570_v1 = vpop.f32.mrf.mxu2  ;;  %v3890_v51 = vpop.f32.mrf.mxu3  ;;  %vm5162_vm7 = vcmp.ge.f32.partialorder %v5034_v40, 0.5  ;;  %v7163_v59 = vld [vmem:[%s7339_s26 + $0x500] sm:$0xff] }
 0x20d   : > { %v5320_v53 = vmul.f32 2.0, %v4936_v12  ;;  %v5352_v50 = vmul.f32 2.0, %v4968_v32  ;;  %v3571_v38 = vadd.f32 %v8309_v58, %v3570_v1  ;;  %v3891_v11 = vadd.f32 %v8309_v58, %v3890_v51  ;;  %v2932_v41 = vpop.f32.mrf.mxu0  ;;  %v3252_v27 = vpop.f32.mrf.mxu1  ;;  %v5066_v12 = vld [vmem:[%s7560_s6 + $0x258] sm:$0xff] }
 0x20e   : > { %v5257_v0 = vmul.f32 2.0, %v4873_v61  ;;  %v5289_v28 = vmul.f32 2.0, %v4905_v43  ;;  %v2933_v55 = vadd.f32 %v8309_v58, %v2932_v41  ;;  %v3253_v8 = vadd.f32 %v8309_v58, %v3252_v27  ;;  %v5098_v61 = vld [vmem:[%s7560_s6 + $0x358] sm:$0xff] }
 0x20f   : > { %v5448_v4 = vsel %vm5192_vm14, %v5320_v53, 0.0  ;;  %v5480_v6 = vsel %vm5224_vm15, %v5352_v50, 0.0  ;;  %v4397_v18 = vmax.f32 %v3571_v38, 0.0  ;;  %v4525_v45 = vmax.f32 %v3891_v11, 0.0 }
 0x210   : > { %5577 = vst.msk [vmem:[%s7619_s9 + $0x248] sm:$0xff] %vm5503_vm4, %v5448_v4  ;;  %v5385_v48 = vsel %vm5129_vm0, %v5257_v0, 0.0  ;;  %v5417_v62 = vsel %vm5161_vm1, %v5289_v28, 0.0  ;;  %v4142_v24 = vmax.f32 %v2933_v55, 0.0  ;;  %v4270_v13 = vmax.f32 %v3253_v8, 0.0  ;;  %v7100_v55 = vld [vmem:[%s7339_s26 + $0x308] sm:$0xff] }
 0x211   : > { %5609 = vst.msk [vmem:[%s7619_s9 + $0x348] sm:$0xff] %vm5503_vm4, %v5480_v6  ;;  %v4809_v16 = vmax.f32 %v4393_v15, %v4397_v18  ;;  %v4841_v17 = vmax.f32 %v4521_v20, %v4525_v45  ;;  %v4394_v15 = vmax.f32 %v3563_v23, 0.0  ;;  %vm5194_vm8 = vcmp.ge.f32.partialorder %v5066_v12, 0.5  ;;  %v7164_v6 = vld [vmem:[%s7339_s26 + $0x508] sm:$0xff] }
 0x212   : > { %5514 = vst.msk [vmem:[%s7619_s9 + $0x50] sm:$0xff] %vm5503_vm4, %v5385_v48  ;;  %v4746_v54 = vmax.f32 %v4138_v63, %v4142_v24  ;;  %v4778_v56 = vmax.f32 %v4266_v29, %v4270_v13  ;;  %vm5226_vm9 = vcmp.ge.f32.partialorder %v5098_v61, 0.5  ;;  %v7228_v18 = vld [vmem:[%s7339_s26 + $0x708] sm:$0xff] }
 0x213   : > { %5546 = vst.msk [vmem:[%s7619_s9 + $0x150] sm:$0xff] %vm5503_vm4, %v5417_v62  ;;  %v4937_v34 = vmax.f32 %v8148_v37, %v4809_v16  ;;  %v4969_v36 = vmax.f32 %v8150_v52, %v4841_v17  ;;  %v7037_v17 = vld [vmem:[%s7339_s26 + $0x110] sm:$0xff] }
 0x214   : > { %v4874_v25 = vmax.f32 %v8152_v47, %v4746_v54  ;;  %v4906_v19 = vmax.f32 %v8154_v33, %v4778_v56  ;;  %v3572_v2 = vpop.f32.mrf.mxu2  ;;  %v3892_v31 = vpop.f32.mrf.mxu3  ;;  %v7227_v47 = vld [vmem:[%s7339_s26 + $0x700] sm:$0xff]  ;;  %v4522_v33 = vmax.f32 %v3883_v35, 0.0  ;;  %v7165_v35 = vld [vmem:[%s7339_s26 + $0x510] sm:$0xff] }
 0x215   : > { %v5321_v7 = vmul.f32 2.0, %v4937_v34  ;;  %v5353_v60 = vmul.f32 2.0, %v4969_v36  ;;  %v3573_v37 = vadd.f32 %v8309_v58, %v3572_v2  ;;  %v3893_v52 = vadd.f32 %v8309_v58, %v3892_v31  ;;  %v2935_v49 = vpop.f32.mrf.mxu0  ;;  %v3255_v57 = vpop.f32.mrf.mxu1  ;;  %v7229_v54 = vld [vmem:[%s7339_s26 + $0x710] sm:$0xff] }
 0x216   : > { %v5258_v42 = vmul.f32 2.0, %v4874_v25  ;;  %v5290_v9 = vmul.f32 2.0, %v4906_v19  ;;  %v2936_v21 = vadd.f32 %v8309_v58, %v2935_v49  ;;  %v3256_v24 = vadd.f32 %v8309_v58, %v3255_v57 }
 0x217   : > { %v5449_v10 = vsel %vm5193_vm3, %v5321_v7, 0.0  ;;  %v5481_v46 = vsel %vm5225_vm5, %v5353_v60, 0.0  ;;  %v4398_v20 = vmax.f32 %v3573_v37, 0.0  ;;  %v4526_v44 = vmax.f32 %v3893_v52, 0.0 }
 0x218   : > { %5578 = vst.msk [vmem:[%s7619_s9 + $0x250] sm:$0xff] %vm5503_vm4, %v5449_v10  ;;  %v5386_v26 = vsel %vm5130_vm6, %v5258_v42, 0.0  ;;  %v5418_v63 = vsel %vm5162_vm7, %v5290_v9, 0.0  ;;  %6774 = vmatmul.msk.bf16.gmra.mxu0 %vm2030_vm2, %v7035_v39  ;;  %6838 = vmatmul.msk.bf16.gmra.mxu1 %vm2030_vm2, %v7099_v30  ;;  %v4143_v36 = vmax.f32 %v2936_v21, 0.0  ;;  %v4271_v25 = vmax.f32 %v3256_v24, 0.0  ;;  %v7230_v21 = vld [vmem:[%s7339_s26 + $0x718] sm:$0xff] }
 0x219   : > { %5610 = vst.msk [vmem:[%s7619_s9 + $0x350] sm:$0xff] %vm5503_vm4, %v5481_v46  ;;  %v4810_v29 = vmax.f32 %v4394_v15, %v4398_v20  ;;  %v4842_v32 = vmax.f32 %v4522_v33, %v4526_v44  ;;  %6902 = vmatmul.msk.bf16.gmra.mxu2 %vm2030_vm2, %v7163_v59  ;;  %6966 = vmatmul.msk.bf16.gmra.mxu3 %vm2030_vm2, %v7227_v47 }
 0x21a   : > { %5515 = vst.msk [vmem:[%s7619_s9 + $0x58] sm:$0xff] %vm5503_vm4, %v5386_v26 }
 0x21b   : > { %5547 = vst.msk [vmem:[%s7619_s9 + $0x158] sm:$0xff] %vm5503_vm4, %v5418_v63  ;;  %v4938_v43 = vmax.f32 %v8168_v3, %v4810_v29  ;;  %v4970_v1 = vmax.f32 %v8170_v22, %v4842_v32  ;;  %v7036_v22 = vld [vmem:[%s7339_s26 + $0x108] sm:$0xff] }
 0x21c   : > { %v3575_v51 = vpop.f32.mrf.mxu2  ;;  %v3895_v53 = vpop.f32.mrf.mxu3 }
 0x21d   : > { %v5322_v50 = vmul.f32 2.0, %v4938_v43  ;;  %v5354_v38 = vmul.f32 2.0, %v4970_v1  ;;  %v2937_v11 = vpop.f32.mrf.mxu0  ;;  %v3257_v41 = vpop.f32.mrf.mxu1  ;;  %v3576_v30 = vadd.f32 %v8309_v58, %v3575_v51  ;;  %v3896_v7 = vadd.f32 %v8309_v58, %v3895_v53 }
 0x21e   : > { %v2938_v60 = vadd.f32 %v8309_v58, %v2937_v11  ;;  %v3258_v37 = vadd.f32 %v8309_v58, %v3257_v41  ;;  %v7038_v41 = vld [vmem:[%s7339_s26 + $0x118] sm:$0xff] }
 0x21f   : > { %v5450_v27 = vsel %vm5194_vm8, %v5322_v50, 0.0  ;;  %v5482_v0 = vsel %vm5226_vm9, %v5354_v38, 0.0  ;;  %v4399_v9 = vmax.f32 %v3576_v30, 0.0  ;;  %v4527_v10 = vmax.f32 %v3896_v7, 0.0 }
 0x220   : > { %5579 = vst.msk [vmem:[%s7619_s9 + $0x258] sm:$0xff] %vm5503_vm4, %v5450_v27  ;;  %v4144_v44 = vmax.f32 %v2938_v60, 0.0  ;;  %v4272_v26 = vmax.f32 %v3258_v37, 0.0  ;;  %v7102_v27 = vld [vmem:[%s7339_s26 + $0x318] sm:$0xff] }
 0x221   : > { %5611 = vst.msk [vmem:[%s7619_s9 + $0x358] sm:$0xff] %vm5503_vm4, %v5482_v0 }
 0x224   : > { %v3577_v3 = vpop.f32.mrf.mxu2  ;;  %v3897_v28 = vpop.f32.mrf.mxu3 }
 0x225   : > { %v2940_v8 = vpop.f32.mrf.mxu0  ;;  %v3260_v4 = vpop.f32.mrf.mxu1  ;;  %v3578_v1 = vadd.f32 %v8309_v58, %v3577_v3  ;;  %v3898_v51 = vadd.f32 %v8309_v58, %v3897_v28 }
 0x226   : > { %v2941_v53 = vadd.f32 %v8309_v58, %v2940_v8  ;;  %v3261_v50 = vadd.f32 %v8309_v58, %v3260_v4 }
 0x227   : > { %v4400_v24 = vmax.f32 %v3578_v1, 0.0  ;;  %v4528_v8 = vmax.f32 %v3898_v51, 0.0  ;;  %v7039_v51 = vld [vmem:[%s7339_s26 + $0x120] sm:$0xff] }
 0x228   : > { %6775 = vmatmul.msk.bf16.gmra.mxu0 %vm2030_vm2, %v7036_v22  ;;  %6839 = vmatmul.msk.bf16.gmra.mxu1 %vm2030_vm2, %v7100_v55 }
 0x229   : > { %6903 = vmatmul.msk.bf16.gmra.mxu2 %vm2030_vm2, %v7164_v6  ;;  %6967 = vmatmul.msk.bf16.gmra.mxu3 %vm2030_vm2, %v7228_v18  ;;  %v7166_v18 = vld [vmem:[%s7339_s26 + $0x518] sm:$0xff] }
 0x22c   : > { %v8377_v14 = vpop.f32.mrf.mxu2  ;;  %v8379_v45 = vpop.f32.mrf.mxu3 }
 0x22d   : > { %v8381_v48 = vpop.f32.mrf.mxu0  ;;  %v8383_v62 = vpop.f32.mrf.mxu1 }
 0x22e   : > { %v3263_v30 = vadd.f32 %v8309_v58, %v8383_v62 }
 0x230   : > { %v4274_v62 = vmax.f32 %v3263_v30, 0.0 }
 0x234   : > { %v8387_v13 = vpop.f32.mrf.mxu2  ;;  %v8389_v16 = vpop.f32.mrf.mxu3 }
 0x235   : > { %v2945_v40 = vpop.f32.mrf.mxu0  ;;  %v3265_v23 = vpop.f32.mrf.mxu1 }
 0x236   : > { %v2946_v56 = vadd.f32 %v8309_v58, %v2945_v40  ;;  %v3266_v34 = vadd.f32 %v8309_v58, %v3265_v23  ;;  %v4273_v40 = vmax.f32 %v3261_v50, 0.0 }
 0x238   : > { %v4147_v19 = vmax.f32 %v2946_v56, 0.0  ;;  %v4275_v2 = vmax.f32 %v3266_v34, 0.0  ;;  %6776 = vmatmul.msk.bf16.gmra.mxu0 %vm2030_vm2, %v7037_v17  ;;  %6840 = vmatmul.msk.bf16.gmra.mxu1 %vm2030_vm2, %v7101_v5  ;;  %v4145_v5 = vmax.f32 %v2941_v53, 0.0  ;;  %v7103_v53 = vld [vmem:[%s7339_s26 + $0x320] sm:$0xff] }
 0x239   : > { %6904 = vmatmul.msk.bf16.gmra.mxu2 %vm2030_vm2, %v7165_v35  ;;  %6968 = vmatmul.msk.bf16.gmra.mxu3 %vm2030_vm2, %v7229_v54 }
 0x23a   : > { %v8401_v31 = vmax.f32 %v4143_v36, %v4147_v19  ;;  %v8403_v39 = vmax.f32 %v4271_v25, %v4275_v2  ;;  %v3581_v25 = vadd.f32 %v8309_v58, %v8377_v14  ;;  %v3901_v19 = vadd.f32 %v8309_v58, %v8379_v45 }
 0x23b   : > { %v2943_v2 = vadd.f32 %v8309_v58, %v8381_v48 }
 0x23c   : > { %v3585_v52 = vpop.f32.mrf.mxu2  ;;  %v3905_v49 = vpop.f32.mrf.mxu3  ;;  %v4529_v45 = vmax.f32 %v3901_v19, 0.0 }
 0x23d   : > { %v3586_v57 = vadd.f32 %v8309_v58, %v3585_v52  ;;  %v3906_v59 = vadd.f32 %v8309_v58, %v3905_v49  ;;  %v2947_v47 = vpop.f32.mrf.mxu0  ;;  %v3267_v15 = vpop.f32.mrf.mxu1 }
 0x23e   : > { %v2948_v33 = vadd.f32 %v8309_v58, %v2947_v47  ;;  %v3268_v42 = vadd.f32 %v8309_v58, %v3267_v15  ;;  %v4401_v47 = vmax.f32 %v3581_v25, 0.0  ;;  %v7232_v25 = vld [vmem:[%s7339_s26 + $0x728] sm:$0xff] }
 0x23f   : > { %v4403_v46 = vmax.f32 %v3586_v57, 0.0  ;;  %v4531_v20 = vmax.f32 %v3906_v59, 0.0 }
 0x240   : > { %v4148_v63 = vmax.f32 %v2948_v33, 0.0  ;;  %v4276_v29 = vmax.f32 %v3268_v42, 0.0  ;;  %v4146_v33 = vmax.f32 %v2943_v2, 0.0 }
 0x241   : > { %v8413_v12 = vmax.f32 %v4399_v9, %v4403_v46  ;;  %v8415_v32 = vmax.f32 %v4527_v10, %v4531_v20 }
 0x242   : > { %v8417_v61 = vmax.f32 %v4144_v44, %v4148_v63  ;;  %v8419_v43 = vmax.f32 %v4272_v26, %v4276_v29  ;;  %v3583_v26 = vadd.f32 %v8309_v58, %v8387_v13  ;;  %v3903_v63 = vadd.f32 %v8309_v58, %v8389_v16 }
 0x244   : > { %v3587_v38 = vpop.f32.mrf.mxu2  ;;  %v3907_v11 = vpop.f32.mrf.mxu3 }
 0x245   : > { %v3588_v0 = vadd.f32 %v8309_v58, %v3587_v38  ;;  %v3908_v22 = vadd.f32 %v8309_v58, %v3907_v11  ;;  %v2950_v55 = vpop.f32.mrf.mxu0  ;;  %v3270_v6 = vpop.f32.mrf.mxu1 }
 0x246   : > { %v2951_v3 = vadd.f32 %v8309_v58, %v2950_v55  ;;  %v3271_v28 = vadd.f32 %v8309_v58, %v3270_v6  ;;  %v4530_v55 = vmax.f32 %v3903_v63, 0.0 }
 0x247   : > { %v4404_v17 = vmax.f32 %v3588_v0, 0.0  ;;  %v4532_v4 = vmax.f32 %v3908_v22, 0.0  ;;  %v7231_v0 = vld [vmem:[%s7339_s26 + $0x720] sm:$0xff]  ;;  %v4402_v22 = vmax.f32 %v3583_v26, 0.0 }
 0x248   : > { %v4149_v23 = vmax.f32 %v2951_v3, 0.0  ;;  %v4277_v35 = vmax.f32 %v3271_v28, 0.0  ;;  %6777 = vmatmul.msk.bf16.gmra.mxu0 %vm2030_vm2, %v7038_v41  ;;  %6841 = vmatmul.msk.bf16.gmra.mxu1 %vm2030_vm2, %v7102_v27  ;;  %v7167_v27 = vld [vmem:[%s7339_s26 + $0x520] sm:$0xff] }
 0x249   : > { %v8435_v54 = vmax.f32 %v4400_v24, %v4404_v17  ;;  %v8437_v56 = vmax.f32 %v4528_v8, %v4532_v4  ;;  %6905 = vmatmul.msk.bf16.gmra.mxu2 %vm2030_vm2, %v7166_v18  ;;  %6969 = vmatmul.msk.bf16.gmra.mxu3 %vm2030_vm2, %v7230_v21  ;;  %v7040_v4 = vld [vmem:[%s7339_s26 + $0x128] sm:$0xff] }
 0x24a   : > { %v8441_v34 = vmax.f32 %v4145_v5, %v4149_v23  ;;  %v8443_v36 = vmax.f32 %v4273_v40, %v4277_v35  ;;  %v7104_v5 = vld [vmem:[%s7339_s26 + $0x328] sm:$0xff] }
 0x24b   : > { %v7168_v35 = vld [vmem:[%s7339_s26 + $0x528] sm:$0xff] }
 0x24c   : > { %v3590_v7 = vpop.f32.mrf.mxu2  ;;  %v3910_v60 = vpop.f32.mrf.mxu3 }
 0x24d   : > { %v3591_v37 = vadd.f32 %v8309_v58, %v3590_v7  ;;  %v3911_v52 = vadd.f32 %v8309_v58, %v3910_v60  ;;  %v2952_v49 = vpop.f32.mrf.mxu0  ;;  %v3272_v57 = vpop.f32.mrf.mxu1 }
 0x24e   : > { %v2953_v59 = vadd.f32 %v8309_v58, %v2952_v49  ;;  %v3273_v14 = vadd.f32 %v8309_v58, %v3272_v57  ;;  %v7041_v57 = vld [vmem:[%s7339_s26 + $0x130] sm:$0xff] }
 0x24f   : > { %v4405_v48 = vmax.f32 %v3591_v37, 0.0  ;;  %v4533_v15 = vmax.f32 %v3911_v52, 0.0 }
 0x250   : > { %v4150_v42 = vmax.f32 %v2953_v59, 0.0  ;;  %v4278_v9 = vmax.f32 %v3273_v14, 0.0  ;;  %v7105_v59 = vld [vmem:[%s7339_s26 + $0x330] sm:$0xff] }
 0x251   : > { %v8457_v10 = vmax.f32 %v4401_v47, %v4405_v48  ;;  %v8459_v46 = vmax.f32 %v4529_v45, %v4533_v15  ;;  %v7169_v45 = vld [vmem:[%s7339_s26 + $0x530] sm:$0xff] }
 0x252   : > { %v8461_v20 = vmax.f32 %v4146_v33, %v4150_v42  ;;  %v8463_v44 = vmax.f32 %v4274_v62, %v4278_v9  ;;  %v7233_v48 = vld [vmem:[%s7339_s26 + $0x730] sm:$0xff]  ;;  %v5003_v42 = vld [vmem:[%s7560_s6 + $0x60] sm:$0xff] }
 0x253   : > { %vm5131_vm10 = vcmp.ge.f32.partialorder %v5003_v42, 0.5 }
 0x254   : > { %v3592_v29 = vpop.f32.mrf.mxu2  ;;  %v3912_v1 = vpop.f32.mrf.mxu3 }
 0x255   : > { %v3593_v50 = vadd.f32 %v8309_v58, %v3592_v29  ;;  %v3913_v38 = vadd.f32 %v8309_v58, %v3912_v1  ;;  %v2955_v11 = vpop.f32.mrf.mxu0  ;;  %v3275_v41 = vpop.f32.mrf.mxu1 }
 0x256   : > { %v2956_v60 = vadd.f32 %v8309_v58, %v2955_v11  ;;  %v3276_v37 = vadd.f32 %v8309_v58, %v3275_v41  ;;  %v8525_v11 = vld [vmem:[%s7560_s6 + $0x260] sm:$0xff] }
 0x257   : > { %v4406_v13 = vmax.f32 %v3593_v50, 0.0  ;;  %v4534_v6 = vmax.f32 %v3913_v38, 0.0  ;;  %v5035_v50 = vld [vmem:[%s7560_s6 + $0x160] sm:$0xff]  ;;  %vm5195_vm12 = vcmp.ge.f32.partialorder %v8525_v11, 0.5 }
 0x258   : > { %6778 = vmatmul.msk.bf16.gmra.mxu0 %vm2030_vm2, %v7039_v51  ;;  %6842 = vmatmul.msk.bf16.gmra.mxu1 %vm2030_vm2, %v7103_v53  ;;  %v4151_v29 = vmax.f32 %v2956_v60, 0.0  ;;  %v4279_v1 = vmax.f32 %v3276_v37, 0.0  ;;  %vm5163_vm11 = vcmp.ge.f32.partialorder %v5035_v50, 0.5 }
 0x259   : > { %v8477_v16 = vmax.f32 %v4402_v22, %v4406_v13  ;;  %v8479_v18 = vmax.f32 %v4530_v55, %v4534_v6  ;;  %6906 = vmatmul.msk.bf16.gmra.mxu2 %vm2030_vm2, %v7167_v27  ;;  %6970 = vmatmul.msk.bf16.gmra.mxu3 %vm2030_vm2, %v7231_v0 }
 0x25c   : > { %v3595_v21 = vpop.f32.mrf.mxu2  ;;  %v3915_v3 = vpop.f32.mrf.mxu3 }
 0x25d   : > { %v2957_v28 = vpop.f32.mrf.mxu0  ;;  %v3277_v24 = vpop.f32.mrf.mxu1  ;;  %v3596_v15 = vadd.f32 %v8309_v58, %v3595_v21  ;;  %v3916_v33 = vadd.f32 %v8309_v58, %v3915_v3 }
 0x25e   : > { %v2958_v26 = vadd.f32 %v8309_v58, %v2957_v28  ;;  %v3278_v63 = vadd.f32 %v8309_v58, %v3277_v24 }
 0x25f   : > { %v4407_v41 = vmax.f32 %v3596_v15, 0.0  ;;  %v4535_v27 = vmax.f32 %v3916_v33, 0.0 }
 0x260   : > { %v4152_v55 = vmax.f32 %v2958_v26, 0.0  ;;  %v4280_v13 = vmax.f32 %v3278_v63, 0.0 }
 0x264   : > { %v3597_v8 = vpop.f32.mrf.mxu2  ;;  %v3917_v17 = vpop.f32.mrf.mxu3 }
 0x265   : > { %v2960_v40 = vpop.f32.mrf.mxu0  ;;  %v3280_v23 = vpop.f32.mrf.mxu1  ;;  %v8520_v38 = vadd.f32 %v8309_v58, %v3597_v8  ;;  %v8528_v6 = vadd.f32 %v8309_v58, %v3917_v17 }
 0x266   : > { %v8531_v21 = vadd.f32 %v8309_v58, %v2960_v40  ;;  %v8539_v17 = vadd.f32 %v8309_v58, %v3280_v23  ;;  %v5004_v23 = vld [vmem:[%s7560_s6 + $0x68] sm:$0xff] }
 0x267   : > { %vm5132_vm14 = vcmp.ge.f32.partialorder %v5004_v23, 0.5 }
 0x268   : > { %6779 = vmatmul.msk.bf16.gmra.mxu0 %vm2030_vm2, %v7040_v4  ;;  %6843 = vmatmul.msk.bf16.gmra.mxu1 %vm2030_vm2, %v7104_v5  ;;  %v5099_v4 = vld [vmem:[%s7560_s6 + $0x360] sm:$0xff]  ;;  %v4408_v5 = vmax.f32 %v8520_v38, 0.0  ;;  %v4281_v26 = vmax.f32 %v8539_v17, 0.0  ;;  %v5068_v17 = vld [vmem:[%s7560_s6 + $0x268] sm:$0xff] }
 0x269   : > { %6907 = vmatmul.msk.bf16.gmra.mxu2 %vm2030_vm2, %v7168_v35  ;;  %6971 = vmatmul.msk.bf16.gmra.mxu3 %vm2030_vm2, %v7232_v25  ;;  %vm5227_vm13 = vcmp.ge.f32.partialorder %v5099_v4, 0.5  ;;  %vm5196_vm0 = vcmp.ge.f32.partialorder %v5068_v17, 0.5 }
 0x26c   : > { %v8491_v19 = vpop.f32.mrf.mxu2  ;;  %v8493_v2 = vpop.f32.mrf.mxu3 }
 0x26d   : > { %v8495_v30 = vpop.f32.mrf.mxu0  ;;  %v8497_v7 = vpop.f32.mrf.mxu1 }
 0x274   : > { %v8501_v52 = vpop.f32.mrf.mxu2  ;;  %v8503_v49 = vpop.f32.mrf.mxu3 }
 0x275   : > { %v2965_v14 = vpop.f32.mrf.mxu0  ;;  %v3285_v47 = vpop.f32.mrf.mxu1 }
 0x276   : > { %v2966_v62 = vadd.f32 %v8309_v58, %v2965_v14  ;;  %v3286_v9 = vadd.f32 %v8309_v58, %v3285_v47 }
 0x278   : > { %v4155_v51 = vmax.f32 %v2966_v62, 0.0  ;;  %v4283_v53 = vmax.f32 %v3286_v9, 0.0  ;;  %6780 = vmatmul.msk.bf16.gmra.mxu0 %vm2030_vm2, %v7041_v57  ;;  %6844 = vmatmul.msk.bf16.gmra.mxu1 %vm2030_vm2, %v7105_v59  ;;  %v4536_v59 = vmax.f32 %v8528_v6, 0.0  ;;  %v4153_v9 = vmax.f32 %v8531_v21, 0.0 }
 0x279   : > { %6908 = vmatmul.msk.bf16.gmra.mxu2 %vm2030_vm2, %v7169_v45  ;;  %6972 = vmatmul.msk.bf16.gmra.mxu3 %vm2030_vm2, %v7233_v48  ;;  %v5036_v45 = vld [vmem:[%s7560_s6 + $0x168] sm:$0xff] }
 0x27a   : > { %v4747_v0 = vmax.f32 %v4151_v29, %v4155_v51  ;;  %v4779_v22 = vmax.f32 %v4279_v1, %v4283_v53  ;;  %vm5164_vm15 = vcmp.ge.f32.partialorder %v5036_v45, 0.5  ;;  %v8558_v51 = vadd.f32 %v8309_v58, %v8491_v19  ;;  %v5037_v45 = vld [vmem:[%s7560_s6 + $0x170] sm:$0xff] }
 0x27b   : > { %v8562_v53 = vadd.f32 %v8309_v58, %v8493_v2  ;;  %vm5165_vm5 = vcmp.ge.f32.partialorder %v5037_v45, 0.5 }
 0x27c   : > { %v4875_v3 = vmax.f32 %v8401_v31, %v4747_v0  ;;  %v4907_v28 = vmax.f32 %v8403_v39, %v4779_v22  ;;  %v3605_v24 = vpop.f32.mrf.mxu2  ;;  %v3925_v8 = vpop.f32.mrf.mxu3  ;;  %v8572_v0 = vadd.f32 %v8309_v58, %v8497_v7  ;;  %v4409_v11 = vmax.f32 %v8558_v51, 0.0 }
 0x27d   : > { %v3606_v35 = vadd.f32 %v8309_v58, %v3605_v24  ;;  %v3926_v40 = vadd.f32 %v8309_v58, %v3925_v8  ;;  %v2967_v25 = vpop.f32.mrf.mxu0  ;;  %v3287_v31 = vpop.f32.mrf.mxu1  ;;  %v7234_v24 = vld [vmem:[%s7339_s26 + $0x738] sm:$0xff] }
 0x27e   : > { %v5259_v60 = vmul.f32 2.0, %v4875_v3  ;;  %v5291_v39 = vmul.f32 2.0, %v4907_v28  ;;  %v2968_v37 = vadd.f32 %v8309_v58, %v2967_v25  ;;  %v3288_v57 = vadd.f32 %v8309_v58, %v3287_v31  ;;  %v7170_v28 = vld [vmem:[%s7339_s26 + $0x538] sm:$0xff] }
 0x27f   : > { %v4411_v14 = vmax.f32 %v3606_v35, 0.0  ;;  %v4539_v47 = vmax.f32 %v3926_v40, 0.0  ;;  %v4282_v38 = vmax.f32 %v8572_v0, 0.0 }
 0x280   : > { %v5387_v48 = vsel %vm5131_vm10, %v5259_v60, 0.0  ;;  %v5419_v15 = vsel %vm5163_vm11, %v5291_v39, 0.0  ;;  %v4156_v33 = vmax.f32 %v2968_v37, 0.0  ;;  %v4284_v62 = vmax.f32 %v3288_v57, 0.0  ;;  %v5100_v39 = vld [vmem:[%s7560_s6 + $0x368] sm:$0xff] }
 0x281   : > { %5516 = vst.msk [vmem:[%s7619_s9 + $0x60] sm:$0xff] %vm5503_vm4, %v5387_v48  ;;  %v4811_v63 = vmax.f32 %v4407_v41, %v4411_v14  ;;  %v4843_v29 = vmax.f32 %v4535_v27, %v4539_v47  ;;  %v8568_v27 = vadd.f32 %v8309_v58, %v8495_v30  ;;  %v5005_v48 = vld [vmem:[%s7560_s6 + $0x70] sm:$0xff]  ;;  %vm5228_vm1 = vcmp.ge.f32.partialorder %v5100_v39, 0.5 }
 0x282   : > { %5548 = vst.msk [vmem:[%s7619_s9 + $0x160] sm:$0xff] %vm5503_vm4, %v5419_v15  ;;  %v4748_v1 = vmax.f32 %v4152_v55, %v4156_v33  ;;  %v4780_v42 = vmax.f32 %v4280_v13, %v4284_v62  ;;  %v7106_v13 = vld [vmem:[%s7339_s26 + $0x338] sm:$0xff]  ;;  %v4537_v15 = vmax.f32 %v8562_v53, 0.0  ;;  %vm5133_vm3 = vcmp.ge.f32.partialorder %v5005_v48, 0.5 }
 0x283   : > { %v4939_v50 = vmax.f32 %v8413_v12, %v4811_v63  ;;  %v4971_v41 = vmax.f32 %v8415_v32, %v4843_v29  ;;  %v7042_v12 = vld [vmem:[%s7339_s26 + $0x138] sm:$0xff]  ;;  %v4154_v63 = vmax.f32 %v8568_v27, 0.0 }
 0x284   : > { %v4876_v19 = vmax.f32 %v8417_v61, %v4748_v1  ;;  %v4908_v2 = vmax.f32 %v8419_v43, %v4780_v42  ;;  %v3607_v22 = vpop.f32.mrf.mxu2  ;;  %v3927_v55 = vpop.f32.mrf.mxu3 }
 0x285   : > { %v5323_v6 = vmul.f32 2.0, %v4939_v50  ;;  %v5355_v32 = vmul.f32 2.0, %v4971_v41  ;;  %v3608_v21 = vadd.f32 %v8309_v58, %v3607_v22  ;;  %v3928_v30 = vadd.f32 %v8309_v58, %v3927_v55  ;;  %v2970_v3 = vpop.f32.mrf.mxu0  ;;  %v3290_v7 = vpop.f32.mrf.mxu1  ;;  %v5069_v22 = vld [vmem:[%s7560_s6 + $0x270] sm:$0xff] }
 0x286   : > { %v5260_v61 = vmul.f32 2.0, %v4876_v19  ;;  %v5292_v8 = vmul.f32 2.0, %v4908_v2  ;;  %v2971_v43 = vadd.f32 %v8309_v58, %v2970_v3  ;;  %v3291_v35 = vadd.f32 %v8309_v58, %v3290_v7  ;;  %v5006_v7 = vld [vmem:[%s7560_s6 + $0x78] sm:$0xff] }
 0x287   : > { %v5451_v40 = vsel %vm5195_vm12, %v5323_v6, 0.0  ;;  %v5483_v25 = vsel %vm5227_vm13, %v5355_v32, 0.0  ;;  %v4412_v31 = vmax.f32 %v3608_v21, 0.0  ;;  %v4540_v60 = vmax.f32 %v3928_v30, 0.0  ;;  %v5101_v6 = vld [vmem:[%s7560_s6 + $0x370] sm:$0xff] }
 0x288   : > { %5580 = vst.msk [vmem:[%s7619_s9 + $0x260] sm:$0xff] %vm5503_vm4, %v5451_v40  ;;  %v5388_v37 = vsel %vm5132_vm14, %v5260_v61, 0.0  ;;  %v5420_v57 = vsel %vm5164_vm15, %v5292_v8, 0.0  ;;  %v4157_v14 = vmax.f32 %v2971_v43, 0.0  ;;  %v4285_v47 = vmax.f32 %v3291_v35, 0.0  ;;  %6781 = vmatmul.msk.bf16.gmra.mxu0 %vm2030_vm2, %v7042_v12  ;;  %6845 = vmatmul.msk.bf16.gmra.mxu1 %vm2030_vm2, %v7106_v13 }
 0x289   : > { %5612 = vst.msk [vmem:[%s7619_s9 + $0x360] sm:$0xff] %vm5503_vm4, %v5483_v25  ;;  %v4812_v4 = vmax.f32 %v4408_v5, %v4412_v31  ;;  %v4844_v23 = vmax.f32 %v4536_v59, %v4540_v60  ;;  %6909 = vmatmul.msk.bf16.gmra.mxu2 %vm2030_vm2, %v7170_v28  ;;  %6973 = vmatmul.msk.bf16.gmra.mxu3 %vm2030_vm2, %v7234_v24  ;;  %v5038_v28 = vld [vmem:[%s7560_s6 + $0x178] sm:$0xff]  ;;  %vm5197_vm6 = vcmp.ge.f32.partialorder %v5069_v22, 0.5  ;;  %vm5229_vm7 = vcmp.ge.f32.partialorder %v5101_v6, 0.5  ;;  %v7043_v31 = vld [vmem:[%s7339_s26 + $0x140] sm:$0xff] }
 0x28a   : > { %5517 = vst.msk [vmem:[%s7619_s9 + $0x68] sm:$0xff] %vm5503_vm4, %v5388_v37  ;;  %v4749_v33 = vmax.f32 %v4153_v9, %v4157_v14  ;;  %v4781_v62 = vmax.f32 %v4281_v26, %v4285_v47  ;;  %v3603_v24 = vadd.f32 %v8309_v58, %v8501_v52  ;;  %v3923_v61 = vadd.f32 %v8309_v58, %v8503_v49  ;;  %v7107_v60 = vld [vmem:[%s7339_s26 + $0x340] sm:$0xff] }
 0x28b   : > { %5549 = vst.msk [vmem:[%s7619_s9 + $0x168] sm:$0xff] %vm5503_vm4, %v5420_v57  ;;  %v4940_v5 = vmax.f32 %v8435_v54, %v4812_v4  ;;  %v4972_v59 = vmax.f32 %v8437_v56, %v4844_v23  ;;  %vm5134_vm8 = vcmp.ge.f32.partialorder %v5006_v7, 0.5  ;;  %vm5166_vm9 = vcmp.ge.f32.partialorder %v5038_v28, 0.5  ;;  %v7171_v47 = vld [vmem:[%s7339_s26 + $0x540] sm:$0xff]  ;;  %v7109_v7 = vld [vmem:[%s7339_s26 + $0x350] sm:$0xff] }
 0x28c   : > { %v4877_v29 = vmax.f32 %v8441_v34, %v4749_v33  ;;  %v4909_v1 = vmax.f32 %v8443_v36, %v4781_v62  ;;  %v3610_v42 = vpop.f32.mrf.mxu2  ;;  %v3930_v9 = vpop.f32.mrf.mxu3 }
 0x28d   : > { %v5324_v26 = vmul.f32 2.0, %v4940_v5  ;;  %v5356_v51 = vmul.f32 2.0, %v4972_v59  ;;  %v3611_v53 = vadd.f32 %v8309_v58, %v3610_v42  ;;  %v3931_v50 = vadd.f32 %v8309_v58, %v3930_v9  ;;  %v2972_v54 = vpop.f32.mrf.mxu0  ;;  %v3292_v41 = vpop.f32.mrf.mxu1  ;;  %v5070_v5 = vld [vmem:[%s7560_s6 + $0x278] sm:$0xff] }
 0x28e   : > { %v5261_v56 = vmul.f32 2.0, %v4877_v29  ;;  %v5293_v34 = vmul.f32 2.0, %v4909_v1  ;;  %v2973_v27 = vadd.f32 %v8309_v58, %v2972_v54  ;;  %v3293_v36 = vadd.f32 %v8309_v58, %v3292_v41  ;;  %v5102_v29 = vld [vmem:[%s7560_s6 + $0x378] sm:$0xff] }
 0x28f   : > { %v5452_v0 = vsel %vm5196_vm0, %v5324_v26, 0.0  ;;  %v5484_v19 = vsel %vm5228_vm1, %v5356_v51, 0.0  ;;  %v4413_v2 = vmax.f32 %v3611_v53, 0.0  ;;  %v4541_v55 = vmax.f32 %v3931_v50, 0.0 }
 0x290   : > { %5581 = vst.msk [vmem:[%s7619_s9 + $0x268] sm:$0xff] %vm5503_vm4, %v5452_v0  ;;  %v5389_v12 = vsel %vm5133_vm3, %v5261_v56, 0.0  ;;  %v5421_v13 = vsel %vm5165_vm5, %v5293_v34, 0.0  ;;  %v4158_v32 = vmax.f32 %v2973_v27, 0.0  ;;  %v4286_v21 = vmax.f32 %v3293_v36, 0.0  ;;  %v7044_v34 = vld [vmem:[%s7339_s26 + $0x148] sm:$0xff] }
 0x291   : > { %5613 = vst.msk [vmem:[%s7619_s9 + $0x368] sm:$0xff] %vm5503_vm4, %v5484_v19  ;;  %v4813_v30 = vmax.f32 %v4409_v11, %v4413_v2  ;;  %v4845_v3 = vmax.f32 %v4537_v15, %v4541_v55  ;;  %v4410_v11 = vmax.f32 %v3603_v24, 0.0  ;;  %vm5198_vm10 = vcmp.ge.f32.partialorder %v5070_v5, 0.5  ;;  %v7108_v27 = vld [vmem:[%s7339_s26 + $0x348] sm:$0xff] }
 0x292   : > { %5518 = vst.msk [vmem:[%s7619_s9 + $0x70] sm:$0xff] %vm5503_vm4, %v5389_v12  ;;  %v4750_v8 = vmax.f32 %v4154_v63, %v4158_v32  ;;  %v4782_v17 = vmax.f32 %v4282_v38, %v4286_v21  ;;  %vm5230_vm11 = vcmp.ge.f32.partialorder %v5102_v29, 0.5  ;;  %v7172_v19 = vld [vmem:[%s7339_s26 + $0x548] sm:$0xff] }
 0x293   : > { %5550 = vst.msk [vmem:[%s7619_s9 + $0x170] sm:$0xff] %vm5503_vm4, %v5421_v13  ;;  %v4941_v43 = vmax.f32 %v8457_v10, %v4813_v30  ;;  %v4973_v35 = vmax.f32 %v8459_v46, %v4845_v3  ;;  %v7236_v2 = vld [vmem:[%s7339_s26 + $0x748] sm:$0xff]  ;;  %v7045_v3 = vld [vmem:[%s7339_s26 + $0x150] sm:$0xff] }
 0x294   : > { %v4878_v52 = vmax.f32 %v8461_v20, %v4750_v8  ;;  %v4910_v49 = vmax.f32 %v8463_v44, %v4782_v17  ;;  %v3612_v40 = vpop.f32.mrf.mxu2  ;;  %v3932_v25 = vpop.f32.mrf.mxu3  ;;  %v7235_v20 = vld [vmem:[%s7339_s26 + $0x740] sm:$0xff]  ;;  %v4538_v44 = vmax.f32 %v3923_v61, 0.0  ;;  %v7173_v61 = vld [vmem:[%s7339_s26 + $0x550] sm:$0xff] }
 0x295   : > { %v5325_v39 = vmul.f32 2.0, %v4941_v43  ;;  %v5357_v37 = vmul.f32 2.0, %v4973_v35  ;;  %v3613_v10 = vadd.f32 %v8309_v58, %v3612_v40  ;;  %v3933_v46 = vadd.f32 %v8309_v58, %v3932_v25  ;;  %v2975_v57 = vpop.f32.mrf.mxu0  ;;  %v3295_v14 = vpop.f32.mrf.mxu1  ;;  %v7237_v8 = vld [vmem:[%s7339_s26 + $0x750] sm:$0xff] }
 0x296   : > { %v5262_v4 = vmul.f32 2.0, %v4878_v52  ;;  %v5294_v23 = vmul.f32 2.0, %v4910_v49  ;;  %v2976_v6 = vadd.f32 %v8309_v58, %v2975_v57  ;;  %v3296_v32 = vadd.f32 %v8309_v58, %v3295_v14  ;;  %v8720_v14 = vld [vmem:[%s9843_s2] ss:$0 sm:$0xff] }
 0x297   : > { %v5453_v48 = vsel %vm5197_vm6, %v5325_v39, 0.0  ;;  %v5485_v45 = vsel %vm5229_vm7, %v5357_v37, 0.0  ;;  %v4414_v15 = vmax.f32 %v3613_v10, 0.0  ;;  %v4542_v33 = vmax.f32 %v3933_v46, 0.0 }
 0x298   : > { %5582 = vst.msk [vmem:[%s7619_s9 + $0x270] sm:$0xff] %vm5503_vm4, %v5453_v48  ;;  %v5390_v62 = vsel %vm5134_vm8, %v5262_v4, 0.0  ;;  %v5422_v63 = vsel %vm5166_vm9, %v5294_v23, 0.0  ;;  %6782 = vmatmul.msk.bf16.gmra.mxu0 %vm2030_vm2, %v7043_v31  ;;  %6846 = vmatmul.msk.bf16.gmra.mxu1 %vm2030_vm2, %v7107_v60  ;;  %v4159_v35 = vmax.f32 %v2976_v6, 0.0  ;;  %v4287_v52 = vmax.f32 %v3296_v32, 0.0  ;;  %v7238_v6 = vld [vmem:[%s7339_s26 + $0x758] sm:$0xff] }
 0x299   : > { %5614 = vst.msk [vmem:[%s7619_s9 + $0x370] sm:$0xff] %vm5503_vm4, %v5485_v45  ;;  %v4814_v38 = vmax.f32 %v4410_v11, %v4414_v15  ;;  %v4846_v59 = vmax.f32 %v4538_v44, %v4542_v33  ;;  %6910 = vmatmul.msk.bf16.gmra.mxu2 %vm2030_vm2, %v7171_v47  ;;  %6974 = vmatmul.msk.bf16.gmra.mxu3 %vm2030_vm2, %v7235_v20 }
 0x29a   : > { %5519 = vst.msk [vmem:[%s7619_s9 + $0x78] sm:$0xff] %vm5503_vm4, %v5390_v62 }
 0x29b   : > { %5551 = vst.msk [vmem:[%s7619_s9 + $0x178] sm:$0xff] %vm5503_vm4, %v5422_v63  ;;  %v4942_v1 = vmax.f32 %v8477_v16, %v4814_v38  ;;  %v4974_v42 = vmax.f32 %v8479_v18, %v4846_v59 }
 0x29c   : > { %v3615_v9 = vpop.f32.mrf.mxu2  ;;  %v3935_v26 = vpop.f32.mrf.mxu3 }
 0x29d   : > { %v5326_v51 = vmul.f32 2.0, %v4942_v1  ;;  %v5358_v53 = vmul.f32 2.0, %v4974_v42  ;;  %v2977_v50 = vpop.f32.mrf.mxu0  ;;  %v3297_v54 = vpop.f32.mrf.mxu1  ;;  %v3616_v60 = vadd.f32 %v8309_v58, %v3615_v9  ;;  %v3936_v39 = vadd.f32 %v8309_v58, %v3935_v26 }
 0x29e   : > { %v2978_v37 = vadd.f32 %v8309_v58, %v2977_v50  ;;  %v3298_v10 = vadd.f32 %v8309_v58, %v3297_v54  ;;  %v7046_v54 = vld [vmem:[%s7339_s26 + $0x158] sm:$0xff] }
 0x29f   : > { %v5454_v41 = vsel %vm5198_vm10, %v5326_v51, 0.0  ;;  %v5486_v56 = vsel %vm5230_vm11, %v5358_v53, 0.0  ;;  %v4415_v48 = vmax.f32 %v3616_v60, 0.0  ;;  %v4543_v45 = vmax.f32 %v3936_v39, 0.0 }
 0x2a0   : > { %5583 = vst.msk [vmem:[%s7619_s9 + $0x278] sm:$0xff] %vm5503_vm4, %v5454_v41  ;;  %v4160_v33 = vmax.f32 %v2978_v37, 0.0  ;;  %v4288_v62 = vmax.f32 %v3298_v10, 0.0  ;;  %v7110_v41 = vld [vmem:[%s7339_s26 + $0x358] sm:$0xff] }
 0x2a1   : > { %5615 = vst.msk [vmem:[%s7619_s9 + $0x378] sm:$0xff] %vm5503_vm4, %v5486_v56 }
 0x2a4   : > { %v8673_v16 = vpop.f32.mrf.mxu2  ;;  %v8675_v18 = vpop.f32.mrf.mxu3 }
 0x2a5   : > { %v2980_v36 = vpop.f32.mrf.mxu0  ;;  %v3300_v0 = vpop.f32.mrf.mxu1  ;;  %v3618_v42 = vadd.f32 %v8720_v14, %v8673_v16  ;;  %v3938_v9 = vadd.f32 %v8720_v14, %v8675_v18 }
 0x2a6   : > { %v2981_v26 = vadd.f32 %v8720_v14, %v2980_v36  ;;  %v3301_v51 = vadd.f32 %v8720_v14, %v3300_v0 }
 0x2a7   : > { %v4416_v32 = vmax.f32 %v3618_v42, 0.0  ;;  %v4544_v36 = vmax.f32 %v3938_v9, 0.0  ;;  %v7047_v9 = vld [vmem:[%s7339_s26 + $0x160] sm:$0xff] }
 0x2a8   : > { %6783 = vmatmul.msk.bf16.gmra.mxu0 %vm2030_vm2, %v7044_v34  ;;  %6847 = vmatmul.msk.bf16.gmra.mxu1 %vm2030_vm2, %v7108_v27 }
 0x2a9   : > { %6911 = vmatmul.msk.bf16.gmra.mxu2 %vm2030_vm2, %v7172_v19  ;;  %6975 = vmatmul.msk.bf16.gmra.mxu3 %vm2030_vm2, %v7236_v2  ;;  %v7174_v2 = vld [vmem:[%s7339_s26 + $0x558] sm:$0xff] }
 0x2ac   : > { %v8685_v22 = vpop.f32.mrf.mxu2  ;;  %v8687_v55 = vpop.f32.mrf.mxu3 }
 0x2ad   : > { %v8689_v12 = vpop.f32.mrf.mxu0  ;;  %v8691_v13 = vpop.f32.mrf.mxu1 }
 0x2ae   : > { %v3303_v60 = vadd.f32 %v8720_v14, %v8691_v13 }
 0x2b0   : > { %v4290_v13 = vmax.f32 %v3303_v60, 0.0 }
 0x2b4   : > { %v8695_v21 = vpop.f32.mrf.mxu2  ;;  %v8697_v30 = vpop.f32.mrf.mxu3 }
 0x2b5   : > { %v2985_v28 = vpop.f32.mrf.mxu0  ;;  %v3305_v24 = vpop.f32.mrf.mxu1 }
 0x2b6   : > { %v2986_v17 = vadd.f32 %v8309_v58, %v2985_v28  ;;  %v3306_v43 = vadd.f32 %v8309_v58, %v3305_v24  ;;  %v4289_v28 = vmax.f32 %v3301_v51, 0.0 }
 0x2b8   : > { %v4163_v49 = vmax.f32 %v2986_v17, 0.0  ;;  %v4291_v40 = vmax.f32 %v3306_v43, 0.0  ;;  %6784 = vmatmul.msk.bf16.gmra.mxu0 %vm2030_vm2, %v7045_v3  ;;  %6848 = vmatmul.msk.bf16.gmra.mxu1 %vm2030_vm2, %v7109_v7  ;;  %v4161_v7 = vmax.f32 %v2981_v26, 0.0  ;;  %v7111_v26 = vld [vmem:[%s7339_s26 + $0x360] sm:$0xff] }
 0x2b9   : > { %6912 = vmatmul.msk.bf16.gmra.mxu2 %vm2030_vm2, %v7173_v61  ;;  %6976 = vmatmul.msk.bf16.gmra.mxu3 %vm2030_vm2, %v7237_v8 }
 0x2ba   : > { %v8709_v25 = vmax.f32 %v4159_v35, %v4163_v49  ;;  %v8711_v31 = vmax.f32 %v4287_v52, %v4291_v40  ;;  %v3621_v52 = vadd.f32 %v8720_v14, %v8685_v22  ;;  %v3941_v49 = vadd.f32 %v8720_v14, %v8687_v55 }
 0x2bb   : > { %v2983_v40 = vadd.f32 %v8720_v14, %v8689_v12 }
 0x2bc   : > { %v3625_v46 = vpop.f32.mrf.mxu2  ;;  %v3945_v57 = vpop.f32.mrf.mxu3  ;;  %v4545_v55 = vmax.f32 %v3941_v49, 0.0 }
 0x2bd   : > { %v3626_v47 = vadd.f32 %v8720_v14, %v3625_v46  ;;  %v3946_v20 = vadd.f32 %v8720_v14, %v3945_v57  ;;  %v2987_v11 = vpop.f32.mrf.mxu0  ;;  %v3307_v44 = vpop.f32.mrf.mxu1 }
 0x2be   : > { %v2988_v4 = vadd.f32 %v8720_v14, %v2987_v11  ;;  %v3308_v23 = vadd.f32 %v8720_v14, %v3307_v44  ;;  %v4417_v11 = vmax.f32 %v3621_v52, 0.0  ;;  %v7240_v52 = vld [vmem:[%s7339_s26 + $0x768] sm:$0xff] }
 0x2bf   : > { %v4419_v58 = vmax.f32 %v3626_v47, 0.0  ;;  %v4547_v15 = vmax.f32 %v3946_v20, 0.0 }
 0x2c0   : > { %v4164_v63 = vmax.f32 %v2988_v4, 0.0  ;;  %v4292_v38 = vmax.f32 %v3308_v23, 0.0  ;;  %v4162_v4 = vmax.f32 %v2983_v40, 0.0 }
 0x2c1   : > { %v8726_v5 = vmax.f32 %v4415_v48, %v4419_v58  ;;  %v8728_v59 = vmax.f32 %v4543_v45, %v4547_v15 }
 0x2c2   : > { %v8730_v29 = vmax.f32 %v4160_v33, %v4164_v63  ;;  %v8732_v1 = vmax.f32 %v4288_v62, %v4292_v38  ;;  %v3623_v62 = vadd.f32 %v8720_v14, %v8695_v21  ;;  %v3943_v63 = vadd.f32 %v8720_v14, %v8697_v30 }
 0x2c4   : > { %v3627_v53 = vpop.f32.mrf.mxu2  ;;  %v3947_v50 = vpop.f32.mrf.mxu3 }
 0x2c5   : > { %v3628_v56 = vadd.f32 %v8720_v14, %v3627_v53  ;;  %v3948_v34 = vadd.f32 %v8720_v14, %v3947_v50  ;;  %v2990_v27 = vpop.f32.mrf.mxu0  ;;  %v3310_v19 = vpop.f32.mrf.mxu1 }
 0x2c6   : > { %v2991_v16 = vadd.f32 %v8720_v14, %v2990_v27  ;;  %v3311_v18 = vadd.f32 %v8720_v14, %v3310_v19  ;;  %v4546_v27 = vmax.f32 %v3943_v63, 0.0 }
 0x2c7   : > { %v4420_v3 = vmax.f32 %v3628_v56, 0.0  ;;  %v4548_v0 = vmax.f32 %v3948_v34, 0.0  ;;  %v7239_v56 = vld [vmem:[%s7339_s26 + $0x760] sm:$0xff]  ;;  %v4418_v34 = vmax.f32 %v3623_v62, 0.0 }
 0x2c8   : > { %v4165_v24 = vmax.f32 %v2991_v16, 0.0  ;;  %v4293_v61 = vmax.f32 %v3311_v18, 0.0  ;;  %6785 = vmatmul.msk.bf16.gmra.mxu0 %vm2030_vm2, %v7046_v54  ;;  %6849 = vmatmul.msk.bf16.gmra.mxu1 %vm2030_vm2, %v7110_v41  ;;  %v7175_v41 = vld [vmem:[%s7339_s26 + $0x560] sm:$0xff] }
 0x2c9   : > { %v8750_v8 = vmax.f32 %v4416_v32, %v4420_v3  ;;  %v8752_v17 = vmax.f32 %v4544_v36, %v4548_v0  ;;  %6913 = vmatmul.msk.bf16.gmra.mxu2 %vm2030_vm2, %v7174_v2  ;;  %6977 = vmatmul.msk.bf16.gmra.mxu3 %vm2030_vm2, %v7238_v6  ;;  %v7048_v0 = vld [vmem:[%s7339_s26 + $0x168] sm:$0xff] }
 0x2ca   : > { %v8756_v43 = vmax.f32 %v4161_v7, %v4165_v24  ;;  %v8758_v35 = vmax.f32 %v4289_v28, %v4293_v61  ;;  %v7112_v7 = vld [vmem:[%s7339_s26 + $0x368] sm:$0xff] }
 0x2cb   : > { %v7176_v61 = vld [vmem:[%s7339_s26 + $0x568] sm:$0xff] }
 0x2cc   : > { %v3630_v39 = vpop.f32.mrf.mxu2  ;;  %v3950_v37 = vpop.f32.mrf.mxu3 }
 0x2cd   : > { %v3631_v10 = vadd.f32 %v8720_v14, %v3630_v39  ;;  %v3951_v46 = vadd.f32 %v8720_v14, %v3950_v37  ;;  %v2992_v57 = vpop.f32.mrf.mxu0  ;;  %v3312_v47 = vpop.f32.mrf.mxu1 }
 0x2ce   : > { %v2993_v20 = vadd.f32 %v8720_v14, %v2992_v57  ;;  %v3313_v22 = vadd.f32 %v8720_v14, %v3312_v47  ;;  %v7049_v47 = vld [vmem:[%s7339_s26 + $0x170] sm:$0xff] }
 0x2cf   : > { %v4421_v12 = vmax.f32 %v3631_v10, 0.0  ;;  %v4549_v44 = vmax.f32 %v3951_v46, 0.0 }
 0x2d0   : > { %v4166_v23 = vmax.f32 %v2993_v20, 0.0  ;;  %v4294_v48 = vmax.f32 %v3313_v22, 0.0  ;;  %v7113_v20 = vld [vmem:[%s7339_s26 + $0x370] sm:$0xff] }
 0x2d1   : > { %v8772_v45 = vmax.f32 %v4417_v11, %v4421_v12  ;;  %v8774_v58 = vmax.f32 %v4545_v55, %v4549_v44  ;;  %v7177_v55 = vld [vmem:[%s7339_s26 + $0x570] sm:$0xff] }
 0x2d2   : > { %v8776_v15 = vmax.f32 %v4162_v4, %v4166_v23  ;;  %v8778_v33 = vmax.f32 %v4290_v13, %v4294_v48  ;;  %v7241_v12 = vld [vmem:[%s7339_s26 + $0x770] sm:$0xff]  ;;  %v5007_v23 = vld [vmem:[%s7560_s6 + $0x80] sm:$0xff] }
 0x2d3   : > { %vm5135_vm12 = vcmp.ge.f32.partialorder %v5007_v23, 0.5 }
 0x2d4   : > { %v3632_v38 = vpop.f32.mrf.mxu2  ;;  %v3952_v42 = vpop.f32.mrf.mxu3 }
 0x2d5   : > { %v3633_v51 = vadd.f32 %v8720_v14, %v3632_v38  ;;  %v3953_v53 = vadd.f32 %v8720_v14, %v3952_v42  ;;  %v2995_v50 = vpop.f32.mrf.mxu0  ;;  %v3315_v54 = vpop.f32.mrf.mxu1 }
 0x2d6   : > { %v2996_v37 = vadd.f32 %v8720_v14, %v2995_v50  ;;  %v3316_v10 = vadd.f32 %v8720_v14, %v3315_v54  ;;  %v8840_v50 = vld [vmem:[%s7560_s6 + $0x280] sm:$0xff] }
 0x2d7   : > { %v4422_v21 = vmax.f32 %v3633_v51, 0.0  ;;  %v4550_v19 = vmax.f32 %v3953_v53, 0.0  ;;  %v5039_v51 = vld [vmem:[%s7560_s6 + $0x180] sm:$0xff]  ;;  %vm5199_vm14 = vcmp.ge.f32.partialorder %v8840_v50, 0.5 }
 0x2d8   : > { %6786 = vmatmul.msk.bf16.gmra.mxu0 %vm2030_vm2, %v7047_v9  ;;  %6850 = vmatmul.msk.bf16.gmra.mxu1 %vm2030_vm2, %v7111_v26  ;;  %v4167_v38 = vmax.f32 %v2996_v37, 0.0  ;;  %v4295_v42 = vmax.f32 %v3316_v10, 0.0  ;;  %vm5167_vm13 = vcmp.ge.f32.partialorder %v5039_v51, 0.5 }
 0x2d9   : > { %v8792_v30 = vmax.f32 %v4418_v34, %v4422_v21  ;;  %v8794_v2 = vmax.f32 %v4546_v27, %v4550_v19  ;;  %6914 = vmatmul.msk.bf16.gmra.mxu2 %vm2030_vm2, %v7175_v41  ;;  %6978 = vmatmul.msk.bf16.gmra.mxu3 %vm2030_vm2, %v7239_v56 }
 0x2dc   : > { %v3635_v6 = vpop.f32.mrf.mxu2  ;;  %v3955_v16 = vpop.f32.mrf.mxu3 }
 0x2dd   : > { %v2997_v18 = vpop.f32.mrf.mxu0  ;;  %v3317_v32 = vpop.f32.mrf.mxu1  ;;  %v3636_v44 = vadd.f32 %v8720_v14, %v3635_v6  ;;  %v3956_v4 = vadd.f32 %v8720_v14, %v3955_v16 }
 0x2de   : > { %v2998_v62 = vadd.f32 %v8720_v14, %v2997_v18  ;;  %v3318_v63 = vadd.f32 %v8720_v14, %v3317_v32 }
 0x2df   : > { %v4423_v54 = vmax.f32 %v3636_v44, 0.0  ;;  %v4551_v41 = vmax.f32 %v3956_v4, 0.0 }
 0x2e0   : > { %v4168_v27 = vmax.f32 %v2998_v62, 0.0  ;;  %v4296_v21 = vmax.f32 %v3318_v63, 0.0 }
 0x2e4   : > { %v3637_v36 = vpop.f32.mrf.mxu2  ;;  %v3957_v3 = vpop.f32.mrf.mxu3 }
 0x2e5   : > { %v3000_v28 = vpop.f32.mrf.mxu0  ;;  %v3320_v24 = vpop.f32.mrf.mxu1  ;;  %v8835_v53 = vadd.f32 %v8720_v14, %v3637_v36  ;;  %v8843_v19 = vadd.f32 %v8720_v14, %v3957_v3 }
 0x2e6   : > { %v8846_v6 = vadd.f32 %v8720_v14, %v3000_v28  ;;  %v8854_v3 = vadd.f32 %v8720_v14, %v3320_v24  ;;  %v5008_v24 = vld [vmem:[%s7560_s6 + $0x88] sm:$0xff] }
 0x2e7   : > { %vm5136_vm0 = vcmp.ge.f32.partialorder %v5008_v24, 0.5 }
 0x2e8   : > { %6787 = vmatmul.msk.bf16.gmra.mxu0 %vm2030_vm2, %v7048_v0  ;;  %6851 = vmatmul.msk.bf16.gmra.mxu1 %vm2030_vm2, %v7112_v7  ;;  %v5103_v0 = vld [vmem:[%s7560_s6 + $0x380] sm:$0xff]  ;;  %v4424_v7 = vmax.f32 %v8835_v53, 0.0  ;;  %v4297_v62 = vmax.f32 %v8854_v3, 0.0  ;;  %v5072_v3 = vld [vmem:[%s7560_s6 + $0x288] sm:$0xff] }
 0x2e9   : > { %6915 = vmatmul.msk.bf16.gmra.mxu2 %vm2030_vm2, %v7176_v61  ;;  %6979 = vmatmul.msk.bf16.gmra.mxu3 %vm2030_vm2, %v7240_v52  ;;  %vm5231_vm15 = vcmp.ge.f32.partialorder %v5103_v0, 0.5  ;;  %vm5200_vm3 = vcmp.ge.f32.partialorder %v5072_v3, 0.5 }
 0x2ec   : > { %v8806_v49 = vpop.f32.mrf.mxu2  ;;  %v8808_v40 = vpop.f32.mrf.mxu3 }
 0x2ed   : > { %v8810_v60 = vpop.f32.mrf.mxu0  ;;  %v8812_v39 = vpop.f32.mrf.mxu1 }
 0x2f4   : > { %v8816_v46 = vpop.f32.mrf.mxu2  ;;  %v8818_v57 = vpop.f32.mrf.mxu3 }
 0x2f5   : > { %v3005_v22 = vpop.f32.mrf.mxu0  ;;  %v3325_v11 = vpop.f32.mrf.mxu1 }
 0x2f6   : > { %v3006_v13 = vadd.f32 %v8720_v14, %v3005_v22  ;;  %v3326_v48 = vadd.f32 %v8720_v14, %v3325_v11 }
 0x2f8   : > { %v4171_v9 = vmax.f32 %v3006_v13, 0.0  ;;  %v4299_v26 = vmax.f32 %v3326_v48, 0.0  ;;  %6788 = vmatmul.msk.bf16.gmra.mxu0 %vm2030_vm2, %v7049_v47  ;;  %6852 = vmatmul.msk.bf16.gmra.mxu1 %vm2030_vm2, %v7113_v20  ;;  %v4552_v20 = vmax.f32 %v8843_v19, 0.0  ;;  %v4169_v48 = vmax.f32 %v8846_v6, 0.0 }
 0x2f9   : > { %6916 = vmatmul.msk.bf16.gmra.mxu2 %vm2030_vm2, %v7177_v55  ;;  %6980 = vmatmul.msk.bf16.gmra.mxu3 %vm2030_vm2, %v7241_v12  ;;  %v5040_v55 = vld [vmem:[%s7560_s6 + $0x188] sm:$0xff] }
 0x2fa   : > { %v4751_v56 = vmax.f32 %v4167_v38, %v4171_v9  ;;  %v4783_v34 = vmax.f32 %v4295_v42, %v4299_v26  ;;  %vm5168_vm1 = vcmp.ge.f32.partialorder %v5040_v55, 0.5  ;;  %v8873_v9 = vadd.f32 %v8720_v14, %v8806_v49  ;;  %v5041_v55 = vld [vmem:[%s7560_s6 + $0x190] sm:$0xff] }
 0x2fb   : > { %v8877_v26 = vadd.f32 %v8720_v14, %v8808_v40  ;;  %vm5169_vm7 = vcmp.ge.f32.partialorder %v5041_v55, 0.5 }
 0x2fc   : > { %v4879_v16 = vmax.f32 %v8709_v25, %v4751_v56  ;;  %v4911_v18 = vmax.f32 %v8711_v31, %v4783_v34  ;;  %v3645_v32 = vpop.f32.mrf.mxu2  ;;  %v3965_v36 = vpop.f32.mrf.mxu3  ;;  %v8887_v56 = vadd.f32 %v8720_v14, %v8812_v39  ;;  %v4425_v50 = vmax.f32 %v8873_v9, 0.0 }
 0x2fd   : > { %v3646_v61 = vadd.f32 %v8720_v14, %v3645_v32  ;;  %v3966_v28 = vadd.f32 %v8720_v14, %v3965_v36  ;;  %v3007_v52 = vpop.f32.mrf.mxu0  ;;  %v3327_v25 = vpop.f32.mrf.mxu1  ;;  %v7242_v32 = vld [vmem:[%s7339_s26 + $0x778] sm:$0xff] }
 0x2fe   : > { %v5263_v37 = vmul.f32 2.0, %v4879_v16  ;;  %v5295_v31 = vmul.f32 2.0, %v4911_v18  ;;  %v3008_v10 = vadd.f32 %v8720_v14, %v3007_v52  ;;  %v3328_v47 = vadd.f32 %v8720_v14, %v3327_v25  ;;  %v7178_v18 = vld [vmem:[%s7339_s26 + $0x578] sm:$0xff] }
 0x2ff   : > { %v4427_v22 = vmax.f32 %v3646_v61, 0.0  ;;  %v4555_v11 = vmax.f32 %v3966_v28, 0.0  ;;  %v4298_v53 = vmax.f32 %v8887_v56, 0.0 }
 0x300   : > { %v5391_v12 = vsel %vm5135_vm12, %v5263_v37, 0.0  ;;  %v5423_v44 = vsel %vm5167_vm13, %v5295_v31, 0.0  ;;  %v4172_v4 = vmax.f32 %v3008_v10, 0.0  ;;  %v4300_v13 = vmax.f32 %v3328_v47, 0.0  ;;  %v5104_v31 = vld [vmem:[%s7560_s6 + $0x388] sm:$0xff] }
 0x301   : > { %5520 = vst.msk [vmem:[%s7619_s9 + $0x80] sm:$0xff] %vm5503_vm4, %v5391_v12  ;;  %v4815_v63 = vmax.f32 %v4423_v54, %v4427_v22  ;;  %v4847_v38 = vmax.f32 %v4551_v41, %v4555_v11  ;;  %v8883_v41 = vadd.f32 %v8720_v14, %v8810_v60  ;;  %v5009_v12 = vld [vmem:[%s7560_s6 + $0x90] sm:$0xff]  ;;  %vm5232_vm5 = vcmp.ge.f32.partialorder %v5104_v31, 0.5 }
 0x302   : > { %5552 = vst.msk [vmem:[%s7619_s9 + $0x180] sm:$0xff] %vm5503_vm4, %v5423_v44  ;;  %v4752_v42 = vmax.f32 %v4168_v27, %v4172_v4  ;;  %v4784_v23 = vmax.f32 %v4296_v21, %v4300_v13  ;;  %v7114_v21 = vld [vmem:[%s7339_s26 + $0x378] sm:$0xff]  ;;  %v4553_v44 = vmax.f32 %v8877_v26, 0.0  ;;  %vm5137_vm6 = vcmp.ge.f32.partialorder %v5009_v12, 0.5 }
 0x303   : > { %v4943_v51 = vmax.f32 %v8726_v5, %v4815_v63  ;;  %v4975_v54 = vmax.f32 %v8728_v59, %v4847_v38  ;;  %v7050_v5 = vld [vmem:[%s7339_s26 + $0x178] sm:$0xff]  ;;  %v4170_v63 = vmax.f32 %v8883_v41, 0.0 }
 0x304   : > { %v4880_v49 = vmax.f32 %v8730_v29, %v4752_v42  ;;  %v4912_v40 = vmax.f32 %v8732_v1, %v4784_v23  ;;  %v3647_v34 = vpop.f32.mrf.mxu2  ;;  %v3967_v27 = vpop.f32.mrf.mxu3 }
 0x305   : > { %v5327_v19 = vmul.f32 2.0, %v4943_v51  ;;  %v5359_v59 = vmul.f32 2.0, %v4975_v54  ;;  %v3648_v6 = vadd.f32 %v8720_v14, %v3647_v34  ;;  %v3968_v60 = vadd.f32 %v8720_v14, %v3967_v27  ;;  %v3010_v16 = vpop.f32.mrf.mxu0  ;;  %v3330_v39 = vpop.f32.mrf.mxu1  ;;  %v5073_v34 = vld [vmem:[%s7560_s6 + $0x290] sm:$0xff] }
 0x306   : > { %v5264_v29 = vmul.f32 2.0, %v4880_v49  ;;  %v5296_v36 = vmul.f32 2.0, %v4912_v40  ;;  %v3011_v1 = vadd.f32 %v8720_v14, %v3010_v16  ;;  %v3331_v61 = vadd.f32 %v8720_v14, %v3330_v39  ;;  %v5010_v39 = vld [vmem:[%s7560_s6 + $0x98] sm:$0xff] }
 0x307   : > { %v5455_v28 = vsel %vm5199_vm14, %v5327_v19, 0.0  ;;  %v5487_v52 = vsel %vm5231_vm15, %v5359_v59, 0.0  ;;  %v4428_v25 = vmax.f32 %v3648_v6, 0.0  ;;  %v4556_v37 = vmax.f32 %v3968_v60, 0.0  ;;  %v5105_v19 = vld [vmem:[%s7560_s6 + $0x390] sm:$0xff] }
 0x308   : > { %5584 = vst.msk [vmem:[%s7619_s9 + $0x280] sm:$0xff] %vm5503_vm4, %v5455_v28  ;;  %v5392_v10 = vsel %vm5136_vm0, %v5264_v29, 0.0  ;;  %v5424_v47 = vsel %vm5168_vm1, %v5296_v36, 0.0  ;;  %v4173_v22 = vmax.f32 %v3011_v1, 0.0  ;;  %v4301_v11 = vmax.f32 %v3331_v61, 0.0  ;;  %6789 = vmatmul.msk.bf16.gmra.mxu0 %vm2030_vm2, %v7050_v5  ;;  %6853 = vmatmul.msk.bf16.gmra.mxu1 %vm2030_vm2, %v7114_v21 }
 0x309   : > { %5616 = vst.msk [vmem:[%s7619_s9 + $0x380] sm:$0xff] %vm5503_vm4, %v5487_v52  ;;  %v4816_v0 = vmax.f32 %v4424_v7, %v4428_v25  ;;  %v4848_v24 = vmax.f32 %v4552_v20, %v4556_v37  ;;  %6917 = vmatmul.msk.bf16.gmra.mxu2 %vm2030_vm2, %v7178_v18  ;;  %6981 = vmatmul.msk.bf16.gmra.mxu3 %vm2030_vm2, %v7242_v32  ;;  %v5042_v18 = vld [vmem:[%s7560_s6 + $0x198] sm:$0xff]  ;;  %vm5201_vm8 = vcmp.ge.f32.partialorder %v5073_v34, 0.5  ;;  %vm5233_vm9 = vcmp.ge.f32.partialorder %v5105_v19, 0.5  ;;  %v7051_v25 = vld [vmem:[%s7339_s26 + $0x180] sm:$0xff] }
 0x30a   : > { %5521 = vst.msk [vmem:[%s7619_s9 + $0x88] sm:$0xff] %vm5503_vm4, %v5392_v10  ;;  %v4753_v4 = vmax.f32 %v4169_v48, %v4173_v22  ;;  %v4785_v13 = vmax.f32 %v4297_v62, %v4301_v11  ;;  %v3643_v32 = vadd.f32 %v8720_v14, %v8816_v46  ;;  %v3963_v29 = vadd.f32 %v8720_v14, %v8818_v57  ;;  %v7115_v37 = vld [vmem:[%s7339_s26 + $0x380] sm:$0xff] }
 0x30b   : > { %5553 = vst.msk [vmem:[%s7619_s9 + $0x188] sm:$0xff] %vm5503_vm4, %v5424_v47  ;;  %v4944_v7 = vmax.f32 %v8750_v8, %v4816_v0  ;;  %v4976_v20 = vmax.f32 %v8752_v17, %v4848_v24  ;;  %vm5138_vm10 = vcmp.ge.f32.partialorder %v5010_v39, 0.5  ;;  %vm5170_vm11 = vcmp.ge.f32.partialorder %v5042_v18, 0.5  ;;  %v7179_v11 = vld [vmem:[%s7339_s26 + $0x580] sm:$0xff]  ;;  %v7117_v39 = vld [vmem:[%s7339_s26 + $0x390] sm:$0xff] }
 0x30c   : > { %v4881_v38 = vmax.f32 %v8756_v43, %v4753_v4  ;;  %v4913_v42 = vmax.f32 %v8758_v35, %v4785_v13  ;;  %v3650_v23 = vpop.f32.mrf.mxu2  ;;  %v3970_v48 = vpop.f32.mrf.mxu3 }
 0x30d   : > { %v5328_v62 = vmul.f32 2.0, %v4944_v7  ;;  %v5360_v9 = vmul.f32 2.0, %v4976_v20  ;;  %v3651_v26 = vadd.f32 %v8720_v14, %v3650_v23  ;;  %v3971_v51 = vadd.f32 %v8720_v14, %v3970_v48  ;;  %v3012_v8 = vpop.f32.mrf.mxu0  ;;  %v3332_v54 = vpop.f32.mrf.mxu1  ;;  %v5074_v7 = vld [vmem:[%s7560_s6 + $0x298] sm:$0xff] }
 0x30e   : > { %v5265_v17 = vmul.f32 2.0, %v4881_v38  ;;  %v5297_v43 = vmul.f32 2.0, %v4913_v42  ;;  %v3013_v41 = vadd.f32 %v8720_v14, %v3012_v8  ;;  %v3333_v35 = vadd.f32 %v8720_v14, %v3332_v54  ;;  %v5106_v38 = vld [vmem:[%s7560_s6 + $0x398] sm:$0xff] }
 0x30f   : > { %v5456_v56 = vsel %vm5200_vm3, %v5328_v62, 0.0  ;;  %v5488_v49 = vsel %vm5232_vm5, %v5360_v9, 0.0  ;;  %v4429_v40 = vmax.f32 %v3651_v26, 0.0  ;;  %v4557_v27 = vmax.f32 %v3971_v51, 0.0 }
 0x310   : > { %5585 = vst.msk [vmem:[%s7619_s9 + $0x288] sm:$0xff] %vm5503_vm4, %v5456_v56  ;;  %v5393_v5 = vsel %vm5137_vm6, %v5265_v17, 0.0  ;;  %v5425_v21 = vsel %vm5169_vm7, %v5297_v43, 0.0  ;;  %v4174_v59 = vmax.f32 %v3013_v41, 0.0  ;;  %v4302_v6 = vmax.f32 %v3333_v35, 0.0  ;;  %v7116_v41 = vld [vmem:[%s7339_s26 + $0x388] sm:$0xff] }
 0x311   : > { %5617 = vst.msk [vmem:[%s7619_s9 + $0x388] sm:$0xff] %vm5503_vm4, %v5488_v49  ;;  %v4817_v60 = vmax.f32 %v4425_v50, %v4429_v40  ;;  %v4849_v16 = vmax.f32 %v4553_v44, %v4557_v27  ;;  %v4426_v50 = vmax.f32 %v3643_v32, 0.0  ;;  %vm5202_vm12 = vcmp.ge.f32.partialorder %v5074_v7, 0.5  ;;  %v7180_v49 = vld [vmem:[%s7339_s26 + $0x588] sm:$0xff] }
 0x312   : > { %5522 = vst.msk [vmem:[%s7619_s9 + $0x90] sm:$0xff] %vm5503_vm4, %v5393_v5  ;;  %v4754_v36 = vmax.f32 %v4170_v63, %v4174_v59  ;;  %v4786_v3 = vmax.f32 %v4298_v53, %v4302_v6  ;;  %vm5234_vm13 = vcmp.ge.f32.partialorder %v5106_v38, 0.5  ;;  %v7244_v40 = vld [vmem:[%s7339_s26 + $0x788] sm:$0xff] }
 0x313   : > { %5554 = vst.msk [vmem:[%s7619_s9 + $0x190] sm:$0xff] %vm5503_vm4, %v5425_v21  ;;  %v4945_v1 = vmax.f32 %v8772_v45, %v4817_v60  ;;  %v4977_v61 = vmax.f32 %v8774_v58, %v4849_v16  ;;  %v7053_v16 = vld [vmem:[%s7339_s26 + $0x190] sm:$0xff] }
 0x314   : > { %v4882_v46 = vmax.f32 %v8776_v15, %v4754_v36  ;;  %v4914_v57 = vmax.f32 %v8778_v33, %v4786_v3  ;;  %v3652_v28 = vpop.f32.mrf.mxu2  ;;  %v3972_v52 = vpop.f32.mrf.mxu3  ;;  %v7243_v15 = vld [vmem:[%s7339_s26 + $0x780] sm:$0xff]  ;;  %v4554_v33 = vmax.f32 %v3963_v29, 0.0  ;;  %v7181_v29 = vld [vmem:[%s7339_s26 + $0x590] sm:$0xff] }
 0x315   : > { %v5329_v31 = vmul.f32 2.0, %v4945_v1  ;;  %v5361_v10 = vmul.f32 2.0, %v4977_v61  ;;  %v3653_v45 = vadd.f32 %v8720_v14, %v3652_v28  ;;  %v3973_v58 = vadd.f32 %v8720_v14, %v3972_v52  ;;  %v3015_v47 = vpop.f32.mrf.mxu0  ;;  %v3335_v22 = vpop.f32.mrf.mxu1  ;;  %v7245_v36 = vld [vmem:[%s7339_s26 + $0x790] sm:$0xff] }
 0x316   : > { %v5266_v0 = vmul.f32 2.0, %v4882_v46  ;;  %v5298_v24 = vmul.f32 2.0, %v4914_v57  ;;  %v3016_v19 = vadd.f32 %v8720_v14, %v3015_v47  ;;  %v3336_v59 = vadd.f32 %v8720_v14, %v3335_v22 }
 0x317   : > { %v5457_v12 = vsel %vm5201_vm8, %v5329_v31, 0.0  ;;  %v5489_v55 = vsel %vm5233_vm9, %v5361_v10, 0.0  ;;  %v4430_v44 = vmax.f32 %v3653_v45, 0.0  ;;  %v4558_v4 = vmax.f32 %v3973_v58, 0.0 }
 0x318   : > { %5586 = vst.msk [vmem:[%s7619_s9 + $0x290] sm:$0xff] %vm5503_vm4, %v5457_v12  ;;  %v5394_v13 = vsel %vm5138_vm10, %v5266_v0, 0.0  ;;  %v5426_v63 = vsel %vm5170_vm11, %v5298_v24, 0.0  ;;  %6790 = vmatmul.msk.bf16.gmra.mxu0 %vm2030_vm2, %v7051_v25  ;;  %6854 = vmatmul.msk.bf16.gmra.mxu1 %vm2030_vm2, %v7115_v37  ;;  %v4175_v61 = vmax.f32 %v3016_v19, 0.0  ;;  %v4303_v46 = vmax.f32 %v3336_v59, 0.0  ;;  %v7246_v19 = vld [vmem:[%s7339_s26 + $0x798] sm:$0xff] }
 0x319   : > { %5618 = vst.msk [vmem:[%s7619_s9 + $0x390] sm:$0xff] %vm5503_vm4, %v5489_v55  ;;  %v4818_v53 = vmax.f32 %v4426_v50, %v4430_v44  ;;  %v4850_v20 = vmax.f32 %v4554_v33, %v4558_v4  ;;  %6918 = vmatmul.msk.bf16.gmra.mxu2 %vm2030_vm2, %v7179_v11  ;;  %6982 = vmatmul.msk.bf16.gmra.mxu3 %vm2030_vm2, %v7243_v15 }
 0x31a   : > { %5523 = vst.msk [vmem:[%s7619_s9 + $0x98] sm:$0xff] %vm5503_vm4, %v5394_v13 }
 0x31b   : > { %5555 = vst.msk [vmem:[%s7619_s9 + $0x198] sm:$0xff] %vm5503_vm4, %v5426_v63  ;;  %v4946_v42 = vmax.f32 %v8792_v30, %v4818_v53  ;;  %v4978_v23 = vmax.f32 %v8794_v2, %v4850_v20  ;;  %v7052_v2 = vld [vmem:[%s7339_s26 + $0x188] sm:$0xff] }
 0x31c   : > { %v3655_v48 = vpop.f32.mrf.mxu2  ;;  %v3975_v62 = vpop.f32.mrf.mxu3 }
 0x31d   : > { %v5330_v9 = vmul.f32 2.0, %v4946_v42  ;;  %v5362_v26 = vmul.f32 2.0, %v4978_v23  ;;  %v3017_v51 = vpop.f32.mrf.mxu0  ;;  %v3337_v8 = vpop.f32.mrf.mxu1  ;;  %v3656_v37 = vadd.f32 %v8720_v14, %v3655_v48  ;;  %v3976_v31 = vadd.f32 %v8720_v14, %v3975_v62 }
 0x31e   : > { %v3018_v10 = vadd.f32 %v8720_v14, %v3017_v51  ;;  %v3338_v45 = vadd.f32 %v8720_v14, %v3337_v8  ;;  %v7054_v8 = vld [vmem:[%s7339_s26 + $0x198] sm:$0xff] }
 0x31f   : > { %v5458_v54 = vsel %vm5202_vm12, %v5330_v9, 0.0  ;;  %v5490_v17 = vsel %vm5234_vm13, %v5362_v26, 0.0  ;;  %v4431_v24 = vmax.f32 %v3656_v37, 0.0  ;;  %v4559_v12 = vmax.f32 %v3976_v31, 0.0 }
 0x320   : > { %5587 = vst.msk [vmem:[%s7619_s9 + $0x298] sm:$0xff] %vm5503_vm4, %v5458_v54  ;;  %v4176_v4 = vmax.f32 %v3018_v10, 0.0  ;;  %v4304_v13 = vmax.f32 %v3338_v45, 0.0  ;;  %v7118_v54 = vld [vmem:[%s7339_s26 + $0x398] sm:$0xff] }
 0x321   : > { %5619 = vst.msk [vmem:[%s7619_s9 + $0x398] sm:$0xff] %vm5503_vm4, %v5490_v17 }
 0x324   : > { %v3657_v30 = vpop.f32.mrf.mxu2  ;;  %v3977_v43 = vpop.f32.mrf.mxu3 }
 0x325   : > { %v3020_v35 = vpop.f32.mrf.mxu0  ;;  %v3340_v56 = vpop.f32.mrf.mxu1  ;;  %v3658_v23 = vadd.f32 %v8720_v14, %v3657_v30  ;;  %v3978_v48 = vadd.f32 %v8720_v14, %v3977_v43 }
 0x326   : > { %v3021_v62 = vadd.f32 %v8720_v14, %v3020_v35  ;;  %v3341_v9 = vadd.f32 %v8720_v14, %v3340_v56 }
 0x327   : > { %v4432_v59 = vmax.f32 %v3658_v23, 0.0  ;;  %v4560_v35 = vmax.f32 %v3978_v48, 0.0  ;;  %v7055_v48 = vld [vmem:[%s7339_s26 + $0x1a0] sm:$0xff] }
 0x328   : > { %6791 = vmatmul.msk.bf16.gmra.mxu0 %vm2030_vm2, %v7052_v2  ;;  %6855 = vmatmul.msk.bf16.gmra.mxu1 %vm2030_vm2, %v7116_v41 }
 0x329   : > { %6919 = vmatmul.msk.bf16.gmra.mxu2 %vm2030_vm2, %v7180_v49  ;;  %6983 = vmatmul.msk.bf16.gmra.mxu3 %vm2030_vm2, %v7244_v40  ;;  %v7182_v40 = vld [vmem:[%s7339_s26 + $0x598] sm:$0xff] }
 0x32c   : > { %v8996_v34 = vpop.f32.mrf.mxu2  ;;  %v8998_v27 = vpop.f32.mrf.mxu3 }
 0x32d   : > { %v9000_v5 = vpop.f32.mrf.mxu0  ;;  %v9002_v21 = vpop.f32.mrf.mxu1 }
 0x32e   : > { %v3343_v37 = vadd.f32 %v8720_v14, %v9002_v21 }
 0x330   : > { %v4306_v21 = vmax.f32 %v3343_v37, 0.0 }
 0x334   : > { %v9006_v6 = vpop.f32.mrf.mxu2  ;;  %v9008_v60 = vpop.f32.mrf.mxu3 }
 0x335   : > { %v3025_v18 = vpop.f32.mrf.mxu0  ;;  %v3345_v32 = vpop.f32.mrf.mxu1 }
 0x336   : > { %v3026_v3 = vadd.f32 %v8720_v14, %v3025_v18  ;;  %v3346_v1 = vadd.f32 %v8720_v14, %v3345_v32  ;;  %v4305_v18 = vmax.f32 %v3341_v9, 0.0 }
 0x338   : > { %v4179_v57 = vmax.f32 %v3026_v3, 0.0  ;;  %v4307_v28 = vmax.f32 %v3346_v1, 0.0  ;;  %6792 = vmatmul.msk.bf16.gmra.mxu0 %vm2030_vm2, %v7053_v16  ;;  %6856 = vmatmul.msk.bf16.gmra.mxu1 %vm2030_vm2, %v7117_v39  ;;  %v4177_v39 = vmax.f32 %v3021_v62, 0.0  ;;  %v7119_v62 = vld [vmem:[%s7339_s26 + $0x3a0] sm:$0xff] }
 0x339   : > { %6920 = vmatmul.msk.bf16.gmra.mxu2 %vm2030_vm2, %v7181_v29  ;;  %6984 = vmatmul.msk.bf16.gmra.mxu3 %vm2030_vm2, %v7245_v36 }
 0x33a   : > { %v9020_v52 = vmax.f32 %v4175_v61, %v4179_v57  ;;  %v9022_v25 = vmax.f32 %v4303_v46, %v4307_v28  ;;  %v3661_v46 = vadd.f32 %v8720_v14, %v8996_v34  ;;  %v3981_v57 = vadd.f32 %v8720_v14, %v8998_v27 }
 0x33b   : > { %v3023_v28 = vadd.f32 %v8720_v14, %v9000_v5 }
 0x33c   : > { %v3665_v58 = vpop.f32.mrf.mxu2  ;;  %v3985_v47 = vpop.f32.mrf.mxu3  ;;  %v4561_v27 = vmax.f32 %v3981_v57, 0.0 }
 0x33d   : > { %v3666_v22 = vadd.f32 %v8720_v14, %v3665_v58  ;;  %v3986_v11 = vadd.f32 %v8720_v14, %v3985_v47  ;;  %v3027_v15 = vpop.f32.mrf.mxu0  ;;  %v3347_v50 = vpop.f32.mrf.mxu1 }
 0x33e   : > { %v3028_v33 = vadd.f32 %v8720_v14, %v3027_v15  ;;  %v3348_v0 = vadd.f32 %v8720_v14, %v3347_v50  ;;  %v4433_v15 = vmax.f32 %v3661_v46, 0.0  ;;  %v7248_v46 = vld [vmem:[%s7339_s26 + $0x7a8] sm:$0xff] }
 0x33f   : > { %v4435_v55 = vmax.f32 %v3666_v22, 0.0  ;;  %v4563_v44 = vmax.f32 %v3986_v11, 0.0 }
 0x340   : > { %v4180_v63 = vmax.f32 %v3028_v33, 0.0  ;;  %v4308_v53 = vmax.f32 %v3348_v0, 0.0  ;;  %v4178_v33 = vmax.f32 %v3023_v28, 0.0 }
 0x341   : > { %v9032_v7 = vmax.f32 %v4431_v24, %v4435_v55  ;;  %v9034_v20 = vmax.f32 %v4559_v12, %v4563_v44 }
 0x342   : > { %v9036_v38 = vmax.f32 %v4176_v4, %v4180_v63  ;;  %v9038_v42 = vmax.f32 %v4304_v13, %v4308_v53  ;;  %v3663_v13 = vadd.f32 %v8720_v14, %v9006_v6  ;;  %v3983_v63 = vadd.f32 %v8720_v14, %v9008_v60 }
 0x344   : > { %v3667_v26 = vpop.f32.mrf.mxu2  ;;  %v3987_v51 = vpop.f32.mrf.mxu3 }
 0x345   : > { %v3668_v17 = vadd.f32 %v8720_v14, %v3667_v26  ;;  %v3988_v2 = vadd.f32 %v8720_v14, %v3987_v51  ;;  %v3030_v41 = vpop.f32.mrf.mxu0  ;;  %v3350_v49 = vpop.f32.mrf.mxu1 }
 0x346   : > { %v3031_v30 = vadd.f32 %v8720_v14, %v3030_v41  ;;  %v3351_v43 = vadd.f32 %v8720_v14, %v3350_v49  ;;  %v4562_v41 = vmax.f32 %v3983_v63, 0.0 }
 0x347   : > { %v4436_v16 = vmax.f32 %v3668_v17, 0.0  ;;  %v4564_v56 = vmax.f32 %v3988_v2, 0.0  ;;  %v7247_v17 = vld [vmem:[%s7339_s26 + $0x7a0] sm:$0xff]  ;;  %v4434_v2 = vmax.f32 %v3663_v13, 0.0 }
 0x348   : > { %v4181_v32 = vmax.f32 %v3031_v30, 0.0  ;;  %v4309_v29 = vmax.f32 %v3351_v43, 0.0  ;;  %6793 = vmatmul.msk.bf16.gmra.mxu0 %vm2030_vm2, %v7054_v8  ;;  %6857 = vmatmul.msk.bf16.gmra.mxu1 %vm2030_vm2, %v7118_v54  ;;  %v7183_v54 = vld [vmem:[%s7339_s26 + $0x5a0] sm:$0xff] }
 0x349   : > { %v9054_v36 = vmax.f32 %v4432_v59, %v4436_v16  ;;  %v9056_v3 = vmax.f32 %v4560_v35, %v4564_v56  ;;  %6921 = vmatmul.msk.bf16.gmra.mxu2 %vm2030_vm2, %v7182_v40  ;;  %6985 = vmatmul.msk.bf16.gmra.mxu3 %vm2030_vm2, %v7246_v19  ;;  %v7056_v56 = vld [vmem:[%s7339_s26 + $0x1a8] sm:$0xff] }
 0x34a   : > { %v9060_v1 = vmax.f32 %v4177_v39, %v4181_v32  ;;  %v9062_v61 = vmax.f32 %v4305_v18, %v4309_v29  ;;  %v7120_v39 = vld [vmem:[%s7339_s26 + $0x3a8] sm:$0xff] }
 0x34b   : > { %v7184_v29 = vld [vmem:[%s7339_s26 + $0x5a8] sm:$0xff] }
 0x34c   : > { %v3670_v31 = vpop.f32.mrf.mxu2  ;;  %v3990_v10 = vpop.f32.mrf.mxu3 }
 0x34d   : > { %v3671_v45 = vadd.f32 %v8720_v14, %v3670_v31  ;;  %v3991_v58 = vadd.f32 %v8720_v14, %v3990_v10  ;;  %v3032_v47 = vpop.f32.mrf.mxu0  ;;  %v3352_v22 = vpop.f32.mrf.mxu1 }
 0x34e   : > { %v3033_v11 = vadd.f32 %v8720_v14, %v3032_v47  ;;  %v3353_v34 = vadd.f32 %v8720_v14, %v3352_v22  ;;  %v7057_v22 = vld [vmem:[%s7339_s26 + $0x1b0] sm:$0xff] }
 0x34f   : > { %v4437_v5 = vmax.f32 %v3671_v45, 0.0  ;;  %v4565_v50 = vmax.f32 %v3991_v58, 0.0 }
 0x350   : > { %v4182_v0 = vmax.f32 %v3033_v11, 0.0  ;;  %v4310_v24 = vmax.f32 %v3353_v34, 0.0  ;;  %v7121_v11 = vld [vmem:[%s7339_s26 + $0x3b0] sm:$0xff] }
 0x351   : > { %v9076_v12 = vmax.f32 %v4433_v15, %v4437_v5  ;;  %v9078_v55 = vmax.f32 %v4561_v27, %v4565_v50  ;;  %v7185_v27 = vld [vmem:[%s7339_s26 + $0x5b0] sm:$0xff] }
 0x352   : > { %v9080_v44 = vmax.f32 %v4178_v33, %v4182_v0  ;;  %v9082_v4 = vmax.f32 %v4306_v21, %v4310_v24  ;;  %v7249_v5 = vld [vmem:[%s7339_s26 + $0x7b0] sm:$0xff]  ;;  %v9133_v21 = vld [vmem:[%s9843_s2] ss:$0 sm:$0xff] }
 0x353   : > { %v5011_v24 = vld [vmem:[%s7560_s6 + $0xa0] sm:$0xff] }
 0x354   : > { %v3672_v53 = vpop.f32.mrf.mxu2  ;;  %v3992_v23 = vpop.f32.mrf.mxu3  ;;  %vm5139_vm14 = vcmp.ge.f32.partialorder %v5011_v24, 0.5 }
 0x355   : > { %v3673_v9 = vadd.f32 %v8720_v14, %v3672_v53  ;;  %v3993_v26 = vadd.f32 %v8720_v14, %v3992_v23  ;;  %v3035_v51 = vpop.f32.mrf.mxu0  ;;  %v3355_v8 = vpop.f32.mrf.mxu1 }
 0x356   : > { %v3036_v10 = vadd.f32 %v8720_v14, %v3035_v51  ;;  %v3356_v45 = vadd.f32 %v8720_v14, %v3355_v8  ;;  %v9149_v51 = vld [vmem:[%s7560_s6 + $0x2a0] sm:$0xff] }
 0x357   : > { %v4438_v6 = vmax.f32 %v3673_v9, 0.0  ;;  %v4566_v49 = vmax.f32 %v3993_v26, 0.0  ;;  %vm5203_vm0 = vcmp.ge.f32.partialorder %v9149_v51, 0.5 }
 0x358   : > { %6794 = vmatmul.msk.bf16.gmra.mxu0 %vm2030_vm2, %v7055_v48  ;;  %6858 = vmatmul.msk.bf16.gmra.mxu1 %vm2030_vm2, %v7119_v62  ;;  %v4183_v23 = vmax.f32 %v3036_v10, 0.0  ;;  %v4311_v48 = vmax.f32 %v3356_v45, 0.0 }
 0x359   : > { %v9096_v60 = vmax.f32 %v4434_v2, %v4438_v6  ;;  %v9098_v40 = vmax.f32 %v4562_v41, %v4566_v49  ;;  %6922 = vmatmul.msk.bf16.gmra.mxu2 %vm2030_vm2, %v7183_v54  ;;  %6986 = vmatmul.msk.bf16.gmra.mxu3 %vm2030_vm2, %v7247_v17 }
 0x35c   : > { %v3675_v19 = vpop.f32.mrf.mxu2  ;;  %v3995_v30 = vpop.f32.mrf.mxu3 }
 0x35d   : > { %v3037_v43 = vpop.f32.mrf.mxu0  ;;  %v3357_v59 = vpop.f32.mrf.mxu1  ;;  %v3676_v50 = vadd.f32 %v8720_v14, %v3675_v19  ;;  %v3996_v33 = vadd.f32 %v8720_v14, %v3995_v30  ;;  %v5043_v14 = vld [vmem:[%s7560_s6 + $0x1a0] sm:$0xff] }
 0x35e   : > { %v3038_v63 = vadd.f32 %v9133_v21, %v3037_v43  ;;  %v3358_v53 = vadd.f32 %v9133_v21, %v3357_v59  ;;  %vm5171_vm15 = vcmp.ge.f32.partialorder %v5043_v14, 0.5 }
 0x35f   : > { %v4439_v8 = vmax.f32 %v3676_v50, 0.0  ;;  %v4567_v54 = vmax.f32 %v3996_v33, 0.0 }
 0x360   : > { %v4184_v41 = vmax.f32 %v3038_v63, 0.0  ;;  %v4312_v6 = vmax.f32 %v3358_v53, 0.0 }
 0x364   : > { %v3677_v35 = vpop.f32.mrf.mxu2  ;;  %v3997_v16 = vpop.f32.mrf.mxu3 }
 0x365   : > { %v3040_v18 = vpop.f32.mrf.mxu0  ;;  %v3360_v32 = vpop.f32.mrf.mxu1  ;;  %v9144_v26 = vadd.f32 %v9133_v21, %v3677_v35  ;;  %v9152_v49 = vadd.f32 %v9133_v21, %v3997_v16 }
 0x366   : > { %v9155_v19 = vadd.f32 %v9133_v21, %v3040_v18  ;;  %v9163_v16 = vadd.f32 %v9133_v21, %v3360_v32  ;;  %v5012_v32 = vld [vmem:[%s7560_s6 + $0xa8] sm:$0xff] }
 0x367   : > { %vm5140_vm3 = vcmp.ge.f32.partialorder %v5012_v32, 0.5 }
 0x368   : > { %6795 = vmatmul.msk.bf16.gmra.mxu0 %vm2030_vm2, %v7056_v56  ;;  %6859 = vmatmul.msk.bf16.gmra.mxu1 %vm2030_vm2, %v7120_v39  ;;  %v5107_v56 = vld [vmem:[%s7560_s6 + $0x3a0] sm:$0xff]  ;;  %v4440_v39 = vmax.f32 %v9144_v26, 0.0  ;;  %v4313_v63 = vmax.f32 %v9163_v16, 0.0  ;;  %v5076_v16 = vld [vmem:[%s7560_s6 + $0x2a8] sm:$0xff] }
 0x369   : > { %6923 = vmatmul.msk.bf16.gmra.mxu2 %vm2030_vm2, %v7184_v29  ;;  %6987 = vmatmul.msk.bf16.gmra.mxu3 %vm2030_vm2, %v7248_v46  ;;  %vm5235_vm1 = vcmp.ge.f32.partialorder %v5107_v56, 0.5  ;;  %vm5204_vm6 = vcmp.ge.f32.partialorder %v5076_v16, 0.5 }
 0x36c   : > { %v9110_v57 = vpop.f32.mrf.mxu2  ;;  %v9112_v28 = vpop.f32.mrf.mxu3 }
 0x36d   : > { %v9114_v37 = vpop.f32.mrf.mxu0  ;;  %v9116_v31 = vpop.f32.mrf.mxu1 }
 0x374   : > { %v9120_v58 = vpop.f32.mrf.mxu2  ;;  %v9122_v47 = vpop.f32.mrf.mxu3 }
 0x375   : > { %v3045_v34 = vpop.f32.mrf.mxu0  ;;  %v3365_v15 = vpop.f32.mrf.mxu1 }
 0x376   : > { %v3046_v0 = vadd.f32 %v9133_v21, %v3045_v34  ;;  %v3366_v13 = vadd.f32 %v9133_v21, %v3365_v15 }
 0x378   : > { %v4187_v62 = vmax.f32 %v3046_v0, 0.0  ;;  %v4315_v9 = vmax.f32 %v3366_v13, 0.0  ;;  %6796 = vmatmul.msk.bf16.gmra.mxu0 %vm2030_vm2, %v7057_v22  ;;  %6860 = vmatmul.msk.bf16.gmra.mxu1 %vm2030_vm2, %v7121_v11  ;;  %v4568_v11 = vmax.f32 %v9152_v49, 0.0  ;;  %v4185_v13 = vmax.f32 %v9155_v19, 0.0 }
 0x379   : > { %6924 = vmatmul.msk.bf16.gmra.mxu2 %vm2030_vm2, %v7185_v27  ;;  %6988 = vmatmul.msk.bf16.gmra.mxu3 %vm2030_vm2, %v7249_v5  ;;  %v5044_v27 = vld [vmem:[%s7560_s6 + $0x1a8] sm:$0xff] }
 0x37a   : > { %v4755_v17 = vmax.f32 %v4183_v23, %v4187_v62  ;;  %v4787_v2 = vmax.f32 %v4311_v48, %v4315_v9  ;;  %vm5172_vm5 = vcmp.ge.f32.partialorder %v5044_v27, 0.5  ;;  %v9182_v62 = vadd.f32 %v9133_v21, %v9110_v57  ;;  %v5045_v27 = vld [vmem:[%s7560_s6 + $0x1b0] sm:$0xff] }
 0x37b   : > { %v9186_v9 = vadd.f32 %v9133_v21, %v9112_v28  ;;  %vm5173_vm9 = vcmp.ge.f32.partialorder %v5045_v27, 0.5 }
 0x37c   : > { %v4883_v30 = vmax.f32 %v9020_v52, %v4755_v17  ;;  %v4915_v43 = vmax.f32 %v9022_v25, %v4787_v2  ;;  %v3685_v59 = vpop.f32.mrf.mxu2  ;;  %v4005_v35 = vpop.f32.mrf.mxu3  ;;  %v9196_v17 = vadd.f32 %v9133_v21, %v9116_v31  ;;  %v4441_v51 = vmax.f32 %v9182_v62, 0.0 }
 0x37d   : > { %v3686_v29 = vadd.f32 %v9133_v21, %v3685_v59  ;;  %v4006_v18 = vadd.f32 %v9133_v21, %v4005_v35  ;;  %v3047_v46 = vpop.f32.mrf.mxu0  ;;  %v3367_v52 = vpop.f32.mrf.mxu1  ;;  %v7250_v59 = vld [vmem:[%s7339_s26 + $0x7b8] sm:$0xff] }
 0x37e   : > { %v5267_v10 = vmul.f32 2.0, %v4883_v30  ;;  %v5299_v25 = vmul.f32 2.0, %v4915_v43  ;;  %v3048_v45 = vadd.f32 %v9133_v21, %v3047_v46  ;;  %v3368_v22 = vadd.f32 %v9133_v21, %v3367_v52  ;;  %v7186_v43 = vld [vmem:[%s7339_s26 + $0x5b8] sm:$0xff] }
 0x37f   : > { %v4443_v34 = vmax.f32 %v3686_v29, 0.0  ;;  %v4571_v15 = vmax.f32 %v4006_v18, 0.0  ;;  %v4314_v26 = vmax.f32 %v9196_v17, 0.0 }
 0x380   : > { %v5395_v5 = vsel %vm5139_vm14, %v5267_v10, 0.0  ;;  %v5427_v50 = vsel %vm5171_vm15, %v5299_v25, 0.0  ;;  %v4188_v33 = vmax.f32 %v3048_v45, 0.0  ;;  %v4316_v0 = vmax.f32 %v3368_v22, 0.0  ;;  %v5108_v25 = vld [vmem:[%s7560_s6 + $0x3a8] sm:$0xff] }
 0x381   : > { %5524 = vst.msk [vmem:[%s7619_s9 + $0xa0] sm:$0xff] %vm5503_vm4, %v5395_v5  ;;  %v4819_v53 = vmax.f32 %v4439_v8, %v4443_v34  ;;  %v4851_v23 = vmax.f32 %v4567_v54, %v4571_v15  ;;  %v9192_v54 = vadd.f32 %v9133_v21, %v9114_v37  ;;  %v5013_v5 = vld [vmem:[%s7560_s6 + $0xb0] sm:$0xff]  ;;  %vm5236_vm7 = vcmp.ge.f32.partialorder %v5108_v25, 0.5 }
 0x382   : > { %5556 = vst.msk [vmem:[%s7619_s9 + $0x1a0] sm:$0xff] %vm5503_vm4, %v5427_v50  ;;  %v4756_v48 = vmax.f32 %v4184_v41, %v4188_v33  ;;  %v4788_v24 = vmax.f32 %v4312_v6, %v4316_v0  ;;  %v7122_v6 = vld [vmem:[%s7339_s26 + $0x3b8] sm:$0xff]  ;;  %v4569_v50 = vmax.f32 %v9186_v9, 0.0  ;;  %vm5141_vm8 = vcmp.ge.f32.partialorder %v5013_v5, 0.5 }
 0x383   : > { %v4947_v14 = vmax.f32 %v9032_v7, %v4819_v53  ;;  %v4979_v8 = vmax.f32 %v9034_v20, %v4851_v23  ;;  %v7058_v7 = vld [vmem:[%s7339_s26 + $0x1b8] sm:$0xff]  ;;  %v4186_v53 = vmax.f32 %v9192_v54, 0.0 }
 0x384   : > { %v4884_v57 = vmax.f32 %v9036_v38, %v4756_v48  ;;  %v4916_v28 = vmax.f32 %v9038_v42, %v4788_v24  ;;  %v3687_v2 = vpop.f32.mrf.mxu2  ;;  %v4007_v41 = vpop.f32.mrf.mxu3 }
 0x385   : > { %v5331_v49 = vmul.f32 2.0, %v4947_v14  ;;  %v5363_v20 = vmul.f32 2.0, %v4979_v8  ;;  %v3688_v19 = vadd.f32 %v9133_v21, %v3687_v2  ;;  %v4008_v37 = vadd.f32 %v9133_v21, %v4007_v41  ;;  %v3050_v30 = vpop.f32.mrf.mxu0  ;;  %v3370_v31 = vpop.f32.mrf.mxu1  ;;  %v5077_v2 = vld [vmem:[%s7560_s6 + $0x2b0] sm:$0xff] }
 0x386   : > { %v5268_v38 = vmul.f32 2.0, %v4884_v57  ;;  %v5300_v35 = vmul.f32 2.0, %v4916_v28  ;;  %v3051_v42 = vadd.f32 %v9133_v21, %v3050_v30  ;;  %v3371_v29 = vadd.f32 %v9133_v21, %v3370_v31  ;;  %v5014_v31 = vld [vmem:[%s7560_s6 + $0xb8] sm:$0xff] }
 0x387   : > { %v5459_v18 = vsel %vm5203_vm0, %v5331_v49, 0.0  ;;  %v5491_v46 = vsel %vm5235_vm1, %v5363_v20, 0.0  ;;  %v4444_v52 = vmax.f32 %v3688_v19, 0.0  ;;  %v4572_v10 = vmax.f32 %v4008_v37, 0.0  ;;  %v5109_v49 = vld [vmem:[%s7560_s6 + $0x3b0] sm:$0xff] }
 0x388   : > { %5588 = vst.msk [vmem:[%s7619_s9 + $0x2a0] sm:$0xff] %vm5503_vm4, %v5459_v18  ;;  %v5396_v45 = vsel %vm5140_vm3, %v5268_v38, 0.0  ;;  %v5428_v22 = vsel %vm5172_vm5, %v5300_v35, 0.0  ;;  %v4189_v34 = vmax.f32 %v3051_v42, 0.0  ;;  %v4317_v15 = vmax.f32 %v3371_v29, 0.0  ;;  %6797 = vmatmul.msk.bf16.gmra.mxu0 %vm2030_vm2, %v7058_v7  ;;  %6861 = vmatmul.msk.bf16.gmra.mxu1 %vm2030_vm2, %v7122_v6 }
 0x389   : > { %5620 = vst.msk [vmem:[%s7619_s9 + $0x3a0] sm:$0xff] %vm5503_vm4, %v5491_v46  ;;  %v4820_v56 = vmax.f32 %v4440_v39, %v4444_v52  ;;  %v4852_v32 = vmax.f32 %v4568_v11, %v4572_v10  ;;  %6925 = vmatmul.msk.bf16.gmra.mxu2 %vm2030_vm2, %v7186_v43  ;;  %6989 = vmatmul.msk.bf16.gmra.mxu3 %vm2030_vm2, %v7250_v59  ;;  %v5046_v43 = vld [vmem:[%s7560_s6 + $0x1b8] sm:$0xff]  ;;  %vm5205_vm10 = vcmp.ge.f32.partialorder %v5077_v2, 0.5  ;;  %vm5237_vm11 = vcmp.ge.f32.partialorder %v5109_v49, 0.5  ;;  %v7059_v52 = vld [vmem:[%s7339_s26 + $0x1c0] sm:$0xff] }
 0x38a   : > { %5525 = vst.msk [vmem:[%s7619_s9 + $0xa8] sm:$0xff] %vm5503_vm4, %v5396_v45  ;;  %v4757_v33 = vmax.f32 %v4185_v13, %v4189_v34  ;;  %v4789_v0 = vmax.f32 %v4313_v63, %v4317_v15  ;;  %v3683_v59 = vadd.f32 %v9133_v21, %v9120_v58  ;;  %v4003_v38 = vadd.f32 %v9133_v21, %v9122_v47  ;;  %v7123_v10 = vld [vmem:[%s7339_s26 + $0x3c0] sm:$0xff] }
 0x38b   : > { %5557 = vst.msk [vmem:[%s7619_s9 + $0x1a8] sm:$0xff] %vm5503_vm4, %v5428_v22  ;;  %v4948_v39 = vmax.f32 %v9054_v36, %v4820_v56  ;;  %v4980_v11 = vmax.f32 %v9056_v3, %v4852_v32  ;;  %vm5142_vm12 = vcmp.ge.f32.partialorder %v5014_v31, 0.5  ;;  %vm5174_vm13 = vcmp.ge.f32.partialorder %v5046_v43, 0.5  ;;  %v7187_v15 = vld [vmem:[%s7339_s26 + $0x5c0] sm:$0xff]  ;;  %v7125_v31 = vld [vmem:[%s7339_s26 + $0x3d0] sm:$0xff] }
 0x38c   : > { %v4885_v23 = vmax.f32 %v9060_v1, %v4757_v33  ;;  %v4917_v48 = vmax.f32 %v9062_v61, %v4789_v0  ;;  %v3690_v24 = vpop.f32.mrf.mxu2  ;;  %v4010_v13 = vpop.f32.mrf.mxu3 }
 0x38d   : > { %v5332_v63 = vmul.f32 2.0, %v4948_v39  ;;  %v5364_v62 = vmul.f32 2.0, %v4980_v11  ;;  %v3691_v9 = vadd.f32 %v9133_v21, %v3690_v24  ;;  %v4011_v14 = vadd.f32 %v9133_v21, %v4010_v13  ;;  %v3052_v36 = vpop.f32.mrf.mxu0  ;;  %v3372_v8 = vpop.f32.mrf.mxu1  ;;  %v5078_v39 = vld [vmem:[%s7560_s6 + $0x2b8] sm:$0xff] }
 0x38e   : > { %v5269_v3 = vmul.f32 2.0, %v4885_v23  ;;  %v5301_v1 = vmul.f32 2.0, %v4917_v48  ;;  %v3053_v54 = vadd.f32 %v9133_v21, %v3052_v36  ;;  %v3373_v61 = vadd.f32 %v9133_v21, %v3372_v8  ;;  %v5110_v23 = vld [vmem:[%s7560_s6 + $0x3b8] sm:$0xff] }
 0x38f   : > { %v5460_v17 = vsel %vm5204_vm6, %v5332_v63, 0.0  ;;  %v5492_v57 = vsel %vm5236_vm7, %v5364_v62, 0.0  ;;  %v4445_v28 = vmax.f32 %v3691_v9, 0.0  ;;  %v4573_v41 = vmax.f32 %v4011_v14, 0.0 }
 0x390   : > { %5589 = vst.msk [vmem:[%s7619_s9 + $0x2a8] sm:$0xff] %vm5503_vm4, %v5460_v17  ;;  %v5397_v7 = vsel %vm5141_vm8, %v5269_v3, 0.0  ;;  %v5429_v6 = vsel %vm5173_vm9, %v5301_v1, 0.0  ;;  %v4190_v20 = vmax.f32 %v3053_v54, 0.0  ;;  %v4318_v19 = vmax.f32 %v3373_v61, 0.0  ;;  %v7124_v54 = vld [vmem:[%s7339_s26 + $0x3c8] sm:$0xff] }
 0x391   : > { %5621 = vst.msk [vmem:[%s7619_s9 + $0x3a8] sm:$0xff] %vm5503_vm4, %v5492_v57  ;;  %v4821_v37 = vmax.f32 %v4441_v51, %v4445_v28  ;;  %v4853_v30 = vmax.f32 %v4569_v50, %v4573_v41  ;;  %v4442_v51 = vmax.f32 %v3683_v59, 0.0  ;;  %vm5206_vm14 = vcmp.ge.f32.partialorder %v5078_v39, 0.5  ;;  %v7188_v57 = vld [vmem:[%s7339_s26 + $0x5c8] sm:$0xff] }
 0x392   : > { %5526 = vst.msk [vmem:[%s7619_s9 + $0xb0] sm:$0xff] %vm5503_vm4, %v5397_v7  ;;  %v4758_v35 = vmax.f32 %v4186_v53, %v4190_v20  ;;  %v4790_v16 = vmax.f32 %v4314_v26, %v4318_v19  ;;  %vm5238_vm15 = vcmp.ge.f32.partialorder %v5110_v23, 0.5  ;;  %v7252_v28 = vld [vmem:[%s7339_s26 + $0x7c8] sm:$0xff] }
 0x393   : > { %5558 = vst.msk [vmem:[%s7619_s9 + $0x1b0] sm:$0xff] %vm5503_vm4, %v5429_v6  ;;  %v4949_v42 = vmax.f32 %v9076_v12, %v4821_v37  ;;  %v4981_v29 = vmax.f32 %v9078_v55, %v4853_v30  ;;  %v7061_v30 = vld [vmem:[%s7339_s26 + $0x1d0] sm:$0xff] }
 0x394   : > { %v4886_v58 = vmax.f32 %v9080_v44, %v4758_v35  ;;  %v4918_v47 = vmax.f32 %v9082_v4, %v4790_v16  ;;  %v3692_v18 = vpop.f32.mrf.mxu2  ;;  %v4012_v46 = vpop.f32.mrf.mxu3  ;;  %v7251_v44 = vld [vmem:[%s7339_s26 + $0x7c0] sm:$0xff]  ;;  %v4570_v4 = vmax.f32 %v4003_v38, 0.0  ;;  %v7189_v38 = vld [vmem:[%s7339_s26 + $0x5d0] sm:$0xff] }
 0x395   : > { %v5333_v25 = vmul.f32 2.0, %v4949_v42  ;;  %v5365_v45 = vmul.f32 2.0, %v4981_v29  ;;  %v3693_v12 = vadd.f32 %v9133_v21, %v3692_v18  ;;  %v4013_v55 = vadd.f32 %v9133_v21, %v4012_v46  ;;  %v3055_v22 = vpop.f32.mrf.mxu0  ;;  %v3375_v34 = vpop.f32.mrf.mxu1  ;;  %v7253_v35 = vld [vmem:[%s7339_s26 + $0x7d0] sm:$0xff] }
 0x396   : > { %v5270_v56 = vmul.f32 2.0, %v4886_v58  ;;  %v5302_v32 = vmul.f32 2.0, %v4918_v47  ;;  %v3056_v49 = vadd.f32 %v9133_v21, %v3055_v22  ;;  %v3376_v20 = vadd.f32 %v9133_v21, %v3375_v34 }
 0x397   : > { %v5461_v5 = vsel %vm5205_vm10, %v5333_v25, 0.0  ;;  %v5493_v27 = vsel %vm5237_vm11, %v5365_v45, 0.0  ;;  %v4446_v50 = vmax.f32 %v3693_v12, 0.0  ;;  %v4574_v33 = vmax.f32 %v4013_v55, 0.0 }
 0x398   : > { %5590 = vst.msk [vmem:[%s7619_s9 + $0x2b0] sm:$0xff] %vm5503_vm4, %v5461_v5  ;;  %v5398_v0 = vsel %vm5142_vm12, %v5270_v56, 0.0  ;;  %v5430_v53 = vsel %vm5174_vm13, %v5302_v32, 0.0  ;;  %6798 = vmatmul.msk.bf16.gmra.mxu0 %vm2030_vm2, %v7059_v52  ;;  %6862 = vmatmul.msk.bf16.gmra.mxu1 %vm2030_vm2, %v7123_v10  ;;  %v4191_v29 = vmax.f32 %v3056_v49, 0.0  ;;  %v4319_v58 = vmax.f32 %v3376_v20, 0.0  ;;  %v7254_v49 = vld [vmem:[%s7339_s26 + $0x7d8] sm:$0xff] }
 0x399   : > { %5622 = vst.msk [vmem:[%s7619_s9 + $0x3b0] sm:$0xff] %vm5503_vm4, %v5493_v27  ;;  %v4822_v26 = vmax.f32 %v4442_v51, %v4446_v50  ;;  %v4854_v11 = vmax.f32 %v4570_v4, %v4574_v33  ;;  %6926 = vmatmul.msk.bf16.gmra.mxu2 %vm2030_vm2, %v7187_v15  ;;  %6990 = vmatmul.msk.bf16.gmra.mxu3 %vm2030_vm2, %v7251_v44 }
 0x39a   : > { %5527 = vst.msk [vmem:[%s7619_s9 + $0xb8] sm:$0xff] %vm5503_vm4, %v5398_v0 }
 0x39b   : > { %5559 = vst.msk [vmem:[%s7619_s9 + $0x1b8] sm:$0xff] %vm5503_vm4, %v5430_v53  ;;  %v4950_v48 = vmax.f32 %v9096_v60, %v4822_v26  ;;  %v4982_v24 = vmax.f32 %v9098_v40, %v4854_v11  ;;  %v7060_v40 = vld [vmem:[%s7339_s26 + $0x1c8] sm:$0xff] }
 0x39c   : > { %v3695_v13 = vpop.f32.mrf.mxu2  ;;  %v4015_v63 = vpop.f32.mrf.mxu3 }
 0x39d   : > { %v5334_v62 = vmul.f32 2.0, %v4950_v48  ;;  %v5366_v9 = vmul.f32 2.0, %v4982_v24  ;;  %v3057_v14 = vpop.f32.mrf.mxu0  ;;  %v3377_v36 = vpop.f32.mrf.mxu1  ;;  %v3696_v10 = vadd.f32 %v9133_v21, %v3695_v13  ;;  %v4016_v25 = vadd.f32 %v9133_v21, %v4015_v63 }
 0x39e   : > { %v3058_v45 = vadd.f32 %v9133_v21, %v3057_v14  ;;  %v3378_v12 = vadd.f32 %v9133_v21, %v3377_v36  ;;  %v7062_v36 = vld [vmem:[%s7339_s26 + $0x1d8] sm:$0xff] }
 0x39f   : > { %v5462_v8 = vsel %vm5206_vm14, %v5334_v62, 0.0  ;;  %v5494_v3 = vsel %vm5238_vm15, %v5366_v9, 0.0  ;;  %v4447_v32 = vmax.f32 %v3696_v10, 0.0  ;;  %v4575_v5 = vmax.f32 %v4016_v25, 0.0 }
 0x3a0   : > { %5591 = vst.msk [vmem:[%s7619_s9 + $0x2b8] sm:$0xff] %vm5503_vm4, %v5462_v8  ;;  %v4192_v33 = vmax.f32 %v3058_v45, 0.0  ;;  %v4320_v0 = vmax.f32 %v3378_v12, 0.0  ;;  %v7126_v8 = vld [vmem:[%s7339_s26 + $0x3d8] sm:$0xff] }
 0x3a1   : > { %5623 = vst.msk [vmem:[%s7619_s9 + $0x3b8] sm:$0xff] %vm5503_vm4, %v5494_v3 }
 0x3a4   : > { %v3697_v60 = vpop.f32.mrf.mxu2  ;;  %v4017_v1 = vpop.f32.mrf.mxu3 }
 0x3a5   : > { %v3060_v61 = vpop.f32.mrf.mxu0  ;;  %v3380_v17 = vpop.f32.mrf.mxu1  ;;  %v3698_v24 = vadd.f32 %v9133_v21, %v3697_v60  ;;  %v4018_v13 = vadd.f32 %v9133_v21, %v4017_v1 }
 0x3a6   : > { %v3061_v63 = vadd.f32 %v9133_v21, %v3060_v61  ;;  %v3381_v62 = vadd.f32 %v9133_v21, %v3380_v17 }
 0x3a7   : > { %v4448_v20 = vmax.f32 %v3698_v24, 0.0  ;;  %v4576_v61 = vmax.f32 %v4018_v13, 0.0  ;;  %v7063_v13 = vld [vmem:[%s7339_s26 + $0x1e0] sm:$0xff] }
 0x3a8   : > { %6799 = vmatmul.msk.bf16.gmra.mxu0 %vm2030_vm2, %v7060_v40  ;;  %6863 = vmatmul.msk.bf16.gmra.mxu1 %vm2030_vm2, %v7124_v54 }
 0x3a9   : > { %6927 = vmatmul.msk.bf16.gmra.mxu2 %vm2030_vm2, %v7188_v57  ;;  %6991 = vmatmul.msk.bf16.gmra.mxu3 %vm2030_vm2, %v7252_v28  ;;  %v7190_v28 = vld [vmem:[%s7339_s26 + $0x5d8] sm:$0xff] }
 0x3ac   : > { %v9305_v2 = vpop.f32.mrf.mxu2  ;;  %v9307_v41 = vpop.f32.mrf.mxu3 }
 0x3ad   : > { %v9309_v7 = vpop.f32.mrf.mxu0  ;;  %v9311_v6 = vpop.f32.mrf.mxu1 }
 0x3ae   : > { %v3383_v10 = vadd.f32 %v9133_v21, %v9311_v6 }
 0x3b0   : > { %v4322_v6 = vmax.f32 %v3383_v10, 0.0 }
 0x3b4   : > { %v9315_v19 = vpop.f32.mrf.mxu2  ;;  %v9317_v37 = vpop.f32.mrf.mxu3 }
 0x3b5   : > { %v3065_v43 = vpop.f32.mrf.mxu0  ;;  %v3385_v59 = vpop.f32.mrf.mxu1 }
 0x3b6   : > { %v3066_v16 = vadd.f32 %v9133_v21, %v3065_v43  ;;  %v3386_v42 = vadd.f32 %v9133_v21, %v3385_v59  ;;  %v4321_v43 = vmax.f32 %v3381_v62, 0.0 }
 0x3b8   : > { %v4195_v47 = vmax.f32 %v3066_v16, 0.0  ;;  %v4323_v18 = vmax.f32 %v3386_v42, 0.0  ;;  %6800 = vmatmul.msk.bf16.gmra.mxu0 %vm2030_vm2, %v7061_v30  ;;  %6864 = vmatmul.msk.bf16.gmra.mxu1 %vm2030_vm2, %v7125_v31  ;;  %v4193_v31 = vmax.f32 %v3061_v63, 0.0  ;;  %v7127_v63 = vld [vmem:[%s7339_s26 + $0x3e0] sm:$0xff] }
 0x3b9   : > { %6928 = vmatmul.msk.bf16.gmra.mxu2 %vm2030_vm2, %v7189_v38  ;;  %6992 = vmatmul.msk.bf16.gmra.mxu3 %vm2030_vm2, %v7253_v35 }
 0x3ba   : > { %v9329_v46 = vmax.f32 %v4191_v29, %v4195_v47  ;;  %v9331_v52 = vmax.f32 %v4319_v58, %v4323_v18  ;;  %v3701_v58 = vadd.f32 %v9133_v21, %v9305_v2  ;;  %v4021_v47 = vadd.f32 %v9133_v21, %v9307_v41 }
 0x3bb   : > { %v3063_v18 = vadd.f32 %v9133_v21, %v9309_v7 }
 0x3bc   : > { %v3705_v55 = vpop.f32.mrf.mxu2  ;;  %v4025_v22 = vpop.f32.mrf.mxu3  ;;  %v4577_v41 = vmax.f32 %v4021_v47, 0.0 }
 0x3bd   : > { %v3706_v34 = vadd.f32 %v9133_v21, %v3705_v55  ;;  %v4026_v15 = vadd.f32 %v9133_v21, %v4025_v22  ;;  %v3067_v44 = vpop.f32.mrf.mxu0  ;;  %v3387_v51 = vpop.f32.mrf.mxu1 }
 0x3be   : > { %v3068_v4 = vadd.f32 %v9133_v21, %v3067_v44  ;;  %v3388_v56 = vadd.f32 %v9133_v21, %v3387_v51  ;;  %v4449_v44 = vmax.f32 %v3701_v58, 0.0  ;;  %v7256_v58 = vld [vmem:[%s7339_s26 + $0x7e8] sm:$0xff] }
 0x3bf   : > { %v4451_v27 = vmax.f32 %v3706_v34, 0.0  ;;  %v4579_v50 = vmax.f32 %v4026_v15, 0.0 }
 0x3c0   : > { %v4196_v53 = vmax.f32 %v3068_v4, 0.0  ;;  %v4324_v26 = vmax.f32 %v3388_v56, 0.0  ;;  %v4194_v4 = vmax.f32 %v3063_v18, 0.0 }
 0x3c1   : > { %v9341_v39 = vmax.f32 %v4447_v32, %v4451_v27  ;;  %v9343_v11 = vmax.f32 %v4575_v5, %v4579_v50 }
 0x3c2   : > { %v9345_v23 = vmax.f32 %v4192_v33, %v4196_v53  ;;  %v9347_v48 = vmax.f32 %v4320_v0, %v4324_v26  ;;  %v3703_v0 = vadd.f32 %v9133_v21, %v9315_v19  ;;  %v4023_v53 = vadd.f32 %v9133_v21, %v9317_v37 }
 0x3c4   : > { %v3707_v9 = vpop.f32.mrf.mxu2  ;;  %v4027_v14 = vpop.f32.mrf.mxu3 }
 0x3c5   : > { %v3708_v3 = vadd.f32 %v9133_v21, %v3707_v9  ;;  %v4028_v40 = vadd.f32 %v9133_v21, %v4027_v14  ;;  %v3070_v54 = vpop.f32.mrf.mxu0  ;;  %v3390_v57 = vpop.f32.mrf.mxu1 }
 0x3c6   : > { %v3071_v60 = vadd.f32 %v9133_v21, %v3070_v54  ;;  %v3391_v1 = vadd.f32 %v9133_v21, %v3390_v57  ;;  %v4578_v54 = vmax.f32 %v4023_v53, 0.0 }
 0x3c7   : > { %v4452_v30 = vmax.f32 %v3708_v3, 0.0  ;;  %v4580_v17 = vmax.f32 %v4028_v40, 0.0  ;;  %v7255_v3 = vld [vmem:[%s7339_s26 + $0x7e0] sm:$0xff]  ;;  %v4450_v40 = vmax.f32 %v3703_v0, 0.0 }
 0x3c8   : > { %v4197_v59 = vmax.f32 %v3071_v60, 0.0  ;;  %v4325_v38 = vmax.f32 %v3391_v1, 0.0  ;;  %6801 = vmatmul.msk.bf16.gmra.mxu0 %vm2030_vm2, %v7062_v36  ;;  %6865 = vmatmul.msk.bf16.gmra.mxu1 %vm2030_vm2, %v7126_v8  ;;  %v7191_v8 = vld [vmem:[%s7339_s26 + $0x5e0] sm:$0xff] }
 0x3c9   : > { %v9363_v35 = vmax.f32 %v4448_v20, %v4452_v30  ;;  %v9365_v16 = vmax.f32 %v4576_v61, %v4580_v17  ;;  %6929 = vmatmul.msk.bf16.gmra.mxu2 %vm2030_vm2, %v7190_v28  ;;  %6993 = vmatmul.msk.bf16.gmra.mxu3 %vm2030_vm2, %v7254_v49  ;;  %v7064_v17 = vld [vmem:[%s7339_s26 + $0x1e8] sm:$0xff] }
 0x3ca   : > { %v9369_v42 = vmax.f32 %v4193_v31, %v4197_v59  ;;  %v9371_v29 = vmax.f32 %v4321_v43, %v4325_v38  ;;  %v7128_v31 = vld [vmem:[%s7339_s26 + $0x3e8] sm:$0xff] }
 0x3cb   : > { %v7192_v38 = vld [vmem:[%s7339_s26 + $0x5e8] sm:$0xff] }
 0x3cc   : > { %v3710_v25 = vpop.f32.mrf.mxu2  ;;  %v4030_v45 = vpop.f32.mrf.mxu3 }
 0x3cd   : > { %v3711_v12 = vadd.f32 %v9133_v21, %v3710_v25  ;;  %v4031_v55 = vadd.f32 %v9133_v21, %v4030_v45  ;;  %v3072_v22 = vpop.f32.mrf.mxu0  ;;  %v3392_v34 = vpop.f32.mrf.mxu1 }
 0x3ce   : > { %v3073_v15 = vadd.f32 %v9133_v21, %v3072_v22  ;;  %v3393_v2 = vadd.f32 %v9133_v21, %v3392_v34  ;;  %v7065_v34 = vld [vmem:[%s7339_s26 + $0x1f0] sm:$0xff] }
 0x3cf   : > { %v4453_v7 = vmax.f32 %v3711_v12, 0.0  ;;  %v4581_v51 = vmax.f32 %v4031_v55, 0.0 }
 0x3d0   : > { %v4198_v56 = vmax.f32 %v3073_v15, 0.0  ;;  %v4326_v32 = vmax.f32 %v3393_v2, 0.0  ;;  %v7129_v15 = vld [vmem:[%s7339_s26 + $0x3f0] sm:$0xff] }
 0x3d1   : > { %v9385_v5 = vmax.f32 %v4449_v44, %v4453_v7  ;;  %v9387_v27 = vmax.f32 %v4577_v41, %v4581_v51  ;;  %v7193_v41 = vld [vmem:[%s7339_s26 + $0x5f0] sm:$0xff] }
 0x3d2   : > { %v9389_v50 = vmax.f32 %v4194_v4, %v4198_v56  ;;  %v9391_v33 = vmax.f32 %v4322_v6, %v4326_v32  ;;  %v7257_v7 = vld [vmem:[%s7339_s26 + $0x7f0] sm:$0xff]  ;;  %v5015_v56 = vld [vmem:[%s7560_s6 + $0xc0] sm:$0xff] }
 0x3d3   : > { %vm5143_vm0 = vcmp.ge.f32.partialorder %v5015_v56, 0.5 }
 0x3d4   : > { %v3712_v26 = vpop.f32.mrf.mxu2  ;;  %v4032_v24 = vpop.f32.mrf.mxu3 }
 0x3d5   : > { %v3713_v62 = vadd.f32 %v9133_v21, %v3712_v26  ;;  %v4033_v9 = vadd.f32 %v9133_v21, %v4032_v24  ;;  %v3075_v14 = vpop.f32.mrf.mxu0  ;;  %v3395_v36 = vpop.f32.mrf.mxu1 }
 0x3d6   : > { %v3076_v45 = vadd.f32 %v9133_v21, %v3075_v14  ;;  %v3396_v12 = vadd.f32 %v9133_v21, %v3395_v36  ;;  %v9453_v14 = vld [vmem:[%s7560_s6 + $0x2c0] sm:$0xff] }
 0x3d7   : > { %v4454_v19 = vmax.f32 %v3713_v62, 0.0  ;;  %v4582_v57 = vmax.f32 %v4033_v9, 0.0  ;;  %v5047_v62 = vld [vmem:[%s7560_s6 + $0x1c0] sm:$0xff]  ;;  %vm5207_vm3 = vcmp.ge.f32.partialorder %v9453_v14, 0.5 }
 0x3d8   : > { %6802 = vmatmul.msk.bf16.gmra.mxu0 %vm2030_vm2, %v7063_v13  ;;  %6866 = vmatmul.msk.bf16.gmra.mxu1 %vm2030_vm2, %v7127_v63  ;;  %v4199_v26 = vmax.f32 %v3076_v45, 0.0  ;;  %v4327_v24 = vmax.f32 %v3396_v12, 0.0  ;;  %vm5175_vm1 = vcmp.ge.f32.partialorder %v5047_v62, 0.5 }
 0x3d9   : > { %v9405_v37 = vmax.f32 %v4450_v40, %v4454_v19  ;;  %v9407_v28 = vmax.f32 %v4578_v54, %v4582_v57  ;;  %6930 = vmatmul.msk.bf16.gmra.mxu2 %vm2030_vm2, %v7191_v8  ;;  %6994 = vmatmul.msk.bf16.gmra.mxu3 %vm2030_vm2, %v7255_v3 }
 0x3dc   : > { %v3715_v49 = vpop.f32.mrf.mxu2  ;;  %v4035_v60 = vpop.f32.mrf.mxu3 }
 0x3dd   : > { %v3077_v1 = vpop.f32.mrf.mxu0  ;;  %v3397_v20 = vpop.f32.mrf.mxu1  ;;  %v3716_v51 = vadd.f32 %v9133_v21, %v3715_v49  ;;  %v4036_v4 = vadd.f32 %v9133_v21, %v4035_v60 }
 0x3de   : > { %v3078_v0 = vadd.f32 %v9133_v21, %v3077_v1  ;;  %v3398_v53 = vadd.f32 %v9133_v21, %v3397_v20 }
 0x3df   : > { %v4455_v36 = vmax.f32 %v3716_v51, 0.0  ;;  %v4583_v8 = vmax.f32 %v4036_v4, 0.0 }
 0x3e0   : > { %v4200_v54 = vmax.f32 %v3078_v0, 0.0  ;;  %v4328_v19 = vmax.f32 %v3398_v53, 0.0 }
 0x3e4   : > { %v3717_v61 = vpop.f32.mrf.mxu2  ;;  %v4037_v30 = vpop.f32.mrf.mxu3 }
 0x3e5   : > { %v3080_v43 = vpop.f32.mrf.mxu0  ;;  %v3400_v59 = vpop.f32.mrf.mxu1  ;;  %v9448_v9 = vadd.f32 %v9133_v21, %v3717_v61  ;;  %v9456_v57 = vadd.f32 %v9133_v21, %v4037_v30 }
 0x3e6   : > { %v9459_v49 = vadd.f32 %v9133_v21, %v3080_v43  ;;  %v9467_v30 = vadd.f32 %v9133_v21, %v3400_v59  ;;  %v5016_v59 = vld [vmem:[%s7560_s6 + $0xc8] sm:$0xff] }
 0x3e7   : > { %vm5144_vm6 = vcmp.ge.f32.partialorder %v5016_v59, 0.5 }
 0x3e8   : > { %6803 = vmatmul.msk.bf16.gmra.mxu0 %vm2030_vm2, %v7064_v17  ;;  %6867 = vmatmul.msk.bf16.gmra.mxu1 %vm2030_vm2, %v7128_v31  ;;  %v5111_v17 = vld [vmem:[%s7560_s6 + $0x3c0] sm:$0xff]  ;;  %v4456_v31 = vmax.f32 %v9448_v9, 0.0  ;;  %v4329_v0 = vmax.f32 %v9467_v30, 0.0  ;;  %v5080_v30 = vld [vmem:[%s7560_s6 + $0x2c8] sm:$0xff] }
 0x3e9   : > { %6931 = vmatmul.msk.bf16.gmra.mxu2 %vm2030_vm2, %v7192_v38  ;;  %6995 = vmatmul.msk.bf16.gmra.mxu3 %vm2030_vm2, %v7256_v58  ;;  %vm5239_vm5 = vcmp.ge.f32.partialorder %v5111_v17, 0.5  ;;  %vm5208_vm8 = vcmp.ge.f32.partialorder %v5080_v30, 0.5 }
 0x3ec   : > { %v9419_v47 = vpop.f32.mrf.mxu2  ;;  %v9421_v18 = vpop.f32.mrf.mxu3 }
 0x3ed   : > { %v9423_v10 = vpop.f32.mrf.mxu0  ;;  %v9425_v25 = vpop.f32.mrf.mxu1 }
 0x3f4   : > { %v9429_v55 = vpop.f32.mrf.mxu2  ;;  %v9431_v22 = vpop.f32.mrf.mxu3 }
 0x3f5   : > { %v3085_v2 = vpop.f32.mrf.mxu0  ;;  %v3405_v44 = vpop.f32.mrf.mxu1 }
 0x3f6   : > { %v3086_v6 = vadd.f32 %v9133_v21, %v3085_v2  ;;  %v3406_v32 = vadd.f32 %v9133_v21, %v3405_v44 }
 0x3f8   : > { %v4203_v13 = vmax.f32 %v3086_v6, 0.0  ;;  %v4331_v63 = vmax.f32 %v3406_v32, 0.0  ;;  %6804 = vmatmul.msk.bf16.gmra.mxu0 %vm2030_vm2, %v7065_v34  ;;  %6868 = vmatmul.msk.bf16.gmra.mxu1 %vm2030_vm2, %v7129_v15  ;;  %v4584_v15 = vmax.f32 %v9456_v57, 0.0  ;;  %v4201_v32 = vmax.f32 %v9459_v49, 0.0 }
 0x3f9   : > { %6932 = vmatmul.msk.bf16.gmra.mxu2 %vm2030_vm2, %v7193_v41  ;;  %6996 = vmatmul.msk.bf16.gmra.mxu3 %vm2030_vm2, %v7257_v7  ;;  %v5048_v41 = vld [vmem:[%s7560_s6 + $0x1c8] sm:$0xff] }
 0x3fa   : > { %v4759_v3 = vmax.f32 %v4199_v26, %v4203_v13  ;;  %v4791_v40 = vmax.f32 %v4327_v24, %v4331_v63  ;;  %vm5176_vm7 = vcmp.ge.f32.partialorder %v5048_v41, 0.5  ;;  %v9486_v13 = vadd.f32 %v9133_v21, %v9419_v47  ;;  %v5049_v41 = vld [vmem:[%s7560_s6 + $0x1d0] sm:$0xff] }
 0x3fb   : > { %v9490_v63 = vadd.f32 %v9133_v21, %v9421_v18  ;;  %vm5177_vm10 = vcmp.ge.f32.partialorder %v5049_v41, 0.5 }
 0x3fc   : > { %v4887_v60 = vmax.f32 %v9329_v46, %v4759_v3  ;;  %v4919_v1 = vmax.f32 %v9331_v52, %v4791_v40  ;;  %v3725_v20 = vpop.f32.mrf.mxu2  ;;  %v4045_v61 = vpop.f32.mrf.mxu3  ;;  %v9500_v3 = vadd.f32 %v9133_v21, %v9425_v25  ;;  %v4457_v14 = vmax.f32 %v9486_v13, 0.0 }
 0x3fd   : > { %v3726_v38 = vadd.f32 %v9133_v21, %v3725_v20  ;;  %v4046_v43 = vadd.f32 %v9133_v21, %v4045_v61  ;;  %v3087_v58 = vpop.f32.mrf.mxu0  ;;  %v3407_v46 = vpop.f32.mrf.mxu1  ;;  %v7258_v20 = vld [vmem:[%s7339_s26 + $0x7f8] sm:$0xff] }
 0x3fe   : > { %v5271_v45 = vmul.f32 2.0, %v4887_v60  ;;  %v5303_v52 = vmul.f32 2.0, %v4919_v1  ;;  %v3088_v12 = vadd.f32 %v9133_v21, %v3087_v58  ;;  %v3408_v34 = vadd.f32 %v9133_v21, %v3407_v46  ;;  %v7194_v1 = vld [vmem:[%s7339_s26 + $0x5f8] sm:$0xff] }
 0x3ff   : > { %v4459_v2 = vmax.f32 %v3726_v38, 0.0  ;;  %v4587_v44 = vmax.f32 %v4046_v43, 0.0  ;;  %v4330_v9 = vmax.f32 %v9500_v3, 0.0 }
 0x400   : > { %v5399_v7 = vsel %vm5143_vm0, %v5271_v45, 0.0  ;;  %v5431_v51 = vsel %vm5175_vm1, %v5303_v52, 0.0  ;;  %v4204_v4 = vmax.f32 %v3088_v12, 0.0  ;;  %v4332_v6 = vmax.f32 %v3408_v34, 0.0  ;;  %v5112_v52 = vld [vmem:[%s7560_s6 + $0x3c8] sm:$0xff] }
 0x401   : > { %5528 = vst.msk [vmem:[%s7619_s9 + $0xc0] sm:$0xff] %vm5503_vm4, %v5399_v7  ;;  %v4823_v53 = vmax.f32 %v4455_v36, %v4459_v2  ;;  %v4855_v26 = vmax.f32 %v4583_v8, %v4587_v44  ;;  %v9496_v8 = vadd.f32 %v9133_v21, %v9423_v10  ;;  %v5017_v7 = vld [vmem:[%s7560_s6 + $0xd0] sm:$0xff]  ;;  %vm5240_vm9 = vcmp.ge.f32.partialorder %v5112_v52, 0.5 }
 0x402   : > { %5560 = vst.msk [vmem:[%s7619_s9 + $0x1c0] sm:$0xff] %vm5503_vm4, %v5431_v51  ;;  %v4760_v24 = vmax.f32 %v4200_v54, %v4204_v4  ;;  %v4792_v56 = vmax.f32 %v4328_v19, %v4332_v6  ;;  %v7130_v19 = vld [vmem:[%s7339_s26 + $0x3f8] sm:$0xff]  ;;  %v4585_v51 = vmax.f32 %v9490_v63, 0.0 }
 0x403   : > { %v4951_v62 = vmax.f32 %v9341_v39, %v4823_v53  ;;  %v4983_v36 = vmax.f32 %v9343_v11, %v4855_v26  ;;  %v7066_v39 = vld [vmem:[%s7339_s26 + $0x1f8] sm:$0xff]  ;;  %v4202_v53 = vmax.f32 %v9496_v8, 0.0 }
 0x404   : > { %v4888_v47 = vmax.f32 %v9345_v23, %v4760_v24  ;;  %v4920_v18 = vmax.f32 %v9347_v48, %v4792_v56  ;;  %v3727_v40 = vpop.f32.mrf.mxu2  ;;  %v4047_v54 = vpop.f32.mrf.mxu3 }
 0x405   : > { %v5335_v57 = vmul.f32 2.0, %v4951_v62  ;;  %v5367_v11 = vmul.f32 2.0, %v4983_v36  ;;  %v3728_v49 = vadd.f32 %v9133_v21, %v3727_v40  ;;  %v4048_v10 = vadd.f32 %v9133_v21, %v4047_v54  ;;  %v3090_v60 = vpop.f32.mrf.mxu0  ;;  %v3410_v25 = vpop.f32.mrf.mxu1  ;;  %v5081_v40 = vld [vmem:[%s7560_s6 + $0x2d0] sm:$0xff] }
 0x406   : > { %v5272_v23 = vmul.f32 2.0, %v4888_v47  ;;  %v5304_v61 = vmul.f32 2.0, %v4920_v18  ;;  %v3091_v48 = vadd.f32 %v9133_v21, %v3090_v60  ;;  %v3411_v38 = vadd.f32 %v9133_v21, %v3410_v25  ;;  %v5018_v25 = vld [vmem:[%s7560_s6 + $0xd8] sm:$0xff] }
 0x407   : > { %v5463_v43 = vsel %vm5207_vm3, %v5335_v57, 0.0  ;;  %v5495_v58 = vsel %vm5239_vm5, %v5367_v11, 0.0  ;;  %v4460_v46 = vmax.f32 %v3728_v49, 0.0  ;;  %v4588_v45 = vmax.f32 %v4048_v10, 0.0  ;;  %v5113_v57 = vld [vmem:[%s7560_s6 + $0x3d0] sm:$0xff] }
 0x408   : > { %5592 = vst.msk [vmem:[%s7619_s9 + $0x2c0] sm:$0xff] %vm5503_vm4, %v5463_v43  ;;  %v5400_v12 = vsel %vm5144_vm6, %v5272_v23, 0.0  ;;  %v5432_v34 = vsel %vm5176_vm7, %v5304_v61, 0.0  ;;  %v4205_v2 = vmax.f32 %v3091_v48, 0.0  ;;  %v4333_v44 = vmax.f32 %v3411_v38, 0.0  ;;  %6805 = vmatmul.msk.bf16.gmra.mxu0 %vm2030_vm2, %v7066_v39  ;;  %6869 = vmatmul.msk.bf16.gmra.mxu1 %vm2030_vm2, %v7130_v19 }
 0x409   : > { %5624 = vst.msk [vmem:[%s7619_s9 + $0x3c0] sm:$0xff] %vm5503_vm4, %v5495_v58  ;;  %v4824_v17 = vmax.f32 %v4456_v31, %v4460_v46  ;;  %v4856_v59 = vmax.f32 %v4584_v15, %v4588_v45  ;;  %6933 = vmatmul.msk.bf16.gmra.mxu2 %vm2030_vm2, %v7194_v1  ;;  %6997 = vmatmul.msk.bf16.gmra.mxu3 %vm2030_vm2, %v7258_v20  ;;  %vm5145_vm2 = vcmp.ge.f32.partialorder %v5017_v7, 0.5  ;;  %v5050_v1 = vld [vmem:[%s7560_s6 + $0x1d8] sm:$0xff]  ;;  %vm5209_vm11 = vcmp.ge.f32.partialorder %v5081_v40, 0.5 }
 0x40a   : > { %5529 = vst.msk [vmem:[%s7619_s9 + $0xc8] sm:$0xff] %vm5503_vm4, %v5400_v12  ;;  %v4761_v4 = vmax.f32 %v4201_v32, %v4205_v2  ;;  %v4793_v6 = vmax.f32 %v4329_v0, %v4333_v44  ;;  %vm5241_vm12 = vcmp.ge.f32.partialorder %v5113_v57, 0.5  ;;  %vm5146_vm13 = vcmp.ge.f32.partialorder %v5018_v25, 0.5 }
 0x40b   : > { %5561 = vst.msk [vmem:[%s7619_s9 + $0x1c8] sm:$0xff] %vm5503_vm4, %v5432_v34  ;;  %v4952_v31 = vmax.f32 %v9363_v35, %v4824_v17  ;;  %v4984_v15 = vmax.f32 %v9365_v16, %v4856_v59  ;;  %vm5178_vm14 = vcmp.ge.f32.partialorder %v5050_v1, 0.5 }
 0x40c   : > { %v4889_v26 = vmax.f32 %v9369_v42, %v4761_v4  ;;  %v4921_v24 = vmax.f32 %v9371_v29, %v4793_v6  ;;  %v3730_v56 = vpop.f32.mrf.mxu2  ;;  %v4050_v32 = vpop.f32.mrf.mxu3  ;;  %v9548_v29 = vld [vmem:[%s9843_s2] ss:$0 sm:$0xff]  ;;  %v5082_v4 = vld [vmem:[%s7560_s6 + $0x2d8] sm:$0xff] }
 0x40d   : > { %v5336_v0 = vmul.f32 2.0, %v4952_v31  ;;  %v5368_v13 = vmul.f32 2.0, %v4984_v15  ;;  %v3731_v63 = vadd.f32 %v9133_v21, %v3730_v56  ;;  %v4051_v62 = vadd.f32 %v9133_v21, %v4050_v32  ;;  %v3092_v35 = vpop.f32.mrf.mxu0  ;;  %v3412_v36 = vpop.f32.mrf.mxu1 }
 0x40e   : > { %v5273_v16 = vmul.f32 2.0, %v4889_v26  ;;  %v5305_v42 = vmul.f32 2.0, %v4921_v24  ;;  %v3093_v8 = vadd.f32 %v9548_v29, %v3092_v35  ;;  %v3413_v3 = vadd.f32 %v9548_v29, %v3412_v36 }
 0x40f   : > { %v5464_v47 = vsel %vm5208_vm8, %v5336_v0, 0.0  ;;  %v5496_v21 = vsel %vm5240_vm9, %v5368_v13, 0.0  ;;  %v4461_v18 = vmax.f32 %v3731_v63, 0.0  ;;  %v4589_v54 = vmax.f32 %v4051_v62, 0.0 }
 0x410   : > { %5593 = vst.msk [vmem:[%s7619_s9 + $0x2c8] sm:$0xff] %vm5503_vm4, %v5464_v47  ;;  %v5401_v39 = vsel %vm5145_vm2, %v5273_v16, 0.0  ;;  %v5433_v19 = vsel %vm5177_vm10, %v5305_v42, 0.0  ;;  %v4206_v11 = vmax.f32 %v3093_v8, 0.0  ;;  %v4334_v49 = vmax.f32 %v3413_v3, 0.0 }
 0x411   : > { %5625 = vst.msk [vmem:[%s7619_s9 + $0x3c8] sm:$0xff] %vm5503_vm4, %v5496_v21  ;;  %v4825_v10 = vmax.f32 %v4457_v14, %v4461_v18  ;;  %v4857_v60 = vmax.f32 %v4585_v51, %v4589_v54  ;;  %v3723_v20 = vadd.f32 %v9548_v29, %v9429_v55  ;;  %v4043_v23 = vadd.f32 %v9548_v29, %v9431_v22 }
 0x412   : > { %5530 = vst.msk [vmem:[%s7619_s9 + $0xd0] sm:$0xff] %vm5503_vm4, %v5401_v39  ;;  %v4762_v61 = vmax.f32 %v4202_v53, %v4206_v11  ;;  %v4794_v30 = vmax.f32 %v4330_v9, %v4334_v49  ;;  %v5114_v53 = vld [vmem:[%s7560_s6 + $0x3d8] sm:$0xff]  ;;  %vm5210_vm15 = vcmp.ge.f32.partialorder %v5082_v4, 0.5 }
 0x413   : > { %5562 = vst.msk [vmem:[%s7619_s9 + $0x1d0] sm:$0xff] %vm5503_vm4, %v5433_v19  ;;  %v4953_v48 = vmax.f32 %v9385_v5, %v4825_v10  ;;  %v4985_v38 = vmax.f32 %v9387_v27, %v4857_v60  ;;  %v4458_v34 = vmax.f32 %v3723_v20, 0.0  ;;  %vm5242_vm0 = vcmp.ge.f32.partialorder %v5114_v53, 0.5 }
 0x414   : > { %v4890_v43 = vmax.f32 %v9389_v50, %v4762_v61  ;;  %v4922_v55 = vmax.f32 %v9391_v33, %v4794_v30  ;;  %v3732_v58 = vpop.f32.mrf.mxu2  ;;  %v4052_v22 = vpop.f32.mrf.mxu3  ;;  %v4586_v50 = vmax.f32 %v4043_v23, 0.0 }
 0x415   : > { %v5337_v46 = vmul.f32 2.0, %v4953_v48  ;;  %v5369_v45 = vmul.f32 2.0, %v4985_v38  ;;  %v3733_v52 = vadd.f32 %v9548_v29, %v3732_v58  ;;  %v4053_v5 = vadd.f32 %v9548_v29, %v4052_v22  ;;  %v3095_v12 = vpop.f32.mrf.mxu0  ;;  %v3415_v27 = vpop.f32.mrf.mxu1 }
 0x416   : > { %v5274_v33 = vmul.f32 2.0, %v4890_v43  ;;  %v5306_v2 = vmul.f32 2.0, %v4922_v55  ;;  %v3096_v3 = vadd.f32 %v9548_v29, %v3095_v12  ;;  %v3416_v47 = vadd.f32 %v9548_v29, %v3415_v27 }
 0x417   : > { %v5465_v44 = vsel %vm5209_vm11, %v5337_v46, 0.0  ;;  %v5497_v14 = vsel %vm5241_vm12, %v5369_v45, 0.0  ;;  %v4462_v17 = vmax.f32 %v3733_v52, 0.0  ;;  %v4590_v59 = vmax.f32 %v4053_v5, 0.0 }
 0x418   : > { %5594 = vst.msk [vmem:[%s7619_s9 + $0x2d0] sm:$0xff] %vm5503_vm4, %v5465_v44  ;;  %v5402_v7 = vsel %vm5146_vm13, %v5274_v33, 0.0  ;;  %v5434_v41 = vsel %vm5178_vm14, %v5306_v2, 0.0  ;;  %v4207_v57 = vmax.f32 %v3096_v3, 0.0  ;;  %v4335_v11 = vmax.f32 %v3416_v47, 0.0 }
 0x419   : > { %5626 = vst.msk [vmem:[%s7619_s9 + $0x3d0] sm:$0xff] %vm5503_vm4, %v5497_v14  ;;  %v4826_v51 = vmax.f32 %v4458_v34, %v4462_v17  ;;  %v4858_v6 = vmax.f32 %v4586_v50, %v4590_v59 }
 0x41a   : > { %5531 = vst.msk [vmem:[%s7619_s9 + $0xd8] sm:$0xff] %vm5503_vm4, %v5402_v7 }
 0x41b   : > { %5563 = vst.msk [vmem:[%s7619_s9 + $0x1d8] sm:$0xff] %vm5503_vm4, %v5434_v41  ;;  %v4954_v9 = vmax.f32 %v9405_v37, %v4826_v51  ;;  %v4986_v31 = vmax.f32 %v9407_v28, %v4858_v6 }
 0x41c   : > { %v3735_v15 = vpop.f32.mrf.mxu2  ;;  %v4055_v26 = vpop.f32.mrf.mxu3 }
 0x41d   : > { %v5338_v24 = vmul.f32 2.0, %v4954_v9  ;;  %v5370_v56 = vmul.f32 2.0, %v4986_v31  ;;  %v3097_v32 = vpop.f32.mrf.mxu0  ;;  %v3417_v0 = vpop.f32.mrf.mxu1  ;;  %v3736_v1 = vadd.f32 %v9548_v29, %v3735_v15  ;;  %v4056_v20 = vadd.f32 %v9548_v29, %v4055_v26 }
 0x41e   : > { %v3098_v23 = vadd.f32 %v9548_v29, %v3097_v32  ;;  %v3418_v61 = vadd.f32 %v9548_v29, %v3417_v0 }
 0x41f   : > { %v5466_v13 = vsel %vm5210_vm15, %v5338_v24, 0.0  ;;  %v5498_v63 = vsel %vm5242_vm0, %v5370_v56, 0.0  ;;  %v4463_v45 = vmax.f32 %v3736_v1, 0.0  ;;  %v4591_v52 = vmax.f32 %v4056_v20, 0.0 }
 0x420   : > { %5595 = vst.msk [vmem:[%s7619_s9 + $0x2d8] sm:$0xff] %vm5503_vm4, %v5466_v13  ;;  %v4208_v27 = vmax.f32 %v3098_v23, 0.0  ;;  %v4336_v34 = vmax.f32 %v3418_v61, 0.0 }
 0x421   : > { %5627 = vst.msk [vmem:[%s7619_s9 + $0x3d8] sm:$0xff] %vm5503_vm4, %v5498_v63 }
 0x424   : > { %v3737_v62 = vpop.f32.mrf.mxu2  ;;  %v4057_v35 = vpop.f32.mrf.mxu3 }
 0x425   : > { %v3100_v36 = vpop.f32.mrf.mxu0  ;;  %v3420_v37 = vpop.f32.mrf.mxu1  ;;  %v3738_v59 = vadd.f32 %v9548_v29, %v3737_v62  ;;  %v4058_v7 = vadd.f32 %v9548_v29, %v4057_v35 }
 0x426   : > { %v3101_v41 = vadd.f32 %v9548_v29, %v3100_v36  ;;  %v3421_v51 = vadd.f32 %v9548_v29, %v3420_v37 }
 0x427   : > { %v4464_v56 = vmax.f32 %v3738_v59, 0.0  ;;  %v4592_v32 = vmax.f32 %v4058_v7, 0.0 }
 0x428   : > { %v4209_v63 = vmax.f32 %v3101_v41, 0.0  ;;  %v4337_v62 = vmax.f32 %v3421_v51, 0.0 }
 0x42c   : > { %v9598_v16 = vpop.f32.mrf.mxu2  ;;  %v9600_v28 = vpop.f32.mrf.mxu3 }
 0x42d   : > { %v9602_v42 = vpop.f32.mrf.mxu0  ;;  %v9604_v8 = vpop.f32.mrf.mxu1 }
 0x434   : > { %v9608_v21 = vpop.f32.mrf.mxu2  ;;  %v9610_v18 = vpop.f32.mrf.mxu3 }
 0x435   : > { %v3105_v40 = vpop.f32.mrf.mxu0  ;;  %v3425_v54 = vpop.f32.mrf.mxu1 }
 0x436   : > { %v3106_v39 = vadd.f32 %v9548_v29, %v3105_v40  ;;  %v3426_v19 = vadd.f32 %v9548_v29, %v3425_v54  ;;  %v3741_v54 = vadd.f32 %v9548_v29, %v9598_v16 }
 0x438   : > { %v4211_v49 = vmax.f32 %v3106_v39, 0.0  ;;  %v4339_v10 = vmax.f32 %v3426_v19, 0.0  ;;  %v4061_v39 = vadd.f32 %v9548_v29, %v9600_v28  ;;  %v3103_v19 = vadd.f32 %v9548_v29, %v9602_v42 }
 0x43a   : > { %v9614_v60 = vmax.f32 %v4207_v57, %v4211_v49  ;;  %v9616_v25 = vmax.f32 %v4335_v11, %v4339_v10  ;;  %v3423_v57 = vadd.f32 %v9548_v29, %v9604_v8  ;;  %v4593_v28 = vmax.f32 %v4061_v39, 0.0 }
 0x43b   : > { %v4210_v42 = vmax.f32 %v3103_v19, 0.0 }
 0x43c   : > { %v3745_v30 = vpop.f32.mrf.mxu2  ;;  %v4065_v48 = vpop.f32.mrf.mxu3 }
 0x43d   : > { %v3746_v38 = vadd.f32 %v9548_v29, %v3745_v30  ;;  %v4066_v43 = vadd.f32 %v9548_v29, %v4065_v48  ;;  %v3107_v55 = vpop.f32.mrf.mxu0  ;;  %v3427_v58 = vpop.f32.mrf.mxu1  ;;  %v4465_v30 = vmax.f32 %v3741_v54, 0.0 }
 0x43e   : > { %v3108_v22 = vadd.f32 %v9548_v29, %v3107_v55  ;;  %v3428_v46 = vadd.f32 %v9548_v29, %v3427_v58 }
 0x43f   : > { %v4467_v5 = vmax.f32 %v3746_v38, 0.0  ;;  %v4595_v12 = vmax.f32 %v4066_v43, 0.0  ;;  %v4338_v43 = vmax.f32 %v3423_v57, 0.0 }
 0x440   : > { %v4212_v50 = vmax.f32 %v3108_v22, 0.0  ;;  %v4340_v33 = vmax.f32 %v3428_v46, 0.0 }
 0x441   : > { %v9626_v2 = vmax.f32 %v4463_v45, %v4467_v5  ;;  %v9628_v44 = vmax.f32 %v4591_v52, %v4595_v12  ;;  %v3743_v52 = vadd.f32 %v9548_v29, %v9608_v21  ;;  %v4063_v5 = vadd.f32 %v9548_v29, %v9610_v18 }
 0x442   : > { %v9630_v14 = vmax.f32 %v4208_v27, %v4212_v50  ;;  %v9632_v17 = vmax.f32 %v4336_v34, %v4340_v33 }
 0x443   : > { %v4466_v7 = vmax.f32 %v3743_v52, 0.0  ;;  %v4594_v41 = vmax.f32 %v4063_v5, 0.0 }
 0x444   : > { %v3747_v4 = vpop.f32.mrf.mxu2  ;;  %v4067_v6 = vpop.f32.mrf.mxu3 }
 0x445   : > { %v3748_v53 = vadd.f32 %v9548_v29, %v3747_v4  ;;  %v4068_v9 = vadd.f32 %v9548_v29, %v4067_v6  ;;  %v3110_v31 = vpop.f32.mrf.mxu0  ;;  %v3430_v15 = vpop.f32.mrf.mxu1 }
 0x446   : > { %v3111_v26 = vadd.f32 %v9548_v29, %v3110_v31  ;;  %v3431_v24 = vadd.f32 %v9548_v29, %v3430_v15 }
 0x447   : > { %v4468_v0 = vmax.f32 %v3748_v53, 0.0  ;;  %v4596_v13 = vmax.f32 %v4068_v9, 0.0 }
 0x448   : > { %v4213_v35 = vmax.f32 %v3111_v26, 0.0  ;;  %v4341_v36 = vmax.f32 %v3431_v24, 0.0 }
 0x449   : > { %v9642_v37 = vmax.f32 %v4464_v56, %v4468_v0  ;;  %v9644_v3 = vmax.f32 %v4592_v32, %v4596_v13 }
 0x44a   : > { %v9646_v47 = vmax.f32 %v4209_v63, %v4213_v35  ;;  %v9648_v40 = vmax.f32 %v4337_v62, %v4341_v36 }
 0x44c   : > { %v3750_v11 = vpop.f32.mrf.mxu2  ;;  %v4070_v49 = vpop.f32.mrf.mxu3 }
 0x44d   : > { %v3751_v10 = vadd.f32 %v9548_v29, %v3750_v11  ;;  %v4071_v1 = vadd.f32 %v9548_v29, %v4070_v49  ;;  %v3112_v20 = vpop.f32.mrf.mxu0  ;;  %v3432_v23 = vpop.f32.mrf.mxu1 }
 0x44e   : > { %v3113_v61 = vadd.f32 %v9548_v29, %v3112_v20  ;;  %v3433_v16 = vadd.f32 %v9548_v29, %v3432_v23 }
 0x44f   : > { %v4469_v48 = vmax.f32 %v3751_v10, 0.0  ;;  %v4597_v38 = vmax.f32 %v4071_v1, 0.0  ;;  %v5019_v10 = vld [vmem:[%s7560_s6 + $0xe0] sm:$0xff] }
 0x450   : > { %v4214_v55 = vmax.f32 %v3113_v61, 0.0  ;;  %v4342_v8 = vmax.f32 %v3433_v16, 0.0  ;;  %vm5147_vm1 = vcmp.ge.f32.partialorder %v5019_v10, 0.5 }
 0x451   : > { %v9662_v58 = vmax.f32 %v4465_v30, %v4469_v48  ;;  %v9664_v22 = vmax.f32 %v4593_v28, %v4597_v38  ;;  %v5051_v48 = vld [vmem:[%s7560_s6 + $0x1e0] sm:$0xff] }
 0x452   : > { %v9666_v46 = vmax.f32 %v4210_v42, %v4214_v55  ;;  %v9668_v45 = vmax.f32 %v4338_v43, %v4342_v8  ;;  %v9706_v42 = vld [vmem:[%s7560_s6 + $0x2e0] sm:$0xff]  ;;  %vm5179_vm3 = vcmp.ge.f32.partialorder %v5051_v48, 0.5 }
 0x453   : > { %vm5211_vm5 = vcmp.ge.f32.partialorder %v9706_v42, 0.5 }
 0x454   : > { %v3752_v12 = vpop.f32.mrf.mxu2  ;;  %v4072_v27 = vpop.f32.mrf.mxu3 }
 0x455   : > { %v3753_v34 = vadd.f32 %v9548_v29, %v3752_v12  ;;  %v4073_v50 = vadd.f32 %v9548_v29, %v4072_v27  ;;  %v3115_v33 = vpop.f32.mrf.mxu0  ;;  %v3435_v59 = vpop.f32.mrf.mxu1 }
 0x456   : > { %v3116_v62 = vadd.f32 %v9548_v29, %v3115_v33  ;;  %v3436_v35 = vadd.f32 %v9548_v29, %v3435_v59 }
 0x457   : > { %v4470_v51 = vmax.f32 %v3753_v34, 0.0  ;;  %v4598_v4 = vmax.f32 %v4073_v50, 0.0 }
 0x458   : > { %v4215_v61 = vmax.f32 %v3116_v62, 0.0  ;;  %v4343_v16 = vmax.f32 %v3436_v35, 0.0 }
 0x459   : > { %v9676_v6 = vmax.f32 %v4466_v7, %v4470_v51  ;;  %v9678_v53 = vmax.f32 %v4594_v41, %v4598_v4  ;;  %v5115_v41 = vld [vmem:[%s7560_s6 + $0x3e0] sm:$0xff] }
 0x45a   : > { %vm5243_vm6 = vcmp.ge.f32.partialorder %v5115_v41, 0.5 }
 0x45c   : > { %v3755_v21 = vpop.f32.mrf.mxu2  ;;  %v4075_v9 = vpop.f32.mrf.mxu3 }
 0x45d   : > { %v3117_v31 = vpop.f32.mrf.mxu0  ;;  %v3437_v18 = vpop.f32.mrf.mxu1  ;;  %v3756_v57 = vadd.f32 %v9548_v29, %v3755_v21  ;;  %v4076_v11 = vadd.f32 %v9548_v29, %v4075_v9 }
 0x45e   : > { %v3118_v20 = vadd.f32 %v9548_v29, %v3117_v31  ;;  %v3438_v23 = vadd.f32 %v9548_v29, %v3437_v18 }
 0x45f   : > { %v4471_v43 = vmax.f32 %v3756_v57, 0.0  ;;  %v4599_v55 = vmax.f32 %v4076_v11, 0.0 }
 0x460   : > { %v4216_v5 = vmax.f32 %v3118_v20, 0.0  ;;  %v4344_v12 = vmax.f32 %v3438_v23, 0.0 }
 0x464   : > { %v3757_v15 = vpop.f32.mrf.mxu2  ;;  %v4077_v26 = vpop.f32.mrf.mxu3 }
 0x465   : > { %v3120_v24 = vpop.f32.mrf.mxu0  ;;  %v3440_v56 = vpop.f32.mrf.mxu1  ;;  %v9703_v38 = vadd.f32 %v9548_v29, %v3757_v15  ;;  %v9709_v27 = vadd.f32 %v9548_v29, %v4077_v26 }
 0x466   : > { %v9712_v34 = vadd.f32 %v9548_v29, %v3120_v24  ;;  %v9720_v4 = vadd.f32 %v9548_v29, %v3440_v56  ;;  %v5020_v56 = vld [vmem:[%s7560_s6 + $0xe8] sm:$0xff] }
 0x467   : > { %v4472_v51 = vmax.f32 %v9703_v38, 0.0  ;;  %v4600_v24 = vmax.f32 %v9709_v27, 0.0  ;;  %vm5148_vm7 = vcmp.ge.f32.partialorder %v5020_v56, 0.5 }
 0x468   : > { %v4345_v20 = vmax.f32 %v9720_v4, 0.0 }
 0x46c   : > { %v9680_v32 = vpop.f32.mrf.mxu2  ;;  %v9682_v0 = vpop.f32.mrf.mxu3 }
 0x46d   : > { %v9684_v13 = vpop.f32.mrf.mxu0  ;;  %v9686_v63 = vpop.f32.mrf.mxu1  ;;  %v9739_v10 = vadd.f32 %v9548_v29, %v9680_v32 }
 0x46f   : > { %v4473_v42 = vmax.f32 %v9739_v10, 0.0 }
 0x474   : > { %v9690_v36 = vpop.f32.mrf.mxu2  ;;  %v9692_v54 = vpop.f32.mrf.mxu3 }
 0x475   : > { %v3125_v39 = vpop.f32.mrf.mxu0  ;;  %v3445_v19 = vpop.f32.mrf.mxu1 }
 0x476   : > { %v3126_v49 = vadd.f32 %v9548_v29, %v3125_v39  ;;  %v3446_v1 = vadd.f32 %v9548_v29, %v3445_v19  ;;  %v5052_v39 = vld [vmem:[%s7560_s6 + $0x1e8] sm:$0xff] }
 0x477   : > { %vm5180_vm8 = vcmp.ge.f32.partialorder %v5052_v39, 0.5 }
 0x478   : > { %v4219_v30 = vmax.f32 %v3126_v49, 0.0  ;;  %v4347_v28 = vmax.f32 %v3446_v1, 0.0  ;;  %v4217_v1 = vmax.f32 %v9712_v34, 0.0 }
 0x47a   : > { %v4763_v8 = vmax.f32 %v4215_v61, %v4219_v30  ;;  %v4795_v52 = vmax.f32 %v4343_v16, %v4347_v28  ;;  %v9743_v28 = vadd.f32 %v9548_v29, %v9682_v0 }
 0x47c   : > { %v4891_v50 = vmax.f32 %v9614_v60, %v4763_v8  ;;  %v4923_v33 = vmax.f32 %v9616_v25, %v4795_v52  ;;  %v3765_v59 = vpop.f32.mrf.mxu2  ;;  %v4085_v7 = vpop.f32.mrf.mxu3  ;;  %v9753_v8 = vadd.f32 %v9548_v29, %v9686_v63 }
 0x47d   : > { %v3766_v21 = vadd.f32 %v9548_v29, %v3765_v59  ;;  %v4086_v9 = vadd.f32 %v9548_v29, %v4085_v7  ;;  %v3127_v31 = vpop.f32.mrf.mxu0  ;;  %v3447_v60 = vpop.f32.mrf.mxu1 }
 0x47e   : > { %v5275_v18 = vmul.f32 2.0, %v4891_v50  ;;  %v5307_v25 = vmul.f32 2.0, %v4923_v33  ;;  %v3128_v15 = vadd.f32 %v9548_v29, %v3127_v31  ;;  %v3448_v26 = vadd.f32 %v9548_v29, %v3447_v60  ;;  %v5084_v33 = vld [vmem:[%s7560_s6 + $0x2e8] sm:$0xff] }
 0x47f   : > { %v4475_v62 = vmax.f32 %v3766_v21, 0.0  ;;  %v4603_v35 = vmax.f32 %v4086_v9, 0.0  ;;  %v5116_v9 = vld [vmem:[%s7560_s6 + $0x3e8] sm:$0xff]  ;;  %vm5212_vm9 = vcmp.ge.f32.partialorder %v5084_v33, 0.5 }
 0x480   : > { %v5403_v19 = vsel %vm5147_vm1, %v5275_v18, 0.0  ;;  %v5435_v57 = vsel %vm5179_vm3, %v5307_v25, 0.0  ;;  %v4220_v11 = vmax.f32 %v3128_v15, 0.0  ;;  %v4348_v49 = vmax.f32 %v3448_v26, 0.0  ;;  %v5021_v26 = vld [vmem:[%s7560_s6 + $0xf0] sm:$0xff] }
 0x481   : > { %5532 = vst.msk [vmem:[%s7619_s9 + $0xe0] sm:$0xff] %vm5503_vm4, %v5403_v19  ;;  %v4827_v23 = vmax.f32 %v4471_v43, %v4475_v62  ;;  %v4859_v61 = vmax.f32 %v4599_v55, %v4603_v35  ;;  %v9749_v55 = vadd.f32 %v9548_v29, %v9684_v13  ;;  %v5053_v62 = vld [vmem:[%s7560_s6 + $0x1f0] sm:$0xff]  ;;  %v4601_v35 = vmax.f32 %v9743_v28, 0.0 }
 0x482   : > { %5564 = vst.msk [vmem:[%s7619_s9 + $0x1e0] sm:$0xff] %vm5503_vm4, %v5435_v57  ;;  %v4764_v16 = vmax.f32 %v4216_v5, %v4220_v11  ;;  %v4796_v30 = vmax.f32 %v4344_v12, %v4348_v49  ;;  %vm5244_vm2 = vcmp.ge.f32.partialorder %v5116_v9, 0.5  ;;  %v4346_v57 = vmax.f32 %v9753_v8, 0.0 }
 0x483   : > { %v4955_v48 = vmax.f32 %v9626_v2, %v4827_v23  ;;  %v4987_v43 = vmax.f32 %v9628_v44, %v4859_v61  ;;  %v4218_v19 = vmax.f32 %v9749_v55, 0.0  ;;  %vm5149_vm10 = vcmp.ge.f32.partialorder %v5021_v26, 0.5  ;;  %v5085_v55 = vld [vmem:[%s7560_s6 + $0x2f0] sm:$0xff]  ;;  %v5086_v26 = vld [vmem:[%s7560_s6 + $0x2f8] sm:$0xff] }
 0x484   : > { %v4892_v32 = vmax.f32 %v9630_v14, %v4764_v16  ;;  %v4924_v52 = vmax.f32 %v9632_v17, %v4796_v30  ;;  %v3767_v5 = vpop.f32.mrf.mxu2  ;;  %v4087_v0 = vpop.f32.mrf.mxu3  ;;  %vm5181_vm11 = vcmp.ge.f32.partialorder %v5053_v62, 0.5  ;;  %vm5213_vm12 = vcmp.ge.f32.partialorder %v5085_v55, 0.5 }
 0x485   : > { %v5339_v12 = vmul.f32 2.0, %v4955_v48  ;;  %v5371_v2 = vmul.f32 2.0, %v4987_v43  ;;  %v3768_v44 = vadd.f32 %v9548_v29, %v3767_v5  ;;  %v4088_v27 = vadd.f32 %v9548_v29, %v4087_v0  ;;  %v3130_v13 = vpop.f32.mrf.mxu0  ;;  %v3450_v34 = vpop.f32.mrf.mxu1  ;;  %v5117_v5 = vld [vmem:[%s7560_s6 + $0x3f0] sm:$0xff] }
 0x486   : > { %v5276_v50 = vmul.f32 2.0, %v4892_v32  ;;  %v5308_v63 = vmul.f32 2.0, %v4924_v52  ;;  %v3131_v14 = vadd.f32 %v9548_v29, %v3130_v13  ;;  %v3451_v17 = vadd.f32 %v9548_v29, %v3450_v34  ;;  %v5054_v13 = vld [vmem:[%s7560_s6 + $0x1f8] sm:$0xff] }
 0x487   : > { %v5467_v59 = vsel %vm5211_vm5, %v5339_v12, 0.0  ;;  %v5499_v7 = vsel %vm5243_vm6, %v5371_v2, 0.0  ;;  %v4476_v4 = vmax.f32 %v3768_v44, 0.0  ;;  %v4604_v21 = vmax.f32 %v4088_v27, 0.0  ;;  %v5022_v27 = vld [vmem:[%s7560_s6 + $0xf8] sm:$0xff] }
 0x488   : > { %5596 = vst.msk [vmem:[%s7619_s9 + $0x2e0] sm:$0xff] %vm5503_vm4, %v5467_v59  ;;  %v5404_v31 = vsel %vm5148_vm7, %v5276_v50, 0.0  ;;  %v5436_v60 = vsel %vm5180_vm8, %v5308_v63, 0.0  ;;  %v4221_v18 = vmax.f32 %v3131_v14, 0.0  ;;  %v4349_v25 = vmax.f32 %v3451_v17, 0.0 }
 0x489   : > { %5628 = vst.msk [vmem:[%s7619_s9 + $0x3e0] sm:$0xff] %vm5503_vm4, %v5499_v7  ;;  %v4828_v41 = vmax.f32 %v4472_v51, %v4476_v4  ;;  %v4860_v15 = vmax.f32 %v4600_v24, %v4604_v21  ;;  %v3763_v34 = vadd.f32 %v9548_v29, %v9690_v36  ;;  %v4083_v50 = vadd.f32 %v9548_v29, %v9692_v54 }
 0x48a   : > { %5533 = vst.msk [vmem:[%s7619_s9 + $0xe8] sm:$0xff] %vm5503_vm4, %v5404_v31  ;;  %v4765_v56 = vmax.f32 %v4217_v1, %v4221_v18  ;;  %v4797_v39 = vmax.f32 %v4345_v20, %v4349_v25  ;;  %vm5245_vm13 = vcmp.ge.f32.partialorder %v5117_v5, 0.5  ;;  %vm5150_vm14 = vcmp.ge.f32.partialorder %v5022_v27, 0.5 }
 0x48b   : > { %5565 = vst.msk [vmem:[%s7619_s9 + $0x1e8] sm:$0xff] %vm5503_vm4, %v5436_v60  ;;  %v4956_v38 = vmax.f32 %v9642_v37, %v4828_v41  ;;  %v4988_v51 = vmax.f32 %v9644_v3, %v4860_v15  ;;  %vm5182_vm15 = vcmp.ge.f32.partialorder %v5054_v13, 0.5  ;;  %v4602_v31 = vmax.f32 %v4083_v50, 0.0 }
 0x48c   : > { %v4893_v24 = vmax.f32 %v9646_v47, %v4765_v56  ;;  %v4925_v11 = vmax.f32 %v9648_v40, %v4797_v39  ;;  %v3770_v49 = vpop.f32.mrf.mxu2  ;;  %v4090_v1 = vpop.f32.mrf.mxu3  ;;  %vm5214_vm0 = vcmp.ge.f32.partialorder %v5086_v26, 0.5 }
 0x48d   : > { %v5340_v20 = vmul.f32 2.0, %v4956_v38  ;;  %v5372_v23 = vmul.f32 2.0, %v4988_v51  ;;  %v3771_v61 = vadd.f32 %v9548_v29, %v3770_v49  ;;  %v4091_v16 = vadd.f32 %v9548_v29, %v4090_v1  ;;  %v3132_v37 = vpop.f32.mrf.mxu0  ;;  %v3452_v30 = vpop.f32.mrf.mxu1 }
 0x48e   : > { %v5277_v3 = vmul.f32 2.0, %v4893_v24  ;;  %v5309_v47 = vmul.f32 2.0, %v4925_v11  ;;  %v3133_v10 = vadd.f32 %v9548_v29, %v3132_v37  ;;  %v3453_v40 = vadd.f32 %v9548_v29, %v3452_v30 }
 0x48f   : > { %v5468_v28 = vsel %vm5212_vm9, %v5340_v20, 0.0  ;;  %v5500_v48 = vsel %vm5244_vm2, %v5372_v23, 0.0  ;;  %v4477_v43 = vmax.f32 %v3771_v61, 0.0  ;;  %v4605_v8 = vmax.f32 %v4091_v16, 0.0 }
 0x490   : > { %5597 = vst.msk [vmem:[%s7619_s9 + $0x2e8] sm:$0xff] %vm5503_vm4, %v5468_v28  ;;  %v5405_v32 = vsel %vm5149_vm10, %v5277_v3, 0.0  ;;  %v5437_v52 = vsel %vm5181_vm11, %v5309_v47, 0.0  ;;  %v4222_v0 = vmax.f32 %v3133_v10, 0.0  ;;  %v4350_v12 = vmax.f32 %v3453_v40, 0.0 }
 0x491   : > { %5629 = vst.msk [vmem:[%s7619_s9 + $0x3e8] sm:$0xff] %vm5503_vm4, %v5500_v48  ;;  %v4829_v2 = vmax.f32 %v4473_v42, %v4477_v43  ;;  %v4861_v44 = vmax.f32 %v4601_v35, %v4605_v8  ;;  %v5118_v35 = vld [vmem:[%s7560_s6 + $0x3f8] sm:$0xff] }
 0x492   : > { %5534 = vst.msk [vmem:[%s7619_s9 + $0xf0] sm:$0xff] %vm5503_vm4, %v5405_v32  ;;  %v4766_v63 = vmax.f32 %v4218_v19, %v4222_v0  ;;  %v4798_v33 = vmax.f32 %v4346_v57, %v4350_v12  ;;  %vm5246_vm1 = vcmp.ge.f32.partialorder %v5118_v35, 0.5 }
 0x493   : > { %5566 = vst.msk [vmem:[%s7619_s9 + $0x1f0] sm:$0xff] %vm5503_vm4, %v5437_v52  ;;  %v4957_v14 = vmax.f32 %v9662_v58, %v4829_v2  ;;  %v4989_v17 = vmax.f32 %v9664_v22, %v4861_v44  ;;  %v4474_v22 = vmax.f32 %v3763_v34, 0.0 }
 0x494   : > { %v4894_v59 = vmax.f32 %v9666_v46, %v4766_v63  ;;  %v4926_v36 = vmax.f32 %v9668_v45, %v4798_v33  ;;  %v3772_v54 = vpop.f32.mrf.mxu2  ;;  %v4092_v7 = vpop.f32.mrf.mxu3 }
 0x495   : > { %v5341_v4 = vmul.f32 2.0, %v4957_v14  ;;  %v5373_v21 = vmul.f32 2.0, %v4989_v17  ;;  %v3773_v9 = vadd.f32 %v9548_v29, %v3772_v54  ;;  %v4093_v58 = vadd.f32 %v9548_v29, %v4092_v7 }
 0x496   : > { %v5278_v46 = vmul.f32 2.0, %v4894_v59  ;;  %v5310_v60 = vmul.f32 2.0, %v4926_v36 }
 0x497   : > { %v5469_v45 = vsel %vm5213_vm12, %v5341_v4, 0.0  ;;  %v5501_v18 = vsel %vm5245_vm13, %v5373_v21, 0.0  ;;  %v4478_v25 = vmax.f32 %v3773_v9, 0.0  ;;  %v4606_v42 = vmax.f32 %v4093_v58, 0.0 }
 0x498   : > { %5598 = vst.msk [vmem:[%s7619_s9 + $0x2f0] sm:$0xff] %vm5503_vm4, %v5469_v45  ;;  %v5406_v41 = vsel %vm5150_vm14, %v5278_v46, 0.0  ;;  %v5438_v15 = vsel %vm5182_vm15, %v5310_v60, 0.0 }
 0x499   : > { %5630 = vst.msk [vmem:[%s7619_s9 + $0x3f0] sm:$0xff] %vm5503_vm4, %v5501_v18  ;;  %v4830_v29 = vmax.f32 %v4474_v22, %v4478_v25  ;;  %v4862_v62 = vmax.f32 %v4602_v31, %v4606_v42 }
 0x49a   : > { %5535 = vst.msk [vmem:[%s7619_s9 + $0xf8] sm:$0xff] %vm5503_vm4, %v5406_v41 }
 0x49b   : > { %5567 = vst.msk [vmem:[%s7619_s9 + $0x1f8] sm:$0xff] %vm5503_vm4, %v5438_v15  ;;  %v4958_v56 = vmax.f32 %v9676_v6, %v4830_v29  ;;  %v4990_v39 = vmax.f32 %v9678_v53, %v4862_v62 }
 0x49d   : > { %v5342_v19 = vmul.f32 2.0, %v4958_v56  ;;  %v5374_v57 = vmul.f32 2.0, %v4990_v39 }
 0x49f   : > { %v5470_v38 = vsel %vm5214_vm0, %v5342_v19, 0.0  ;;  %v5502_v51 = vsel %vm5246_vm1, %v5374_v57, 0.0 }
 0x4a0   : > { %5599 = vst.msk [vmem:[%s7619_s9 + $0x2f8] sm:$0xff] %vm5503_vm4, %v5470_v38 }
 0x4a1   : > { %5631 = vst.msk [vmem:[%s7619_s9 + $0x3f8] sm:$0xff] %vm5503_vm4, %v5502_v51 }
 0x4a2 PF: > { %s14_s15 = sadd.s32 1, %s7288_s15  }
 0x4a3   : > { %p11_p4 = scmp.ge.s32.totalorder %s14_s15, 4  }
 0x4a5   :  { %13 = sbr.rel (!%p11_p4) target bundleno = 1 (0x1), region = 69 }

// kernel: cnn_forward.6
= control target key start
LH: loop header
LB: loop body
LE: loop exit
PB: predicated region body
PF: predicated region fallthrough
CT: control target
= control target key end

     0   :  { %s3120_s15 = smov 0   ;;  %s4168_s0 = inlined_call_operand.vmem [shape: bf16[2,1024,144], index: 0, kind: input, shape index: {}]   ;;  %s4169_s1 = inlined_call_operand.vmem [shape: bf16[144,32], index: 1, kind: input, shape index: {}]   ;;  %s4170_s2 = inlined_call_operand.vmem [shape: f32[1,32], index: 2, kind: input, shape index: {}]   ;;  %s4171_s3 = inlined_call_operand.vmem [shape: f32[2,256,32], index: 3, kind: input, shape index: {}]   ;;  %s4172_s4 = inlined_call_operand.vmem [shape: f32[2,256,32], index: 4, kind: output, shape index: {}]  }
   0x1 LB: > { %s2302_s16 = sadd.s32 4294967295, %s3093_s15   ;;  %p2306_p0 = scmp.ge.s32.totalorder %s3093_s15, 1  ;;  %s3093_s15 = sphi %s3120_s15, %s14_s15  }
   0x2   : > { %p172_p1 = scmp.lt.s32.totalorder %s3093_s15, 3 }
   0x4   : > { %p173_p2 = pnand %p2306_p0, %p172_p1 }
   0x5   : > { %p203_p3 = scmp.lt.s32.totalorder (!%p173_p2), %s2302_s16, 1 }
   0x6   : > { %176 = sbr.rel (%p173_p2) target bundleno = 693 (0x2b5), region = 36 }
   0xb   : > { %v3065_v0 = vld [vmem:[%s4169_s1 + $0x38] sm:$0xff]  ;;  %v3066_v1 = vld [vmem:[%s4169_s1 + $0x40] sm:$0xff]  ;;  %v3064_v2 = vld [vmem:[%s4169_s1 + $0x30] sm:$0xff]  ;;  %s4174_s16 = smov (!%p203_p3, %s2302_s16), 1  ;;  %vm999_vm0 = vcmask 130048   ;;  %vm2202_vm2 = vcmask 261120  }
   0xc   : > { %1192 = vmatpush.bf16.msra.mxu0 %v3065_v0  ;;  %3067 = vmatpush.bf16.msra.mxu2 %v3065_v0  ;;  %s2927_s23 = sshll.u32 %s4174_s16, 10  ;;  %v3063_v5 = vld [vmem:[%s4169_s1 + $0x28] sm:$0xff]  ;;  %v3062_v9 = vld [vmem:[%s4169_s1 + $0x20] sm:$0xff]  ;;  %v3061_v11 = vld [vmem:[%s4169_s1 + $0x18] sm:$0xff]  ;;  %s2928_s17 = sshll.u32 %s4174_s16, 8 }
   0xd   : > { %1528 = vmatpush.bf16.msra.mxu1 %v3066_v1  ;;  %3075 = vmatpush.bf16.msra.mxu3 %v3066_v1  ;;  %s3143_s26 = scalar_lea.vmem %s4168_s0, %s2927_s23  ;;  %v3060_v12 = vld [vmem:[%s4169_s1 + $0x10] sm:$0xff]  ;;  %v3059_v16 = vld [vmem:[%s4169_s1 + $0x8] sm:$0xff]  ;;  %v3058_v19 = vld [vmem:[%s4169_s1] sm:$0xff]  ;;  %s3368_s20 = scalar_lea.vmem %s4171_s3, %s2928_s17 }
   0xe   : > { %v2930_v3 = vld [vmem:[%s3143_s26 + $0x4] sm:$0xf]  ;;  %v2317_v4 = vld [vmem:[%s3143_s26 + $0x8] sm:$0xf0]  ;;  %v2996_v7 = vld [vmem:[%s3143_s26 + $0x214] sm:$0xf]  ;;  %s3392_s23 = scalar_lea.vmem %s4172_s4, %s2928_s17 }
   0xf   : > { %v2320_v6 = vor.u32 %v2930_v3, %v2317_v4  ;;  %v2581_v8 = vld [vmem:[%s3143_s26 + $0x218] sm:$0xf0]  ;;  %v2932_v13 = vld [vmem:[%s3143_s26 + $0x14] sm:$0xf]  ;;  %v2998_v17 = vld [vmem:[%s3143_s26 + $0x224] sm:$0xf] }
  0x10   : > { %1193 = vmatpush.bf16.msra.mxu0 %v3064_v2  ;;  %3068 = vmatpush.bf16.msra.mxu2 %v3064_v2  ;;  %v2584_v10 = vor.u32 %v2996_v7, %v2581_v8  ;;  %v2325_v14 = vld [vmem:[%s3143_s26 + $0x18] sm:$0xf0]  ;;  %v2589_v18 = vld [vmem:[%s3143_s26 + $0x228] sm:$0xf0]  ;;  %v2315_v20 = vld [vmem:[%s3143_s26] sm:$0xf] }
  0x11   : > { %2861 = vmatmul.msk.bf16.vlgmr.msra.gmra.mxu1 %vm999_vm0, %v2320_v6  ;;  %v2328_v15 = vor.u32 %v2932_v13, %v2325_v14  ;;  %v2592_v21 = vor.u32 %v2998_v17, %v2589_v18  ;;  %v2931_v22 = vld [vmem:[%s3143_s26 + $0x4] sm:$0xf0]  ;;  %v2571_v23 = vld [vmem:[%s3143_s26 + $0x200] sm:$0xf]  ;;  %v2934_v27 = vld [vmem:[%s3143_s26 + $0x24] sm:$0xf] }
  0x12   : > { %2894 = vmatmul.msk.bf16.vlgmr.msra.gmra.mxu3 %vm999_vm0, %v2584_v10  ;;  %v2995_v24 = vld [vmem:[%s3143_s26 + $0x204] sm:$0xf0]  ;;  %v2316_v25 = vor.u32 %v2931_v22, %v2315_v20  ;;  %v2333_v28 = vld [vmem:[%s3143_s26 + $0x28] sm:$0xf0]  ;;  %v3000_v30 = vld [vmem:[%s3143_s26 + $0x234] sm:$0xf] }
  0x13   : > { %v2572_v26 = vor.u32 %v2995_v24, %v2571_v23  ;;  %v2336_v29 = vor.u32 %v2934_v27, %v2333_v28  ;;  %v2597_v31 = vld [vmem:[%s3143_s26 + $0x238] sm:$0xf0]  ;;  %v2323_v32 = vld [vmem:[%s3143_s26 + $0x10] sm:$0xf]  ;;  %v2933_v34 = vld [vmem:[%s3143_s26 + $0x14] sm:$0xf0] }
  0x14   : > { %1194 = vmatpush.bf16.msra.mxu0 %v3063_v5  ;;  %3069 = vmatpush.bf16.msra.mxu2 %v3063_v5  ;;  %v2600_v33 = vor.u32 %v3000_v30, %v2597_v31  ;;  %v2579_v35 = vld [vmem:[%s3143_s26 + $0x210] sm:$0xf]  ;;  %v2997_v36 = vld [vmem:[%s3143_s26 + $0x214] sm:$0xf0]  ;;  %v2324_v37 = vor.u32 %v2933_v34, %v2323_v32  ;;  %v2936_v39 = vld [vmem:[%s3143_s26 + $0x34] sm:$0xf] }
  0x15   : > { %v2580_v38 = vor.u32 %v2997_v36, %v2579_v35  ;;  %v2341_v40 = vld [vmem:[%s3143_s26 + $0x38] sm:$0xf0]  ;;  %v3002_v42 = vld [vmem:[%s3143_s26 + $0x244] sm:$0xf]  ;;  %v2605_v43 = vld [vmem:[%s3143_s26 + $0x248] sm:$0xf0] }
  0x16   : > { %v2344_v41 = vor.u32 %v2936_v39, %v2341_v40  ;;  %v2331_v44 = vld [vmem:[%s3143_s26 + $0x20] sm:$0xf]  ;;  %v2608_v45 = vor.u32 %v3002_v42, %v2605_v43  ;;  %v2935_v46 = vld [vmem:[%s3143_s26 + $0x24] sm:$0xf0]  ;;  %v2938_v51 = vld [vmem:[%s3143_s26 + $0x44] sm:$0xf] }
  0x17   : > { %v2587_v47 = vld [vmem:[%s3143_s26 + $0x220] sm:$0xf]  ;;  %v2999_v48 = vld [vmem:[%s3143_s26 + $0x224] sm:$0xf0]  ;;  %v2332_v49 = vor.u32 %v2935_v46, %v2331_v44  ;;  %v2349_v52 = vld [vmem:[%s3143_s26 + $0x48] sm:$0xf0] }
  0x18   : > { %1195 = vmatpush.bf16.msra.mxu0 %v3062_v9  ;;  %3070 = vmatpush.bf16.msra.mxu2 %v3062_v9  ;;  %v2588_v50 = vor.u32 %v2999_v48, %v2587_v47  ;;  %v2352_v53 = vor.u32 %v2938_v51, %v2349_v52  ;;  %v3004_v54 = vld [vmem:[%s3143_s26 + $0x254] sm:$0xf]  ;;  %v2613_v55 = vld [vmem:[%s3143_s26 + $0x258] sm:$0xf0]  ;;  %v2339_v56 = vld [vmem:[%s3143_s26 + $0x30] sm:$0xf] }
  0x19   : > { %v2616_v57 = vor.u32 %v3004_v54, %v2613_v55  ;;  %v2937_v58 = vld [vmem:[%s3143_s26 + $0x34] sm:$0xf0]  ;;  %v2595_v59 = vld [vmem:[%s3143_s26 + $0x230] sm:$0xf]  ;;  %v2940_v63 = vld [vmem:[%s3143_s26 + $0x54] sm:$0xf] }
  0x1a   : > { %v3001_v60 = vld [vmem:[%s3143_s26 + $0x234] sm:$0xf0]  ;;  %v2340_v61 = vor.u32 %v2937_v58, %v2339_v56  ;;  %v2357_v0 = vld [vmem:[%s3143_s26 + $0x58] sm:$0xf0]  ;;  %v3006_v2 = vld [vmem:[%s3143_s26 + $0x264] sm:$0xf] }
  0x1b   : > { %v2596_v62 = vor.u32 %v3001_v60, %v2595_v59  ;;  %v2360_v1 = vor.u32 %v2940_v63, %v2357_v0  ;;  %v2621_v3 = vld [vmem:[%s3143_s26 + $0x268] sm:$0xf0]  ;;  %v2347_v4 = vld [vmem:[%s3143_s26 + $0x40] sm:$0xf]  ;;  %v2939_v6 = vld [vmem:[%s3143_s26 + $0x44] sm:$0xf0] }
  0x1c   : > { %1196 = vmatpush.bf16.msra.mxu0 %v3061_v11  ;;  %3071 = vmatpush.bf16.msra.mxu2 %v3061_v11  ;;  %v2624_v5 = vor.u32 %v3006_v2, %v2621_v3  ;;  %v2603_v7 = vld [vmem:[%s3143_s26 + $0x240] sm:$0xf]  ;;  %v3003_v8 = vld [vmem:[%s3143_s26 + $0x244] sm:$0xf0]  ;;  %v2348_v9 = vor.u32 %v2939_v6, %v2347_v4  ;;  %v2942_v11 = vld [vmem:[%s3143_s26 + $0x64] sm:$0xf] }
  0x1d   : > { %v2604_v10 = vor.u32 %v3003_v8, %v2603_v7  ;;  %v3008_v14 = vld [vmem:[%s3143_s26 + $0x274] sm:$0xf]  ;;  %v2941_v18 = vld [vmem:[%s3143_s26 + $0x54] sm:$0xf0]  ;;  %v2373_v24 = vld [vmem:[%s3143_s26 + $0x78] sm:$0xf0] }
  0x1e   : > { %v3005_v20 = vld [vmem:[%s3143_s26 + $0x254] sm:$0xf0]  ;;  %v2944_v23 = vld [vmem:[%s3143_s26 + $0x74] sm:$0xf]  ;;  %v2637_v27 = vld [vmem:[%s3143_s26 + $0x288] sm:$0xf0] }
  0x1f   : > { %v2363_v28 = vld [vmem:[%s3143_s26 + $0x60] sm:$0xf]  ;;  %v2943_v30 = vld [vmem:[%s3143_s26 + $0x64] sm:$0xf0]  ;;  %v2946_v35 = vld [vmem:[%s3143_s26 + $0x84] sm:$0xf] }
  0x20   : > { %1197 = vmatpush.bf16.msra.mxu0 %v3060_v12  ;;  %3072 = vmatpush.bf16.msra.mxu2 %v3060_v12  ;;  %v2365_v12 = vld [vmem:[%s3143_s26 + $0x68] sm:$0xf0]  ;;  %v2619_v31 = vld [vmem:[%s3143_s26 + $0x260] sm:$0xf]  ;;  %v3007_v32 = vld [vmem:[%s3143_s26 + $0x264] sm:$0xf0] }
  0x21   : > { %2862 = vmatmul.msk.bf16.gmra.mxu1 %vm999_vm0, %v2328_v15  ;;  %v2368_v13 = vor.u32 %v2942_v11, %v2365_v12  ;;  %v2629_v15 = vld [vmem:[%s3143_s26 + $0x278] sm:$0xf0]  ;;  %v2620_v34 = vor.u32 %v3007_v32, %v2619_v31  ;;  %v2381_v36 = vld [vmem:[%s3143_s26 + $0x88] sm:$0xf0]  ;;  %v3012_v39 = vld [vmem:[%s3143_s26 + $0x294] sm:$0xf] }
  0x22   : > { %2895 = vmatmul.msk.bf16.gmra.mxu3 %vm999_vm0, %v2592_v21  ;;  %v2632_v17 = vor.u32 %v3008_v14, %v2629_v15  ;;  %v2645_v40 = vld [vmem:[%s3143_s26 + $0x298] sm:$0xf0]  ;;  %v2945_v43 = vld [vmem:[%s3143_s26 + $0x74] sm:$0xf0]  ;;  %v2627_v44 = vld [vmem:[%s3143_s26 + $0x270] sm:$0xf] }
  0x23   : > { %v2648_v42 = vor.u32 %v3012_v39, %v2645_v40  ;;  %v2389_v51 = vld [vmem:[%s3143_s26 + $0x98] sm:$0xf0]  ;;  %v3014_v55 = vld [vmem:[%s3143_s26 + $0x2a4] sm:$0xf]  ;;  %v2653_v56 = vld [vmem:[%s3143_s26 + $0x2a8] sm:$0xf0] }
  0x24   : > { %1198 = vmatpush.bf16.msra.mxu0 %v3059_v16  ;;  %3073 = vmatpush.bf16.msra.mxu2 %v3059_v16  ;;  %v2355_v16 = vld [vmem:[%s3143_s26 + $0x50] sm:$0xf]  ;;  %v2656_v58 = vor.u32 %v3014_v55, %v2653_v56  ;;  %v2947_v59 = vld [vmem:[%s3143_s26 + $0x84] sm:$0xf0]  ;;  %v2635_v60 = vld [vmem:[%s3143_s26 + $0x280] sm:$0xf] }
  0x25   : > { %v2356_v21 = vor.u32 %v2941_v18, %v2355_v16  ;;  %v2950_v3 = vld [vmem:[%s3143_s26 + $0xa4] sm:$0xf]  ;;  %v2397_v4 = vld [vmem:[%s3143_s26 + $0xa8] sm:$0xf0]  ;;  %v2661_v11 = vld [vmem:[%s3143_s26 + $0x2b8] sm:$0xf0] }
  0x26   : > { %v2400_v6 = vor.u32 %v2950_v3, %v2397_v4  ;;  %v2387_v12 = vld [vmem:[%s3143_s26 + $0x90] sm:$0xf]  ;;  %v2949_v14 = vld [vmem:[%s3143_s26 + $0x94] sm:$0xf0]  ;;  %v2651_v39 = vld [vmem:[%s3143_s26 + $0x2a0] sm:$0xf] }
  0x27   : > { %v2643_v15 = vld [vmem:[%s3143_s26 + $0x290] sm:$0xf]  ;;  %v3013_v16 = vld [vmem:[%s3143_s26 + $0x294] sm:$0xf0]  ;;  %v2388_v18 = vor.u32 %v2949_v14, %v2387_v12  ;;  %v3015_v40 = vld [vmem:[%s3143_s26 + $0x2a4] sm:$0xf0] }
  0x28   : > { %1199 = vmatpush.bf16.msra.mxu0 %v3058_v19  ;;  %3074 = vmatpush.bf16.msra.mxu2 %v3058_v19  ;;  %v2611_v19 = vld [vmem:[%s3143_s26 + $0x250] sm:$0xf]  ;;  %v2953_v4 = vld [vmem:[%s3143_s26 + $0xb4] sm:$0xf0] }
  0x29   : > { %v2612_v22 = vor.u32 %v3005_v20, %v2611_v19  ;;  %v2644_v19 = vor.u32 %v3013_v16, %v2643_v15 }
  0x2b   : > { %1200 = vmatmul.bf16.vlgmr.msra.gmra.mxu0 %v2316_v25  ;;  %1360 = vmatmul.bf16.vlgmr.msra.gmra.mxu2 %v2572_v26  ;;  %v2376_v25 = vor.u32 %v2944_v23, %v2373_v24  ;;  %v3010_v26 = vld [vmem:[%s3143_s26 + $0x284] sm:$0xf]  ;;  %v2952_v23 = vld [vmem:[%s3143_s26 + $0xb4] sm:$0xf]  ;;  %v2405_v24 = vld [vmem:[%s3143_s26 + $0xb8] sm:$0xf0] }
  0x31   : > { %2863 = vmatmul.msk.bf16.gmra.mxu1 %vm999_vm0, %v2336_v29  ;;  %v2640_v29 = vor.u32 %v3010_v26, %v2637_v27 }
  0x32   : > { %2896 = vmatmul.msk.bf16.gmra.mxu3 %vm999_vm0, %v2600_v33  ;;  %v2364_v33 = vor.u32 %v2943_v30, %v2363_v28  ;;  %v2408_v28 = vor.u32 %v2952_v23, %v2405_v24 }
  0x3b   : > { %1205 = vmatmul.bf16.gmra.mxu0 %v2324_v37  ;;  %1365 = vmatmul.bf16.gmra.mxu2 %v2580_v38  ;;  %v2384_v37 = vor.u32 %v2946_v35, %v2381_v36  ;;  %v2395_v35 = vld [vmem:[%s3143_s26 + $0xa0] sm:$0xf] }
  0x41   : > { %2864 = vmatmul.msk.bf16.gmra.mxu1 %vm999_vm0, %v2344_v41  ;;  %v2371_v41 = vld [vmem:[%s3143_s26 + $0x70] sm:$0xf] }
  0x42   : > { %2897 = vmatmul.msk.bf16.gmra.mxu3 %vm999_vm0, %v2608_v45  ;;  %v3009_v45 = vld [vmem:[%s3143_s26 + $0x274] sm:$0xf0]  ;;  %v2372_v46 = vor.u32 %v2945_v43, %v2371_v41 }
  0x43   : > { %v2628_v47 = vor.u32 %v3009_v45, %v2627_v44  ;;  %v2652_v44 = vor.u32 %v3015_v40, %v2651_v39 }
  0x4b   : > { %1210 = vmatmul.bf16.gmra.mxu0 %v2332_v49  ;;  %1370 = vmatmul.bf16.gmra.mxu2 %v2588_v50  ;;  %v2948_v50 = vld [vmem:[%s3143_s26 + $0x94] sm:$0xf] }
  0x4c   : > { %v2392_v52 = vor.u32 %v2948_v50, %v2389_v51  ;;  %v2954_v50 = vld [vmem:[%s3143_s26 + $0xc4] sm:$0xf]  ;;  %v2413_v51 = vld [vmem:[%s3143_s26 + $0xc8] sm:$0xf0] }
  0x4d   : > { %v2416_v56 = vor.u32 %v2954_v50, %v2413_v51 }
  0x51   : > { %2865 = vmatmul.msk.bf16.gmra.mxu1 %vm999_vm0, %v2352_v53 }
  0x52   : > { %2898 = vmatmul.msk.bf16.gmra.mxu3 %vm999_vm0, %v2616_v57  ;;  %v2379_v57 = vld [vmem:[%s3143_s26 + $0x80] sm:$0xf] }
  0x5b   : > { %1215 = vmatmul.bf16.gmra.mxu0 %v2340_v61  ;;  %1375 = vmatmul.bf16.gmra.mxu2 %v2596_v62  ;;  %v3011_v61 = vld [vmem:[%s3143_s26 + $0x284] sm:$0xf0]  ;;  %v2380_v62 = vor.u32 %v2947_v59, %v2379_v57 }
  0x5c   : > { %v2636_v63 = vor.u32 %v3011_v61, %v2635_v60  ;;  %v3020_v60 = vld [vmem:[%s3143_s26 + $0x2d4] sm:$0xf]  ;;  %v2677_v61 = vld [vmem:[%s3143_s26 + $0x2d8] sm:$0xf0] }
  0x5d   : > { %v2680_v3 = vor.u32 %v3020_v60, %v2677_v61  ;;  %v2685_v60 = vld [vmem:[%s3143_s26 + $0x2e8] sm:$0xf0] }
  0x61   : > { %2866 = vmatmul.msk.bf16.gmra.mxu1 %vm999_vm0, %v2360_v1 }
  0x62   : > { %2899 = vmatmul.msk.bf16.gmra.mxu3 %vm999_vm0, %v2624_v5 }
  0x6b   : > { %1220 = vmatmul.bf16.gmra.mxu0 %v2348_v9  ;;  %1380 = vmatmul.bf16.gmra.mxu2 %v2604_v10  ;;  %v3016_v10 = vld [vmem:[%s3143_s26 + $0x2b4] sm:$0xf] }
  0x71   : > { %2867 = vmatmul.msk.bf16.gmra.mxu1 %vm999_vm0, %v2368_v13  ;;  %v2664_v13 = vor.u32 %v3016_v10, %v2661_v11  ;;  %v3017_v10 = vld [vmem:[%s3143_s26 + $0x2b4] sm:$0xf0] }
  0x72   : > { %2900 = vmatmul.msk.bf16.gmra.mxu3 %vm999_vm0, %v2632_v17 }
  0x7b   : > { %1225 = vmatmul.bf16.gmra.mxu0 %v2356_v21  ;;  %1385 = vmatmul.bf16.gmra.mxu2 %v2612_v22 }
  0x81   : > { %2868 = vmatmul.msk.bf16.gmra.mxu1 %vm999_vm0, %v2376_v25  ;;  %v3302_v25 = vld [vmem:[%s4170_s2] ss:$0 sm:$0xff] }
  0x82   : > { %2901 = vmatmul.msk.bf16.gmra.mxu3 %vm999_vm0, %v2640_v29 }
  0x8b   : > { %1230 = vmatmul.bf16.gmra.mxu0 %v2364_v33  ;;  %1390 = vmatmul.bf16.gmra.mxu2 %v2620_v34  ;;  %v3018_v33 = vld [vmem:[%s3143_s26 + $0x2c4] sm:$0xf]  ;;  %v2669_v34 = vld [vmem:[%s3143_s26 + $0x2c8] sm:$0xf0] }
  0x8c   : > { %v2672_v36 = vor.u32 %v3018_v33, %v2669_v34 }
  0x8e   : > { %v3241_v38 = vpop.f32.mrf.mxu1 }
  0x91   : > { %2869 = vmatmul.msk.bf16.gmra.mxu1 %vm999_vm0, %v2384_v37  ;;  %v2951_v37 = vld [vmem:[%s3143_s26 + $0xa4] sm:$0xf0] }
  0x92   : > { %2902 = vmatmul.msk.bf16.gmra.mxu3 %vm999_vm0, %v2648_v42  ;;  %v2396_v43 = vor.u32 %v2951_v37, %v2395_v35  ;;  %v2074_v37 = vld [vmem:[%s3368_s20] sm:$0xff] }
  0x93   : > { %vm2106_vm1 = vcmp.ge.f32.partialorder %v2074_v37, 0.5  ;;  %v3024_v37 = vld [vmem:[%s3143_s26 + $0x2f4] sm:$0xf] }
  0x95   : > { %v1695_v49 = vpop.f32.mrf.mxu3 }
  0x96   : > { %v3251_v48 = vpop.f32.mrf.mxu1 }
  0x9b   : > { %1235 = vmatmul.bf16.gmra.mxu0 %v2372_v46  ;;  %1395 = vmatmul.bf16.gmra.mxu2 %v2628_v47 }
  0x9d   : > { %v3257_v54 = vpop.f32.mrf.mxu3 }
  0x9e   : > { %v3255_v53 = vpop.f32.mrf.mxu1 }
  0xa1   : > { %2870 = vmatmul.msk.bf16.gmra.mxu1 %vm999_vm0, %v2392_v52 }
  0xa2   : > { %2903 = vmatmul.msk.bf16.gmra.mxu3 %vm999_vm0, %v2656_v58 }
  0xa5   : > { %v3271_v2 = vpop.f32.mrf.mxu3 }
  0xa6   : > { %v3267_v0 = vpop.f32.mrf.mxu1 }
  0xa8   : > { %v3269_v1 = vpop.f32.mrf.mxu0 }
  0xa9   : > { %v1202_v11 = vadd.f32 %v3302_v25, %v3269_v1 }
  0xab   : > { %1240 = vmatmul.bf16.gmra.mxu0 %v2380_v62  ;;  %1400 = vmatmul.bf16.gmra.mxu2 %v2636_v63  ;;  %v2403_v63 = vld [vmem:[%s3143_s26 + $0xb0] sm:$0xf]  ;;  %v1531_v23 = vadd.f32 %v3241_v38, %v1202_v11 }
  0xac   : > { %v2404_v15 = vor.u32 %v2953_v4, %v2403_v63  ;;  %v3019_v4 = vld [vmem:[%s3143_s26 + $0x2c4] sm:$0xf0] }
  0xad   : > { %v3281_v9 = vpop.f32.mrf.mxu3  ;;  %v1850_v33 = vmax.f32 %v1531_v23, 0.0 }
  0xae   : > { %v3275_v5 = vpop.f32.mrf.mxu2  ;;  %v3277_v7 = vpop.f32.mrf.mxu1 }
  0xb0   : > { %v3279_v8 = vpop.f32.mrf.mxu0 }
  0xb1   : > { %2871 = vmatmul.msk.bf16.gmra.mxu1 %vm999_vm0, %v2400_v6  ;;  %v2659_v6 = vld [vmem:[%s3143_s26 + $0x2b0] sm:$0xf] }
  0xb2   : > { %2904 = vmatmul.msk.bf16.gmra.mxu3 %vm999_vm0, %v2664_v13  ;;  %v2660_v16 = vor.u32 %v3017_v10, %v2659_v6 }
  0xb5   : > { %v3295_v22 = vpop.f32.mrf.mxu3 }
  0xb6   : > { %v3290_v17 = vpop.f32.mrf.mxu2  ;;  %v3293_v20 = vpop.f32.mrf.mxu1 }
  0xb8   : > { %v1206_v21 = vpop.f32.mrf.mxu0 }
  0xb9   : > { %v1207_v62 = vadd.f32 %v3302_v25, %v1206_v21 }
  0xbb   : > { %1245 = vmatmul.bf16.gmra.mxu0 %v2388_v18  ;;  %1405 = vmatmul.bf16.gmra.mxu2 %v2644_v19  ;;  %v1536_v13 = vadd.f32 %v3255_v53, %v1207_v62  ;;  %v1204_v18 = vadd.f32 %v3302_v25, %v3279_v8  ;;  %v2411_v62 = vld [vmem:[%s3143_s26 + $0xc0] sm:$0xf] }
  0xbd   : > { %v3307_v32 = vpop.f32.mrf.mxu3  ;;  %v1852_v8 = vmax.f32 %v1536_v13, 0.0  ;;  %v1533_v38 = vadd.f32 %v3251_v48, %v1204_v18 }
  0xbe   : > { %v1366_v26 = vpop.f32.mrf.mxu2  ;;  %v1545_v29 = vpop.f32.mrf.mxu1 }
  0xbf   : > { %v1367_v27 = vadd.f32 %v3302_v25, %v1366_v26  ;;  %v1978_v40 = vmax.f32 %v1850_v33, %v1852_v8  ;;  %v1851_v48 = vmax.f32 %v1533_v38, 0.0 }
  0xc0   : > { %v1208_v30 = vpop.f32.mrf.mxu0 }
  0xc1   : > { %v3305_v31 = vadd.f32 %v1695_v49, %v1367_v27  ;;  %2872 = vmatmul.msk.bf16.gmra.mxu1 %vm999_vm0, %v2408_v28  ;;  %v1209_v19 = vadd.f32 %v3302_v25, %v1208_v30  ;;  %v2421_v30 = vld [vmem:[%s3143_s26 + $0xd8] sm:$0xf0] }
  0xc2   : > { %2905 = vmatmul.msk.bf16.gmra.mxu3 %vm999_vm0, %v2672_v36 }
  0xc5   : > { %v3323_v49 = vpop.f32.mrf.mxu3 }
  0xc6   : > { %v1368_v41 = vpop.f32.mrf.mxu2  ;;  %v3318_v45 = vpop.f32.mrf.mxu1 }
  0xc7   : > { %v1369_v42 = vadd.f32 %v3302_v25, %v1368_v41 }
  0xc8   : > { %v1211_v46 = vpop.f32.mrf.mxu0 }
  0xc9   : > { %v3321_v47 = vadd.f32 %v3257_v54, %v1369_v42 }
  0xcb   : > { %1250 = vmatmul.bf16.gmra.mxu0 %v2396_v43  ;;  %1410 = vmatmul.bf16.gmra.mxu2 %v2652_v44 }
  0xcd   : > { %v3333_v59 = vpop.f32.mrf.mxu3 }
  0xce   : > { %v1371_v52 = vpop.f32.mrf.mxu2  ;;  %v3328_v57 = vpop.f32.mrf.mxu1 }
  0xcf   : > { %v1372_v55 = vadd.f32 %v3302_v25, %v1371_v52 }
  0xd0   : > { %v1213_v58 = vpop.f32.mrf.mxu0 }
  0xd1   : > { %v3331_v54 = vadd.f32 %v3271_v2, %v1372_v55  ;;  %2873 = vmatmul.msk.bf16.gmra.mxu1 %vm999_vm0, %v2416_v56  ;;  %v1212_v2 = vadd.f32 %v3302_v25, %v1211_v46  ;;  %v1214_v35 = vadd.f32 %v3302_v25, %v1213_v58  ;;  %v3022_v58 = vld [vmem:[%s3143_s26 + $0x2e4] sm:$0xf] }
  0xd2   : > { %2906 = vmatmul.msk.bf16.gmra.mxu3 %vm999_vm0, %v2680_v3  ;;  %v2688_v63 = vor.u32 %v3022_v58, %v2685_v60  ;;  %v2667_v3 = vld [vmem:[%s3143_s26 + $0x2c0] sm:$0xf]  ;;  %v2437_v58 = vld [vmem:[%s3143_s26 + $0xf8] sm:$0xf0] }
  0xd3   : > { %v1541_v24 = vadd.f32 %v3277_v7, %v1212_v2  ;;  %v1538_v7 = vadd.f32 %v3267_v0, %v1209_v19  ;;  %v1543_v46 = vadd.f32 %v3293_v20, %v1214_v35  ;;  %v1918_v56 = vmax.f32 %v3331_v54, 0.0  ;;  %v2955_v54 = vld [vmem:[%s3143_s26 + $0xc4] sm:$0xf0] }
  0xd4   : > { %v2668_v18 = vor.u32 %v3019_v4, %v2667_v3  ;;  %v2427_v3 = vld [vmem:[%s3143_s26 + $0xe0] sm:$0xf] }
  0xd5   : > { %v3361_v27 = vpop.f32.mrf.mxu3  ;;  %v1854_v34 = vmax.f32 %v1541_v24, 0.0  ;;  %v1853_v43 = vmax.f32 %v1538_v7, 0.0  ;;  %v1855_v6 = vmax.f32 %v1543_v46, 0.0  ;;  %v2958_v7 = vld [vmem:[%s3143_s26 + $0xe4] sm:$0xf] }
  0xd6   : > { %v1373_v12 = vpop.f32.mrf.mxu2  ;;  %v3353_v1 = vpop.f32.mrf.mxu1 }
  0xd7   : > { %v1374_v14 = vadd.f32 %v3302_v25, %v1373_v12  ;;  %v1979_v12 = vmax.f32 %v1851_v48, %v1853_v43  ;;  %v3021_v48 = vld [vmem:[%s3143_s26 + $0x2d4] sm:$0xf0] }
  0xd8   : > { %v1216_v21 = vpop.f32.mrf.mxu0 }
  0xd9   : > { %v3358_v53 = vadd.f32 %v3281_v9, %v1374_v14  ;;  %v1217_v26 = vadd.f32 %v3302_v25, %v1216_v21  ;;  %v2956_v9 = vld [vmem:[%s3143_s26 + $0xd4] sm:$0xf]  ;;  %v2075_v14 = vld [vmem:[%s3368_s20 + $0x8] sm:$0xff] }
  0xda   : > { %v2424_v42 = vor.u32 %v2956_v9, %v2421_v30  ;;  %vm2107_vm3 = vcmp.ge.f32.partialorder %v2075_v14, 0.5  ;;  %v2429_v9 = vld [vmem:[%s3143_s26 + $0xe8] sm:$0xf0] }
  0xdb   : > { %v1546_v28 = vadd.f32 %v1545_v29, %v1217_v26  ;;  %1255 = vmatmul.bf16.gmra.mxu0 %v2404_v15  ;;  %1415 = vmatmul.bf16.gmra.mxu2 %v2660_v16  ;;  %v2412_v16 = vor.u32 %v2955_v54, %v2411_v62  ;;  %v1919_v8 = vmax.f32 %v3358_v53, 0.0  ;;  %v2701_v54 = vld [vmem:[%s3143_s26 + $0x308] sm:$0xf0] }
  0xdd   : > { %v1856_v36 = vmax.f32 %v1546_v28, 0.0  ;;  %v3382_v55 = vpop.f32.mrf.mxu3 }
  0xde   : > { %v1376_v39 = vpop.f32.mrf.mxu2  ;;  %v3377_v0 = vpop.f32.mrf.mxu1 }
  0xdf   : > { %v2010_v41 = vmax.f32 %v1854_v34, %v1856_v36  ;;  %v1377_v29 = vadd.f32 %v3302_v25, %v1376_v39  ;;  %v2432_v34 = vor.u32 %v2958_v7, %v2429_v9  ;;  %v2693_v39 = vld [vmem:[%s3143_s26 + $0x2f8] sm:$0xf0]  ;;  %v3028_v9 = vld [vmem:[%s3143_s26 + $0x314] sm:$0xf] }
  0xe0   : > { %v1218_v44 = vpop.f32.mrf.mxu0 }
  0xe1   : > { %v2042_v50 = vmax.f32 %v1978_v40, %v2010_v41  ;;  %v1706_v51 = vadd.f32 %v3295_v22, %v1377_v29  ;;  %v1219_v52 = vadd.f32 %v3302_v25, %v1218_v44  ;;  %2874 = vmatmul.msk.bf16.gmra.mxu1 %vm999_vm0, %v2424_v42  ;;  %v2419_v40 = vld [vmem:[%s3143_s26 + $0xd0] sm:$0xf]  ;;  %v2696_v41 = vor.u32 %v3024_v37, %v2693_v39  ;;  %v2957_v29 = vld [vmem:[%s3143_s26 + $0xd4] sm:$0xf0] }
  0xe2   : > { %2907 = vmatmul.msk.bf16.gmra.mxu3 %vm999_vm0, %v2688_v63  ;;  %v2675_v42 = vld [vmem:[%s3143_s26 + $0x2d0] sm:$0xf]  ;;  %v2420_v44 = vor.u32 %v2957_v29, %v2419_v40  ;;  %v3026_v63 = vld [vmem:[%s3143_s26 + $0x304] sm:$0xf]  ;;  %v2961_v40 = vld [vmem:[%s3143_s26 + $0xf4] sm:$0xf0] }
  0xe3   : > { %v2138_v20 = vmul.f32 2.0, %v2042_v50  ;;  %v1920_v61 = vmax.f32 %v1706_v51, 0.0  ;;  %v1548_v22 = vadd.f32 %v3318_v45, %v1219_v52  ;;  %v2676_v46 = vor.u32 %v3021_v48, %v2675_v42  ;;  %v2435_v37 = vld [vmem:[%s3143_s26 + $0xf0] sm:$0xf]  ;;  %v3025_v29 = vld [vmem:[%s3143_s26 + $0x2f4] sm:$0xf0] }
  0xe4   : > { %v2704_v4 = vor.u32 %v3026_v63, %v2701_v54 }
  0xe5   : > { %v2170_v10 = vsel %vm2106_vm1, %v2138_v20, 0.0  ;;  %v3401_v11 = vmax.f32 %v1918_v56, %v1920_v61  ;;  %v1857_v2 = vmax.f32 %v1548_v22, 0.0  ;;  %v3413_v26 = vpop.f32.mrf.mxu3  ;;  %v2960_v56 = vld [vmem:[%s3143_s26 + $0xf4] sm:$0xf] }
  0xe6   : > { %2203 = vst.msk [vmem:[%s3392_s23] sm:$0xff] %vm2202_vm2, %v2170_v10  ;;  %v1378_v13 = vpop.f32.mrf.mxu2  ;;  %v3408_v19 = vpop.f32.mrf.mxu1  ;;  %v2440_v20 = vor.u32 %v2960_v56, %v2437_v58  ;;  %v2683_v10 = vld [vmem:[%s3143_s26 + $0x2e0] sm:$0xf]  ;;  %v2436_v56 = vor.u32 %v2961_v40, %v2435_v37 }
  0xe7   : > { %v2011_v45 = vmax.f32 %v1855_v6, %v1857_v2  ;;  %v1379_v15 = vadd.f32 %v3302_v25, %v1378_v13  ;;  %v2959_v6 = vld [vmem:[%s3143_s26 + $0xe4] sm:$0xf0] }
  0xe8   : > { %v3410_v21 = vpop.f32.mrf.mxu0  ;;  %v3023_v2 = vld [vmem:[%s3143_s26 + $0x2e4] sm:$0xf0]  ;;  %v2428_v13 = vor.u32 %v2959_v6, %v2427_v3 }
  0xe9   : > { %v2043_v23 = vmax.f32 %v1979_v12, %v2011_v45  ;;  %v1708_v24 = vadd.f32 %v3307_v32, %v1379_v15  ;;  %v2684_v45 = vor.u32 %v3023_v2, %v2683_v10  ;;  %v1222_v42 = vadd.f32 %v3302_v25, %v3410_v21 }
  0xeb   : > { %v2139_v28 = vmul.f32 2.0, %v2043_v23  ;;  %v1921_v38 = vmax.f32 %v1708_v24, 0.0  ;;  %1260 = vmatmul.bf16.gmra.mxu0 %v2412_v16  ;;  %1420 = vmatmul.bf16.gmra.mxu2 %v2668_v18  ;;  %v2962_v18 = vld [vmem:[%s3143_s26 + $0x104] sm:$0xf]  ;;  %v2445_v23 = vld [vmem:[%s3143_s26 + $0x108] sm:$0xf0]  ;;  %v1551_v21 = vadd.f32 %v3328_v57, %v1222_v42 }
  0xed   : > { %v2171_v30 = vsel %vm2107_vm3, %v2139_v28, 0.0  ;;  %v3418_v33 = vmax.f32 %v1919_v8, %v1921_v38  ;;  %v3428_v36 = vpop.f32.mrf.mxu3  ;;  %v2448_v8 = vor.u32 %v2962_v18, %v2445_v23 }
  0xee   : > { %2204 = vst.msk [vmem:[%s3392_s23 + $0x8] sm:$0xff] %vm2202_vm2, %v2171_v30  ;;  %v3422_v32 = vpop.f32.mrf.mxu2  ;;  %v3424_v53 = vpop.f32.mrf.mxu1  ;;  %v2709_v30 = vld [vmem:[%s3143_s26 + $0x318] sm:$0xf0] }
  0xef   : > { %v2712_v39 = vor.u32 %v3028_v9, %v2709_v30 }
  0xf0   : > { %v3426_v35 = vpop.f32.mrf.mxu0 }
  0xf1   : > { %2875 = vmatmul.msk.bf16.gmra.mxu1 %vm999_vm0, %v2432_v34  ;;  %v1224_v6 = vadd.f32 %v3302_v25, %v3426_v35 }
  0xf2   : > { %2908 = vmatmul.msk.bf16.gmra.mxu3 %vm999_vm0, %v2696_v41  ;;  %v2691_v41 = vld [vmem:[%s3143_s26 + $0x2f0] sm:$0xf] }
  0xf3   : > { %v2692_v58 = vor.u32 %v3025_v29, %v2691_v41  ;;  %v1553_v35 = vadd.f32 %v3353_v1, %v1224_v6 }
  0xf5   : > { %v3442_v52 = vpop.f32.mrf.mxu3 }
  0xf6   : > { %v3437_v43 = vpop.f32.mrf.mxu2  ;;  %v3440_v50 = vpop.f32.mrf.mxu1 }
  0xf8   : > { %v1226_v51 = vpop.f32.mrf.mxu0 }
  0xf9   : > { %v1227_v34 = vadd.f32 %v3302_v25, %v1226_v51 }
  0xfb   : > { %1265 = vmatmul.bf16.gmra.mxu0 %v2420_v44  ;;  %1425 = vmatmul.bf16.gmra.mxu2 %v2676_v46  ;;  %v1382_v44 = vadd.f32 %v3302_v25, %v3422_v32  ;;  %v1556_v51 = vadd.f32 %v3377_v0, %v1227_v34 }
  0xfd   : > { %v3446_v62 = vpop.f32.mrf.mxu3  ;;  %v1711_v0 = vadd.f32 %v3323_v49, %v1382_v44  ;;  %v1860_v2 = vmax.f32 %v1556_v51, 0.0 }
  0xfe   : > { %v1386_v60 = vpop.f32.mrf.mxu2  ;;  %v1565_v61 = vpop.f32.mrf.mxu1 }
  0xff   : > { %v1922_v9 = vmax.f32 %v1711_v0, 0.0  ;;  %v1859_v0 = vmax.f32 %v1553_v35, 0.0 }
 0x100   : > { %v1228_v22 = vpop.f32.mrf.mxu0 }
 0x101   : > { %2876 = vmatmul.msk.bf16.gmra.mxu1 %vm999_vm0, %v2440_v20  ;;  %v1387_v20 = vadd.f32 %v3302_v25, %v1386_v60  ;;  %v1229_v60 = vadd.f32 %v3302_v25, %v1228_v22 }
 0x102   : > { %2909 = vmatmul.msk.bf16.gmra.mxu3 %vm999_vm0, %v2704_v4 }
 0x103   : > { %v1716_v57 = vadd.f32 %v3361_v27, %v1387_v20  ;;  %v1558_v22 = vadd.f32 %v3408_v19, %v1229_v60  ;;  %v2717_v20 = vld [vmem:[%s3143_s26 + $0x328] sm:$0xf0] }
 0x105   : > { %v3460_v16 = vpop.f32.mrf.mxu3  ;;  %v1861_v51 = vmax.f32 %v1558_v22, 0.0 }
 0x106   : > { %v3455_v12 = vpop.f32.mrf.mxu2  ;;  %v3458_v14 = vpop.f32.mrf.mxu1 }
 0x107   : > { %v1389_v1 = vadd.f32 %v3302_v25, %v3455_v12 }
 0x108   : > { %v1231_v15 = vpop.f32.mrf.mxu0 }
 0x109   : > { %v1232_v48 = vadd.f32 %v3302_v25, %v1231_v15  ;;  %v1858_v15 = vmax.f32 %v1551_v21, 0.0 }
 0x10b   : > { %1270 = vmatmul.bf16.gmra.mxu0 %v2428_v13  ;;  %1430 = vmatmul.bf16.gmra.mxu2 %v2684_v45  ;;  %v1561_v3 = vadd.f32 %v3424_v53, %v1232_v48  ;;  %v2964_v53 = vld [vmem:[%s3143_s26 + $0x114] sm:$0xf]  ;;  %v2453_v45 = vld [vmem:[%s3143_s26 + $0x118] sm:$0xf0]  ;;  %v1980_v30 = vmax.f32 %v1858_v15, %v1860_v2  ;;  %v2963_v48 = vld [vmem:[%s3143_s26 + $0x104] sm:$0xf0] }
 0x10c   : > { %v2456_v37 = vor.u32 %v2964_v53, %v2453_v45  ;;  %v1981_v45 = vmax.f32 %v1859_v0, %v1861_v51  ;;  %v3029_v0 = vld [vmem:[%s3143_s26 + $0x314] sm:$0xf0] }
 0x10d   : > { %v3466_v7 = vpop.f32.mrf.mxu3  ;;  %v1862_v18 = vmax.f32 %v1561_v3, 0.0  ;;  %v3027_v3 = vld [vmem:[%s3143_s26 + $0x304] sm:$0xf0] }
 0x10e   : > { %v1391_v24 = vpop.f32.mrf.mxu2  ;;  %v3464_v28 = vpop.f32.mrf.mxu1 }
 0x10f   : > { %v1392_v10 = vadd.f32 %v3302_v25, %v1391_v24 }
 0x110   : > { %v1233_v38 = vpop.f32.mrf.mxu0 }
 0x111   : > { %2877 = vmatmul.msk.bf16.gmra.mxu1 %vm999_vm0, %v2448_v8  ;;  %v1234_v23 = vadd.f32 %v3302_v25, %v1233_v38  ;;  %v2076_v8 = vld [vmem:[%s3368_s20 + $0x10] sm:$0xff]  ;;  %v1721_v24 = vadd.f32 %v3413_v26, %v1392_v10  ;;  %v1384_v38 = vadd.f32 %v3302_v25, %v3437_v43  ;;  %v2443_v43 = vld [vmem:[%s3143_s26 + $0x100] sm:$0xf] }
 0x112   : > { %2910 = vmatmul.msk.bf16.gmra.mxu3 %vm999_vm0, %v2712_v39  ;;  %v1924_v39 = vmax.f32 %v1716_v57, 0.0  ;;  %vm2108_vm4 = vcmp.ge.f32.partialorder %v2076_v8, 0.5  ;;  %v2092_v57 = vld [vmem:[%s3368_s20 + $0x90] sm:$0xff]  ;;  %v2444_v15 = vor.u32 %v2963_v48, %v2443_v43 }
 0x113   : > { %v1563_v40 = vadd.f32 %v3440_v50, %v1234_v23  ;;  %v1713_v6 = vadd.f32 %v3333_v59, %v1384_v38  ;;  %vm2124_vm5 = vcmp.ge.f32.partialorder %v2092_v57, 0.5  ;;  %v2968_v57 = vld [vmem:[%s3143_s26 + $0x134] sm:$0xf] }
 0x114   : > { %v1996_v60 = vmax.f32 %v1922_v9, %v1924_v39  ;;  %v2077_v9 = vld [vmem:[%s3368_s20 + $0x18] sm:$0xff] }
 0x115   : > { %v3489_v4 = vpop.f32.mrf.mxu3  ;;  %v1863_v10 = vmax.f32 %v1563_v40, 0.0  ;;  %vm2109_vm6 = vcmp.ge.f32.partialorder %v2077_v9, 0.5  ;;  %v2459_v9 = vld [vmem:[%s3143_s26 + $0x120] sm:$0xf] }
 0x116   : > { %v1393_v46 = vpop.f32.mrf.mxu2  ;;  %v3484_v63 = vpop.f32.mrf.mxu1 }
 0x117   : > { %v1394_v12 = vadd.f32 %v3302_v25, %v1393_v46  ;;  %v1718_v46 = vadd.f32 %v3382_v55, %v1389_v1  ;;  %v2966_v1 = vld [vmem:[%s3143_s26 + $0x124] sm:$0xf] }
 0x118   : > { %v1236_v54 = vpop.f32.mrf.mxu0 }
 0x119   : > { %v1237_v32 = vadd.f32 %v3302_v25, %v1236_v54  ;;  %v1723_v59 = vadd.f32 %v3428_v36, %v1394_v12  ;;  %v1925_v22 = vmax.f32 %v1718_v46, 0.0 }
 0x11b   : > { %v1566_v13 = vadd.f32 %v1565_v61, %v1237_v32  ;;  %1275 = vmatmul.bf16.gmra.mxu0 %v2436_v56  ;;  %1435 = vmatmul.bf16.gmra.mxu2 %v2692_v58  ;;  %v1926_v56 = vmax.f32 %v1721_v24, 0.0  ;;  %v3030_v58 = vld [vmem:[%s3143_s26 + $0x324] sm:$0xf] }
 0x11c   : > { %v2720_v32 = vor.u32 %v3030_v58, %v2717_v20  ;;  %v3032_v20 = vld [vmem:[%s3143_s26 + $0x334] sm:$0xf] }
 0x11d   : > { %v1864_v49 = vmax.f32 %v1566_v13, 0.0  ;;  %v3516_v44 = vpop.f32.mrf.mxu3 }
 0x11e   : > { %v1396_v61 = vpop.f32.mrf.mxu2  ;;  %v3509_v19 = vpop.f32.mrf.mxu1 }
 0x11f   : > { %v2012_v27 = vmax.f32 %v1862_v18, %v1864_v49  ;;  %v1397_v34 = vadd.f32 %v3302_v25, %v1396_v61 }
 0x120   : > { %v1238_v26 = vpop.f32.mrf.mxu0 }
 0x121   : > { %v2044_v41 = vmax.f32 %v1980_v30, %v2012_v27  ;;  %v1726_v29 = vadd.f32 %v3442_v52, %v1397_v34  ;;  %v1239_v42 = vadd.f32 %v3302_v25, %v1238_v26  ;;  %2878 = vmatmul.msk.bf16.gmra.mxu1 %vm999_vm0, %v2456_v37  ;;  %v2699_v52 = vld [vmem:[%s3143_s26 + $0x300] sm:$0xf]  ;;  %v1923_v27 = vmax.f32 %v1713_v6, 0.0  ;;  %v2461_v26 = vld [vmem:[%s3143_s26 + $0x128] sm:$0xf0] }
 0x122   : > { %v2700_v18 = vor.u32 %v3027_v3, %v2699_v52  ;;  %2911 = vmatmul.msk.bf16.gmra.mxu3 %vm999_vm0, %v2720_v32  ;;  %v1927_v34 = vmax.f32 %v1723_v59, 0.0  ;;  %v2464_v48 = vor.u32 %v2966_v1, %v2461_v26  ;;  %v2965_v52 = vld [vmem:[%s3143_s26 + $0x114] sm:$0xf0]  ;;  %v2707_v32 = vld [vmem:[%s3143_s26 + $0x310] sm:$0xf] }
 0x123   : > { %v2140_v54 = vmul.f32 2.0, %v2044_v41  ;;  %v1928_v50 = vmax.f32 %v1726_v29, 0.0  ;;  %v1568_v21 = vadd.f32 %v3458_v14, %v1239_v42  ;;  %v1997_v40 = vmax.f32 %v1923_v27, %v1925_v22  ;;  %v2093_v29 = vld [vmem:[%s3368_s20 + $0x98] sm:$0xff]  ;;  %v2967_v22 = vld [vmem:[%s3143_s26 + $0x124] sm:$0xf0] }
 0x124   : > { %vm2125_vm7 = vcmp.ge.f32.partialorder %v2093_v29, 0.5  ;;  %v2708_v46 = vor.u32 %v3029_v0, %v2707_v32  ;;  %v2460_v27 = vor.u32 %v2967_v22, %v2459_v9  ;;  %v2970_v1 = vld [vmem:[%s3143_s26 + $0x144] sm:$0xf]  ;;  %v2477_v26 = vld [vmem:[%s3143_s26 + $0x148] sm:$0xf0] }
 0x125   : > { %v2172_v2 = vsel %vm2108_vm4, %v2140_v54, 0.0  ;;  %v2028_v13 = vmax.f32 %v1926_v56, %v1928_v50  ;;  %v1865_v53 = vmax.f32 %v1568_v21, 0.0  ;;  %v3540_v36 = vpop.f32.mrf.mxu3  ;;  %v2725_v54 = vld [vmem:[%s3143_s26 + $0x338] sm:$0xf0]  ;;  %v2451_v21 = vld [vmem:[%s3143_s26 + $0x110] sm:$0xf] }
 0x126   : > { %2205 = vst.msk [vmem:[%s3392_s23 + $0x10] sm:$0xff] %vm2202_vm2, %v2172_v2  ;;  %v1398_v14 = vpop.f32.mrf.mxu2  ;;  %v3535_v8 = vpop.f32.mrf.mxu1  ;;  %v2728_v3 = vor.u32 %v3032_v20, %v2725_v54  ;;  %v2467_v54 = vld [vmem:[%s3143_s26 + $0x130] sm:$0xf] }
 0x127   : > { %v2060_v23 = vmax.f32 %v1996_v60, %v2028_v13  ;;  %v2013_v49 = vmax.f32 %v1863_v10, %v1865_v53  ;;  %v1399_v55 = vadd.f32 %v3302_v25, %v1398_v14  ;;  %v2452_v60 = vor.u32 %v2965_v52, %v2451_v21  ;;  %v2469_v53 = vld [vmem:[%s3143_s26 + $0x138] sm:$0xf0]  ;;  %v2969_v21 = vld [vmem:[%s3143_s26 + $0x134] sm:$0xf0]  ;;  %v2723_v52 = vld [vmem:[%s3143_s26 + $0x330] sm:$0xf] }
 0x128   : > { %v3537_v35 = vpop.f32.mrf.mxu0  ;;  %v2472_v14 = vor.u32 %v2968_v57, %v2469_v53  ;;  %v2468_v57 = vor.u32 %v2969_v21, %v2467_v54 }
 0x129   : > { %v2156_v24 = vmul.f32 2.0, %v2060_v23  ;;  %v2045_v61 = vmax.f32 %v1981_v45, %v2013_v49  ;;  %v1728_v30 = vadd.f32 %v3446_v62, %v1399_v55  ;;  %v3034_v23 = vld [vmem:[%s3143_s26 + $0x344] sm:$0xf]  ;;  %v2733_v49 = vld [vmem:[%s3143_s26 + $0x348] sm:$0xf0]  ;;  %v1242_v32 = vadd.f32 %v3302_v25, %v3537_v35 }
 0x12a   : > { %v2736_v55 = vor.u32 %v3034_v23, %v2733_v49 }
 0x12b   : > { %v2188_v37 = vsel %vm2124_vm5, %v2156_v24, 0.0  ;;  %v2141_v38 = vmul.f32 2.0, %v2045_v61  ;;  %v1929_v39 = vmax.f32 %v1728_v30, 0.0  ;;  %1280 = vmatmul.bf16.gmra.mxu0 %v2444_v15  ;;  %1440 = vmatmul.bf16.gmra.mxu2 %v2700_v18  ;;  %v2715_v24 = vld [vmem:[%s3143_s26 + $0x320] sm:$0xf]  ;;  %v1571_v35 = vadd.f32 %v3464_v28, %v1242_v32 }
 0x12c   : > { %2221 = vst.msk [vmem:[%s3392_s23 + $0x90] sm:$0xff] %vm2202_vm2, %v2188_v37  ;;  %v3031_v61 = vld [vmem:[%s3143_s26 + $0x324] sm:$0xf0] }
 0x12d   : > { %v2173_v62 = vsel %vm2109_vm6, %v2141_v38, 0.0  ;;  %v2029_v41 = vmax.f32 %v1927_v34, %v1929_v39  ;;  %v3555_v58 = vpop.f32.mrf.mxu3  ;;  %v2716_v34 = vor.u32 %v3031_v61, %v2715_v24 }
 0x12e   : > { %2206 = vst.msk [vmem:[%s3392_s23 + $0x18] sm:$0xff] %vm2202_vm2, %v2173_v62  ;;  %v3549_v42 = vpop.f32.mrf.mxu2  ;;  %v3551_v51 = vpop.f32.mrf.mxu1  ;;  %v2480_v62 = vor.u32 %v2970_v1, %v2477_v26 }
 0x12f   : > { %v2061_v43 = vmax.f32 %v1997_v40, %v2029_v41 }
 0x130   : > { %v3553_v56 = vpop.f32.mrf.mxu0 }
 0x131   : > { %v2157_v12 = vmul.f32 2.0, %v2061_v43  ;;  %2879 = vmatmul.msk.bf16.gmra.mxu1 %vm999_vm0, %v2464_v48  ;;  %v3036_v48 = vld [vmem:[%s3143_s26 + $0x354] sm:$0xf]  ;;  %v1244_v22 = vadd.f32 %v3302_v25, %v3553_v56 }
 0x132   : > { %2912 = vmatmul.msk.bf16.gmra.mxu3 %vm999_vm0, %v2728_v3  ;;  %v3033_v3 = vld [vmem:[%s3143_s26 + $0x334] sm:$0xf0] }
 0x133   : > { %v2189_v50 = vsel %vm2125_vm7, %v2157_v12, 0.0  ;;  %v2741_v12 = vld [vmem:[%s3143_s26 + $0x358] sm:$0xf0]  ;;  %v2724_v53 = vor.u32 %v3033_v3, %v2723_v52  ;;  %v1573_v56 = vadd.f32 %v3484_v63, %v1244_v22 }
 0x134   : > { %2222 = vst.msk [vmem:[%s3392_s23 + $0x98] sm:$0xff] %vm2202_vm2, %v2189_v50  ;;  %v2744_v50 = vor.u32 %v3036_v48, %v2741_v12 }
 0x135   : > { %v3571_v13 = vpop.f32.mrf.mxu3 }
 0x136   : > { %v3566_v6 = vpop.f32.mrf.mxu2  ;;  %v3569_v10 = vpop.f32.mrf.mxu1 }
 0x138   : > { %v1246_v2 = vpop.f32.mrf.mxu0 }
 0x139   : > { %v1247_v20 = vadd.f32 %v3302_v25, %v1246_v2 }
 0x13b   : > { %1285 = vmatmul.bf16.gmra.mxu0 %v2452_v60  ;;  %1445 = vmatmul.bf16.gmra.mxu2 %v2708_v46  ;;  %v1402_v60 = vadd.f32 %v3302_v25, %v3549_v42  ;;  %v1576_v2 = vadd.f32 %v3509_v19, %v1247_v20 }
 0x13d   : > { %v3575_v59 = vpop.f32.mrf.mxu3  ;;  %v1731_v19 = vadd.f32 %v3460_v16, %v1402_v60  ;;  %v1868_v61 = vmax.f32 %v1576_v2, 0.0 }
 0x13e   : > { %v1406_v45 = vpop.f32.mrf.mxu2  ;;  %v1585_v15 = vpop.f32.mrf.mxu1 }
 0x13f   : > { %v1930_v48 = vmax.f32 %v1731_v19, 0.0  ;;  %v1867_v19 = vmax.f32 %v1573_v56, 0.0 }
 0x140   : > { %v1248_v18 = vpop.f32.mrf.mxu0 }
 0x141   : > { %2880 = vmatmul.msk.bf16.gmra.mxu1 %vm999_vm0, %v2472_v14  ;;  %v1407_v14 = vadd.f32 %v3302_v25, %v1406_v45  ;;  %v1249_v45 = vadd.f32 %v3302_v25, %v1248_v18 }
 0x142   : > { %2913 = vmatmul.msk.bf16.gmra.mxu3 %vm999_vm0, %v2736_v55 }
 0x143   : > { %v1736_v28 = vadd.f32 %v3489_v4, %v1407_v14  ;;  %v1578_v18 = vadd.f32 %v3535_v8, %v1249_v45  ;;  %v2749_v14 = vld [vmem:[%s3143_s26 + $0x368] sm:$0xf0] }
 0x145   : > { %v3589_v39 = vpop.f32.mrf.mxu3  ;;  %v1869_v2 = vmax.f32 %v1578_v18, 0.0 }
 0x146   : > { %v3584_v30 = vpop.f32.mrf.mxu2  ;;  %v3587_v37 = vpop.f32.mrf.mxu1 }
 0x147   : > { %v1409_v63 = vadd.f32 %v3302_v25, %v3584_v30 }
 0x148   : > { %v1251_v38 = vpop.f32.mrf.mxu0 }
 0x149   : > { %v1252_v0 = vadd.f32 %v3302_v25, %v1251_v38  ;;  %v1866_v38 = vmax.f32 %v1571_v35, 0.0 }
 0x14b   : > { %1290 = vmatmul.bf16.gmra.mxu0 %v2460_v27  ;;  %1450 = vmatmul.bf16.gmra.mxu2 %v2716_v34  ;;  %v1581_v9 = vadd.f32 %v3551_v51, %v1252_v0  ;;  %v2972_v51 = vld [vmem:[%s3143_s26 + $0x154] sm:$0xf]  ;;  %v2485_v34 = vld [vmem:[%s3143_s26 + $0x158] sm:$0xf0]  ;;  %v1982_v12 = vmax.f32 %v1866_v38, %v1868_v61  ;;  %v2971_v0 = vld [vmem:[%s3143_s26 + $0x144] sm:$0xf0] }
 0x14c   : > { %v2488_v54 = vor.u32 %v2972_v51, %v2485_v34  ;;  %v1983_v34 = vmax.f32 %v1867_v19, %v1869_v2 }
 0x14d   : > { %v3595_v43 = vpop.f32.mrf.mxu3  ;;  %v1870_v1 = vmax.f32 %v1581_v9, 0.0  ;;  %v3035_v9 = vld [vmem:[%s3143_s26 + $0x344] sm:$0xf0] }
 0x14e   : > { %v1411_v40 = vpop.f32.mrf.mxu2  ;;  %v3593_v41 = vpop.f32.mrf.mxu1 }
 0x14f   : > { %v1412_v24 = vadd.f32 %v3302_v25, %v1411_v40 }
 0x150   : > { %v1253_v29 = vpop.f32.mrf.mxu0 }
 0x151   : > { %2881 = vmatmul.msk.bf16.gmra.mxu1 %vm999_vm0, %v2480_v62  ;;  %v1254_v26 = vadd.f32 %v3302_v25, %v1253_v29  ;;  %v2078_v62 = vld [vmem:[%s3368_s20 + $0x20] sm:$0xff]  ;;  %v1741_v40 = vadd.f32 %v3540_v36, %v1412_v24  ;;  %v1404_v29 = vadd.f32 %v3302_v25, %v3566_v6 }
 0x152   : > { %2914 = vmatmul.msk.bf16.gmra.mxu3 %vm999_vm0, %v2744_v50  ;;  %v1932_v50 = vmax.f32 %v1736_v28, 0.0  ;;  %vm2110_vm8 = vcmp.ge.f32.partialorder %v2078_v62, 0.5  ;;  %v2475_v6 = vld [vmem:[%s3143_s26 + $0x140] sm:$0xf] }
 0x153   : > { %v1583_v21 = vadd.f32 %v3569_v10, %v1254_v26  ;;  %v1733_v22 = vadd.f32 %v3466_v7, %v1404_v29  ;;  %v2094_v28 = vld [vmem:[%s3368_s20 + $0xa0] sm:$0xff]  ;;  %v2476_v38 = vor.u32 %v2971_v0, %v2475_v6 }
 0x154   : > { %v1998_v45 = vmax.f32 %v1930_v48, %v1932_v50  ;;  %v2079_v48 = vld [vmem:[%s3368_s20 + $0x28] sm:$0xff]  ;;  %vm2126_vm9 = vcmp.ge.f32.partialorder %v2094_v28, 0.5  ;;  %v2974_v50 = vld [vmem:[%s3143_s26 + $0x164] sm:$0xf]  ;;  %v2501_v28 = vld [vmem:[%s3143_s26 + $0x178] sm:$0xf0] }
 0x155   : > { %v3618_v55 = vpop.f32.mrf.mxu3  ;;  %v1871_v24 = vmax.f32 %v1583_v21, 0.0  ;;  %vm2111_vm10 = vcmp.ge.f32.partialorder %v2079_v48, 0.5 }
 0x156   : > { %v1413_v46 = vpop.f32.mrf.mxu2  ;;  %v3613_v23 = vpop.f32.mrf.mxu1 }
 0x157   : > { %v1414_v30 = vadd.f32 %v3302_v25, %v1413_v46  ;;  %v1738_v46 = vadd.f32 %v3516_v44, %v1409_v63  ;;  %v2493_v63 = vld [vmem:[%s3143_s26 + $0x168] sm:$0xf0] }
 0x158   : > { %v1256_v49 = vpop.f32.mrf.mxu0  ;;  %v2496_v6 = vor.u32 %v2974_v50, %v2493_v63  ;;  %v2509_v50 = vld [vmem:[%s3143_s26 + $0x188] sm:$0xf0] }
 0x159   : > { %v1257_v42 = vadd.f32 %v3302_v25, %v1256_v49  ;;  %v1743_v7 = vadd.f32 %v3555_v58, %v1414_v30  ;;  %v1933_v18 = vmax.f32 %v1738_v46, 0.0 }
 0x15b   : > { %v1586_v27 = vadd.f32 %v1585_v15, %v1257_v42  ;;  %1295 = vmatmul.bf16.gmra.mxu0 %v2468_v57  ;;  %1455 = vmatmul.bf16.gmra.mxu2 %v2724_v53  ;;  %v1934_v57 = vmax.f32 %v1741_v40, 0.0  ;;  %v3038_v53 = vld [vmem:[%s3143_s26 + $0x364] sm:$0xf] }
 0x15c   : > { %v2752_v42 = vor.u32 %v3038_v53, %v2749_v14  ;;  %v3040_v53 = vld [vmem:[%s3143_s26 + $0x374] sm:$0xf]  ;;  %v2757_v14 = vld [vmem:[%s3143_s26 + $0x378] sm:$0xf0] }
 0x15d   : > { %v1872_v16 = vmax.f32 %v1586_v27, 0.0  ;;  %v3645_v60 = vpop.f32.mrf.mxu3 }
 0x15e   : > { %v1416_v15 = vpop.f32.mrf.mxu2  ;;  %v3638_v8 = vpop.f32.mrf.mxu1 }
 0x15f   : > { %v2014_v4 = vmax.f32 %v1870_v1, %v1872_v16  ;;  %v1417_v20 = vadd.f32 %v3302_v25, %v1416_v15 }
 0x160   : > { %v1258_v36 = vpop.f32.mrf.mxu0 }
 0x161   : > { %v2046_v52 = vmax.f32 %v1982_v12, %v2014_v4  ;;  %v1746_v3 = vadd.f32 %v3571_v13, %v1417_v20  ;;  %v1259_v32 = vadd.f32 %v3302_v25, %v1258_v36  ;;  %2882 = vmatmul.msk.bf16.gmra.mxu1 %vm999_vm0, %v2488_v54  ;;  %v2731_v13 = vld [vmem:[%s3143_s26 + $0x340] sm:$0xf]  ;;  %v1931_v4 = vmax.f32 %v1733_v22, 0.0 }
 0x162   : > { %v2732_v1 = vor.u32 %v3035_v9, %v2731_v13  ;;  %2915 = vmatmul.msk.bf16.gmra.mxu3 %vm999_vm0, %v2752_v42  ;;  %v2760_v13 = vor.u32 %v3040_v53, %v2757_v14  ;;  %v2739_v9 = vld [vmem:[%s3143_s26 + $0x350] sm:$0xf]  ;;  %v3037_v42 = vld [vmem:[%s3143_s26 + $0x354] sm:$0xf0] }
 0x163   : > { %v2142_v49 = vmul.f32 2.0, %v2046_v52  ;;  %v1936_v10 = vmax.f32 %v1746_v3, 0.0  ;;  %v1588_v35 = vadd.f32 %v3587_v37, %v1259_v32  ;;  %v1999_v36 = vmax.f32 %v1931_v4, %v1933_v18  ;;  %v2095_v52 = vld [vmem:[%s3368_s20 + $0xa8] sm:$0xff]  ;;  %v2747_v18 = vld [vmem:[%s3143_s26 + $0x360] sm:$0xf] }
 0x164   : > { %vm2127_vm11 = vcmp.ge.f32.partialorder %v2095_v52, 0.5  ;;  %v2499_v14 = vld [vmem:[%s3143_s26 + $0x170] sm:$0xf] }
 0x165   : > { %v2174_v61 = vsel %vm2110_vm8, %v2142_v49, 0.0  ;;  %v2030_v27 = vmax.f32 %v1934_v57, %v1936_v10  ;;  %v1873_v51 = vmax.f32 %v1588_v35, 0.0  ;;  %v3669_v58 = vpop.f32.mrf.mxu3  ;;  %v2483_v10 = vld [vmem:[%s3143_s26 + $0x150] sm:$0xf]  ;;  %v2973_v35 = vld [vmem:[%s3143_s26 + $0x154] sm:$0xf0] }
 0x166   : > { %2207 = vst.msk [vmem:[%s3392_s23 + $0x20] sm:$0xff] %vm2202_vm2, %v2174_v61  ;;  %v1418_v37 = vpop.f32.mrf.mxu2  ;;  %v3664_v62 = vpop.f32.mrf.mxu1  ;;  %v2484_v22 = vor.u32 %v2973_v35, %v2483_v10  ;;  %v2977_v10 = vld [vmem:[%s3143_s26 + $0x174] sm:$0xf0]  ;;  %v2755_v35 = vld [vmem:[%s3143_s26 + $0x370] sm:$0xf] }
 0x167   : > { %v2062_v26 = vmax.f32 %v1998_v45, %v2030_v27  ;;  %v2015_v16 = vmax.f32 %v1871_v24, %v1873_v51  ;;  %v1419_v44 = vadd.f32 %v3302_v25, %v1418_v37  ;;  %v1935_v25 = vmax.f32 %v1743_v7, 0.0  ;;  %v2976_v27 = vld [vmem:[%s3143_s26 + $0x174] sm:$0xf]  ;;  %v3042_v7 = vld [vmem:[%s3143_s26 + $0x384] sm:$0xf] }
 0x168   : > { %v3666_v56 = vpop.f32.mrf.mxu0  ;;  %v2740_v45 = vor.u32 %v3037_v42, %v2739_v9 }
 0x169   : > { %v2158_v40 = vmul.f32 2.0, %v2062_v26  ;;  %v2047_v15 = vmax.f32 %v1983_v34, %v2015_v16  ;;  %v1748_v12 = vadd.f32 %v3575_v59, %v1419_v44  ;;  %v2504_v34 = vor.u32 %v2976_v27, %v2501_v28  ;;  %v2765_v26 = vld [vmem:[%s3143_s26 + $0x388] sm:$0xf0]  ;;  %v2491_v16 = vld [vmem:[%s3143_s26 + $0x160] sm:$0xf] }
 0x16a   : > { %v2768_v48 = vor.u32 %v3042_v7, %v2765_v26  ;;  %v2975_v44 = vld [vmem:[%s3143_s26 + $0x164] sm:$0xf0]  ;;  %v2500_v27 = vor.u32 %v2977_v10, %v2499_v14 }
 0x16b   : > { %v2190_v20 = vsel %vm2126_vm9, %v2158_v40, 0.0  ;;  %v2143_v54 = vmul.f32 2.0, %v2047_v15  ;;  %v1937_v29 = vmax.f32 %v1748_v12, 0.0  ;;  %1300 = vmatmul.bf16.gmra.mxu0 %v2476_v38  ;;  %1460 = vmatmul.bf16.gmra.mxu2 %v2732_v1  ;;  %v3039_v40 = vld [vmem:[%s3143_s26 + $0x364] sm:$0xf0]  ;;  %v2492_v12 = vor.u32 %v2975_v44, %v2491_v16 }
 0x16c   : > { %2223 = vst.msk [vmem:[%s3392_s23 + $0xa0] sm:$0xff] %vm2202_vm2, %v2190_v20  ;;  %v2748_v4 = vor.u32 %v3039_v40, %v2747_v18 }
 0x16d   : > { %v2175_v59 = vsel %vm2111_vm10, %v2143_v54, 0.0  ;;  %v2031_v21 = vmax.f32 %v1935_v25, %v1937_v29  ;;  %v3684_v30 = vpop.f32.mrf.mxu3  ;;  %v2978_v29 = vld [vmem:[%s3143_s26 + $0x184] sm:$0xf] }
 0x16e   : > { %2208 = vst.msk [vmem:[%s3392_s23 + $0x28] sm:$0xff] %vm2202_vm2, %v2175_v59  ;;  %v3678_v3 = vpop.f32.mrf.mxu2  ;;  %v3680_v0 = vpop.f32.mrf.mxu1 }
 0x16f   : > { %v2063_v32 = vmax.f32 %v1999_v36, %v2031_v21  ;;  %v2512_v36 = vor.u32 %v2978_v29, %v2509_v50 }
 0x170   : > { %v3682_v2 = vpop.f32.mrf.mxu0 }
 0x171   : > { %v2159_v57 = vmul.f32 2.0, %v2063_v32  ;;  %2883 = vmatmul.msk.bf16.gmra.mxu1 %vm999_vm0, %v2496_v6  ;;  %v3044_v32 = vld [vmem:[%s3143_s26 + $0x394] sm:$0xf]  ;;  %v2773_v6 = vld [vmem:[%s3143_s26 + $0x398] sm:$0xf0] }
 0x172   : > { %2916 = vmatmul.msk.bf16.gmra.mxu3 %vm999_vm0, %v2760_v13  ;;  %v3041_v13 = vld [vmem:[%s3143_s26 + $0x374] sm:$0xf0] }
 0x173   : > { %v2191_v49 = vsel %vm2127_vm11, %v2159_v57, 0.0  ;;  %v3731_v57 = vld [vmem:[%s4170_s2] ss:$0 sm:$0xff]  ;;  %v2756_v28 = vor.u32 %v3041_v13, %v2755_v35 }
 0x174   : > { %2224 = vst.msk [vmem:[%s3392_s23 + $0xa8] sm:$0xff] %vm2202_vm2, %v2191_v49  ;;  %v2776_v49 = vor.u32 %v3044_v32, %v2773_v6  ;;  %v1262_v9 = vadd.f32 %v3731_v57, %v3666_v56  ;;  %v1264_v44 = vadd.f32 %v3731_v57, %v3682_v2 }
 0x175   : > { %v3700_v61 = vpop.f32.mrf.mxu3 }
 0x176   : > { %v3695_v19 = vpop.f32.mrf.mxu2  ;;  %v3698_v46 = vpop.f32.mrf.mxu1  ;;  %v1591_v56 = vadd.f32 %v3593_v41, %v1262_v9  ;;  %v1593_v2 = vadd.f32 %v3613_v23, %v1264_v44 }
 0x178   : > { %v1266_v24 = vpop.f32.mrf.mxu0 }
 0x179   : > { %v1267_v53 = vadd.f32 %v3731_v57, %v1266_v24 }
 0x17b   : > { %1305 = vmatmul.bf16.gmra.mxu0 %v2484_v22  ;;  %1465 = vmatmul.bf16.gmra.mxu2 %v2740_v45  ;;  %v1422_v22 = vadd.f32 %v3731_v57, %v3678_v3  ;;  %v1596_v24 = vadd.f32 %v3638_v8, %v1267_v53 }
 0x17d   : > { %v3704_v1 = vpop.f32.mrf.mxu3  ;;  %v1751_v8 = vadd.f32 %v3589_v39, %v1422_v22  ;;  %v1876_v40 = vmax.f32 %v1596_v24, 0.0 }
 0x17e   : > { %v1426_v51 = vpop.f32.mrf.mxu2  ;;  %v1605_v37 = vpop.f32.mrf.mxu1 }
 0x17f   : > { %v1938_v32 = vmax.f32 %v1751_v8, 0.0  ;;  %v1875_v8 = vmax.f32 %v1593_v2, 0.0 }
 0x180   : > { %v1268_v38 = vpop.f32.mrf.mxu0 }
 0x181   : > { %2884 = vmatmul.msk.bf16.gmra.mxu1 %vm999_vm0, %v2504_v34  ;;  %v1427_v34 = vadd.f32 %v3731_v57, %v1426_v51  ;;  %v1269_v51 = vadd.f32 %v3731_v57, %v1268_v38 }
 0x182   : > { %2917 = vmatmul.msk.bf16.gmra.mxu3 %vm999_vm0, %v2768_v48 }
 0x183   : > { %v1756_v41 = vadd.f32 %v3618_v55, %v1427_v34  ;;  %v1598_v38 = vadd.f32 %v3664_v62, %v1269_v51  ;;  %v2781_v34 = vld [vmem:[%s3143_s26 + $0x3a8] sm:$0xf0] }
 0x185   : > { %v3718_v54 = vpop.f32.mrf.mxu3  ;;  %v1877_v24 = vmax.f32 %v1598_v38, 0.0 }
 0x186   : > { %v3713_v15 = vpop.f32.mrf.mxu2  ;;  %v3716_v25 = vpop.f32.mrf.mxu1 }
 0x187   : > { %v1429_v23 = vadd.f32 %v3731_v57, %v3713_v15 }
 0x188   : > { %v1271_v20 = vpop.f32.mrf.mxu0 }
 0x189   : > { %v1272_v42 = vadd.f32 %v3731_v57, %v1271_v20  ;;  %v1874_v20 = vmax.f32 %v1591_v56, 0.0 }
 0x18b   : > { %1310 = vmatmul.bf16.gmra.mxu0 %v2492_v12  ;;  %1470 = vmatmul.bf16.gmra.mxu2 %v2748_v4  ;;  %v1601_v16 = vadd.f32 %v3680_v0, %v1272_v42  ;;  %v2980_v0 = vld [vmem:[%s3143_s26 + $0x194] sm:$0xf]  ;;  %v2517_v4 = vld [vmem:[%s3143_s26 + $0x198] sm:$0xf0]  ;;  %v1984_v6 = vmax.f32 %v1874_v20, %v1876_v40  ;;  %v2979_v42 = vld [vmem:[%s3143_s26 + $0x184] sm:$0xf0] }
 0x18c   : > { %v2520_v14 = vor.u32 %v2980_v0, %v2517_v4  ;;  %v1985_v4 = vmax.f32 %v1875_v8, %v1877_v24  ;;  %v3045_v8 = vld [vmem:[%s3143_s26 + $0x394] sm:$0xf0] }
 0x18d   : > { %v3724_v52 = vpop.f32.mrf.mxu3  ;;  %v1878_v29 = vmax.f32 %v1601_v16, 0.0  ;;  %v3043_v16 = vld [vmem:[%s3143_s26 + $0x384] sm:$0xf0] }
 0x18e   : > { %v1431_v63 = vpop.f32.mrf.mxu2  ;;  %v3722_v59 = vpop.f32.mrf.mxu1 }
 0x18f   : > { %v1432_v18 = vadd.f32 %v3731_v57, %v1431_v63 }
 0x190   : > { %v1273_v21 = vpop.f32.mrf.mxu0 }
 0x191   : > { %2885 = vmatmul.msk.bf16.gmra.mxu1 %vm999_vm0, %v2512_v36  ;;  %v1274_v50 = vadd.f32 %v3731_v57, %v1273_v21  ;;  %v2080_v36 = vld [vmem:[%s3368_s20 + $0x30] sm:$0xff]  ;;  %v1761_v63 = vadd.f32 %v3669_v58, %v1432_v18  ;;  %v1424_v21 = vadd.f32 %v3731_v57, %v3695_v19  ;;  %v2507_v19 = vld [vmem:[%s3143_s26 + $0x180] sm:$0xf] }
 0x192   : > { %2918 = vmatmul.msk.bf16.gmra.mxu3 %vm999_vm0, %v2776_v49  ;;  %v1940_v49 = vmax.f32 %v1756_v41, 0.0  ;;  %vm2112_vm12 = vcmp.ge.f32.partialorder %v2080_v36, 0.5  ;;  %v2096_v41 = vld [vmem:[%s3368_s20 + $0xb0] sm:$0xff]  ;;  %v2508_v20 = vor.u32 %v2979_v42, %v2507_v19 }
 0x193   : > { %v1603_v10 = vadd.f32 %v3698_v46, %v1274_v50  ;;  %v1753_v44 = vadd.f32 %v3595_v43, %v1424_v21  ;;  %vm2128_vm13 = vcmp.ge.f32.partialorder %v2096_v41, 0.5  ;;  %v2984_v41 = vld [vmem:[%s3143_s26 + $0x1b4] sm:$0xf] }
 0x194   : > { %v2000_v51 = vmax.f32 %v1938_v32, %v1940_v49  ;;  %v2081_v32 = vld [vmem:[%s3368_s20 + $0x38] sm:$0xff] }
 0x195   : > { %v3752_v48 = vpop.f32.mrf.mxu3  ;;  %v1879_v18 = vmax.f32 %v1603_v10, 0.0  ;;  %vm2113_vm14 = vcmp.ge.f32.partialorder %v2081_v32, 0.5  ;;  %v2523_v32 = vld [vmem:[%s3143_s26 + $0x1a0] sm:$0xf] }
 0x196   : > { %v1433_v45 = vpop.f32.mrf.mxu2  ;;  %v3747_v7 = vpop.f32.mrf.mxu1 }
 0x197   : > { %v1434_v15 = vadd.f32 %v3731_v57, %v1433_v45  ;;  %v1758_v45 = vadd.f32 %v3645_v60, %v1429_v23  ;;  %v2982_v23 = vld [vmem:[%s3143_s26 + $0x1a4] sm:$0xf] }
 0x198   : > { %v1276_v26 = vpop.f32.mrf.mxu0 }
 0x199   : > { %v1277_v3 = vadd.f32 %v3731_v57, %v1276_v26  ;;  %v1763_v43 = vadd.f32 %v3684_v30, %v1434_v15  ;;  %v1941_v38 = vmax.f32 %v1758_v45, 0.0 }
 0x19b   : > { %v1606_v12 = vadd.f32 %v1605_v37, %v1277_v3  ;;  %1315 = vmatmul.bf16.gmra.mxu0 %v2500_v27  ;;  %1475 = vmatmul.bf16.gmra.mxu2 %v2756_v28  ;;  %v1942_v27 = vmax.f32 %v1761_v63, 0.0  ;;  %v3046_v28 = vld [vmem:[%s3143_s26 + $0x3a4] sm:$0xf] }
 0x19c   : > { %v2784_v3 = vor.u32 %v3046_v28, %v2781_v34  ;;  %v3048_v34 = vld [vmem:[%s3143_s26 + $0x3b4] sm:$0xf] }
 0x19d   : > { %v1880_v39 = vmax.f32 %v1606_v12, 0.0  ;;  %v3779_v22 = vpop.f32.mrf.mxu3 }
 0x19e   : > { %v1436_v37 = vpop.f32.mrf.mxu2  ;;  %v3772_v62 = vpop.f32.mrf.mxu1 }
 0x19f   : > { %v2016_v55 = vmax.f32 %v1878_v29, %v1880_v39  ;;  %v1437_v53 = vadd.f32 %v3731_v57, %v1436_v37 }
 0x1a0   : > { %v1278_v58 = vpop.f32.mrf.mxu0 }
 0x1a1   : > { %v2048_v35 = vmax.f32 %v1984_v6, %v2016_v55  ;;  %v1766_v13 = vadd.f32 %v3700_v61, %v1437_v53  ;;  %v1279_v9 = vadd.f32 %v3731_v57, %v1278_v58  ;;  %2886 = vmatmul.msk.bf16.gmra.mxu1 %vm999_vm0, %v2520_v14  ;;  %v2763_v61 = vld [vmem:[%s3143_s26 + $0x380] sm:$0xf]  ;;  %v1939_v55 = vmax.f32 %v1753_v44, 0.0  ;;  %v2525_v58 = vld [vmem:[%s3143_s26 + $0x1a8] sm:$0xf0] }
 0x1a2   : > { %v2764_v29 = vor.u32 %v3043_v16, %v2763_v61  ;;  %2919 = vmatmul.msk.bf16.gmra.mxu3 %vm999_vm0, %v2784_v3  ;;  %v1943_v53 = vmax.f32 %v1763_v43, 0.0  ;;  %v2528_v42 = vor.u32 %v2982_v23, %v2525_v58  ;;  %v2981_v61 = vld [vmem:[%s3143_s26 + $0x194] sm:$0xf0]  ;;  %v2771_v3 = vld [vmem:[%s3143_s26 + $0x390] sm:$0xf] }
 0x1a3   : > { %v2144_v26 = vmul.f32 2.0, %v2048_v35  ;;  %v1944_v46 = vmax.f32 %v1766_v13, 0.0  ;;  %v1608_v56 = vadd.f32 %v3716_v25, %v1279_v9  ;;  %v2001_v10 = vmax.f32 %v1939_v55, %v1941_v38  ;;  %v2097_v13 = vld [vmem:[%s3368_s20 + $0xb8] sm:$0xff]  ;;  %v2983_v38 = vld [vmem:[%s3143_s26 + $0x1a4] sm:$0xf0] }
 0x1a4   : > { %vm2129_vm15 = vcmp.ge.f32.partialorder %v2097_v13, 0.5  ;;  %v2772_v45 = vor.u32 %v3045_v8, %v2771_v3  ;;  %v2524_v55 = vor.u32 %v2983_v38, %v2523_v32  ;;  %v2986_v23 = vld [vmem:[%s3143_s26 + $0x1c4] sm:$0xf]  ;;  %v2541_v58 = vld [vmem:[%s3143_s26 + $0x1c8] sm:$0xf0] }
 0x1a5   : > { %v2176_v40 = vsel %vm2112_vm12, %v2144_v26, 0.0  ;;  %v2032_v12 = vmax.f32 %v1942_v27, %v1944_v46  ;;  %v1881_v0 = vmax.f32 %v1608_v56, 0.0  ;;  %v3803_v30 = vpop.f32.mrf.mxu3  ;;  %v2789_v26 = vld [vmem:[%s3143_s26 + $0x3b8] sm:$0xf0]  ;;  %v2515_v56 = vld [vmem:[%s3143_s26 + $0x190] sm:$0xf] }
 0x1a6   : > { %2209 = vst.msk [vmem:[%s3392_s23 + $0x30] sm:$0xff] %vm2202_vm2, %v2176_v40  ;;  %v1438_v25 = vpop.f32.mrf.mxu2  ;;  %v3798_v36 = vpop.f32.mrf.mxu1  ;;  %v2792_v16 = vor.u32 %v3048_v34, %v2789_v26  ;;  %v2531_v26 = vld [vmem:[%s3143_s26 + $0x1b0] sm:$0xf] }
 0x1a7   : > { %v2064_v50 = vmax.f32 %v2000_v51, %v2032_v12  ;;  %v2017_v39 = vmax.f32 %v1879_v18, %v1881_v0  ;;  %v1439_v60 = vadd.f32 %v3731_v57, %v1438_v25  ;;  %v2516_v51 = vor.u32 %v2981_v61, %v2515_v56  ;;  %v2533_v0 = vld [vmem:[%s3143_s26 + $0x1b8] sm:$0xf0]  ;;  %v2985_v56 = vld [vmem:[%s3143_s26 + $0x1b4] sm:$0xf0]  ;;  %v2787_v61 = vld [vmem:[%s3143_s26 + $0x3b0] sm:$0xf] }
 0x1a8   : > { %v3800_v2 = vpop.f32.mrf.mxu0  ;;  %v2536_v25 = vor.u32 %v2984_v41, %v2533_v0  ;;  %v2532_v41 = vor.u32 %v2985_v56, %v2531_v26 }
 0x1a9   : > { %v2160_v63 = vmul.f32 2.0, %v2064_v50  ;;  %v2049_v37 = vmax.f32 %v1985_v4, %v2017_v39  ;;  %v1768_v6 = vadd.f32 %v3704_v1, %v1439_v60  ;;  %v3050_v50 = vld [vmem:[%s3143_s26 + $0x3c4] sm:$0xf]  ;;  %v2797_v39 = vld [vmem:[%s3143_s26 + $0x3c8] sm:$0xf0]  ;;  %v1282_v3 = vadd.f32 %v3731_v57, %v3800_v2 }
 0x1aa   : > { %v2800_v60 = vor.u32 %v3050_v50, %v2797_v39 }
 0x1ab   : > { %v2192_v14 = vsel %vm2128_vm13, %v2160_v63, 0.0  ;;  %v2145_v21 = vmul.f32 2.0, %v2049_v37  ;;  %v1945_v49 = vmax.f32 %v1768_v6, 0.0  ;;  %1320 = vmatmul.bf16.gmra.mxu0 %v2508_v20  ;;  %1480 = vmatmul.bf16.gmra.mxu2 %v2764_v29  ;;  %v2779_v63 = vld [vmem:[%s3143_s26 + $0x3a0] sm:$0xf]  ;;  %v1611_v2 = vadd.f32 %v3722_v59, %v1282_v3 }
 0x1ac   : > { %2225 = vst.msk [vmem:[%s3392_s23 + $0xb0] sm:$0xff] %vm2202_vm2, %v2192_v14  ;;  %v3047_v37 = vld [vmem:[%s3143_s26 + $0x3a4] sm:$0xf0] }
 0x1ad   : > { %v2177_v1 = vsel %vm2113_vm14, %v2145_v21, 0.0  ;;  %v2033_v35 = vmax.f32 %v1943_v53, %v1945_v49  ;;  %v3818_v28 = vpop.f32.mrf.mxu3  ;;  %v2780_v53 = vor.u32 %v3047_v37, %v2779_v63 }
 0x1ae   : > { %2210 = vst.msk [vmem:[%s3392_s23 + $0x38] sm:$0xff] %vm2202_vm2, %v2177_v1  ;;  %v3812_v9 = vpop.f32.mrf.mxu2  ;;  %v3814_v24 = vpop.f32.mrf.mxu1  ;;  %v2544_v1 = vor.u32 %v2986_v23, %v2541_v58 }
 0x1af   : > { %v2065_v19 = vmax.f32 %v2001_v10, %v2033_v35 }
 0x1b0   : > { %v3816_v27 = vpop.f32.mrf.mxu0 }
 0x1b1   : > { %v2161_v15 = vmul.f32 2.0, %v2065_v19  ;;  %2887 = vmatmul.msk.bf16.gmra.mxu1 %vm999_vm0, %v2528_v42  ;;  %v3052_v42 = vld [vmem:[%s3143_s26 + $0x3d4] sm:$0xf]  ;;  %v1284_v38 = vadd.f32 %v3731_v57, %v3816_v27 }
 0x1b2   : > { %2920 = vmatmul.msk.bf16.gmra.mxu3 %vm999_vm0, %v2792_v16  ;;  %v3049_v16 = vld [vmem:[%s3143_s26 + $0x3b4] sm:$0xf0] }
 0x1b3   : > { %v2193_v46 = vsel %vm2129_vm15, %v2161_v15, 0.0  ;;  %v2805_v15 = vld [vmem:[%s3143_s26 + $0x3d8] sm:$0xf0]  ;;  %v2788_v0 = vor.u32 %v3049_v16, %v2787_v61  ;;  %v1613_v27 = vadd.f32 %v3747_v7, %v1284_v38 }
 0x1b4   : > { %2226 = vst.msk [vmem:[%s3392_s23 + $0xb8] sm:$0xff] %vm2202_vm2, %v2193_v46  ;;  %v2808_v46 = vor.u32 %v3052_v42, %v2805_v15 }
 0x1b5   : > { %v3834_v12 = vpop.f32.mrf.mxu3 }
 0x1b6   : > { %v3829_v44 = vpop.f32.mrf.mxu2  ;;  %v3832_v18 = vpop.f32.mrf.mxu1 }
 0x1b8   : > { %v1286_v40 = vpop.f32.mrf.mxu0 }
 0x1b9   : > { %v1287_v34 = vadd.f32 %v3731_v57, %v1286_v40 }
 0x1bb   : > { %1325 = vmatmul.bf16.gmra.mxu0 %v2516_v51  ;;  %1485 = vmatmul.bf16.gmra.mxu2 %v2772_v45  ;;  %v1442_v51 = vadd.f32 %v3731_v57, %v3812_v9  ;;  %v1616_v40 = vadd.f32 %v3772_v62, %v1287_v34 }
 0x1bd   : > { %v3838_v43 = vpop.f32.mrf.mxu3  ;;  %v1771_v62 = vadd.f32 %v3718_v54, %v1442_v51  ;;  %v1884_v37 = vmax.f32 %v1616_v40, 0.0 }
 0x1be   : > { %v1446_v4 = vpop.f32.mrf.mxu2  ;;  %v1625_v20 = vpop.f32.mrf.mxu1 }
 0x1bf   : > { %v1946_v42 = vmax.f32 %v1771_v62, 0.0  ;;  %v1883_v62 = vmax.f32 %v1613_v27, 0.0 }
 0x1c0   : > { %v1288_v29 = vpop.f32.mrf.mxu0 }
 0x1c1   : > { %2888 = vmatmul.msk.bf16.gmra.mxu1 %vm999_vm0, %v2536_v25  ;;  %v1447_v25 = vadd.f32 %v3731_v57, %v1446_v4  ;;  %v1289_v4 = vadd.f32 %v3731_v57, %v1288_v29 }
 0x1c2   : > { %2921 = vmatmul.msk.bf16.gmra.mxu3 %vm999_vm0, %v2800_v60 }
 0x1c3   : > { %v1776_v59 = vadd.f32 %v3752_v48, %v1447_v25  ;;  %v1618_v29 = vadd.f32 %v3798_v36, %v1289_v4  ;;  %v2813_v25 = vld [vmem:[%s3143_s26 + $0x3e8] sm:$0xf0] }
 0x1c5   : > { %v3852_v49 = vpop.f32.mrf.mxu3  ;;  %v1885_v40 = vmax.f32 %v1618_v29, 0.0 }
 0x1c6   : > { %v3847_v6 = vpop.f32.mrf.mxu2  ;;  %v3850_v14 = vpop.f32.mrf.mxu1 }
 0x1c7   : > { %v1449_v7 = vadd.f32 %v3731_v57, %v3847_v6 }
 0x1c8   : > { %v1291_v21 = vpop.f32.mrf.mxu0 }
 0x1c9   : > { %v1292_v8 = vadd.f32 %v3731_v57, %v1291_v21  ;;  %v1882_v21 = vmax.f32 %v1611_v2, 0.0 }
 0x1cb   : > { %1330 = vmatmul.bf16.gmra.mxu0 %v2524_v55  ;;  %1490 = vmatmul.bf16.gmra.mxu2 %v2780_v53  ;;  %v1621_v32 = vadd.f32 %v3814_v24, %v1292_v8  ;;  %v2988_v24 = vld [vmem:[%s3143_s26 + $0x1d4] sm:$0xf]  ;;  %v2549_v53 = vld [vmem:[%s3143_s26 + $0x1d8] sm:$0xf0]  ;;  %v1986_v15 = vmax.f32 %v1882_v21, %v1884_v37  ;;  %v2987_v8 = vld [vmem:[%s3143_s26 + $0x1c4] sm:$0xf0] }
 0x1cc   : > { %v2552_v26 = vor.u32 %v2988_v24, %v2549_v53  ;;  %v1987_v53 = vmax.f32 %v1883_v62, %v1885_v40  ;;  %v3053_v62 = vld [vmem:[%s3143_s26 + $0x3d4] sm:$0xf0] }
 0x1cd   : > { %v3858_v19 = vpop.f32.mrf.mxu3  ;;  %v1886_v23 = vmax.f32 %v1621_v32, 0.0  ;;  %v3051_v32 = vld [vmem:[%s3143_s26 + $0x3c4] sm:$0xf0] }
 0x1ce   : > { %v1451_v10 = vpop.f32.mrf.mxu2  ;;  %v3856_v35 = vpop.f32.mrf.mxu1 }
 0x1cf   : > { %v1452_v63 = vadd.f32 %v3731_v57, %v1451_v10 }
 0x1d0   : > { %v1293_v13 = vpop.f32.mrf.mxu0 }
 0x1d1   : > { %2889 = vmatmul.msk.bf16.gmra.mxu1 %vm999_vm0, %v2544_v1  ;;  %v1294_v58 = vadd.f32 %v3731_v57, %v1293_v13  ;;  %v2082_v1 = vld [vmem:[%s3368_s20 + $0x40] sm:$0xff]  ;;  %v1781_v10 = vadd.f32 %v3803_v30, %v1452_v63  ;;  %v1444_v13 = vadd.f32 %v3731_v57, %v3829_v44 }
 0x1d2   : > { %2922 = vmatmul.msk.bf16.gmra.mxu3 %vm999_vm0, %v2808_v46  ;;  %v1948_v46 = vmax.f32 %v1776_v59, 0.0  ;;  %vm2114_vm1 = vcmp.ge.f32.partialorder %v2082_v1, 0.5  ;;  %v2539_v44 = vld [vmem:[%s3143_s26 + $0x1c0] sm:$0xf] }
 0x1d3   : > { %v1623_v56 = vadd.f32 %v3832_v18, %v1294_v58  ;;  %v1773_v38 = vadd.f32 %v3724_v52, %v1444_v13  ;;  %v2098_v59 = vld [vmem:[%s3368_s20 + $0xc0] sm:$0xff]  ;;  %v2540_v21 = vor.u32 %v2987_v8, %v2539_v44 }
 0x1d4   : > { %v2002_v4 = vmax.f32 %v1946_v42, %v1948_v46  ;;  %v2083_v42 = vld [vmem:[%s3368_s20 + $0x48] sm:$0xff]  ;;  %vm2130_vm3 = vcmp.ge.f32.partialorder %v2098_v59, 0.5  ;;  %v2565_v59 = vld [vmem:[%s3143_s26 + $0x1f8] sm:$0xf0] }
 0x1d5   : > { %v3881_v60 = vpop.f32.mrf.mxu3  ;;  %v1887_v63 = vmax.f32 %v1623_v56, 0.0  ;;  %vm2115_vm4 = vcmp.ge.f32.partialorder %v2083_v42, 0.5  ;;  %v3055_v42 = vld [vmem:[%s3143_s26 + $0x3e4] sm:$0xf0] }
 0x1d6   : > { %v1453_v45 = vpop.f32.mrf.mxu2  ;;  %v3876_v50 = vpop.f32.mrf.mxu1 }
 0x1d7   : > { %v1454_v6 = vadd.f32 %v3731_v57, %v1453_v45  ;;  %v1778_v45 = vadd.f32 %v3779_v22, %v1449_v7  ;;  %v2990_v7 = vld [vmem:[%s3143_s26 + $0x1e4] sm:$0xf] }
 0x1d8   : > { %v1296_v39 = vpop.f32.mrf.mxu0 }
 0x1d9   : > { %v1297_v9 = vadd.f32 %v3731_v57, %v1296_v39  ;;  %v1783_v52 = vadd.f32 %v3818_v28, %v1454_v6  ;;  %v1949_v29 = vmax.f32 %v1778_v45, 0.0 }
 0x1db   : > { %v1626_v55 = vadd.f32 %v1625_v20, %v1297_v9  ;;  %1335 = vmatmul.bf16.gmra.mxu0 %v2532_v41  ;;  %1495 = vmatmul.bf16.gmra.mxu2 %v2788_v0  ;;  %v1950_v41 = vmax.f32 %v1781_v10, 0.0  ;;  %v3054_v0 = vld [vmem:[%s3143_s26 + $0x3e4] sm:$0xf] }
 0x1dc   : > { %v2816_v9 = vor.u32 %v3054_v0, %v2813_v25  ;;  %v3056_v0 = vld [vmem:[%s3143_s26 + $0x3f4] sm:$0xf]  ;;  %v2821_v25 = vld [vmem:[%s3143_s26 + $0x3f8] sm:$0xf0] }
 0x1dd   : > { %v1888_v54 = vmax.f32 %v1626_v55, 0.0  ;;  %v3908_v51 = vpop.f32.mrf.mxu3 }
 0x1de   : > { %v1456_v20 = vpop.f32.mrf.mxu2  ;;  %v3901_v36 = vpop.f32.mrf.mxu1 }
 0x1df   : > { %v2018_v48 = vmax.f32 %v1886_v23, %v1888_v54  ;;  %v1457_v34 = vadd.f32 %v3731_v57, %v1456_v20 }
 0x1e0   : > { %v1298_v30 = vpop.f32.mrf.mxu0 }
 0x1e1   : > { %v2050_v61 = vmax.f32 %v1986_v15, %v2018_v48  ;;  %v1786_v16 = vadd.f32 %v3834_v12, %v1457_v34  ;;  %v1299_v3 = vadd.f32 %v3731_v57, %v1298_v30  ;;  %2890 = vmatmul.msk.bf16.gmra.mxu1 %vm999_vm0, %v2552_v26  ;;  %v2795_v12 = vld [vmem:[%s3143_s26 + $0x3c0] sm:$0xf]  ;;  %v1947_v48 = vmax.f32 %v1773_v38, 0.0  ;;  %v2557_v30 = vld [vmem:[%s3143_s26 + $0x1e8] sm:$0xf0] }
 0x1e2   : > { %v2796_v23 = vor.u32 %v3051_v32, %v2795_v12  ;;  %2923 = vmatmul.msk.bf16.gmra.mxu3 %vm999_vm0, %v2816_v9  ;;  %v1951_v34 = vmax.f32 %v1783_v52, 0.0  ;;  %v2560_v8 = vor.u32 %v2990_v7, %v2557_v30  ;;  %v2824_v32 = vor.u32 %v3056_v0, %v2821_v25  ;;  %v2803_v9 = vld [vmem:[%s3143_s26 + $0x3d0] sm:$0xf]  ;;  %v2555_v52 = vld [vmem:[%s3143_s26 + $0x1e0] sm:$0xf] }
 0x1e3   : > { %v2146_v39 = vmul.f32 2.0, %v2050_v61  ;;  %v1952_v18 = vmax.f32 %v1786_v16, 0.0  ;;  %v1628_v2 = vadd.f32 %v3850_v14, %v1299_v3  ;;  %v2003_v56 = vmax.f32 %v1947_v48, %v1949_v29  ;;  %v2099_v16 = vld [vmem:[%s3368_s20 + $0xc8] sm:$0xff] }
 0x1e4   : > { %vm2131_vm5 = vcmp.ge.f32.partialorder %v2099_v16, 0.5  ;;  %v2804_v45 = vor.u32 %v3053_v62, %v2803_v9  ;;  %v2993_v16 = vld [vmem:[%s3143_s26 + $0x1f4] sm:$0xf0] }
 0x1e5   : > { %v2178_v37 = vsel %vm2114_vm1, %v2146_v39, 0.0  ;;  %v2034_v55 = vmax.f32 %v1950_v41, %v1952_v18  ;;  %v1889_v24 = vmax.f32 %v1628_v2, 0.0  ;;  %v3932_v28 = vpop.f32.mrf.mxu3  ;;  %v2547_v18 = vld [vmem:[%s3143_s26 + $0x1d0] sm:$0xf]  ;;  %v2989_v2 = vld [vmem:[%s3143_s26 + $0x1d4] sm:$0xf0] }
 0x1e6   : > { %2211 = vst.msk [vmem:[%s3392_s23 + $0x40] sm:$0xff] %vm2202_vm2, %v2178_v37  ;;  %v1458_v14 = vpop.f32.mrf.mxu2  ;;  %v3927_v1 = vpop.f32.mrf.mxu1 }
 0x1e7   : > { %v2066_v58 = vmax.f32 %v2002_v4, %v2034_v55  ;;  %v2019_v54 = vmax.f32 %v1887_v63, %v1889_v24  ;;  %v1459_v22 = vadd.f32 %v3731_v57, %v1458_v14  ;;  %v2548_v4 = vor.u32 %v2989_v2, %v2547_v18  ;;  %v2992_v55 = vld [vmem:[%s3143_s26 + $0x1f4] sm:$0xf] }
 0x1e8   : > { %v3929_v27 = vpop.f32.mrf.mxu0  ;;  %v2568_v14 = vor.u32 %v2992_v55, %v2565_v59 }
 0x1e9   : > { %v2162_v10 = vmul.f32 2.0, %v2066_v58  ;;  %v2051_v20 = vmax.f32 %v1987_v53, %v2019_v54  ;;  %v1788_v15 = vadd.f32 %v3838_v43, %v1459_v22  ;;  %v2991_v58 = vld [vmem:[%s3143_s26 + $0x1e4] sm:$0xf0]  ;;  %v2811_v54 = vld [vmem:[%s3143_s26 + $0x3e0] sm:$0xf] }
 0x1ea   : > { %v2556_v29 = vor.u32 %v2991_v58, %v2555_v52 }
 0x1eb   : > { %v2194_v26 = vsel %vm2130_vm3, %v2162_v10, 0.0  ;;  %v2147_v13 = vmul.f32 2.0, %v2051_v20  ;;  %v1953_v46 = vmax.f32 %v1788_v15, 0.0  ;;  %1340 = vmatmul.bf16.gmra.mxu0 %v2540_v21  ;;  %1500 = vmatmul.bf16.gmra.mxu2 %v2796_v23  ;;  %v2812_v10 = vor.u32 %v3055_v42, %v2811_v54 }
 0x1ec   : > { %2227 = vst.msk [vmem:[%s3392_s23 + $0xc0] sm:$0xff] %vm2202_vm2, %v2194_v26  ;;  %v2573_v26 = vld [vmem:[%s3143_s26 + $0x208] sm:$0xf0] }
 0x1ed   : > { %v2179_v43 = vsel %vm2115_vm4, %v2147_v13, 0.0  ;;  %v2035_v61 = vmax.f32 %v1951_v34, %v1953_v46  ;;  %v3952_v12 = vpop.f32.mrf.mxu3  ;;  %v2994_v34 = vld [vmem:[%s3143_s26 + $0x204] sm:$0xf] }
 0x1ee   : > { %2212 = vst.msk [vmem:[%s3392_s23 + $0x48] sm:$0xff] %vm2202_vm2, %v2179_v43  ;;  %v3941_v3 = vpop.f32.mrf.mxu2  ;;  %v3943_v40 = vpop.f32.mrf.mxu1  ;;  %v2576_v46 = vor.u32 %v2994_v34, %v2573_v26  ;;  %v2084_v34 = vld [vmem:[%s3368_s20 + $0x50] sm:$0xff] }
 0x1ef   : > { %v2067_v44 = vmax.f32 %v2003_v56, %v2035_v61  ;;  %v2563_v61 = vld [vmem:[%s3143_s26 + $0x1f0] sm:$0xf] }
 0x1f0   : > { %v3945_v41 = vpop.f32.mrf.mxu0  ;;  %v2564_v18 = vor.u32 %v2993_v16, %v2563_v61 }
 0x1f1   : > { %v2163_v6 = vmul.f32 2.0, %v2067_v44  ;;  %2891 = vmatmul.msk.bf16.gmra.mxu1 %vm999_vm0, %v2560_v8  ;;  %v2819_v44 = vld [vmem:[%s3143_s26 + $0x3f0] sm:$0xf]  ;;  %v3057_v8 = vld [vmem:[%s3143_s26 + $0x3f4] sm:$0xf0] }
 0x1f2   : > { %2924 = vmatmul.msk.bf16.gmra.mxu3 %vm999_vm0, %v2824_v32  ;;  %v2820_v2 = vor.u32 %v3057_v8, %v2819_v44  ;;  %v1462_v32 = vadd.f32 %v3731_v57, %v3941_v3 }
 0x1f3   : > { %v2195_v39 = vsel %vm2131_vm5, %v2163_v6, 0.0  ;;  %v1302_v6 = vadd.f32 %v3731_v57, %v3929_v27 }
 0x1f4   : > { %2228 = vst.msk [vmem:[%s3392_s23 + $0xc8] sm:$0xff] %vm2202_vm2, %v2195_v39 }
 0x1f5   : > { %v3965_v24 = vpop.f32.mrf.mxu3 }
 0x1f6   : > { %v3958_v38 = vpop.f32.mrf.mxu2  ;;  %v3961_v63 = vpop.f32.mrf.mxu1 }
 0x1f7   : > { %v1464_v16 = vadd.f32 %v3731_v57, %v3958_v38 }
 0x1f8   : > { %v1306_v37 = vpop.f32.mrf.mxu0 }
 0x1f9   : > { %v1307_v43 = vadd.f32 %v3731_v57, %v1306_v37 }
 0x1fb   : > { %1345 = vmatmul.bf16.gmra.mxu0 %v2548_v4  ;;  %1505 = vmatmul.bf16.gmra.mxu2 %v2804_v45  ;;  %v1636_v39 = vadd.f32 %v3901_v36, %v1307_v43  ;;  %v1631_v45 = vadd.f32 %v3856_v35, %v1302_v6  ;;  %v1304_v35 = vadd.f32 %v3731_v57, %v3945_v41 }
 0x1fd   : > { %v3972_v20 = vpop.f32.mrf.mxu3  ;;  %v1892_v59 = vmax.f32 %v1636_v39, 0.0  ;;  %v1890_v52 = vmax.f32 %v1631_v45, 0.0  ;;  %v1633_v41 = vadd.f32 %v3876_v50, %v1304_v35  ;;  %v1793_v45 = vadd.f32 %v3858_v19, %v1464_v16 }
 0x1fe   : > { %v1466_v53 = vpop.f32.mrf.mxu2  ;;  %v1645_v21 = vpop.f32.mrf.mxu1 }
 0x1ff   : > { %v1467_v9 = vadd.f32 %v3731_v57, %v1466_v53  ;;  %v1791_v53 = vadd.f32 %v3852_v49, %v1462_v32 }
 0x200   : > { %v1308_v23 = vpop.f32.mrf.mxu0 }
 0x201   : > { %2892 = vmatmul.msk.bf16.gmra.mxu1 %vm999_vm0, %v2568_v14  ;;  %v1309_v55 = vadd.f32 %v3731_v57, %v1308_v23  ;;  %v1954_v26 = vmax.f32 %v1791_v53, 0.0 }
 0x203   : > { %v1638_v42 = vadd.f32 %v3927_v1, %v1309_v55 }
 0x205   : > { %v3980_v56 = vpop.f32.mrf.mxu3  ;;  %v1893_v44 = vmax.f32 %v1638_v42, 0.0 }
 0x206   : > { %v1468_v22 = vpop.f32.mrf.mxu2  ;;  %v3974_v15 = vpop.f32.mrf.mxu1 }
 0x208   : > { %v1311_v48 = vpop.f32.mrf.mxu0 }
 0x209   : > { %v1312_v0 = vadd.f32 %v3731_v57, %v1311_v48 }
 0x20b   : > { %1350 = vmatmul.bf16.gmra.mxu0 %v2556_v29  ;;  %1510 = vmatmul.bf16.gmra.mxu2 %v2812_v10  ;;  %v1641_v37 = vadd.f32 %v3943_v40, %v1312_v0  ;;  %v1796_v40 = vadd.f32 %v3881_v60, %v1467_v9  ;;  %v1988_v10 = vmax.f32 %v1890_v52, %v1892_v59  ;;  %v2100_v9 = vld [vmem:[%s3368_s20 + $0xd0] sm:$0xff]  ;;  %v1955_v52 = vmax.f32 %v1793_v45, 0.0 }
 0x20c   : > { %v1469_v60 = vadd.f32 %v3731_v57, %v1468_v22  ;;  %vm2132_vm6 = vcmp.ge.f32.partialorder %v2100_v9, 0.5 }
 0x20d   : > { %v4002_v3 = vpop.f32.mrf.mxu3  ;;  %v1894_v58 = vmax.f32 %v1641_v37, 0.0 }
 0x20e   : > { %v1471_v13 = vpop.f32.mrf.mxu2  ;;  %v3978_v7 = vpop.f32.mrf.mxu1 }
 0x20f   : > { %v1472_v36 = vadd.f32 %v3731_v57, %v1471_v13  ;;  %v1956_v13 = vmax.f32 %v1796_v40, 0.0 }
 0x210   : > { %v1313_v30 = vpop.f32.mrf.mxu0 }
 0x211   : > { %2893 = vmatmul.msk.bf16.gmra.mxu1 %vm999_vm0, %v2576_v46  ;;  %v1314_v23 = vadd.f32 %v3731_v57, %v1313_v30  ;;  %vm2116_vm0 = vcmp.ge.f32.partialorder %v2084_v34, 0.5  ;;  %v2004_v39 = vmax.f32 %v1954_v26, %v1956_v13 }
 0x213   : > { %v1643_v43 = vadd.f32 %v3961_v63, %v1314_v23  ;;  %v1891_v63 = vmax.f32 %v1633_v41, 0.0 }
 0x215   : > { %v1989_v37 = vmax.f32 %v1891_v63, %v1893_v44 }
 0x216   : > { %v1473_v25 = vpop.f32.mrf.mxu2  ;;  %v3995_v62 = vpop.f32.mrf.mxu1 }
 0x217   : > { %v1474_v50 = vadd.f32 %v3731_v57, %v1473_v25 }
 0x218   : > { %v1316_v4 = vpop.f32.mrf.mxu0 }
 0x219   : > { %v1317_v27 = vadd.f32 %v3731_v57, %v1316_v4  ;;  %v4026_v4 = vpop.f32.mrf.mxu3 }
 0x21b   : > { %v1646_v14 = vadd.f32 %v1645_v21, %v1317_v27  ;;  %1355 = vmatmul.bf16.gmra.mxu0 %v2564_v18  ;;  %1515 = vmatmul.bf16.gmra.mxu2 %v2820_v2  ;;  %v1801_v21 = vadd.f32 %v3932_v28, %v1472_v36  ;;  %v1895_v18 = vmax.f32 %v1643_v43, 0.0  ;;  %v2085_v36 = vld [vmem:[%s3368_s20 + $0x58] sm:$0xff] }
 0x21c   : > { %vm2117_vm7 = vcmp.ge.f32.partialorder %v2085_v36, 0.5 }
 0x21d   : > { %v1896_v54 = vmax.f32 %v1646_v14, 0.0  ;;  %v1958_v8 = vmax.f32 %v1801_v21, 0.0 }
 0x21e   : > { %v1476_v29 = vpop.f32.mrf.mxu2  ;;  %v4015_v46 = vpop.f32.mrf.mxu1 }
 0x21f   : > { %v2020_v48 = vmax.f32 %v1894_v58, %v1896_v54  ;;  %v1477_v49 = vadd.f32 %v3731_v57, %v1476_v29 }
 0x220   : > { %v1318_v30 = vpop.f32.mrf.mxu0 }
 0x221   : > { %v2052_v1 = vmax.f32 %v1988_v10, %v2020_v48  ;;  %v1806_v28 = vadd.f32 %v3965_v24, %v1477_v49  ;;  %v1319_v61 = vadd.f32 %v3731_v57, %v1318_v30  ;;  %v1798_v24 = vadd.f32 %v3908_v51, %v1469_v60  ;;  %v2101_v10 = vld [vmem:[%s3368_s20 + $0xd8] sm:$0xff]  ;;  %v4042_v49 = vpop.f32.mrf.mxu3 }
 0x222   : > { %vm2133_vm8 = vcmp.ge.f32.partialorder %v2101_v10, 0.5  ;;  %v2086_v10 = vld [vmem:[%s3368_s20 + $0x60] sm:$0xff] }
 0x223   : > { %v2148_v22 = vmul.f32 2.0, %v2052_v1  ;;  %v1960_v6 = vmax.f32 %v1806_v28, 0.0  ;;  %v1648_v0 = vadd.f32 %v3974_v15, %v1319_v61  ;;  %v1803_v15 = vadd.f32 %v3952_v12, %v1474_v50 }
 0x224   : > { %v1957_v53 = vmax.f32 %v1798_v24, 0.0  ;;  %vm2118_vm9 = vcmp.ge.f32.partialorder %v2086_v10, 0.5 }
 0x225   : > { %v2180_v2 = vsel %vm2116_vm0, %v2148_v22, 0.0  ;;  %v2036_v32 = vmax.f32 %v1958_v8, %v1960_v6  ;;  %v1897_v38 = vmax.f32 %v1648_v0, 0.0  ;;  %v1959_v12 = vmax.f32 %v1803_v15, 0.0 }
 0x226   : > { %2213 = vst.msk [vmem:[%s3392_s23 + $0x50] sm:$0xff] %vm2202_vm2, %v2180_v2  ;;  %v1478_v25 = vpop.f32.mrf.mxu2  ;;  %v4034_v59 = vpop.f32.mrf.mxu1  ;;  %v2005_v42 = vmax.f32 %v1955_v52, %v1957_v53 }
 0x227   : > { %v2068_v27 = vmax.f32 %v2004_v39, %v2036_v32  ;;  %v2021_v55 = vmax.f32 %v1895_v18, %v1897_v38  ;;  %v1479_v51 = vadd.f32 %v3731_v57, %v1478_v25 }
 0x228   : > { %v1321_v14 = vpop.f32.mrf.mxu0 }
 0x229   : > { %v2164_v19 = vmul.f32 2.0, %v2068_v27  ;;  %v2053_v35 = vmax.f32 %v1989_v37, %v2021_v55  ;;  %v1808_v40 = vadd.f32 %v3972_v20, %v1479_v51  ;;  %v1820_v1 = vpop.f32.mrf.mxu3  ;;  %v1322_v18 = vadd.f32 %v3731_v57, %v1321_v14 }
 0x22b   : > { %v2196_v58 = vsel %vm2132_vm6, %v2164_v19, 0.0  ;;  %v2149_v23 = vmul.f32 2.0, %v2053_v35  ;;  %v1961_v54 = vmax.f32 %v1808_v40, 0.0  ;;  %v1651_v27 = vadd.f32 %v3978_v7, %v1322_v18 }
 0x22c   : > { %2229 = vst.msk [vmem:[%s3392_s23 + $0xd0] sm:$0xff] %vm2202_vm2, %v2196_v58 }
 0x22d   : > { %v2181_v21 = vsel %vm2117_vm7, %v2149_v23, 0.0  ;;  %v2037_v29 = vmax.f32 %v1959_v12, %v1961_v54  ;;  %v1898_v52 = vmax.f32 %v1651_v27, 0.0 }
 0x22e   : > { %2214 = vst.msk [vmem:[%s3392_s23 + $0x58] sm:$0xff] %vm2202_vm2, %v2181_v21  ;;  %v1481_v48 = vpop.f32.mrf.mxu2  ;;  %v1660_v20 = vpop.f32.mrf.mxu1 }
 0x22f   : > { %v2069_v34 = vmax.f32 %v2005_v42, %v2037_v29  ;;  %v1482_v45 = vadd.f32 %v3731_v57, %v1481_v48 }
 0x230   : > { %v1323_v26 = vpop.f32.mrf.mxu0 }
 0x231   : > { %v2165_v41 = vmul.f32 2.0, %v2069_v34  ;;  %v4046_v44 = vpop.f32.mrf.mxu3  ;;  %v1811_v19 = vadd.f32 %v3980_v56, %v1482_v45  ;;  %v1324_v35 = vadd.f32 %v3731_v57, %v1323_v26  ;;  %v2102_v45 = vld [vmem:[%s3368_s20 + $0xe0] sm:$0xff] }
 0x232   : > { %vm2134_vm10 = vcmp.ge.f32.partialorder %v2102_v45, 0.5 }
 0x233   : > { %v2197_v13 = vsel %vm2133_vm8, %v2165_v41, 0.0  ;;  %v1962_v34 = vmax.f32 %v1811_v19, 0.0  ;;  %v1653_v56 = vadd.f32 %v3995_v62, %v1324_v35 }
 0x234   : > { %2230 = vst.msk [vmem:[%s3392_s23 + $0xd8] sm:$0xff] %vm2202_vm2, %v2197_v13 }
 0x236   : > { %v1483_v60 = vpop.f32.mrf.mxu2  ;;  %v1662_v30 = vpop.f32.mrf.mxu1 }
 0x238   : > { %v1326_v43 = vpop.f32.mrf.mxu0 }
 0x239   : > { %v1825_v6 = vpop.f32.mrf.mxu3  ;;  %v1327_v24 = vadd.f32 %v3731_v57, %v1326_v43 }
 0x23b   : > { %v1656_v9 = vadd.f32 %v4015_v46, %v1327_v24 }
 0x23d   : > { %v1900_v46 = vmax.f32 %v1656_v9, 0.0 }
 0x23e   : > { %v1486_v28 = vpop.f32.mrf.mxu2  ;;  %v1665_v61 = vpop.f32.mrf.mxu1 }
 0x23f   : > { %v1487_v37 = vadd.f32 %v3731_v57, %v1486_v28  ;;  %v1990_v21 = vmax.f32 %v1898_v52, %v1900_v46 }
 0x240   : > { %v1328_v16 = vpop.f32.mrf.mxu0 }
 0x241   : > { %v4054_v38 = vpop.f32.mrf.mxu3  ;;  %v1329_v51 = vadd.f32 %v3731_v57, %v1328_v16  ;;  %v1816_v40 = vadd.f32 %v4026_v4, %v1487_v37 }
 0x243   : > { %v1658_v23 = vadd.f32 %v4034_v59, %v1329_v51 }
 0x245   : > { %v1901_v16 = vmax.f32 %v1658_v23, 0.0 }
 0x246   : > { %v1488_v8 = vpop.f32.mrf.mxu2  ;;  %v1667_v50 = vpop.f32.mrf.mxu1 }
 0x247   : > { %v1489_v4 = vadd.f32 %v3731_v57, %v1488_v8 }
 0x248   : > { %v1331_v22 = vpop.f32.mrf.mxu0 }
 0x249   : > { %v1332_v2 = vadd.f32 %v3731_v57, %v1331_v22 }
 0x24b   : > { %v1661_v55 = vadd.f32 %v1660_v20, %v1332_v2  ;;  %v1964_v20 = vmax.f32 %v1816_v40, 0.0 }
 0x24d   : > { %v1902_v12 = vmax.f32 %v1661_v55, 0.0  ;;  %v2006_v24 = vmax.f32 %v1962_v34, %v1964_v20  ;;  %v2087_v55 = vld [vmem:[%s3368_s20 + $0x68] sm:$0xff] }
 0x24e   : > { %v1491_v0 = vpop.f32.mrf.mxu2  ;;  %v4048_v63 = vpop.f32.mrf.mxu1  ;;  %vm2119_vm11 = vcmp.ge.f32.partialorder %v2087_v55, 0.5 }
 0x24f   : > { %v1492_v14 = vadd.f32 %v3731_v57, %v1491_v0 }
 0x250   : > { %v1333_v39 = vpop.f32.mrf.mxu0 }
 0x251   : > { %v1334_v7 = vadd.f32 %v3731_v57, %v1333_v39  ;;  %v1821_v54 = vadd.f32 %v1820_v1, %v1492_v14  ;;  %v4076_v1 = vpop.f32.mrf.mxu3 }
 0x253   : > { %v1663_v13 = vadd.f32 %v1662_v30, %v1334_v7  ;;  %v1966_v22 = vmax.f32 %v1821_v54, 0.0  ;;  %v1899_v30 = vmax.f32 %v1653_v56, 0.0 }
 0x255   : > { %v1903_v18 = vmax.f32 %v1663_v13, 0.0 }
 0x256   : > { %v1493_v32 = vpop.f32.mrf.mxu2  ;;  %v4058_v25 = vpop.f32.mrf.mxu1 }
 0x257   : > { %v1494_v62 = vadd.f32 %v3731_v57, %v1493_v32 }
 0x258   : > { %v1336_v15 = vpop.f32.mrf.mxu0 }
 0x259   : > { %v1337_v36 = vadd.f32 %v3731_v57, %v1336_v15  ;;  %v1991_v15 = vmax.f32 %v1899_v30, %v1901_v16  ;;  %v4096_v7 = vpop.f32.mrf.mxu3 }
 0x25b   : > { %v1666_v53 = vadd.f32 %v1665_v61, %v1337_v36  ;;  %v1484_v61 = vadd.f32 %v3731_v57, %v1483_v60 }
 0x25d   : > { %v1904_v58 = vmax.f32 %v1666_v53, 0.0  ;;  %v1813_v60 = vadd.f32 %v4002_v3, %v1484_v61 }
 0x25e   : > { %v1496_v42 = vpop.f32.mrf.mxu2  ;;  %v4073_v26 = vpop.f32.mrf.mxu1 }
 0x25f   : > { %v2022_v29 = vmax.f32 %v1902_v12, %v1904_v58  ;;  %v1497_v48 = vadd.f32 %v3731_v57, %v1496_v42  ;;  %v1963_v19 = vmax.f32 %v1813_v60, 0.0  ;;  %v2103_v42 = vld [vmem:[%s3368_s20 + $0xe8] sm:$0xff] }
 0x260   : > { %v1338_v41 = vpop.f32.mrf.mxu0  ;;  %vm2135_vm12 = vcmp.ge.f32.partialorder %v2103_v42, 0.5 }
 0x261   : > { %v2054_v43 = vmax.f32 %v1990_v21, %v2022_v29  ;;  %v1826_v28 = vadd.f32 %v1825_v6, %v1497_v48  ;;  %v1339_v59 = vadd.f32 %v3731_v57, %v1338_v41  ;;  %v1818_v6 = vadd.f32 %v4042_v49, %v1489_v4  ;;  %v4090_v49 = vld [vmem:[%s4170_s2] ss:$0 sm:$0xff]  ;;  %v1835_v56 = vpop.f32.mrf.mxu3 }
 0x262   : > { %v1823_v57 = vadd.f32 %v4046_v44, %v1494_v62 }
 0x263   : > { %v2150_v8 = vmul.f32 2.0, %v2054_v43  ;;  %v1968_v0 = vmax.f32 %v1826_v28, 0.0  ;;  %v1668_v39 = vadd.f32 %v1667_v50, %v1339_v59  ;;  %v1965_v14 = vmax.f32 %v1818_v6, 0.0 }
 0x264   : > { %v1967_v35 = vmax.f32 %v1823_v57, 0.0  ;;  %v1916_v6 = vmax.f32 %v3305_v31, 0.0 }
 0x265   : > { %v2182_v2 = vsel %vm2118_vm9, %v2150_v8, 0.0  ;;  %v2038_v9 = vmax.f32 %v1966_v22, %v1968_v0  ;;  %v1905_v37 = vmax.f32 %v1668_v39, 0.0  ;;  %v2007_v58 = vmax.f32 %v1963_v19, %v1965_v14 }
 0x266   : > { %2215 = vst.msk [vmem:[%s3392_s23 + $0x60] sm:$0xff] %vm2202_vm2, %v2182_v2  ;;  %v1498_v27 = vpop.f32.mrf.mxu2  ;;  %v4093_v51 = vpop.f32.mrf.mxu1  ;;  %v1362_v0 = vadd.f32 %v4090_v49, %v3275_v5  ;;  %v1364_v5 = vadd.f32 %v4090_v49, %v3290_v17  ;;  %v1917_v17 = vmax.f32 %v3321_v47, 0.0 }
 0x267   : > { %v2070_v32 = vmax.f32 %v2006_v24, %v2038_v9  ;;  %v2023_v50 = vmax.f32 %v1903_v18, %v1905_v37  ;;  %v1499_v36 = vadd.f32 %v4090_v49, %v1498_v27  ;;  %v2090_v27 = vld [vmem:[%s3368_s20 + $0x80] sm:$0xff] }
 0x268   : > { %v1341_v3 = vpop.f32.mrf.mxu0  ;;  %vm2122_vm13 = vcmp.ge.f32.partialorder %v2090_v27, 0.5 }
 0x269   : > { %v2166_v46 = vmul.f32 2.0, %v2070_v32  ;;  %v2055_v44 = vmax.f32 %v1991_v15, %v2023_v50  ;;  %v1828_v53 = vadd.f32 %v4054_v38, %v1499_v36  ;;  %v4107_v43 = vpop.f32.mrf.mxu3  ;;  %v1342_v9 = vadd.f32 %v4090_v49, %v1341_v3 }
 0x26b   : > { %v2198_v40 = vsel %vm2134_vm10, %v2166_v46, 0.0  ;;  %v2151_v52 = vmul.f32 2.0, %v2055_v44  ;;  %v1969_v12 = vmax.f32 %v1828_v53, 0.0  ;;  %v1671_v50 = vadd.f32 %v4048_v63, %v1342_v9 }
 0x26c   : > { %2231 = vst.msk [vmem:[%s3392_s23 + $0xe0] sm:$0xff] %vm2202_vm2, %v2198_v40 }
 0x26d   : > { %v2183_v23 = vsel %vm2119_vm11, %v2151_v52, 0.0  ;;  %v2039_v54 = vmax.f32 %v1967_v35, %v1969_v12  ;;  %v1906_v12 = vmax.f32 %v1671_v50, 0.0 }
 0x26e   : > { %2216 = vst.msk [vmem:[%s3392_s23 + $0x68] sm:$0xff] %vm2202_vm2, %v2183_v23  ;;  %v1501_v21 = vpop.f32.mrf.mxu2  ;;  %v1680_v38 = vpop.f32.mrf.mxu1 }
 0x26f   : > { %v2071_v29 = vmax.f32 %v2007_v58, %v2039_v54  ;;  %v1502_v45 = vadd.f32 %v4090_v49, %v1501_v21  ;;  %v2091_v21 = vld [vmem:[%s3368_s20 + $0x88] sm:$0xff] }
 0x270   : > { %v1343_v10 = vpop.f32.mrf.mxu0  ;;  %vm2123_vm14 = vcmp.ge.f32.partialorder %v2091_v21, 0.5 }
 0x271   : > { %v2167_v48 = vmul.f32 2.0, %v2071_v29  ;;  %v1840_v62 = vpop.f32.mrf.mxu3  ;;  %v1831_v55 = vadd.f32 %v4076_v1, %v1502_v45 }
 0x273   : > { %v2199_v34 = vsel %vm2135_vm12, %v2167_v48, 0.0  ;;  %v1970_v54 = vmax.f32 %v1831_v55, 0.0 }
 0x274   : > { %2232 = vst.msk [vmem:[%s3392_s23 + $0xe8] sm:$0xff] %vm2202_vm2, %v2199_v34 }
 0x276   : > { %v1503_v20 = vpop.f32.mrf.mxu2  ;;  %v4105_v4 = vpop.f32.mrf.mxu1 }
 0x278   : > { %v1346_v41 = vpop.f32.mrf.mxu0 }
 0x279   : > { %v1347_v18 = vadd.f32 %v4090_v49, %v1346_v41  ;;  %v4117_v37 = vpop.f32.mrf.mxu3 }
 0x27b   : > { %v1676_v32 = vadd.f32 %v4073_v26, %v1347_v18 }
 0x27d   : > { %v1908_v1 = vmax.f32 %v1676_v32, 0.0 }
 0x27e   : > { %v1506_v13 = vpop.f32.mrf.mxu2  ;;  %v1685_v28 = vpop.f32.mrf.mxu1 }
 0x27f   : > { %v1507_v36 = vadd.f32 %v4090_v49, %v1506_v13 }
 0x280   : > { %v1348_v59 = vpop.f32.mrf.mxu0 }
 0x281   : > { %v1349_v63 = vadd.f32 %v4090_v49, %v1348_v59  ;;  %v1836_v58 = vadd.f32 %v1835_v56, %v1507_v36  ;;  %v1845_v41 = vpop.f32.mrf.mxu3  ;;  %v1992_v56 = vmax.f32 %v1906_v12, %v1908_v1 }
 0x283   : > { %v1678_v48 = vadd.f32 %v4093_v51, %v1349_v63 }
 0x286   : > { %v1508_v61 = vpop.f32.mrf.mxu2  ;;  %v4109_v16 = vpop.f32.mrf.mxu1 }
 0x288   : > { %v1351_v22 = vpop.f32.mrf.mxu0 }
 0x289   : > { %v1352_v60 = vadd.f32 %v4090_v49, %v1351_v22  ;;  %v2088_v22 = vld [vmem:[%s3368_s20 + $0x70] sm:$0xff] }
 0x28a   : > { %vm2120_vm15 = vcmp.ge.f32.partialorder %v2088_v22, 0.5 }
 0x28b   : > { %v1681_v46 = vadd.f32 %v1680_v38, %v1352_v60 }
 0x28d   : > { %v1910_v42 = vmax.f32 %v1681_v46, 0.0  ;;  %v2089_v46 = vld [vmem:[%s3368_s20 + $0x78] sm:$0xff] }
 0x28e   : > { %v1511_v8 = vpop.f32.mrf.mxu2  ;;  %v1690_v39 = vpop.f32.mrf.mxu1  ;;  %vm2121_vm3 = vcmp.ge.f32.partialorder %v2089_v46, 0.5 }
 0x28f   : > { %v1691_v24 = vadd.f32 %v1690_v39, %v1362_v0  ;;  %v1512_v26 = vadd.f32 %v4090_v49, %v1511_v8  ;;  %v1972_v0 = vmax.f32 %v1836_v58, 0.0  ;;  %v1509_v39 = vadd.f32 %v4090_v49, %v1508_v61 }
 0x290   : > { %v1353_v30 = vpop.f32.mrf.mxu0 }
 0x291   : > { %v1914_v2 = vmax.f32 %v1691_v24, 0.0  ;;  %v1354_v23 = vadd.f32 %v4090_v49, %v1353_v30  ;;  %v1841_v34 = vadd.f32 %v1840_v62, %v1512_v26  ;;  %v2008_v60 = vmax.f32 %v1970_v54, %v1972_v0 }
 0x293   : > { %v1994_v15 = vmax.f32 %v1914_v2, %v1916_v6  ;;  %v1683_v30 = vadd.f32 %v4105_v4, %v1354_v23  ;;  %v1909_v6 = vmax.f32 %v1678_v48, 0.0 }
 0x295   : > { %v2058_v31 = vmax.f32 %v1994_v15, %v3401_v11  ;;  %v1344_v11 = vadd.f32 %v4090_v49, %v1343_v10  ;;  %v1504_v10 = vadd.f32 %v4090_v49, %v1503_v20  ;;  %v1838_v15 = vadd.f32 %v4107_v43, %v1509_v39 }
 0x296   : > { %v1513_v57 = vpop.f32.mrf.mxu2  ;;  %v1692_v3 = vpop.f32.mrf.mxu1  ;;  %v1911_v27 = vmax.f32 %v1683_v30, 0.0 }
 0x297   : > { %v2154_v44 = vmul.f32 2.0, %v2058_v31  ;;  %v1693_v53 = vadd.f32 %v1692_v3, %v1364_v5  ;;  %v1673_v38 = vadd.f32 %v4058_v25, %v1344_v11  ;;  %v1514_v18 = vadd.f32 %v4090_v49, %v1513_v57  ;;  %v2104_v31 = vld [vmem:[%s3368_s20 + $0xf0] sm:$0xff] }
 0x298   : > { %v1356_v14 = vpop.f32.mrf.mxu0  ;;  %v1833_v57 = vadd.f32 %v4096_v7, %v1504_v10  ;;  %vm2136_vm1 = vcmp.ge.f32.partialorder %v2104_v31, 0.5 }
 0x299   : > { %v1357_v19 = vadd.f32 %v4090_v49, %v1356_v14  ;;  %v2186_v35 = vsel %vm2122_vm13, %v2154_v44, 0.0  ;;  %v1915_v40 = vmax.f32 %v1693_v53, 0.0  ;;  %v1907_v45 = vmax.f32 %v1673_v38, 0.0  ;;  %v1847_v44 = vpop.f32.mrf.mxu3 }
 0x29a   : > { %2219 = vst.msk [vmem:[%s3392_s23 + $0x80] sm:$0xff] %vm2202_vm2, %v2186_v35  ;;  %v1973_v53 = vmax.f32 %v1838_v15, 0.0  ;;  %v1971_v11 = vmax.f32 %v1833_v57, 0.0 }
 0x29b   : > { %v1686_v52 = vadd.f32 %v1685_v28, %v1357_v19  ;;  %v1995_v47 = vmax.f32 %v1915_v40, %v1917_v17  ;;  %v1993_v55 = vmax.f32 %v1907_v45, %v1909_v6 }
 0x29c   : > { %v2009_v35 = vmax.f32 %v1971_v11, %v1973_v53 }
 0x29d   : > { %v1912_v29 = vmax.f32 %v1686_v52, 0.0  ;;  %v2059_v28 = vmax.f32 %v1995_v47, %v3418_v33  ;;  %v1974_v33 = vmax.f32 %v1841_v34, 0.0  ;;  %v2105_v52 = vld [vmem:[%s3368_s20 + $0xf8] sm:$0xff] }
 0x29e   : > { %v1516_v13 = vpop.f32.mrf.mxu2  ;;  %vm2137_vm4 = vcmp.ge.f32.partialorder %v2105_v52, 0.5 }
 0x29f   : > { %v2024_v59 = vmax.f32 %v1910_v42, %v1912_v29  ;;  %v1517_v8 = vadd.f32 %v4090_v49, %v1516_v13  ;;  %v2155_v20 = vmul.f32 2.0, %v2059_v28 }
 0x2a0   : > { %v1358_v25 = vpop.f32.mrf.mxu0 }
 0x2a1   : > { %v2056_v51 = vmax.f32 %v1992_v56, %v2024_v59  ;;  %v1846_v62 = vadd.f32 %v1845_v41, %v1517_v8  ;;  %v1359_v24 = vadd.f32 %v4090_v49, %v1358_v25  ;;  %v2187_v2 = vsel %vm2123_vm14, %v2155_v20, 0.0 }
 0x2a2   : > { %2220 = vst.msk [vmem:[%s3392_s23 + $0x88] sm:$0xff] %vm2202_vm2, %v2187_v2 }
 0x2a3   : > { %v2152_v9 = vmul.f32 2.0, %v2056_v51  ;;  %v1976_v61 = vmax.f32 %v1846_v62, 0.0  ;;  %v1688_v4 = vadd.f32 %v4109_v16, %v1359_v24  ;;  %v1843_v16 = vadd.f32 %v4117_v37, %v1514_v18 }
 0x2a5   : > { %v2184_v5 = vsel %vm2120_vm15, %v2152_v9, 0.0  ;;  %v2040_v32 = vmax.f32 %v1974_v33, %v1976_v61  ;;  %v1913_v50 = vmax.f32 %v1688_v4, 0.0  ;;  %v1975_v63 = vmax.f32 %v1843_v16, 0.0 }
 0x2a6   : > { %2217 = vst.msk [vmem:[%s3392_s23 + $0x70] sm:$0xff] %vm2202_vm2, %v2184_v5  ;;  %v1518_v36 = vpop.f32.mrf.mxu2 }
 0x2a7   : > { %v2072_v3 = vmax.f32 %v2008_v60, %v2040_v32  ;;  %v2025_v14 = vmax.f32 %v1911_v27, %v1913_v50  ;;  %v1519_v43 = vadd.f32 %v4090_v49, %v1518_v36 }
 0x2a9   : > { %v2168_v19 = vmul.f32 2.0, %v2072_v3  ;;  %v2057_v17 = vmax.f32 %v1993_v55, %v2025_v14  ;;  %v1848_v7 = vadd.f32 %v1847_v44, %v1519_v43 }
 0x2ab   : > { %v2200_v26 = vsel %vm2136_vm1, %v2168_v19, 0.0  ;;  %v2153_v37 = vmul.f32 2.0, %v2057_v17  ;;  %v1977_v1 = vmax.f32 %v1848_v7, 0.0 }
 0x2ac   : > { %2233 = vst.msk [vmem:[%s3392_s23 + $0xf0] sm:$0xff] %vm2202_vm2, %v2200_v26 }
 0x2ad   : > { %v2185_v40 = vsel %vm2121_vm3, %v2153_v37, 0.0  ;;  %v2041_v49 = vmax.f32 %v1975_v63, %v1977_v1 }
 0x2ae   : > { %2218 = vst.msk [vmem:[%s3392_s23 + $0x78] sm:$0xff] %vm2202_vm2, %v2185_v40 }
 0x2af   : > { %v2073_v12 = vmax.f32 %v2009_v35, %v2041_v49 }
 0x2b1   : > { %v2169_v58 = vmul.f32 2.0, %v2073_v12 }
 0x2b3   : > { %v2201_v23 = vsel %vm2137_vm4, %v2169_v58, 0.0 }
 0x2b4   : > { %2234 = vst.msk [vmem:[%s3392_s23 + $0xf8] sm:$0xff] %vm2202_vm2, %v2201_v23 }
 0x2b5 PF: > { %s14_s15 = sadd.s32 1, %s3093_s15  }
 0x2b6   : > { %p11_p4 = scmp.ge.s32.totalorder %s14_s15, 4  }
 0x2b8   :  { %13 = sbr.rel (!%p11_p4) target bundleno = 1 (0x1), region = 69 }

// kernel: cnn_forward.7
= control target key start
LH: loop header
LB: loop body
LE: loop exit
PB: predicated region body
PF: predicated region fallthrough
CT: control target
= control target key end

     0   :  { %s1572_s15 = smov 0   ;;  %s1895_s0 = inlined_call_operand.vmem [shape: bf16[2,256,288], index: 0, kind: input, shape index: {}]   ;;  %s1896_s1 = inlined_call_operand.vmem [shape: bf16[288,64], index: 1, kind: input, shape index: {}]   ;;  %s1897_s2 = inlined_call_operand.vmem [shape: f32[1,64], index: 2, kind: input, shape index: {}]   ;;  %s1898_s3 = inlined_call_operand.vmem [shape: f32[2,64,64], index: 3, kind: input, shape index: {}]   ;;  %s1899_s4 = inlined_call_operand.vmem [shape: f32[2,64,64], index: 4, kind: output, shape index: {}]  }
   0x1 LB: > { %s1151_s16 = sadd.s32 4294967295, %s1545_s15   ;;  %p1155_p0 = scmp.ge.s32.totalorder %s1545_s15, 1  ;;  %s1545_s15 = sphi %s1572_s15, %s14_s15  }
   0x2   : > { %p172_p1 = scmp.lt.s32.totalorder %s1545_s15, 3 }
   0x4   : > { %p173_p2 = pnand %p1155_p0, %p172_p1 }
   0x5   : > { %p203_p3 = scmp.lt.s32.totalorder (!%p173_p2), %s1151_s16, 1 }
   0x6   : > { %176 = sbr.rel (%p173_p2) target bundleno = 380 (0x17c), region = 36 }
   0xb   : > { %v1500_v0 = vld [vmem:[%s1896_s1 + $0x38] sm:$0xff]  ;;  %v1586_v1 = vld [vmem:[%s1896_s1 + $0x88] sm:$0xff]  ;;  %v1499_v3 = vld [vmem:[%s1896_s1 + $0x30] sm:$0xff]  ;;  %s1901_s16 = smov (!%p203_p3, %s1151_s16), 1  ;;  %vm671_vm0 = vcmask 261120   ;;  %vm1075_vm2 = vcmask 523264  }
   0xc   : > { %v1591_v2 = vld [vmem:[%s1896_s1 + $0x78] sm:$0xff]  ;;  %720 = vmatpush.bf16.msra.mxu0 %v1500_v0  ;;  %1511 = vmatpush.bf16.msra.mxu3 %v1500_v0  ;;  %v1603_v4 = vld [vmem:[%s1896_s1 + $0x80] sm:$0xff]  ;;  %v1507_v5 = vld [vmem:[%s1896_s1 + $0x70] sm:$0xff]  ;;  %s1529_s29 = smul.u32 384, %s1901_s16  ;;  %s1443_s10 = sshll.u32 %s1901_s16, 6 }
   0xd   : > { %904 = vmatpush.bf16.msra.mxu2 %v1586_v1  ;;  %809 = vmatpush.bf16.msra.mxu1 %v1591_v2  ;;  %v1498_v6 = vld [vmem:[%s1896_s1 + $0x28] sm:$0xff]  ;;  %v1497_v11 = vld [vmem:[%s1896_s1 + $0x20] sm:$0xff]  ;;  %v1496_v13 = vld [vmem:[%s1896_s1 + $0x18] sm:$0xff]  ;;  %s1782_s13 = scalar_lea.vmem %s1898_s3, %s1443_s10  ;;  %s1790_s17 = scalar_lea.vmem %s1899_s4, %s1443_s10 }
   0xe   : > { %s1612_s6 = scalar_lea.vmem %s1895_s0, %s1529_s29  ;;  %v1506_v9 = vld [vmem:[%s1896_s1 + $0x68] sm:$0xff]  ;;  %v1505_v12 = vld [vmem:[%s1896_s1 + $0x60] sm:$0xff]  ;;  %v1504_v14 = vld [vmem:[%s1896_s1 + $0x58] sm:$0xff] }
   0xf   : > { %v1171_v7 = vld [vmem:[%s1612_s6 + $0x8] sm:$0xf]  ;;  %v1447_v8 = vld [vmem:[%s1612_s6 + $0x10] sm:$0xf0]  ;;  %v1183_v17 = vld [vmem:[%s1612_s6 + $0x20] sm:$0xf] }
  0x10   : > { %721 = vmatpush.bf16.msra.mxu0 %v1499_v3  ;;  %1512 = vmatpush.bf16.msra.mxu3 %v1499_v3  ;;  %v1172_v10 = vor.u32 %v1447_v8, %v1171_v7  ;;  %v1495_v15 = vld [vmem:[%s1896_s1 + $0x10] sm:$0xff]  ;;  %v1450_v18 = vld [vmem:[%s1612_s6 + $0x28] sm:$0xf0]  ;;  %v1493_v22 = vld [vmem:[%s1896_s1] sm:$0xff] }
  0x11   : > { %905 = vmatpush.bf16.msra.mxu2 %v1603_v4  ;;  %810 = vmatpush.bf16.msra.mxu1 %v1507_v5  ;;  %v1503_v16 = vld [vmem:[%s1896_s1 + $0x50] sm:$0xff]  ;;  %v1184_v19 = vor.u32 %v1450_v18, %v1183_v17  ;;  %v1494_v20 = vld [vmem:[%s1896_s1 + $0x8] sm:$0xff]  ;;  %v1501_v23 = vld [vmem:[%s1896_s1 + $0x40] sm:$0xff] }
  0x12   : > { %v1502_v21 = vld [vmem:[%s1896_s1 + $0x48] sm:$0xff]  ;;  %v1163_v24 = vld [vmem:[%s1612_s6] sm:$0xf]  ;;  %v1445_v28 = vld [vmem:[%s1612_s6 + $0x4] sm:$0xf] }
  0x13   : > { %v1446_v25 = vld [vmem:[%s1612_s6 + $0x8] sm:$0xf0]  ;;  %v1307_v26 = vld [vmem:[%s1612_s6 + $0x120] sm:$0xf]  ;;  %v1165_v29 = vld [vmem:[%s1612_s6 + $0xc] sm:$0xf0] }
  0x14   : > { %1425 = vmatmul.msk.bf16.vlgmr.msra.gmra.mxu2 %vm671_vm0, %v1172_v10  ;;  %722 = vmatpush.bf16.msra.mxu0 %v1498_v6  ;;  %v1482_v27 = vld [vmem:[%s1612_s6 + $0x128] sm:$0xf0]  ;;  %v1164_v30 = vor.u32 %v1446_v25, %v1163_v24  ;;  %v1168_v32 = vor.u32 %v1445_v28, %v1165_v29  ;;  %v1195_v33 = vld [vmem:[%s1612_s6 + $0x38] sm:$0xf]  ;;  %v1453_v34 = vld [vmem:[%s1612_s6 + $0x40] sm:$0xf0] }
  0x15   : > { %1513 = vmatpush.bf16.msra.mxu3 %v1498_v6  ;;  %811 = vmatpush.bf16.msra.mxu1 %v1506_v9  ;;  %v1308_v31 = vor.u32 %v1482_v27, %v1307_v26  ;;  %v1196_v35 = vor.u32 %v1453_v34, %v1195_v33  ;;  %v1175_v36 = vld [vmem:[%s1612_s6 + $0x18] sm:$0xf]  ;;  %v1449_v37 = vld [vmem:[%s1612_s6 + $0x20] sm:$0xf0]  ;;  %v1448_v40 = vld [vmem:[%s1612_s6 + $0x1c] sm:$0xf] }
  0x16   : > { %v1319_v38 = vld [vmem:[%s1612_s6 + $0x138] sm:$0xf]  ;;  %v1485_v39 = vld [vmem:[%s1612_s6 + $0x140] sm:$0xf0]  ;;  %v1177_v41 = vld [vmem:[%s1612_s6 + $0x24] sm:$0xf0]  ;;  %v1176_v42 = vor.u32 %v1449_v37, %v1175_v36 }
  0x17   : > { %v1320_v43 = vor.u32 %v1485_v39, %v1319_v38  ;;  %v1180_v44 = vor.u32 %v1448_v40, %v1177_v41  ;;  %v1207_v45 = vld [vmem:[%s1612_s6 + $0x50] sm:$0xf]  ;;  %v1456_v46 = vld [vmem:[%s1612_s6 + $0x58] sm:$0xf0]  ;;  %v1451_v52 = vld [vmem:[%s1612_s6 + $0x34] sm:$0xf] }
  0x18   : > { %723 = vmatpush.bf16.msra.mxu0 %v1497_v11  ;;  %v1208_v47 = vor.u32 %v1456_v46, %v1207_v45  ;;  %v1187_v48 = vld [vmem:[%s1612_s6 + $0x30] sm:$0xf]  ;;  %v1452_v49 = vld [vmem:[%s1612_s6 + $0x38] sm:$0xf0]  ;;  %v1189_v53 = vld [vmem:[%s1612_s6 + $0x3c] sm:$0xf0] }
  0x19   : > { %1514 = vmatpush.bf16.msra.mxu3 %v1497_v11  ;;  %812 = vmatpush.bf16.msra.mxu1 %v1505_v12  ;;  %v1331_v50 = vld [vmem:[%s1612_s6 + $0x150] sm:$0xf]  ;;  %v1488_v51 = vld [vmem:[%s1612_s6 + $0x158] sm:$0xf0]  ;;  %v1188_v54 = vor.u32 %v1452_v49, %v1187_v48  ;;  %v1192_v56 = vor.u32 %v1451_v52, %v1189_v53  ;;  %v1219_v57 = vld [vmem:[%s1612_s6 + $0x68] sm:$0xf] }
  0x1a   : > { %v1332_v55 = vor.u32 %v1488_v51, %v1331_v50  ;;  %v1459_v58 = vld [vmem:[%s1612_s6 + $0x70] sm:$0xf0]  ;;  %v1199_v60 = vld [vmem:[%s1612_s6 + $0x48] sm:$0xf]  ;;  %v1454_v0 = vld [vmem:[%s1612_s6 + $0x4c] sm:$0xf] }
  0x1b   : > { %v1220_v59 = vor.u32 %v1459_v58, %v1219_v57  ;;  %v1455_v61 = vld [vmem:[%s1612_s6 + $0x50] sm:$0xf0]  ;;  %v1343_v62 = vld [vmem:[%s1612_s6 + $0x168] sm:$0xf]  ;;  %v1462_v6 = vld [vmem:[%s1612_s6 + $0x88] sm:$0xf0] }
  0x1c   : > { %724 = vmatpush.bf16.msra.mxu0 %v1496_v13  ;;  %v1491_v63 = vld [vmem:[%s1612_s6 + $0x170] sm:$0xf0]  ;;  %v1211_v8 = vld [vmem:[%s1612_s6 + $0x60] sm:$0xf]  ;;  %v1481_v10 = vld [vmem:[%s1612_s6 + $0x124] sm:$0xf] }
  0x1d   : > { %1515 = vmatpush.bf16.msra.mxu3 %v1496_v13  ;;  %813 = vmatpush.bf16.msra.mxu1 %v1504_v14  ;;  %v1344_v3 = vor.u32 %v1491_v63, %v1343_v62  ;;  %v1309_v11 = vld [vmem:[%s1612_s6 + $0x12c] sm:$0xf0]  ;;  %v1243_v17 = vld [vmem:[%s1612_s6 + $0x98] sm:$0xf]  ;;  %v1465_v18 = vld [vmem:[%s1612_s6 + $0xa0] sm:$0xf0] }
  0x1e   : > { %v1213_v13 = vld [vmem:[%s1612_s6 + $0x6c] sm:$0xf0]  ;;  %v1460_v24 = vld [vmem:[%s1612_s6 + $0x7c] sm:$0xf]  ;;  %v1225_v25 = vld [vmem:[%s1612_s6 + $0x84] sm:$0xf0] }
  0x1f   : > { %v1228_v28 = vor.u32 %v1460_v24, %v1225_v25  ;;  %v1255_v29 = vld [vmem:[%s1612_s6 + $0xb0] sm:$0xf]  ;;  %v1464_v33 = vld [vmem:[%s1612_s6 + $0x98] sm:$0xf0]  ;;  %v1487_v34 = vld [vmem:[%s1612_s6 + $0x154] sm:$0xf] }
  0x20   : > { %725 = vmatpush.bf16.msra.mxu0 %v1495_v15  ;;  %v1463_v36 = vld [vmem:[%s1612_s6 + $0x94] sm:$0xf]  ;;  %v1237_v37 = vld [vmem:[%s1612_s6 + $0x9c] sm:$0xf0]  ;;  %v1267_v41 = vld [vmem:[%s1612_s6 + $0xc8] sm:$0xf] }
  0x21   : > { %1516 = vmatpush.bf16.msra.mxu3 %v1495_v15  ;;  %814 = vmatpush.bf16.msra.mxu1 %v1503_v16  ;;  %v1312_v15 = vor.u32 %v1481_v10, %v1309_v11  ;;  %v1240_v40 = vor.u32 %v1463_v36, %v1237_v37  ;;  %v1467_v45 = vld [vmem:[%s1612_s6 + $0xb0] sm:$0xf0]  ;;  %v1490_v46 = vld [vmem:[%s1612_s6 + $0x16c] sm:$0xf]  ;;  %v1249_v49 = vld [vmem:[%s1612_s6 + $0xb4] sm:$0xf0] }
  0x22   : > { %v1466_v48 = vld [vmem:[%s1612_s6 + $0xac] sm:$0xf]  ;;  %v1259_v58 = vld [vmem:[%s1612_s6 + $0xc0] sm:$0xf]  ;;  %v1469_v62 = vld [vmem:[%s1612_s6 + $0xc4] sm:$0xf] }
  0x23   : > { %v1252_v53 = vor.u32 %v1466_v48, %v1249_v49  ;;  %v1261_v63 = vld [vmem:[%s1612_s6 + $0xcc] sm:$0xf0]  ;;  %v1475_v49 = vld [vmem:[%s1612_s6 + $0xf4] sm:$0xf] }
  0x24   : > { %1426 = vmatmul.msk.bf16.gmra.mxu2 %vm671_vm0, %v1184_v19  ;;  %726 = vmatpush.bf16.msra.mxu0 %v1494_v20  ;;  %v1244_v19 = vor.u32 %v1465_v18, %v1243_v17  ;;  %v1472_v17 = vld [vmem:[%s1612_s6 + $0xdc] sm:$0xf]  ;;  %v1273_v18 = vld [vmem:[%s1612_s6 + $0xe4] sm:$0xf0] }
  0x25   : > { %1517 = vmatpush.bf16.msra.mxu3 %v1494_v20  ;;  %815 = vmatpush.bf16.msra.mxu1 %v1502_v21  ;;  %v1223_v20 = vld [vmem:[%s1612_s6 + $0x78] sm:$0xf]  ;;  %v1276_v25 = vor.u32 %v1472_v17, %v1273_v18 }
  0x28   : > { %727 = vmatpush.bf16.msra.mxu0 %v1493_v22 }
  0x29   : > { %1518 = vmatpush.bf16.msra.mxu3 %v1493_v22  ;;  %816 = vmatpush.bf16.msra.mxu1 %v1501_v23  ;;  %v1484_v22 = vld [vmem:[%s1612_s6 + $0x13c] sm:$0xf] }
  0x2b   : > { %728 = vmatmul.bf16.vlgmr.msra.gmra.mxu0 %v1164_v30  ;;  %v1468_v30 = vld [vmem:[%s1612_s6 + $0xb8] sm:$0xf0] }
  0x2c   : > { %788 = vmatmul.bf16.vlgmr.msra.gmra.mxu3 %v1308_v31  ;;  %817 = vmatmul.bf16.vlgmr.msra.gmra.mxu1 %v1168_v32  ;;  %v1256_v31 = vor.u32 %v1468_v30, %v1255_v29  ;;  %v1235_v32 = vld [vmem:[%s1612_s6 + $0x90] sm:$0xf] }
  0x2d   : > { %1519 = vmatpush.bf16.msrb.mxu3 %v1591_v2  ;;  %v1200_v2 = vor.u32 %v1455_v61, %v1199_v60  ;;  %v1236_v38 = vor.u32 %v1464_v33, %v1235_v32  ;;  %v1339_v60 = vld [vmem:[%s1612_s6 + $0x158] sm:$0xf]  ;;  %v1489_v61 = vld [vmem:[%s1612_s6 + $0x160] sm:$0xf0]  ;;  %v1480_v32 = vld [vmem:[%s1612_s6 + $0x118] sm:$0xf0] }
  0x31   : > { %1520 = vmatpush.bf16.msrb.mxu3 %v1507_v5  ;;  %v1231_v5 = vld [vmem:[%s1612_s6 + $0x80] sm:$0xf] }
  0x32   : > { %v1232_v7 = vor.u32 %v1462_v6, %v1231_v5  ;;  %v1291_v6 = vld [vmem:[%s1612_s6 + $0xf8] sm:$0xf] }
  0x34   : > { %1427 = vmatmul.msk.bf16.gmra.mxu2 %vm671_vm0, %v1196_v35  ;;  %v1333_v35 = vld [vmem:[%s1612_s6 + $0x15c] sm:$0xf0] }
  0x35   : > { %1521 = vmatpush.bf16.msrb.mxu3 %v1506_v9  ;;  %v1458_v9 = vld [vmem:[%s1612_s6 + $0x68] sm:$0xf0]  ;;  %v1336_v39 = vor.u32 %v1487_v34, %v1333_v35 }
  0x39   : > { %1522 = vmatpush.bf16.msrb.mxu3 %v1505_v12  ;;  %v1457_v12 = vld [vmem:[%s1612_s6 + $0x64] sm:$0xf] }
  0x3b   : > { %733 = vmatmul.bf16.gmra.mxu0 %v1176_v42  ;;  %v1471_v42 = vld [vmem:[%s1612_s6 + $0xd0] sm:$0xf0] }
  0x3c   : > { %793 = vmatmul.bf16.gmra.mxu3 %v1320_v43  ;;  %822 = vmatmul.bf16.gmra.mxu1 %v1180_v44  ;;  %v1268_v43 = vor.u32 %v1471_v42, %v1267_v41  ;;  %v1247_v44 = vld [vmem:[%s1612_s6 + $0xa8] sm:$0xf] }
  0x3d   : > { %1523 = vmatpush.bf16.msrb.mxu3 %v1504_v14  ;;  %v1212_v14 = vor.u32 %v1458_v9, %v1211_v8  ;;  %v1248_v51 = vor.u32 %v1467_v45, %v1247_v44  ;;  %v1283_v45 = vld [vmem:[%s1612_s6 + $0xf0] sm:$0xf] }
  0x41   : > { %1524 = vmatpush.bf16.msrb.mxu3 %v1503_v16  ;;  %v1216_v16 = vor.u32 %v1457_v12, %v1213_v13  ;;  %v1271_v13 = vld [vmem:[%s1612_s6 + $0xd8] sm:$0xf] }
  0x44   : > { %1428 = vmatmul.msk.bf16.gmra.mxu2 %vm671_vm0, %v1208_v47  ;;  %v1345_v47 = vld [vmem:[%s1612_s6 + $0x174] sm:$0xf0] }
  0x45   : > { %1525 = vmatpush.bf16.msrb.mxu3 %v1502_v21  ;;  %v1461_v21 = vld [vmem:[%s1612_s6 + $0x80] sm:$0xf0]  ;;  %v1348_v52 = vor.u32 %v1490_v46, %v1345_v47  ;;  %v1476_v46 = vld [vmem:[%s1612_s6 + $0xf8] sm:$0xf0] }
  0x46   : > { %v1224_v26 = vor.u32 %v1461_v21, %v1223_v20 }
  0x49   : > { %1526 = vmatpush.bf16.msrb.mxu3 %v1501_v23  ;;  %v1321_v23 = vld [vmem:[%s1612_s6 + $0x144] sm:$0xf0] }
  0x4a   : > { %v1324_v27 = vor.u32 %v1484_v22, %v1321_v23 }
  0x4b   : > { %738 = vmatmul.bf16.gmra.mxu0 %v1188_v54  ;;  %v1279_v54 = vld [vmem:[%s1612_s6 + $0xe0] sm:$0xf] }
  0x4c   : > { %798 = vmatmul.bf16.gmra.mxu3 %v1332_v55  ;;  %827 = vmatmul.bf16.gmra.mxu1 %v1192_v56  ;;  %v1474_v55 = vld [vmem:[%s1612_s6 + $0xe8] sm:$0xf0] }
  0x4d   : > { %1527 = vmatpush.bf16.msra.mxu3 %v1586_v1  ;;  %v1201_v1 = vld [vmem:[%s1612_s6 + $0x54] sm:$0xf0]  ;;  %v1280_v57 = vor.u32 %v1474_v55, %v1279_v54 }
  0x51   : > { %1528 = vmatpush.bf16.msra.mxu3 %v1603_v4  ;;  %v1204_v4 = vor.u32 %v1454_v0, %v1201_v1 }
  0x54   : > { %1429 = vmatmul.msk.bf16.gmra.mxu2 %vm671_vm0, %v1220_v59  ;;  %v1470_v59 = vld [vmem:[%s1612_s6 + $0xc8] sm:$0xf0] }
  0x55   : > { %v1260_v1 = vor.u32 %v1470_v59, %v1259_v58 }
  0x5b   : > { %743 = vmatmul.bf16.gmra.mxu0 %v1200_v2 }
  0x5c   : > { %803 = vmatmul.bf16.gmra.mxu3 %v1344_v3  ;;  %832 = vmatmul.bf16.gmra.mxu1 %v1204_v4  ;;  %v1340_v3 = vor.u32 %v1489_v61, %v1339_v60  ;;  %v1264_v4 = vor.u32 %v1469_v62, %v1261_v63  ;;  %v1043_v61 = vld [vmem:[%s1782_s13] sm:$0xff] }
  0x5d   : > { %vm1051_vm1 = vcmp.ge.f32.partialorder %v1043_v61, 0.5 }
  0x64   : > { %1430 = vmatmul.msk.bf16.gmra.mxu2 %vm671_vm0, %v1232_v7  ;;  %v1477_v7 = vld [vmem:[%s1612_s6 + $0x100] sm:$0xf0] }
  0x65   : > { %v1292_v11 = vor.u32 %v1477_v7, %v1291_v6 }
  0x6b   : > { %748 = vmatmul.bf16.gmra.mxu0 %v1212_v14  ;;  %v1473_v14 = vld [vmem:[%s1612_s6 + $0xe0] sm:$0xf0] }
  0x6c   : > { %877 = vmatmul.bf16.vlgmr.msrb.gmra.mxu3 %v1312_v15  ;;  %837 = vmatmul.bf16.gmra.mxu1 %v1216_v16  ;;  %v1351_v15 = vld [vmem:[%s1612_s6 + $0x170] sm:$0xf]  ;;  %v1492_v16 = vld [vmem:[%s1612_s6 + $0x178] sm:$0xf0]  ;;  %v1272_v22 = vor.u32 %v1473_v14, %v1271_v13  ;;  %v1297_v13 = vld [vmem:[%s1612_s6 + $0x114] sm:$0xf0] }
  0x6d   : > { %v1352_v24 = vor.u32 %v1492_v16, %v1351_v15 }
  0x74   : > { %1431 = vmatmul.msk.bf16.gmra.mxu2 %vm671_vm0, %v1244_v19  ;;  %v1755_v19 = vld [vmem:[%s1897_s2] ss:$0 sm:$0xff] }
  0x7b   : > { %753 = vmatmul.bf16.gmra.mxu0 %v1224_v26 }
  0x7c   : > { %882 = vmatmul.bf16.gmra.mxu3 %v1324_v27  ;;  %842 = vmatmul.bf16.gmra.mxu1 %v1228_v28 }
  0x84   : > { %1432 = vmatmul.msk.bf16.gmra.mxu2 %vm671_vm0, %v1256_v31  ;;  %v1303_v31 = vld [vmem:[%s1612_s6 + $0x110] sm:$0xf] }
  0x8b   : > { %758 = vmatmul.bf16.gmra.mxu0 %v1236_v38  ;;  %v1304_v38 = vor.u32 %v1480_v32, %v1303_v31 }
  0x8c   : > { %887 = vmatmul.bf16.gmra.mxu3 %v1336_v39  ;;  %847 = vmatmul.bf16.gmra.mxu1 %v1240_v40 }
  0x94   : > { %1433 = vmatmul.msk.bf16.gmra.mxu2 %vm671_vm0, %v1268_v43 }
  0x97   : > { %v1729_v50 = vpop.f32.mrf.mxu2 }
  0x9b   : > { %763 = vmatmul.bf16.gmra.mxu0 %v1248_v51  ;;  %v1285_v51 = vld [vmem:[%s1612_s6 + $0xfc] sm:$0xf0] }
  0x9c   : > { %892 = vmatmul.bf16.gmra.mxu3 %v1348_v52  ;;  %852 = vmatmul.bf16.gmra.mxu1 %v1252_v53  ;;  %v1288_v58 = vor.u32 %v1475_v49, %v1285_v51 }
  0x9f   : > { %v909_v56 = vpop.f32.mrf.mxu2 }
  0xa4   : > { %1434 = vmatmul.msk.bf16.gmra.mxu2 %vm671_vm0, %v1280_v57 }
  0xa7   : > { %v912_v0 = vpop.f32.mrf.mxu2 }
  0xa8   : > { %v729_v2 = vpop.f32.mrf.mxu0 }
  0xa9   : > { %v818_v5 = vpop.f32.mrf.mxu1  ;;  %v730_v28 = vadd.f32 %v1755_v19, %v729_v2  ;;  %v1483_v2 = vld [vmem:[%s1612_s6 + $0x130] sm:$0xf0] }
  0xab   : > { %768 = vmatmul.bf16.gmra.mxu0 %v1260_v1  ;;  %v819_v33 = vadd.f32 %v818_v5, %v730_v28  ;;  %v1315_v1 = vld [vmem:[%s1612_s6 + $0x128] sm:$0xf]  ;;  %v1486_v28 = vld [vmem:[%s1612_s6 + $0x148] sm:$0xf0] }
  0xac   : > { %1439 = vmatmul.msk.bf16.vlgmr.msra.gmra.mxu3 %vm671_vm0, %v1340_v3  ;;  %857 = vmatmul.bf16.gmra.mxu1 %v1264_v4  ;;  %v1316_v7 = vor.u32 %v1483_v2, %v1315_v1 }
  0xad   : > { %v908_v42 = vadd.f32 %v1729_v50, %v819_v33 }
  0xaf   : > { %v1743_v8 = vpop.f32.mrf.mxu3  ;;  %v914_v9 = vpop.f32.mrf.mxu2  ;;  %v987_v52 = vmax.f32 %v908_v42, 0.0 }
  0xb0   : > { %v731_v10 = vpop.f32.mrf.mxu0 }
  0xb1   : > { %v820_v12 = vpop.f32.mrf.mxu1  ;;  %v732_v26 = vadd.f32 %v1755_v19, %v731_v10  ;;  %v1295_v10 = vld [vmem:[%s1612_s6 + $0x108] sm:$0xf] }
  0xb3   : > { %v821_v30 = vadd.f32 %v820_v12, %v732_v26  ;;  %v1478_v12 = vld [vmem:[%s1612_s6 + $0x10c] sm:$0xf] }
  0xb4   : > { %1435 = vmatmul.msk.bf16.gmra.mxu2 %vm671_vm0, %v1292_v11  ;;  %v1479_v11 = vld [vmem:[%s1612_s6 + $0x110] sm:$0xf0]  ;;  %v1300_v18 = vor.u32 %v1478_v12, %v1297_v13 }
  0xb5   : > { %v910_v39 = vadd.f32 %v909_v56, %v821_v30  ;;  %v1284_v56 = vor.u32 %v1476_v46, %v1283_v45  ;;  %v1296_v16 = vor.u32 %v1479_v11, %v1295_v10 }
  0xb7   : > { %v1757_v20 = vpop.f32.mrf.mxu3  ;;  %v1759_v21 = vpop.f32.mrf.mxu2  ;;  %v988_v47 = vmax.f32 %v910_v39, 0.0 }
  0xb8   : > { %v734_v23 = vpop.f32.mrf.mxu0 }
  0xb9   : > { %v823_v27 = vpop.f32.mrf.mxu1  ;;  %v735_v29 = vadd.f32 %v1755_v19, %v734_v23  ;;  %v1019_v59 = vmax.f32 %v987_v52, %v988_v47 }
  0xbb   : > { %773 = vmatmul.bf16.gmra.mxu0 %v1272_v22  ;;  %v824_v34 = vadd.f32 %v823_v27, %v735_v29  ;;  %v1327_v27 = vld [vmem:[%s1612_s6 + $0x140] sm:$0xf] }
  0xbc   : > { %1440 = vmatmul.msk.bf16.gmra.mxu3 %vm671_vm0, %v1352_v24  ;;  %862 = vmatmul.bf16.gmra.mxu1 %v1276_v25 }
  0xbd   : > { %v913_v43 = vadd.f32 %v912_v0, %v824_v34  ;;  %v1328_v34 = vor.u32 %v1486_v28, %v1327_v27 }
  0xbf   : > { %v1767_v35 = vpop.f32.mrf.mxu3  ;;  %v1769_v36 = vpop.f32.mrf.mxu2  ;;  %v989_v53 = vmax.f32 %v913_v43, 0.0 }
  0xc0   : > { %v736_v37 = vpop.f32.mrf.mxu0  ;;  %v795_v10 = vadd.f32 %v1755_v19, %v1767_v35 }
  0xc1   : > { %v737_v40 = vadd.f32 %v1755_v19, %v736_v37  ;;  %v825_v41 = vpop.f32.mrf.mxu1 }
  0xc3   : > { %v826_v44 = vadd.f32 %v825_v41, %v737_v40 }
  0xc4   : > { %1436 = vmatmul.msk.bf16.gmra.mxu2 %vm671_vm0, %v1304_v38 }
  0xc5   : > { %v915_v48 = vadd.f32 %v914_v9, %v826_v44 }
  0xc7   : > { %v990_v50 = vmax.f32 %v915_v48, 0.0  ;;  %v1784_v54 = vpop.f32.mrf.mxu3  ;;  %v922_v55 = vpop.f32.mrf.mxu2 }
  0xc8   : > { %v739_v57 = vpop.f32.mrf.mxu0  ;;  %v797_v35 = vadd.f32 %v1755_v19, %v1784_v54 }
  0xc9   : > { %v1027_v60 = vmax.f32 %v989_v53, %v990_v50  ;;  %v828_v62 = vpop.f32.mrf.mxu1  ;;  %v740_v24 = vadd.f32 %v1755_v19, %v739_v57  ;;  %v1044_v53 = vld [vmem:[%s1782_s13 + $0x8] sm:$0xff] }
  0xca   : > { %vm1052_vm3 = vcmp.ge.f32.partialorder %v1044_v53, 0.5 }
  0xcb   : > { %v1035_v63 = vmax.f32 %v1019_v59, %v1027_v60  ;;  %778 = vmatmul.bf16.gmra.mxu0 %v1284_v56  ;;  %v829_v29 = vadd.f32 %v828_v62, %v740_v24 }
  0xcc   : > { %867 = vmatmul.bf16.gmra.mxu1 %v1288_v58 }
  0xcd   : > { %v1059_v0 = vmul.f32 2.0, %v1035_v63  ;;  %v918_v40 = vadd.f32 %v1759_v21, %v829_v29  ;;  %v792_v63 = vadd.f32 %v1755_v19, %v1757_v20 }
  0xcf   : > { %v1067_v3 = vsel %vm1051_vm1, %v1059_v0, 0.0  ;;  %v1794_v4 = vpop.f32.mrf.mxu3  ;;  %v924_v5 = vpop.f32.mrf.mxu2  ;;  %v991_v45 = vmax.f32 %v918_v40, 0.0 }
  0xd0   : > { %1076 = vst.msk [vmem:[%s1790_s17] sm:$0xff] %vm1075_vm2, %v1067_v3  ;;  %v741_v6 = vpop.f32.mrf.mxu0 }
  0xd1   : > { %v830_v9 = vpop.f32.mrf.mxu1  ;;  %v742_v22 = vadd.f32 %v1755_v19, %v741_v6 }
  0xd3   : > { %v831_v26 = vadd.f32 %v830_v9, %v742_v22 }
  0xd4   : > { %1437 = vmatmul.msk.bf16.gmra.mxu2 %vm671_vm0, %v1316_v7 }
  0xd5   : > { %v920_v37 = vadd.f32 %v1769_v36, %v831_v26 }
  0xd7   : > { %v1803_v14 = vpop.f32.mrf.mxu3  ;;  %v1805_v15 = vpop.f32.mrf.mxu2  ;;  %v992_v43 = vmax.f32 %v920_v37, 0.0 }
  0xd8   : > { %v744_v17 = vpop.f32.mrf.mxu0 }
  0xd9   : > { %v833_v23 = vpop.f32.mrf.mxu1  ;;  %v745_v25 = vadd.f32 %v1755_v19, %v744_v17  ;;  %v1020_v51 = vmax.f32 %v991_v45, %v992_v43 }
  0xdb   : > { %783 = vmatmul.bf16.gmra.mxu0 %v1296_v16  ;;  %v834_v30 = vadd.f32 %v833_v23, %v745_v25 }
  0xdc   : > { %872 = vmatmul.bf16.gmra.mxu1 %v1300_v18 }
  0xdd   : > { %v923_v41 = vadd.f32 %v922_v55, %v834_v30  ;;  %v790_v55 = vadd.f32 %v1755_v19, %v1743_v8 }
  0xdf   : > { %v1812_v31 = vpop.f32.mrf.mxu3  ;;  %v929_v32 = vpop.f32.mrf.mxu2  ;;  %v993_v46 = vmax.f32 %v923_v41, 0.0  ;;  %v1045_v41 = vld [vmem:[%s1782_s13 + $0x10] sm:$0xff] }
  0xe0   : > { %v746_v33 = vpop.f32.mrf.mxu0  ;;  %vm1053_vm4 = vcmp.ge.f32.partialorder %v1045_v41, 0.5 }
  0xe1   : > { %v747_v38 = vadd.f32 %v1755_v19, %v746_v33  ;;  %v835_v39 = vpop.f32.mrf.mxu1 }
  0xe3   : > { %v836_v42 = vadd.f32 %v835_v39, %v747_v38 }
  0xe4   : > { %1438 = vmatmul.msk.bf16.gmra.mxu2 %vm671_vm0, %v1328_v34 }
  0xe5   : > { %v925_v44 = vadd.f32 %v924_v5, %v836_v42 }
  0xe7   : > { %v994_v47 = vmax.f32 %v925_v44, 0.0  ;;  %v1818_v48 = vpop.f32.mrf.mxu3  ;;  %v932_v49 = vpop.f32.mrf.mxu2 }
  0xe8   : > { %v749_v36 = vpop.f32.mrf.mxu0 }
  0xe9   : > { %v1028_v52 = vmax.f32 %v993_v46, %v994_v47  ;;  %v838_v50 = vpop.f32.mrf.mxu1  ;;  %v750_v6 = vadd.f32 %v1755_v19, %v749_v36 }
  0xeb   : > { %v1036_v56 = vmax.f32 %v1020_v51, %v1028_v52  ;;  %v839_v11 = vadd.f32 %v838_v50, %v750_v6 }
  0xed   : > { %v1060_v21 = vmul.f32 2.0, %v1036_v56  ;;  %v928_v24 = vadd.f32 %v1805_v15, %v839_v11 }
  0xef   : > { %v1068_v57 = vsel %vm1052_vm3, %v1060_v21, 0.0  ;;  %v878_v58 = vpop.f32.mrf.mxu3  ;;  %v934_v59 = vpop.f32.mrf.mxu2  ;;  %v995_v29 = vmax.f32 %v928_v24, 0.0 }
  0xf0   : > { %1077 = vst.msk [vmem:[%s1790_s17 + $0x8] sm:$0xff] %vm1075_vm2, %v1068_v57  ;;  %v1825_v60 = vadd.f32 %v878_v58, %v790_v55  ;;  %v751_v61 = vpop.f32.mrf.mxu0 }
  0xf1   : > { %v840_v62 = vpop.f32.mrf.mxu1  ;;  %v752_v5 = vadd.f32 %v1755_v19, %v751_v61 }
  0xf3   : > { %v841_v9 = vadd.f32 %v840_v62, %v752_v5 }
  0xf5   : > { %v930_v18 = vadd.f32 %v929_v32, %v841_v9 }
  0xf7   : > { %v880_v0 = vpop.f32.mrf.mxu3  ;;  %v937_v1 = vpop.f32.mrf.mxu2  ;;  %v996_v27 = vmax.f32 %v930_v18, 0.0 }
  0xf8   : > { %v1829_v2 = vadd.f32 %v880_v0, %v792_v63  ;;  %v754_v3 = vpop.f32.mrf.mxu0 }
  0xf9   : > { %v843_v8 = vpop.f32.mrf.mxu1  ;;  %v755_v7 = vadd.f32 %v1755_v19, %v754_v3  ;;  %v1021_v39 = vmax.f32 %v995_v29, %v996_v27  ;;  %v800_v29 = vadd.f32 %v1755_v19, %v1794_v4 }
  0xfb   : > { %v844_v12 = vadd.f32 %v843_v8, %v755_v7 }
  0xfd   : > { %v933_v25 = vadd.f32 %v932_v49, %v844_v12 }
  0xff   : > { %v883_v13 = vpop.f32.mrf.mxu3  ;;  %v939_v20 = vpop.f32.mrf.mxu2  ;;  %v997_v30 = vmax.f32 %v933_v25, 0.0 }
 0x100   : > { %v1836_v16 = vadd.f32 %v883_v13, %v795_v10  ;;  %v756_v17 = vpop.f32.mrf.mxu0 }
 0x101   : > { %v757_v22 = vadd.f32 %v1755_v19, %v756_v17  ;;  %v845_v23 = vpop.f32.mrf.mxu1 }
 0x103   : > { %v846_v26 = vadd.f32 %v845_v23, %v757_v22  ;;  %v1046_v23 = vld [vmem:[%s1782_s13 + $0x18] sm:$0xff] }
 0x104   : > { %vm1054_vm5 = vcmp.ge.f32.partialorder %v1046_v23, 0.5  ;;  %v1050_v23 = vld [vmem:[%s1782_s13 + $0x38] sm:$0xff] }
 0x105   : > { %v935_v28 = vadd.f32 %v934_v59, %v846_v26  ;;  %vm1058_vm7 = vcmp.ge.f32.partialorder %v1050_v23, 0.5 }
 0x107   : > { %v998_v33 = vmax.f32 %v935_v28, 0.0  ;;  %v885_v34 = vpop.f32.mrf.mxu3  ;;  %v942_v37 = vpop.f32.mrf.mxu2 }
 0x108   : > { %v1842_v32 = vadd.f32 %v885_v34, %v797_v35  ;;  %v759_v38 = vpop.f32.mrf.mxu0 }
 0x109   : > { %v1029_v40 = vmax.f32 %v997_v30, %v998_v33  ;;  %v848_v15 = vpop.f32.mrf.mxu1  ;;  %v760_v50 = vadd.f32 %v1755_v19, %v759_v38  ;;  %v802_v30 = vadd.f32 %v1755_v19, %v1803_v14 }
 0x10b   : > { %v1037_v42 = vmax.f32 %v1021_v39, %v1029_v40  ;;  %v849_v55 = vadd.f32 %v848_v15, %v760_v50 }
 0x10d   : > { %v1061_v43 = vmul.f32 2.0, %v1037_v42  ;;  %v938_v3 = vadd.f32 %v937_v1, %v849_v55 }
 0x10f   : > { %v1069_v44 = vsel %vm1053_vm4, %v1061_v43, 0.0  ;;  %v888_v45 = vpop.f32.mrf.mxu3  ;;  %v944_v46 = vpop.f32.mrf.mxu2  ;;  %v999_v9 = vmax.f32 %v938_v3, 0.0 }
 0x110   : > { %1078 = vst.msk [vmem:[%s1790_s17 + $0x10] sm:$0xff] %vm1075_vm2, %v1069_v44  ;;  %v761_v54 = vpop.f32.mrf.mxu0  ;;  %v889_v33 = vadd.f32 %v888_v45, %v800_v29 }
 0x111   : > { %v850_v47 = vpop.f32.mrf.mxu1  ;;  %v762_v52 = vadd.f32 %v1755_v19, %v761_v54 }
 0x113   : > { %v851_v21 = vadd.f32 %v850_v47, %v762_v52 }
 0x115   : > { %v940_v62 = vadd.f32 %v939_v20, %v851_v21  ;;  %v805_v21 = vadd.f32 %v1755_v19, %v1812_v31 }
 0x117   : > { %v890_v49 = vpop.f32.mrf.mxu3  ;;  %v1847_v36 = vpop.f32.mrf.mxu2  ;;  %v1000_v6 = vmax.f32 %v940_v62, 0.0  ;;  %v807_v62 = vadd.f32 %v1755_v19, %v1818_v48 }
 0x118   : > { %v764_v51 = vpop.f32.mrf.mxu0  ;;  %v891_v34 = vadd.f32 %v890_v49, %v802_v30 }
 0x119   : > { %v853_v53 = vpop.f32.mrf.mxu1  ;;  %v765_v56 = vadd.f32 %v1755_v19, %v764_v51  ;;  %v1022_v18 = vmax.f32 %v999_v9, %v1000_v6 }
 0x11b   : > { %v854_v57 = vadd.f32 %v853_v53, %v765_v56 }
 0x11d   : > { %v943_v5 = vadd.f32 %v942_v37, %v854_v57 }
 0x11f   : > { %v893_v58 = vpop.f32.mrf.mxu3  ;;  %v949_v59 = vpop.f32.mrf.mxu2  ;;  %v1001_v10 = vmax.f32 %v943_v5, 0.0 }
 0x120   : > { %v766_v61 = vpop.f32.mrf.mxu0 }
 0x121   : > { %v767_v63 = vadd.f32 %v1755_v19, %v766_v61  ;;  %v855_v0 = vpop.f32.mrf.mxu1 }
 0x123   : > { %v856_v8 = vadd.f32 %v855_v0, %v767_v63  ;;  %v894_v63 = vadd.f32 %v893_v58, %v805_v21 }
 0x125   : > { %v945_v7 = vadd.f32 %v944_v46, %v856_v8 }
 0x127   : > { %v1002_v11 = vmax.f32 %v945_v7, 0.0  ;;  %v895_v12 = vpop.f32.mrf.mxu3  ;;  %v952_v13 = vpop.f32.mrf.mxu2 }
 0x128   : > { %v769_v17 = vpop.f32.mrf.mxu0  ;;  %v896_v5 = vadd.f32 %v895_v12, %v807_v62 }
 0x129   : > { %v1030_v22 = vmax.f32 %v1001_v10, %v1002_v11  ;;  %v858_v20 = vpop.f32.mrf.mxu1  ;;  %v770_v46 = vadd.f32 %v1755_v19, %v769_v17  ;;  %v1047_v17 = vld [vmem:[%s1782_s13 + $0x20] sm:$0xff] }
 0x12a   : > { %vm1055_vm6 = vcmp.ge.f32.partialorder %v1047_v17, 0.5 }
 0x12b   : > { %v1038_v24 = vmax.f32 %v1022_v18, %v1030_v22  ;;  %v859_v14 = vadd.f32 %v858_v20, %v770_v46 }
 0x12d   : > { %v1062_v25 = vmul.f32 2.0, %v1038_v24  ;;  %v948_v55 = vadd.f32 %v1847_v36, %v859_v14 }
 0x12f   : > { %v1070_v26 = vsel %vm1054_vm5, %v1062_v25, 0.0  ;;  %v954_v1 = vpop.f32.mrf.mxu2  ;;  %v977_v27 = vpop.f32.mrf.mxu3 }
 0x130   : > { %1079 = vst.msk [vmem:[%s1790_s17 + $0x18] sm:$0xff] %vm1075_vm2, %v1070_v26  ;;  %v771_v28 = vpop.f32.mrf.mxu0  ;;  %v978_v37 = vadd.f32 %v977_v27, %v889_v33 }
 0x131   : > { %v860_v35 = vpop.f32.mrf.mxu1  ;;  %v772_v15 = vadd.f32 %v1755_v19, %v771_v28 }
 0x132   : > { %v1015_v43 = vmax.f32 %v978_v37, 0.0 }
 0x133   : > { %v861_v47 = vadd.f32 %v860_v35, %v772_v15 }
 0x135   : > { %v950_v53 = vadd.f32 %v949_v59, %v861_v47  ;;  %v1003_v59 = vmax.f32 %v948_v55, 0.0 }
 0x137   : > { %v1860_v38 = vpop.f32.mrf.mxu2  ;;  %v979_v39 = vpop.f32.mrf.mxu3  ;;  %v1004_v0 = vmax.f32 %v950_v53, 0.0 }
 0x138   : > { %v980_v40 = vadd.f32 %v979_v39, %v891_v34  ;;  %v774_v41 = vpop.f32.mrf.mxu0 }
 0x139   : > { %v863_v42 = vpop.f32.mrf.mxu1  ;;  %v775_v4 = vadd.f32 %v1755_v19, %v774_v41  ;;  %v1023_v36 = vmax.f32 %v1003_v59, %v1004_v0 }
 0x13a   : > { %v1016_v44 = vmax.f32 %v980_v40, 0.0 }
 0x13b   : > { %v864_v45 = vadd.f32 %v863_v42, %v775_v4 }
 0x13c   : > { %v1026_v54 = vmax.f32 %v1015_v43, %v1016_v44 }
 0x13d   : > { %v953_v57 = vadd.f32 %v952_v13, %v864_v45 }
 0x13f   : > { %v959_v49 = vpop.f32.mrf.mxu2  ;;  %v982_v51 = vpop.f32.mrf.mxu3  ;;  %v1005_v6 = vmax.f32 %v953_v57, 0.0 }
 0x140   : > { %v776_v52 = vpop.f32.mrf.mxu0  ;;  %v983_v8 = vadd.f32 %v982_v51, %v894_v63 }
 0x141   : > { %v777_v50 = vadd.f32 %v1755_v19, %v776_v52  ;;  %v865_v56 = vpop.f32.mrf.mxu1 }
 0x142   : > { %v1017_v22 = vmax.f32 %v983_v8, 0.0 }
 0x143   : > { %v866_v61 = vadd.f32 %v865_v56, %v777_v50 }
 0x145   : > { %v955_v3 = vadd.f32 %v954_v1, %v866_v61 }
 0x147   : > { %v1006_v7 = vmax.f32 %v955_v3, 0.0  ;;  %v962_v9 = vpop.f32.mrf.mxu2  ;;  %v984_v10 = vpop.f32.mrf.mxu3 }
 0x148   : > { %v985_v31 = vadd.f32 %v984_v10, %v896_v5  ;;  %v779_v11 = vpop.f32.mrf.mxu0 }
 0x149   : > { %v1031_v13 = vmax.f32 %v1005_v6, %v1006_v7  ;;  %v868_v18 = vpop.f32.mrf.mxu1  ;;  %v780_v37 = vadd.f32 %v1755_v19, %v779_v11  ;;  %v1049_v7 = vld [vmem:[%s1782_s13 + $0x30] sm:$0xff] }
 0x14a   : > { %v1018_v48 = vmax.f32 %v985_v31, 0.0  ;;  %vm1057_vm9 = vcmp.ge.f32.partialorder %v1049_v7, 0.5 }
 0x14b   : > { %v1039_v58 = vmax.f32 %v1023_v36, %v1031_v13  ;;  %v869_v15 = vadd.f32 %v868_v18, %v780_v37 }
 0x14c   : > { %v1034_v12 = vmax.f32 %v1017_v22, %v1018_v48 }
 0x14d   : > { %v1063_v20 = vmul.f32 2.0, %v1039_v58  ;;  %v958_v51 = vadd.f32 %v1860_v38, %v869_v15 }
 0x14e   : > { %v1042_v24 = vmax.f32 %v1026_v54, %v1034_v12 }
 0x14f   : > { %v1071_v25 = vsel %vm1055_vm6, %v1063_v20, 0.0  ;;  %v964_v26 = vpop.f32.mrf.mxu2  ;;  %v1007_v21 = vmax.f32 %v958_v51, 0.0 }
 0x150   : > { %1080 = vst.msk [vmem:[%s1790_s17 + $0x20] sm:$0xff] %vm1075_vm2, %v1071_v25  ;;  %v1066_v1 = vmul.f32 2.0, %v1042_v24  ;;  %v781_v27 = vpop.f32.mrf.mxu0 }
 0x151   : > { %v870_v28 = vpop.f32.mrf.mxu1  ;;  %v782_v33 = vadd.f32 %v1755_v19, %v781_v27 }
 0x152   : > { %v1074_v35 = vsel %vm1058_vm7, %v1066_v1, 0.0 }
 0x153   : > { %1083 = vst.msk [vmem:[%s1790_s17 + $0x38] sm:$0xff] %vm1075_vm2, %v1074_v35  ;;  %v871_v40 = vadd.f32 %v870_v28, %v782_v33 }
 0x155   : > { %v960_v4 = vadd.f32 %v959_v49, %v871_v40 }
 0x157   : > { %v967_v29 = vpop.f32.mrf.mxu2 }
 0x158   : > { %v784_v30 = vpop.f32.mrf.mxu0  ;;  %v968_v41 = vadd.f32 %v967_v29, %v1825_v60  ;;  %v1008_v60 = vmax.f32 %v960_v4, 0.0 }
 0x159   : > { %v873_v34 = vpop.f32.mrf.mxu1  ;;  %v785_v39 = vadd.f32 %v1755_v19, %v784_v30 }
 0x15a   : > { %v1011_v14 = vmax.f32 %v968_v41, 0.0  ;;  %v1024_v49 = vmax.f32 %v1007_v21, %v1008_v60 }
 0x15b   : > { %v874_v42 = vadd.f32 %v873_v34, %v785_v39 }
 0x15d   : > { %v963_v52 = vadd.f32 %v962_v9, %v874_v42 }
 0x15f   : > { %v969_v43 = vpop.f32.mrf.mxu2  ;;  %v1009_v55 = vmax.f32 %v963_v52, 0.0 }
 0x160   : > { %v970_v44 = vadd.f32 %v969_v43, %v1829_v2  ;;  %v786_v46 = vpop.f32.mrf.mxu0 }
 0x161   : > { %v787_v54 = vadd.f32 %v1755_v19, %v786_v46  ;;  %v875_v47 = vpop.f32.mrf.mxu1  ;;  %v1048_v19 = vld [vmem:[%s1782_s13 + $0x28] sm:$0xff] }
 0x162   : > { %v1012_v45 = vmax.f32 %v970_v44, 0.0  ;;  %vm1056_vm8 = vcmp.ge.f32.partialorder %v1048_v19, 0.5 }
 0x163   : > { %v876_v53 = vadd.f32 %v875_v47, %v787_v54 }
 0x164   : > { %v1025_v50 = vmax.f32 %v1011_v14, %v1012_v45 }
 0x165   : > { %v965_v56 = vadd.f32 %v964_v26, %v876_v53 }
 0x167   : > { %v1010_v57 = vmax.f32 %v965_v56, 0.0  ;;  %v972_v2 = vpop.f32.mrf.mxu2 }
 0x168   : > { %v973_v38 = vadd.f32 %v972_v2, %v1836_v16 }
 0x169   : > { %v1032_v61 = vmax.f32 %v1009_v55, %v1010_v57 }
 0x16a   : > { %v1013_v8 = vmax.f32 %v973_v38, 0.0 }
 0x16b   : > { %v1040_v62 = vmax.f32 %v1024_v49, %v1032_v61 }
 0x16d   : > { %v1064_v63 = vmul.f32 2.0, %v1040_v62 }
 0x16f   : > { %v1072_v0 = vsel %vm1056_vm8, %v1064_v63, 0.0  ;;  %v974_v3 = vpop.f32.mrf.mxu2 }
 0x170   : > { %1081 = vst.msk [vmem:[%s1790_s17 + $0x28] sm:$0xff] %vm1075_vm2, %v1072_v0  ;;  %v975_v5 = vadd.f32 %v974_v3, %v1842_v32 }
 0x172   : > { %v1014_v59 = vmax.f32 %v975_v5, 0.0 }
 0x174   : > { %v1033_v6 = vmax.f32 %v1013_v8, %v1014_v59 }
 0x176   : > { %v1041_v9 = vmax.f32 %v1025_v50, %v1033_v6 }
 0x178   : > { %v1065_v10 = vmul.f32 2.0, %v1041_v9 }
 0x17a   : > { %v1073_v31 = vsel %vm1057_vm9, %v1065_v10, 0.0 }
 0x17b   : > { %1082 = vst.msk [vmem:[%s1790_s17 + $0x30] sm:$0xff] %vm1075_vm2, %v1073_v31 }
 0x17c PF: > { %s14_s15 = sadd.s32 1, %s1545_s15  }
 0x17d   : > { %p11_p4 = scmp.ge.s32.totalorder %s14_s15, 4  }
 0x17f   :  { %13 = sbr.rel (!%p11_p4) target bundleno = 1 (0x1), region = 69 }

</bundles_post_ra>
